<compile_context>
chip_gen: v7x
topology: tpu7x:2x2x1
jax: 0.10.0
libtpu: 0.0.40
codegen_flags: <defaults>
</compile_context>

<pallas_src>
import functools

import jax
import jax.numpy as jnp
from jax.experimental import pallas as pl
from jax.experimental.pallas import tpu as pltpu

BN_EPS = 1e-5
LANE = 128


def _round_up(x, m):
    return (x + m - 1) // m * m


# ---------------------------------------------------------------------------
# Kernels
# ---------------------------------------------------------------------------
def _conv3x3_kernel(*refs, ho, wo, fold_input_bn, pad_output):
    """3x3 / pad=1 / stride=1 conv of one image, as 9 shifted-tap MXU dots.

    refs (fold_input_bn=False): x, w, out, sum, sq
    refs (fold_input_bn=True):  x, w, in_scale, in_shift, out, sum, sq

    x_ref:   (1, ho+2, wo+2, cp)  bf16  zero-padded image (borders == 0)
    w_ref:   (9, cp, coutp)       bf16  per-tap weights (zero-padded channels)
    scale/shift: (1, cp) f32  per-input-channel affine (BN1 fold) + ReLU
    out_ref: (1, ho(+2), wo(+2), coutp) bf16 raw conv output
    sum_ref/sq_ref: (1, 8, coutp) f32 per-image BN partial sums
    """
    if fold_input_bn:
        x_ref, w_ref, sc_ref, sh_ref, out_ref, sum_ref, sq_ref = refs
        scale = sc_ref[...]
        shift = sh_ref[...]
    else:
        x_ref, w_ref, out_ref, sum_ref, sq_ref = refs
        scale = shift = None

    cp = x_ref.shape[-1]
    coutp = w_ref.shape[-1]

    if fold_input_bn:
        # Base (row, col) indices of the interior test; reused by all 9 taps.
        rows0 = jax.lax.broadcasted_iota(jnp.int32, (ho, wo, cp), 0)
        cols0 = jax.lax.broadcasted_iota(jnp.int32, (ho, wo, cp), 1)

    acc = jnp.zeros((ho * wo, coutp), jnp.float32)
    for kh in range(3):
        for kw in range(3):
            tap = x_ref[0, kh:kh + ho, kw:kw + wo, :]            # (ho, wo, cp)
            if fold_input_bn:
                t = tap.astype(jnp.float32) * scale + shift
                t = jnp.maximum(t, 0.0)
                # Keep the conv's spatial zero padding exact: positions that
                # came from the padded border must contribute 0 (the affine
                # shift would otherwise make them non-zero).
                rows = rows0 + kh
                cols = cols0 + kw
                interior = ((rows >= 1) & (rows <= ho) &
                            (cols >= 1) & (cols <= wo))
                t = jnp.where(interior, t, 0.0)
                tap = t.astype(jnp.bfloat16)
            acc = acc + jnp.dot(tap.reshape(ho * wo, cp),
                                w_ref[kh * 3 + kw],
                                preferred_element_type=jnp.float32)

    # BN batch-stat partials from the exact f32 accumulator.  Reduce in
    # groups of 8 sublanes (pure VALU adds, single unmasked (8, coutp) store);
    # the final 8-row fold happens in the tiny host-side reduction.
    sum_ref[...] = acc.reshape(-1, 8, coutp).sum(axis=0)[None]
    sq_ref[...] = (acc * acc).reshape(-1, 8, coutp).sum(axis=0)[None]

    out = acc.reshape(ho, wo, coutp).astype(out_ref.dtype)
    if pad_output:
        # Write into a spatially padded buffer so the next conv can consume
        # it directly (zero borders preserved).
        out_ref[...] = jnp.zeros_like(out_ref)
        out_ref[0, 1:1 + ho, 1:1 + wo, :] = out
    else:
        out_ref[...] = out[None]


def _bn_residual_kernel(y_ref, sc_ref, sh_ref, res_ref, out_ref, *,
                        ho, wo, apply_relu):
    """BN2 affine + identity residual + optional ReLU for one image.

    y_ref:   (1, ho, wo, coutp)     bf16 raw conv2 output
    sc/sh:   (1, coutp)             f32 folded BN2 scale / shift
    res_ref: (1, ho+2, wo+2, cp)    bf16 padded input image (residual source)
    out_ref: (1, ho, wo, coutp)     f32
    """
    y = y_ref[0].astype(jnp.float32)
    res = res_ref[0, 1:1 + ho, 1:1 + wo, :].astype(jnp.float32)
    out = y * sc_ref[...] + sh_ref[...] + res
    if apply_relu:
        out = jnp.maximum(out, 0.0)
    out_ref[...] = out[None].astype(out_ref.dtype)


# ---------------------------------------------------------------------------
# Pallas-call wrappers
# ---------------------------------------------------------------------------
def _conv3x3_pass(xp, w_slab, *, ho, wo, in_scale=None, in_shift=None,
                  pad_output):
    """One conv pass over the whole batch (grid = one image per step)."""
    n, hp_in, wp_in, cp = xp.shape
    assert hp_in == ho + 2 and wp_in == wo + 2
    coutp = w_slab.shape[-1]
    fold = in_scale is not None
    hp_out, wp_out = (ho + 2, wo + 2) if pad_output else (ho, wo)

    kernel = functools.partial(_conv3x3_kernel, ho=ho, wo=wo,
                               fold_input_bn=fold, pad_output=pad_output)

    in_specs = [pl.BlockSpec((1, hp_in, wp_in, cp), lambda i: (i, 0, 0, 0)),
                pl.BlockSpec((9, cp, coutp), lambda i: (0, 0, 0))]
    args = [xp, w_slab]
    if fold:
        in_specs += [pl.BlockSpec((1, cp), lambda i: (0, 0)),
                     pl.BlockSpec((1, cp), lambda i: (0, 0))]
        args += [in_scale, in_shift]

    out_specs = [pl.BlockSpec((1, hp_out, wp_out, coutp),
                              lambda i: (i, 0, 0, 0)),
                 pl.BlockSpec((1, 8, coutp), lambda i: (i, 0, 0)),
                 pl.BlockSpec((1, 8, coutp), lambda i: (i, 0, 0))]
    out_shape = [jax.ShapeDtypeStruct((n, hp_out, wp_out, coutp), jnp.bfloat16),
                 jax.ShapeDtypeStruct((n, 8, coutp), jnp.float32),
                 jax.ShapeDtypeStruct((n, 8, coutp), jnp.float32)]

    flops = 2 * n * ho * wo * 9 * cp * coutp
    bytes_accessed = (xp.size * 2 + w_slab.size * 2
                      + n * hp_out * wp_out * coutp * 2
                      + 2 * n * 8 * coutp * 4)

    return pl.pallas_call(
        kernel,
        grid=(n,),
        in_specs=in_specs,
        out_specs=out_specs,
        out_shape=out_shape,
        compiler_params=pltpu.CompilerParams(
            dimension_semantics=("parallel",)),
        cost_estimate=pl.CostEstimate(flops=flops, transcendentals=0,
                                      bytes_accessed=bytes_accessed),
    )(*args)


def _bn_residual_pass(y2, scale2, shift2, xp, *, ho, wo, apply_relu):
    n, _, _, coutp = y2.shape
    cp = xp.shape[-1]
    kernel = functools.partial(_bn_residual_kernel, ho=ho, wo=wo,
                               apply_relu=apply_relu)
    return pl.pallas_call(
        kernel,
        grid=(n,),
        in_specs=[pl.BlockSpec((1, ho, wo, coutp), lambda i: (i, 0, 0, 0)),
                  pl.BlockSpec((1, coutp), lambda i: (0, 0)),
                  pl.BlockSpec((1, coutp), lambda i: (0, 0)),
                  pl.BlockSpec((1, ho + 2, wo + 2, cp),
                               lambda i: (i, 0, 0, 0))],
        out_specs=pl.BlockSpec((1, ho, wo, coutp), lambda i: (i, 0, 0, 0)),
        out_shape=jax.ShapeDtypeStruct((n, ho, wo, coutp), jnp.float32),
        compiler_params=pltpu.CompilerParams(
            dimension_semantics=("parallel",)),
    )(y2, scale2, shift2, xp)


def _fold_bn(sum_part, sq_part, gamma, beta, m):
    """Fold per-image BN partials into per-channel scale/shift (batch stats)."""
    total = jnp.sum(sum_part, axis=(0, 1))            # (coutp,)
    total_sq = jnp.sum(sq_part, axis=(0, 1))
    mean = total / float(m)
    var = jnp.maximum(total_sq / float(m) - mean * mean, 0.0)
    rstd = jax.lax.rsqrt(var + BN_EPS)
    scale = gamma * rstd
    shift = beta - mean * scale
    return (scale.reshape(1, -1).astype(jnp.float32),
            shift.reshape(1, -1).astype(jnp.float32))


# ---------------------------------------------------------------------------
# Layout glue
# ---------------------------------------------------------------------------
def _prep_weight(w_hwio, cin_p, cout_p):
    """(3,3,Cin,Cout) -> (9, Cin_p, Cout_p) bf16 per-tap weight slab."""
    _, _, cin, cout = w_hwio.shape
    w = jnp.pad(w_hwio, ((0, 0), (0, 0),
                         (0, cin_p - cin), (0, cout_p - cout)))
    return w.reshape(9, cin_p, cout_p).astype(jnp.bfloat16)


def _pad_vec(v, n):
    return jnp.pad(v, (0, n - v.shape[0]))


# ---------------------------------------------------------------------------
# Parameters / forward
# ---------------------------------------------------------------------------
def init_basic_block_params(key, inplanes, planes):
    """Deterministic synthetic parameters.

    Conv weights are stored HWIO = (3, 3, Cin, Cout).  To load real PyTorch
    weights (Cout, Cin, 3, 3), use w.transpose(2, 3, 1, 0).
    """
    k1, k2, k3, k4, k5, k6 = jax.random.split(key, 6)
    w1 = jax.random.normal(k1, (3, 3, inplanes, planes), jnp.float32) \
        * (2.0 / (inplanes * 9)) ** 0.5
    w2 = jax.random.normal(k2, (3, 3, planes, planes), jnp.float32) \
        * (2.0 / (planes * 9)) ** 0.5
    gamma1 = 1.0 + 0.1 * jax.random.normal(k3, (planes,), jnp.float32)
    beta1 = 0.1 * jax.random.normal(k4, (planes,), jnp.float32)
    gamma2 = 1.0 + 0.1 * jax.random.normal(k5, (planes,), jnp.float32)
    beta2 = 0.1 * jax.random.normal(k6, (planes,), jnp.float32)
    return {"w1": w1, "w2": w2, "gamma1": gamma1, "beta1": beta1,
            "gamma2": gamma2, "beta2": beta2}


def basic_block_forward(x_nchw, params, stride=1, last=False):
    """Matches BasicBlock.forward (training-mode BN, identity residual)."""
    # TODO(synk): downsample branch (arbitrary nn.Sequential) not implemented;
    # identity residual requires stride == 1 and inplanes == planes.
    x = jnp.transpose(x_nchw, (0, 2, 3, 1)).astype(jnp.float32)    # NHWC
    n, h, w, cin = x.shape
    planes = params["w1"].shape[-1]
    assert stride == 1 and cin == planes, "identity residual path only"
    ho, wo = h, w
    assert (ho * wo) % 8 == 0, "spatial size must be a multiple of 8"

    cp = _round_up(cin, LANE)
    coutp = _round_up(planes, LANE)       # == cp (cin == planes asserted)
    m = n * ho * wo                       # true BN sample count

    # Zero-padded (spatially and along channels), lane-dense bf16 input.
    xp = jnp.pad(x, ((0, 0), (1, 1), (1, 1), (0, cp - cin))
                 ).astype(jnp.bfloat16)

    w1 = _prep_weight(params["w1"], cp, coutp)
    w2 = _prep_weight(params["w2"], coutp, coutp)
    g1 = _pad_vec(params["gamma1"], coutp)
    b1 = _pad_vec(params["beta1"], coutp)
    g2 = _pad_vec(params["gamma2"], coutp)
    b2 = _pad_vec(params["beta2"], coutp)

    # ---- Pass A: conv1 (raw, spatially padded output) + BN1 partials -------
    y1p, s1, q1 = _conv3x3_pass(xp, w1, ho=ho, wo=wo, pad_output=True)
    scale1, shift1 = _fold_bn(s1, q1, g1, b1, m)

    # ---- Pass B: conv2 with BN1+ReLU folded into its input + BN2 partials --
    y2, s2, q2 = _conv3x3_pass(y1p, w2, ho=ho, wo=wo,
                               in_scale=scale1, in_shift=shift1,
                               pad_output=False)
    scale2, shift2 = _fold_bn(s2, q2, g2, b2, m)

    # ---- Pass C: BN2 + identity residual + (ReLU unless last) --------------
    out = _bn_residual_pass(y2, scale2, shift2, xp, ho=ho, wo=wo,
                            apply_relu=not last)
    out = out[..., :planes]
    return jnp.transpose(out, (0, 3, 1, 2))                         # NCHW


# ---------------------------------------------------------------------------
# Pure-JAX reference (test harness only)
# ---------------------------------------------------------------------------
def _reference_forward(x_nchw, params, stride=1, last=False):
    x = jnp.transpose(x_nchw, (0, 2, 3, 1))

    def conv(h, w, s):
        return jax.lax.conv_general_dilated(
            h, w, window_strides=(s, s), padding=((1, 1), (1, 1)),
            dimension_numbers=("NHWC", "HWIO", "NHWC"))

    def bn(h, gamma, beta):
        mean = jnp.mean(h, axis=(0, 1, 2))
        var = jnp.mean(jnp.square(h - mean), axis=(0, 1, 2))
        return (h - mean) * jax.lax.rsqrt(var + BN_EPS) * gamma + beta

    out = jnp.maximum(
        bn(conv(x, params["w1"], stride), params["gamma1"], params["beta1"]),
        0.0)
    out = bn(conv(out, params["w2"], 1),
             params["gamma2"], params["beta2"]) + x
    if not last:
        out = jnp.maximum(out, 0.0)
    return jnp.transpose(out, (0, 3, 1, 2))


if __name__ == "__main__":
    key = jax.random.PRNGKey(0)
    kx, kp = jax.random.split(key)

    N, C, H, W = 2, 4, 16, 16          # inplanes = planes = 4, stride = 1
    x = jax.random.normal(kx, (N, C, H, W), jnp.float32)
    params = init_basic_block_params(kp, inplanes=C, planes=C)

    fwd = jax.jit(functools.partial(basic_block_forward, stride=1, last=False))
    out = fwd(x, params)
    jax.block_until_ready(out)
    assert out.shape == (N, C, H, W), out.shape

    ref = _reference_forward(x, params, stride=1, last=False)
    err = float(jnp.max(jnp.abs(out - ref)))
    assert err < 1e-1, f"max abs err vs reference: {err}"
    print("KERNEL_OK")
</pallas_src>

<mosaic_0001>
module attributes {stable_mosaic.version = 11 : i64} {
  func.func @_conv3x3_kernel(%arg0: i32, %arg1: memref<1x18x18x128xbf16, #tpu.memory_space<vmem>>, %arg2: memref<9x128x128xbf16, #tpu.memory_space<vmem>>, %arg3: memref<1x18x18x128xbf16, #tpu.memory_space<vmem>>, %arg4: memref<1x8x128xf32, #tpu.memory_space<vmem>>, %arg5: memref<1x8x128xf32, #tpu.memory_space<vmem>>) attributes {dimension_semantics = [#tpu.dimension_semantics<parallel>], iteration_bounds = array<i64: 2>, scalar_prefetch = 0 : i64, scratch_operands = 0 : i64, tpu.core_type = #tpu.core_type<tc>, window_params = [{transform_indices = @transform_0, window_bounds = array<i64: 1, 18, 18, 128>}, {pipeline_mode = #tpu.pipeline_mode<synchronous>, transform_indices = @transform_1, window_bounds = array<i64: 9, 128, 128>}, {transform_indices = @transform_2, window_bounds = array<i64: 1, 18, 18, 128>}, {transform_indices = @transform_3, window_bounds = array<i64: 1, 8, 128>}, {transform_indices = @transform_4, window_bounds = array<i64: 1, 8, 128>}]} {
    %cst = arith.constant 0.000000e+00 : f32
    %0 = vector.broadcast %cst : f32 to vector<256x128xf32>
    %c0 = arith.constant 0 : index
    %c0_0 = arith.constant 0 : index
    %c0_1 = arith.constant 0 : index
    %c0_2 = arith.constant 0 : index
    %1 = vector.load %arg1[%c0, %c0_0, %c0_1, %c0_2] : memref<1x18x18x128xbf16, #tpu.memory_space<vmem>>, vector<1x16x16x128xbf16>
    %2 = vector.shape_cast %1 : vector<1x16x16x128xbf16> to vector<16x16x128xbf16>
    %3 = vector.shape_cast %2 : vector<16x16x128xbf16> to vector<256x128xbf16>
    %c0_3 = arith.constant 0 : index
    %c0_4 = arith.constant 0 : index
    %c0_5 = arith.constant 0 : index
    %4 = vector.load %arg2[%c0_3, %c0_4, %c0_5] : memref<9x128x128xbf16, #tpu.memory_space<vmem>>, vector<1x128x128xbf16>
    %5 = vector.shape_cast %4 : vector<1x128x128xbf16> to vector<128x128xbf16>
    %cst_6 = arith.constant dense<0.000000e+00> : vector<256x128xf32>
    %6 = tpu.matmul %3, %5, %cst_6 {dimension_numbers = #tpu.dot_dimension_numbers<[1], [0], [0], [1], [0, 0, 1, 1], [], []>} : vector<256x128xbf16>, vector<128x128xbf16>, vector<256x128xf32> -> vector<256x128xf32>
    %7 = arith.addf %0, %6 : vector<256x128xf32>
    %c0_7 = arith.constant 0 : index
    %c0_8 = arith.constant 0 : index
    %c1 = arith.constant 1 : index
    %c0_9 = arith.constant 0 : index
    %8 = vector.load %arg1[%c0_7, %c0_8, %c1, %c0_9] : memref<1x18x18x128xbf16, #tpu.memory_space<vmem>>, vector<1x16x16x128xbf16>
    %9 = vector.shape_cast %8 : vector<1x16x16x128xbf16> to vector<16x16x128xbf16>
    %10 = vector.shape_cast %9 : vector<16x16x128xbf16> to vector<256x128xbf16>
    %c1_10 = arith.constant 1 : index
    %c0_11 = arith.constant 0 : index
    %c0_12 = arith.constant 0 : index
    %11 = vector.load %arg2[%c1_10, %c0_11, %c0_12] : memref<9x128x128xbf16, #tpu.memory_space<vmem>>, vector<1x128x128xbf16>
    %12 = vector.shape_cast %11 : vector<1x128x128xbf16> to vector<128x128xbf16>
    %cst_13 = arith.constant dense<0.000000e+00> : vector<256x128xf32>
    %13 = tpu.matmul %10, %12, %cst_13 {dimension_numbers = #tpu.dot_dimension_numbers<[1], [0], [0], [1], [0, 0, 1, 1], [], []>} : vector<256x128xbf16>, vector<128x128xbf16>, vector<256x128xf32> -> vector<256x128xf32>
    %14 = arith.addf %7, %13 : vector<256x128xf32>
    %c0_14 = arith.constant 0 : index
    %c0_15 = arith.constant 0 : index
    %c2 = arith.constant 2 : index
    %c0_16 = arith.constant 0 : index
    %15 = vector.load %arg1[%c0_14, %c0_15, %c2, %c0_16] : memref<1x18x18x128xbf16, #tpu.memory_space<vmem>>, vector<1x16x16x128xbf16>
    %16 = vector.shape_cast %15 : vector<1x16x16x128xbf16> to vector<16x16x128xbf16>
    %17 = vector.shape_cast %16 : vector<16x16x128xbf16> to vector<256x128xbf16>
    %c2_17 = arith.constant 2 : index
    %c0_18 = arith.constant 0 : index
    %c0_19 = arith.constant 0 : index
    %18 = vector.load %arg2[%c2_17, %c0_18, %c0_19] : memref<9x128x128xbf16, #tpu.memory_space<vmem>>, vector<1x128x128xbf16>
    %19 = vector.shape_cast %18 : vector<1x128x128xbf16> to vector<128x128xbf16>
    %cst_20 = arith.constant dense<0.000000e+00> : vector<256x128xf32>
    %20 = tpu.matmul %17, %19, %cst_20 {dimension_numbers = #tpu.dot_dimension_numbers<[1], [0], [0], [1], [0, 0, 1, 1], [], []>} : vector<256x128xbf16>, vector<128x128xbf16>, vector<256x128xf32> -> vector<256x128xf32>
    %21 = arith.addf %14, %20 : vector<256x128xf32>
    %c0_21 = arith.constant 0 : index
    %c1_22 = arith.constant 1 : index
    %c0_23 = arith.constant 0 : index
    %c0_24 = arith.constant 0 : index
    %22 = vector.load %arg1[%c0_21, %c1_22, %c0_23, %c0_24] : memref<1x18x18x128xbf16, #tpu.memory_space<vmem>>, vector<1x16x16x128xbf16>
    %23 = vector.shape_cast %22 : vector<1x16x16x128xbf16> to vector<16x16x128xbf16>
    %24 = vector.shape_cast %23 : vector<16x16x128xbf16> to vector<256x128xbf16>
    %c3 = arith.constant 3 : index
    %c0_25 = arith.constant 0 : index
    %c0_26 = arith.constant 0 : index
    %25 = vector.load %arg2[%c3, %c0_25, %c0_26] : memref<9x128x128xbf16, #tpu.memory_space<vmem>>, vector<1x128x128xbf16>
    %26 = vector.shape_cast %25 : vector<1x128x128xbf16> to vector<128x128xbf16>
    %cst_27 = arith.constant dense<0.000000e+00> : vector<256x128xf32>
    %27 = tpu.matmul %24, %26, %cst_27 {dimension_numbers = #tpu.dot_dimension_numbers<[1], [0], [0], [1], [0, 0, 1, 1], [], []>} : vector<256x128xbf16>, vector<128x128xbf16>, vector<256x128xf32> -> vector<256x128xf32>
    %28 = arith.addf %21, %27 : vector<256x128xf32>
    %c0_28 = arith.constant 0 : index
    %c1_29 = arith.constant 1 : index
    %c1_30 = arith.constant 1 : index
    %c0_31 = arith.constant 0 : index
    %29 = vector.load %arg1[%c0_28, %c1_29, %c1_30, %c0_31] : memref<1x18x18x128xbf16, #tpu.memory_space<vmem>>, vector<1x16x16x128xbf16>
    %30 = vector.shape_cast %29 : vector<1x16x16x128xbf16> to vector<16x16x128xbf16>
    %31 = vector.shape_cast %30 : vector<16x16x128xbf16> to vector<256x128xbf16>
    %c4 = arith.constant 4 : index
    %c0_32 = arith.constant 0 : index
    %c0_33 = arith.constant 0 : index
    %32 = vector.load %arg2[%c4, %c0_32, %c0_33] : memref<9x128x128xbf16, #tpu.memory_space<vmem>>, vector<1x128x128xbf16>
    %33 = vector.shape_cast %32 : vector<1x128x128xbf16> to vector<128x128xbf16>
    %cst_34 = arith.constant dense<0.000000e+00> : vector<256x128xf32>
    %34 = tpu.matmul %31, %33, %cst_34 {dimension_numbers = #tpu.dot_dimension_numbers<[1], [0], [0], [1], [0, 0, 1, 1], [], []>} : vector<256x128xbf16>, vector<128x128xbf16>, vector<256x128xf32> -> vector<256x128xf32>
    %35 = arith.addf %28, %34 : vector<256x128xf32>
    %c0_35 = arith.constant 0 : index
    %c1_36 = arith.constant 1 : index
    %c2_37 = arith.constant 2 : index
    %c0_38 = arith.constant 0 : index
    %36 = vector.load %arg1[%c0_35, %c1_36, %c2_37, %c0_38] : memref<1x18x18x128xbf16, #tpu.memory_space<vmem>>, vector<1x16x16x128xbf16>
    %37 = vector.shape_cast %36 : vector<1x16x16x128xbf16> to vector<16x16x128xbf16>
    %38 = vector.shape_cast %37 : vector<16x16x128xbf16> to vector<256x128xbf16>
    %c5 = arith.constant 5 : index
    %c0_39 = arith.constant 0 : index
    %c0_40 = arith.constant 0 : index
    %39 = vector.load %arg2[%c5, %c0_39, %c0_40] : memref<9x128x128xbf16, #tpu.memory_space<vmem>>, vector<1x128x128xbf16>
    %40 = vector.shape_cast %39 : vector<1x128x128xbf16> to vector<128x128xbf16>
    %cst_41 = arith.constant dense<0.000000e+00> : vector<256x128xf32>
    %41 = tpu.matmul %38, %40, %cst_41 {dimension_numbers = #tpu.dot_dimension_numbers<[1], [0], [0], [1], [0, 0, 1, 1], [], []>} : vector<256x128xbf16>, vector<128x128xbf16>, vector<256x128xf32> -> vector<256x128xf32>
    %42 = arith.addf %35, %41 : vector<256x128xf32>
    %c0_42 = arith.constant 0 : index
    %c2_43 = arith.constant 2 : index
    %c0_44 = arith.constant 0 : index
    %c0_45 = arith.constant 0 : index
    %43 = vector.load %arg1[%c0_42, %c2_43, %c0_44, %c0_45] : memref<1x18x18x128xbf16, #tpu.memory_space<vmem>>, vector<1x16x16x128xbf16>
    %44 = vector.shape_cast %43 : vector<1x16x16x128xbf16> to vector<16x16x128xbf16>
    %45 = vector.shape_cast %44 : vector<16x16x128xbf16> to vector<256x128xbf16>
    %c6 = arith.constant 6 : index
    %c0_46 = arith.constant 0 : index
    %c0_47 = arith.constant 0 : index
    %46 = vector.load %arg2[%c6, %c0_46, %c0_47] : memref<9x128x128xbf16, #tpu.memory_space<vmem>>, vector<1x128x128xbf16>
    %47 = vector.shape_cast %46 : vector<1x128x128xbf16> to vector<128x128xbf16>
    %cst_48 = arith.constant dense<0.000000e+00> : vector<256x128xf32>
    %48 = tpu.matmul %45, %47, %cst_48 {dimension_numbers = #tpu.dot_dimension_numbers<[1], [0], [0], [1], [0, 0, 1, 1], [], []>} : vector<256x128xbf16>, vector<128x128xbf16>, vector<256x128xf32> -> vector<256x128xf32>
    %49 = arith.addf %42, %48 : vector<256x128xf32>
    %c0_49 = arith.constant 0 : index
    %c2_50 = arith.constant 2 : index
    %c1_51 = arith.constant 1 : index
    %c0_52 = arith.constant 0 : index
    %50 = vector.load %arg1[%c0_49, %c2_50, %c1_51, %c0_52] : memref<1x18x18x128xbf16, #tpu.memory_space<vmem>>, vector<1x16x16x128xbf16>
    %51 = vector.shape_cast %50 : vector<1x16x16x128xbf16> to vector<16x16x128xbf16>
    %52 = vector.shape_cast %51 : vector<16x16x128xbf16> to vector<256x128xbf16>
    %c7 = arith.constant 7 : index
    %c0_53 = arith.constant 0 : index
    %c0_54 = arith.constant 0 : index
    %53 = vector.load %arg2[%c7, %c0_53, %c0_54] : memref<9x128x128xbf16, #tpu.memory_space<vmem>>, vector<1x128x128xbf16>
    %54 = vector.shape_cast %53 : vector<1x128x128xbf16> to vector<128x128xbf16>
    %cst_55 = arith.constant dense<0.000000e+00> : vector<256x128xf32>
    %55 = tpu.matmul %52, %54, %cst_55 {dimension_numbers = #tpu.dot_dimension_numbers<[1], [0], [0], [1], [0, 0, 1, 1], [], []>} : vector<256x128xbf16>, vector<128x128xbf16>, vector<256x128xf32> -> vector<256x128xf32>
    %56 = arith.addf %49, %55 : vector<256x128xf32>
    %c0_56 = arith.constant 0 : index
    %c2_57 = arith.constant 2 : index
    %c2_58 = arith.constant 2 : index
    %c0_59 = arith.constant 0 : index
    %57 = vector.load %arg1[%c0_56, %c2_57, %c2_58, %c0_59] : memref<1x18x18x128xbf16, #tpu.memory_space<vmem>>, vector<1x16x16x128xbf16>
    %58 = vector.shape_cast %57 : vector<1x16x16x128xbf16> to vector<16x16x128xbf16>
    %59 = vector.shape_cast %58 : vector<16x16x128xbf16> to vector<256x128xbf16>
    %c8 = arith.constant 8 : index
    %c0_60 = arith.constant 0 : index
    %c0_61 = arith.constant 0 : index
    %60 = vector.load %arg2[%c8, %c0_60, %c0_61] : memref<9x128x128xbf16, #tpu.memory_space<vmem>>, vector<1x128x128xbf16>
    %61 = vector.shape_cast %60 : vector<1x128x128xbf16> to vector<128x128xbf16>
    %cst_62 = arith.constant dense<0.000000e+00> : vector<256x128xf32>
    %62 = tpu.matmul %59, %61, %cst_62 {dimension_numbers = #tpu.dot_dimension_numbers<[1], [0], [0], [1], [0, 0, 1, 1], [], []>} : vector<256x128xbf16>, vector<128x128xbf16>, vector<256x128xf32> -> vector<256x128xf32>
    %63 = arith.addf %56, %62 : vector<256x128xf32>
    %64 = vector.shape_cast %63 : vector<256x128xf32> to vector<32x8x128xf32>
    %cst_63 = arith.constant dense<0.000000e+00> : vector<8x128xf32>
    %65 = vector.multi_reduction <add>, %64, %cst_63 [0] : vector<32x8x128xf32> to vector<8x128xf32>
    %66 = vector.shape_cast %65 : vector<8x128xf32> to vector<1x8x128xf32>
    %c0_64 = arith.constant 0 : index
    %c0_65 = arith.constant 0 : index
    %c0_66 = arith.constant 0 : index
    %67 = vector.load %arg4[%c0_64, %c0_65, %c0_66] : memref<1x8x128xf32, #tpu.memory_space<vmem>>, vector<1x8x128xf32>
    tpu.vector_store %arg4[%c0_64, %c0_65, %c0_66], %66 {strides = array<i32>} : memref<1x8x128xf32, #tpu.memory_space<vmem>>, vector<1x8x128xf32>,
    %68 = arith.mulf %63, %63 : vector<256x128xf32>
    %69 = vector.shape_cast %68 : vector<256x128xf32> to vector<32x8x128xf32>
    %cst_67 = arith.constant dense<0.000000e+00> : vector<8x128xf32>
    %70 = vector.multi_reduction <add>, %69, %cst_67 [0] : vector<32x8x128xf32> to vector<8x128xf32>
    %71 = vector.shape_cast %70 : vector<8x128xf32> to vector<1x8x128xf32>
    %c0_68 = arith.constant 0 : index
    %c0_69 = arith.constant 0 : index
    %c0_70 = arith.constant 0 : index
    %72 = vector.load %arg5[%c0_68, %c0_69, %c0_70] : memref<1x8x128xf32, #tpu.memory_space<vmem>>, vector<1x8x128xf32>
    tpu.vector_store %arg5[%c0_68, %c0_69, %c0_70], %71 {strides = array<i32>} : memref<1x8x128xf32, #tpu.memory_space<vmem>>, vector<1x8x128xf32>,
    %73 = vector.shape_cast %63 : vector<256x128xf32> to vector<16x16x128xf32>
    %74 = arith.truncf %73 : vector<16x16x128xf32> to vector<16x16x128xbf16>
    %cst_71 = arith.constant 0.000000e+00 : bf16
    %75 = vector.broadcast %cst_71 : bf16 to vector<1x18x18x128xbf16>
    %c0_72 = arith.constant 0 : index
    %c0_73 = arith.constant 0 : index
    %c0_74 = arith.constant 0 : index
    %c0_75 = arith.constant 0 : index
    %76 = vector.load %arg3[%c0_72, %c0_73, %c0_74, %c0_75] : memref<1x18x18x128xbf16, #tpu.memory_space<vmem>>, vector<1x18x18x128xbf16>
    tpu.vector_store %arg3[%c0_72, %c0_73, %c0_74, %c0_75], %75 {strides = array<i32>} : memref<1x18x18x128xbf16, #tpu.memory_space<vmem>>, vector<1x18x18x128xbf16>,
    %c0_76 = arith.constant 0 : index
    %c1_77 = arith.constant 1 : index
    %c1_78 = arith.constant 1 : index
    %c0_79 = arith.constant 0 : index
    %77 = vector.load %arg3[%c0_76, %c1_77, %c1_78, %c0_79] : memref<1x18x18x128xbf16, #tpu.memory_space<vmem>>, vector<1x16x16x128xbf16>
    %78 = vector.shape_cast %77 : vector<1x16x16x128xbf16> to vector<16x16x128xbf16>
    %79 = vector.shape_cast %74 : vector<16x16x128xbf16> to vector<1x16x16x128xbf16>
    tpu.vector_store %arg3[%c0_76, %c1_77, %c1_78, %c0_79], %79 {strides = array<i32>} : memref<1x18x18x128xbf16, #tpu.memory_space<vmem>>, vector<1x16x16x128xbf16>,
    return
  }
  func.func @transform_0(%arg0: i32) -> (i32, i32, i32, i32) {
    %c0_i32 = arith.constant 0 : i32
    %c0_i32_0 = arith.constant 0 : i32
    %c0_i32_1 = arith.constant 0 : i32
    %c0_i32_2 = arith.constant 0 : i32
    return %arg0, %c0_i32, %c0_i32_0, %c0_i32_1 : i32, i32, i32, i32
  }
  func.func @transform_1(%arg0: i32) -> (i32, i32, i32) {
    %c0_i32 = arith.constant 0 : i32
    %c0_i32_0 = arith.constant 0 : i32
    %c0_i32_1 = arith.constant 0 : i32
    %c0_i32_2 = arith.constant 0 : i32
    return %c0_i32, %c0_i32_0, %c0_i32_1 : i32, i32, i32
  }
  func.func @transform_2(%arg0: i32) -> (i32, i32, i32, i32) {
    %c0_i32 = arith.constant 0 : i32
    %c0_i32_0 = arith.constant 0 : i32
    %c0_i32_1 = arith.constant 0 : i32
    %c0_i32_2 = arith.constant 0 : i32
    return %arg0, %c0_i32, %c0_i32_0, %c0_i32_1 : i32, i32, i32, i32
  }
  func.func @transform_3(%arg0: i32) -> (i32, i32, i32) {
    %c0_i32 = arith.constant 0 : i32
    %c0_i32_0 = arith.constant 0 : i32
    %c0_i32_1 = arith.constant 0 : i32
    return %arg0, %c0_i32, %c0_i32_0 : i32, i32, i32
  }
  func.func @transform_4(%arg0: i32) -> (i32, i32, i32) {
    %c0_i32 = arith.constant 0 : i32
    %c0_i32_0 = arith.constant 0 : i32
    %c0_i32_1 = arith.constant 0 : i32
    return %arg0, %c0_i32, %c0_i32_0 : i32, i32, i32
  }
}

module attributes {stable_mosaic.version = 11 : i64} {
  func.func @_bn_residual_kernel(%arg0: i32, %arg1: memref<1x16x16x128xbf16, #tpu.memory_space<vmem>>, %arg2: memref<1x128xf32, #tpu.memory_space<vmem>>, %arg3: memref<1x128xf32, #tpu.memory_space<vmem>>, %arg4: memref<1x18x18x128xbf16, #tpu.memory_space<vmem>>, %arg5: memref<1x16x16x128xf32, #tpu.memory_space<vmem>>) attributes {dimension_semantics = [#tpu.dimension_semantics<parallel>], iteration_bounds = array<i64: 2>, scalar_prefetch = 0 : i64, scratch_operands = 0 : i64, tpu.core_type = #tpu.core_type<tc>, window_params = [{transform_indices = @transform_0, window_bounds = array<i64: 1, 16, 16, 128>}, {pipeline_mode = #tpu.pipeline_mode<synchronous>, transform_indices = @transform_1, window_bounds = array<i64: 1, 128>}, {pipeline_mode = #tpu.pipeline_mode<synchronous>, transform_indices = @transform_2, window_bounds = array<i64: 1, 128>}, {transform_indices = @transform_3, window_bounds = array<i64: 1, 18, 18, 128>}, {transform_indices = @transform_4, window_bounds = array<i64: 1, 16, 16, 128>}]} {
    %c0 = arith.constant 0 : index
    %c0_0 = arith.constant 0 : index
    %c0_1 = arith.constant 0 : index
    %c0_2 = arith.constant 0 : index
    %0 = vector.load %arg1[%c0, %c0_0, %c0_1, %c0_2] : memref<1x16x16x128xbf16, #tpu.memory_space<vmem>>, vector<1x16x16x128xbf16>
    %1 = vector.shape_cast %0 : vector<1x16x16x128xbf16> to vector<16x16x128xbf16>
    %2 = arith.extf %1 : vector<16x16x128xbf16> to vector<16x16x128xf32>
    %c0_3 = arith.constant 0 : index
    %c1 = arith.constant 1 : index
    %c1_4 = arith.constant 1 : index
    %c0_5 = arith.constant 0 : index
    %3 = vector.load %arg4[%c0_3, %c1, %c1_4, %c0_5] : memref<1x18x18x128xbf16, #tpu.memory_space<vmem>>, vector<1x16x16x128xbf16>
    %4 = vector.shape_cast %3 : vector<1x16x16x128xbf16> to vector<16x16x128xbf16>
    %5 = arith.extf %4 : vector<16x16x128xbf16> to vector<16x16x128xf32>
    %c0_6 = arith.constant 0 : index
    %c0_7 = arith.constant 0 : index
    %6 = vector.load %arg2[%c0_6, %c0_7] : memref<1x128xf32, #tpu.memory_space<vmem>>, vector<1x128xf32>
    %7 = vector.shape_cast %6 : vector<1x128xf32> to vector<1x1x128xf32>
    %8 = vector.broadcast %7 : vector<1x1x128xf32> to vector<16x16x128xf32>
    %9 = arith.mulf %2, %8 : vector<16x16x128xf32>
    %c0_8 = arith.constant 0 : index
    %c0_9 = arith.constant 0 : index
    %10 = vector.load %arg3[%c0_8, %c0_9] : memref<1x128xf32, #tpu.memory_space<vmem>>, vector<1x128xf32>
    %11 = vector.shape_cast %10 : vector<1x128xf32> to vector<1x1x128xf32>
    %12 = vector.broadcast %11 : vector<1x1x128xf32> to vector<16x16x128xf32>
    %13 = arith.addf %9, %12 : vector<16x16x128xf32>
    %14 = arith.addf %13, %5 : vector<16x16x128xf32>
    %cst = arith.constant 0.000000e+00 : f32
    %15 = vector.broadcast %cst : f32 to vector<16x16x128xf32>
    %16 = arith.maximumf %14, %15 : vector<16x16x128xf32>
    %17 = vector.shape_cast %16 : vector<16x16x128xf32> to vector<1x16x16x128xf32>
    %c0_10 = arith.constant 0 : index
    %c0_11 = arith.constant 0 : index
    %c0_12 = arith.constant 0 : index
    %c0_13 = arith.constant 0 : index
    %18 = vector.load %arg5[%c0_10, %c0_11, %c0_12, %c0_13] : memref<1x16x16x128xf32, #tpu.memory_space<vmem>>, vector<1x16x16x128xf32>
    tpu.vector_store %arg5[%c0_10, %c0_11, %c0_12, %c0_13], %17 {strides = array<i32>} : memref<1x16x16x128xf32, #tpu.memory_space<vmem>>, vector<1x16x16x128xf32>,
    return
  }
  func.func @transform_0(%arg0: i32) -> (i32, i32, i32, i32) {
    %c0_i32 = arith.constant 0 : i32
    %c0_i32_0 = arith.constant 0 : i32
    %c0_i32_1 = arith.constant 0 : i32
    %c0_i32_2 = arith.constant 0 : i32
    return %arg0, %c0_i32, %c0_i32_0, %c0_i32_1 : i32, i32, i32, i32
  }
  func.func @transform_1(%arg0: i32) -> (i32, i32) {
    %c0_i32 = arith.constant 0 : i32
    %c0_i32_0 = arith.constant 0 : i32
    %c0_i32_1 = arith.constant 0 : i32
    return %c0_i32, %c0_i32_0 : i32, i32
  }
  func.func @transform_2(%arg0: i32) -> (i32, i32) {
    %c0_i32 = arith.constant 0 : i32
    %c0_i32_0 = arith.constant 0 : i32
    %c0_i32_1 = arith.constant 0 : i32
    return %c0_i32, %c0_i32_0 : i32, i32
  }
  func.func @transform_3(%arg0: i32) -> (i32, i32, i32, i32) {
    %c0_i32 = arith.constant 0 : i32
    %c0_i32_0 = arith.constant 0 : i32
    %c0_i32_1 = arith.constant 0 : i32
    %c0_i32_2 = arith.constant 0 : i32
    return %arg0, %c0_i32, %c0_i32_0, %c0_i32_1 : i32, i32, i32, i32
  }
  func.func @transform_4(%arg0: i32) -> (i32, i32, i32, i32) {
    %c0_i32 = arith.constant 0 : i32
    %c0_i32_0 = arith.constant 0 : i32
    %c0_i32_1 = arith.constant 0 : i32
    %c0_i32_2 = arith.constant 0 : i32
    return %arg0, %c0_i32, %c0_i32_0, %c0_i32_1 : i32, i32, i32, i32
  }
}

module attributes {stable_mosaic.version = 11 : i64} {
  func.func @_conv3x3_kernel(%arg0: i32, %arg1: memref<1x18x18x128xbf16, #tpu.memory_space<vmem>>, %arg2: memref<9x128x128xbf16, #tpu.memory_space<vmem>>, %arg3: memref<1x128xf32, #tpu.memory_space<vmem>>, %arg4: memref<1x128xf32, #tpu.memory_space<vmem>>, %arg5: memref<1x16x16x128xbf16, #tpu.memory_space<vmem>>, %arg6: memref<1x8x128xf32, #tpu.memory_space<vmem>>, %arg7: memref<1x8x128xf32, #tpu.memory_space<vmem>>) attributes {dimension_semantics = [#tpu.dimension_semantics<parallel>], iteration_bounds = array<i64: 2>, scalar_prefetch = 0 : i64, scratch_operands = 0 : i64, tpu.core_type = #tpu.core_type<tc>, window_params = [{transform_indices = @transform_0, window_bounds = array<i64: 1, 18, 18, 128>}, {pipeline_mode = #tpu.pipeline_mode<synchronous>, transform_indices = @transform_1, window_bounds = array<i64: 9, 128, 128>}, {pipeline_mode = #tpu.pipeline_mode<synchronous>, transform_indices = @transform_2, window_bounds = array<i64: 1, 128>}, {pipeline_mode = #tpu.pipeline_mode<synchronous>, transform_indices = @transform_3, window_bounds = array<i64: 1, 128>}, {transform_indices = @transform_4, window_bounds = array<i64: 1, 16, 16, 128>}, {transform_indices = @transform_5, window_bounds = array<i64: 1, 8, 128>}, {transform_indices = @transform_6, window_bounds = array<i64: 1, 8, 128>}]} {
    %c0 = arith.constant 0 : index
    %c0_0 = arith.constant 0 : index
    %0 = vector.load %arg3[%c0, %c0_0] : memref<1x128xf32, #tpu.memory_space<vmem>>, vector<1x128xf32>
    %c0_1 = arith.constant 0 : index
    %c0_2 = arith.constant 0 : index
    %1 = vector.load %arg4[%c0_1, %c0_2] : memref<1x128xf32, #tpu.memory_space<vmem>>, vector<1x128xf32>
    %2 = tpu.iota {dimensions = array<i32: 0>} : vector<16x16x128xi32>
    %3 = tpu.iota {dimensions = array<i32: 1>} : vector<16x16x128xi32>
    %cst = arith.constant 0.000000e+00 : f32
    %4 = vector.broadcast %cst : f32 to vector<256x128xf32>
    %c0_3 = arith.constant 0 : index
    %c0_4 = arith.constant 0 : index
    %c0_5 = arith.constant 0 : index
    %c0_6 = arith.constant 0 : index
    %5 = vector.load %arg1[%c0_3, %c0_4, %c0_5, %c0_6] : memref<1x18x18x128xbf16, #tpu.memory_space<vmem>>, vector<1x16x16x128xbf16>
    %6 = vector.shape_cast %5 : vector<1x16x16x128xbf16> to vector<16x16x128xbf16>
    %7 = arith.extf %6 : vector<16x16x128xbf16> to vector<16x16x128xf32>
    %8 = vector.shape_cast %0 : vector<1x128xf32> to vector<1x1x128xf32>
    %9 = vector.broadcast %8 : vector<1x1x128xf32> to vector<16x16x128xf32>
    %10 = arith.mulf %7, %9 : vector<16x16x128xf32>
    %11 = vector.shape_cast %1 : vector<1x128xf32> to vector<1x1x128xf32>
    %12 = vector.broadcast %11 : vector<1x1x128xf32> to vector<16x16x128xf32>
    %13 = arith.addf %10, %12 : vector<16x16x128xf32>
    %cst_7 = arith.constant 0.000000e+00 : f32
    %14 = vector.broadcast %cst_7 : f32 to vector<16x16x128xf32>
    %15 = arith.maximumf %13, %14 : vector<16x16x128xf32>
    %c0_i32 = arith.constant 0 : i32
    %16 = vector.broadcast %c0_i32 : i32 to vector<16x16x128xi32>
    %17 = arith.addi %2, %16 : vector<16x16x128xi32>
    %c0_i32_8 = arith.constant 0 : i32
    %18 = vector.broadcast %c0_i32_8 : i32 to vector<16x16x128xi32>
    %19 = arith.addi %3, %18 : vector<16x16x128xi32>
    %c1_i32 = arith.constant 1 : i32
    %20 = vector.broadcast %c1_i32 : i32 to vector<16x16x128xi32>
    %21 = arith.cmpi sge, %17, %20 : vector<16x16x128xi32>
    %c16_i32 = arith.constant 16 : i32
    %22 = vector.broadcast %c16_i32 : i32 to vector<16x16x128xi32>
    %23 = arith.cmpi sle, %17, %22 : vector<16x16x128xi32>
    %24 = arith.andi %21, %23 : vector<16x16x128xi1>
    %c1_i32_9 = arith.constant 1 : i32
    %25 = vector.broadcast %c1_i32_9 : i32 to vector<16x16x128xi32>
    %26 = arith.cmpi sge, %19, %25 : vector<16x16x128xi32>
    %27 = arith.andi %24, %26 : vector<16x16x128xi1>
    %c16_i32_10 = arith.constant 16 : i32
    %28 = vector.broadcast %c16_i32_10 : i32 to vector<16x16x128xi32>
    %29 = arith.cmpi sle, %19, %28 : vector<16x16x128xi32>
    %30 = arith.andi %27, %29 : vector<16x16x128xi1>
    %cst_11 = arith.constant 0.000000e+00 : f32
    %31 = vector.broadcast %cst_11 : f32 to vector<16x16x128xf32>
    %32 = arith.select %30, %15, %31 : vector<16x16x128xi1>, vector<16x16x128xf32>
    %33 = arith.truncf %32 : vector<16x16x128xf32> to vector<16x16x128xbf16>
    %34 = vector.shape_cast %33 : vector<16x16x128xbf16> to vector<256x128xbf16>
    %c0_12 = arith.constant 0 : index
    %c0_13 = arith.constant 0 : index
    %c0_14 = arith.constant 0 : index
    %35 = vector.load %arg2[%c0_12, %c0_13, %c0_14] : memref<9x128x128xbf16, #tpu.memory_space<vmem>>, vector<1x128x128xbf16>
    %36 = vector.shape_cast %35 : vector<1x128x128xbf16> to vector<128x128xbf16>
    %cst_15 = arith.constant dense<0.000000e+00> : vector<256x128xf32>
    %37 = tpu.matmul %34, %36, %cst_15 {dimension_numbers = #tpu.dot_dimension_numbers<[1], [0], [0], [1], [0, 0, 1, 1], [], []>} : vector<256x128xbf16>, vector<128x128xbf16>, vector<256x128xf32> -> vector<256x128xf32>
    %38 = arith.addf %4, %37 : vector<256x128xf32>
    %c0_16 = arith.constant 0 : index
    %c0_17 = arith.constant 0 : index
    %c1 = arith.constant 1 : index
    %c0_18 = arith.constant 0 : index
    %39 = vector.load %arg1[%c0_16, %c0_17, %c1, %c0_18] : memref<1x18x18x128xbf16, #tpu.memory_space<vmem>>, vector<1x16x16x128xbf16>
    %40 = vector.shape_cast %39 : vector<1x16x16x128xbf16> to vector<16x16x128xbf16>
    %41 = arith.extf %40 : vector<16x16x128xbf16> to vector<16x16x128xf32>
    %42 = vector.shape_cast %0 : vector<1x128xf32> to vector<1x1x128xf32>
    %43 = vector.broadcast %42 : vector<1x1x128xf32> to vector<16x16x128xf32>
    %44 = arith.mulf %41, %43 : vector<16x16x128xf32>
    %45 = vector.shape_cast %1 : vector<1x128xf32> to vector<1x1x128xf32>
    %46 = vector.broadcast %45 : vector<1x1x128xf32> to vector<16x16x128xf32>
    %47 = arith.addf %44, %46 : vector<16x16x128xf32>
    %cst_19 = arith.constant 0.000000e+00 : f32
    %48 = vector.broadcast %cst_19 : f32 to vector<16x16x128xf32>
    %49 = arith.maximumf %47, %48 : vector<16x16x128xf32>
    %c0_i32_20 = arith.constant 0 : i32
    %50 = vector.broadcast %c0_i32_20 : i32 to vector<16x16x128xi32>
    %51 = arith.addi %2, %50 : vector<16x16x128xi32>
    %c1_i32_21 = arith.constant 1 : i32
    %52 = vector.broadcast %c1_i32_21 : i32 to vector<16x16x128xi32>
    %53 = arith.addi %3, %52 : vector<16x16x128xi32>
    %c1_i32_22 = arith.constant 1 : i32
    %54 = vector.broadcast %c1_i32_22 : i32 to vector<16x16x128xi32>
    %55 = arith.cmpi sge, %51, %54 : vector<16x16x128xi32>
    %c16_i32_23 = arith.constant 16 : i32
    %56 = vector.broadcast %c16_i32_23 : i32 to vector<16x16x128xi32>
    %57 = arith.cmpi sle, %51, %56 : vector<16x16x128xi32>
    %58 = arith.andi %55, %57 : vector<16x16x128xi1>
    %c1_i32_24 = arith.constant 1 : i32
    %59 = vector.broadcast %c1_i32_24 : i32 to vector<16x16x128xi32>
    %60 = arith.cmpi sge, %53, %59 : vector<16x16x128xi32>
    %61 = arith.andi %58, %60 : vector<16x16x128xi1>
    %c16_i32_25 = arith.constant 16 : i32
    %62 = vector.broadcast %c16_i32_25 : i32 to vector<16x16x128xi32>
    %63 = arith.cmpi sle, %53, %62 : vector<16x16x128xi32>
    %64 = arith.andi %61, %63 : vector<16x16x128xi1>
    %cst_26 = arith.constant 0.000000e+00 : f32
    %65 = vector.broadcast %cst_26 : f32 to vector<16x16x128xf32>
    %66 = arith.select %64, %49, %65 : vector<16x16x128xi1>, vector<16x16x128xf32>
    %67 = arith.truncf %66 : vector<16x16x128xf32> to vector<16x16x128xbf16>
    %68 = vector.shape_cast %67 : vector<16x16x128xbf16> to vector<256x128xbf16>
    %c1_27 = arith.constant 1 : index
    %c0_28 = arith.constant 0 : index
    %c0_29 = arith.constant 0 : index
    %69 = vector.load %arg2[%c1_27, %c0_28, %c0_29] : memref<9x128x128xbf16, #tpu.memory_space<vmem>>, vector<1x128x128xbf16>
    %70 = vector.shape_cast %69 : vector<1x128x128xbf16> to vector<128x128xbf16>
    %cst_30 = arith.constant dense<0.000000e+00> : vector<256x128xf32>
    %71 = tpu.matmul %68, %70, %cst_30 {dimension_numbers = #tpu.dot_dimension_numbers<[1], [0], [0], [1], [0, 0, 1, 1], [], []>} : vector<256x128xbf16>, vector<128x128xbf16>, vector<256x128xf32> -> vector<256x128xf32>
    %72 = arith.addf %38, %71 : vector<256x128xf32>
    %c0_31 = arith.constant 0 : index
    %c0_32 = arith.constant 0 : index
    %c2 = arith.constant 2 : index
    %c0_33 = arith.constant 0 : index
    %73 = vector.load %arg1[%c0_31, %c0_32, %c2, %c0_33] : memref<1x18x18x128xbf16, #tpu.memory_space<vmem>>, vector<1x16x16x128xbf16>
    %74 = vector.shape_cast %73 : vector<1x16x16x128xbf16> to vector<16x16x128xbf16>
    %75 = arith.extf %74 : vector<16x16x128xbf16> to vector<16x16x128xf32>
    %76 = vector.shape_cast %0 : vector<1x128xf32> to vector<1x1x128xf32>
    %77 = vector.broadcast %76 : vector<1x1x128xf32> to vector<16x16x128xf32>
    %78 = arith.mulf %75, %77 : vector<16x16x128xf32>
    %79 = vector.shape_cast %1 : vector<1x128xf32> to vector<1x1x128xf32>
    %80 = vector.broadcast %79 : vector<1x1x128xf32> to vector<16x16x128xf32>
    %81 = arith.addf %78, %80 : vector<16x16x128xf32>
    %cst_34 = arith.constant 0.000000e+00 : f32
    %82 = vector.broadcast %cst_34 : f32 to vector<16x16x128xf32>
    %83 = arith.maximumf %81, %82 : vector<16x16x128xf32>
    %c0_i32_35 = arith.constant 0 : i32
    %84 = vector.broadcast %c0_i32_35 : i32 to vector<16x16x128xi32>
    %85 = arith.addi %2, %84 : vector<16x16x128xi32>
    %c2_i32 = arith.constant 2 : i32
    %86 = vector.broadcast %c2_i32 : i32 to vector<16x16x128xi32>
    %87 = arith.addi %3, %86 : vector<16x16x128xi32>
    %c1_i32_36 = arith.constant 1 : i32
    %88 = vector.broadcast %c1_i32_36 : i32 to vector<16x16x128xi32>
    %89 = arith.cmpi sge, %85, %88 : vector<16x16x128xi32>
    %c16_i32_37 = arith.constant 16 : i32
    %90 = vector.broadcast %c16_i32_37 : i32 to vector<16x16x128xi32>
    %91 = arith.cmpi sle, %85, %90 : vector<16x16x128xi32>
    %92 = arith.andi %89, %91 : vector<16x16x128xi1>
    %c1_i32_38 = arith.constant 1 : i32
    %93 = vector.broadcast %c1_i32_38 : i32 to vector<16x16x128xi32>
    %94 = arith.cmpi sge, %87, %93 : vector<16x16x128xi32>
    %95 = arith.andi %92, %94 : vector<16x16x128xi1>
    %c16_i32_39 = arith.constant 16 : i32
    %96 = vector.broadcast %c16_i32_39 : i32 to vector<16x16x128xi32>
    %97 = arith.cmpi sle, %87, %96 : vector<16x16x128xi32>
    %98 = arith.andi %95, %97 : vector<16x16x128xi1>
    %cst_40 = arith.constant 0.000000e+00 : f32
    %99 = vector.broadcast %cst_40 : f32 to vector<16x16x128xf32>
    %100 = arith.select %98, %83, %99 : vector<16x16x128xi1>, vector<16x16x128xf32>
    %101 = arith.truncf %100 : vector<16x16x128xf32> to vector<16x16x128xbf16>
    %102 = vector.shape_cast %101 : vector<16x16x128xbf16> to vector<256x128xbf16>
    %c2_41 = arith.constant 2 : index
    %c0_42 = arith.constant 0 : index
    %c0_43 = arith.constant 0 : index
    %103 = vector.load %arg2[%c2_41, %c0_42, %c0_43] : memref<9x128x128xbf16, #tpu.memory_space<vmem>>, vector<1x128x128xbf16>
    %104 = vector.shape_cast %103 : vector<1x128x128xbf16> to vector<128x128xbf16>
    %cst_44 = arith.constant dense<0.000000e+00> : vector<256x128xf32>
    %105 = tpu.matmul %102, %104, %cst_44 {dimension_numbers = #tpu.dot_dimension_numbers<[1], [0], [0], [1], [0, 0, 1, 1], [], []>} : vector<256x128xbf16>, vector<128x128xbf16>, vector<256x128xf32> -> vector<256x128xf32>
    %106 = arith.addf %72, %105 : vector<256x128xf32>
    %c0_45 = arith.constant 0 : index
    %c1_46 = arith.constant 1 : index
    %c0_47 = arith.constant 0 : index
    %c0_48 = arith.constant 0 : index
    %107 = vector.load %arg1[%c0_45, %c1_46, %c0_47, %c0_48] : memref<1x18x18x128xbf16, #tpu.memory_space<vmem>>, vector<1x16x16x128xbf16>
    %108 = vector.shape_cast %107 : vector<1x16x16x128xbf16> to vector<16x16x128xbf16>
    %109 = arith.extf %108 : vector<16x16x128xbf16> to vector<16x16x128xf32>
    %110 = vector.shape_cast %0 : vector<1x128xf32> to vector<1x1x128xf32>
    %111 = vector.broadcast %110 : vector<1x1x128xf32> to vector<16x16x128xf32>
    %112 = arith.mulf %109, %111 : vector<16x16x128xf32>
    %113 = vector.shape_cast %1 : vector<1x128xf32> to vector<1x1x128xf32>
    %114 = vector.broadcast %113 : vector<1x1x128xf32> to vector<16x16x128xf32>
    %115 = arith.addf %112, %114 : vector<16x16x128xf32>
    %cst_49 = arith.constant 0.000000e+00 : f32
    %116 = vector.broadcast %cst_49 : f32 to vector<16x16x128xf32>
    %117 = arith.maximumf %115, %116 : vector<16x16x128xf32>
    %c1_i32_50 = arith.constant 1 : i32
    %118 = vector.broadcast %c1_i32_50 : i32 to vector<16x16x128xi32>
    %119 = arith.addi %2, %118 : vector<16x16x128xi32>
    %c0_i32_51 = arith.constant 0 : i32
    %120 = vector.broadcast %c0_i32_51 : i32 to vector<16x16x128xi32>
    %121 = arith.addi %3, %120 : vector<16x16x128xi32>
    %c1_i32_52 = arith.constant 1 : i32
    %122 = vector.broadcast %c1_i32_52 : i32 to vector<16x16x128xi32>
    %123 = arith.cmpi sge, %119, %122 : vector<16x16x128xi32>
    %c16_i32_53 = arith.constant 16 : i32
    %124 = vector.broadcast %c16_i32_53 : i32 to vector<16x16x128xi32>
    %125 = arith.cmpi sle, %119, %124 : vector<16x16x128xi32>
    %126 = arith.andi %123, %125 : vector<16x16x128xi1>
    %c1_i32_54 = arith.constant 1 : i32
    %127 = vector.broadcast %c1_i32_54 : i32 to vector<16x16x128xi32>
    %128 = arith.cmpi sge, %121, %127 : vector<16x16x128xi32>
    %129 = arith.andi %126, %128 : vector<16x16x128xi1>
    %c16_i32_55 = arith.constant 16 : i32
    %130 = vector.broadcast %c16_i32_55 : i32 to vector<16x16x128xi32>
    %131 = arith.cmpi sle, %121, %130 : vector<16x16x128xi32>
    %132 = arith.andi %129, %131 : vector<16x16x128xi1>
    %cst_56 = arith.constant 0.000000e+00 : f32
    %133 = vector.broadcast %cst_56 : f32 to vector<16x16x128xf32>
    %134 = arith.select %132, %117, %133 : vector<16x16x128xi1>, vector<16x16x128xf32>
    %135 = arith.truncf %134 : vector<16x16x128xf32> to vector<16x16x128xbf16>
    %136 = vector.shape_cast %135 : vector<16x16x128xbf16> to vector<256x128xbf16>
    %c3 = arith.constant 3 : index
    %c0_57 = arith.constant 0 : index
    %c0_58 = arith.constant 0 : index
    %137 = vector.load %arg2[%c3, %c0_57, %c0_58] : memref<9x128x128xbf16, #tpu.memory_space<vmem>>, vector<1x128x128xbf16>
    %138 = vector.shape_cast %137 : vector<1x128x128xbf16> to vector<128x128xbf16>
    %cst_59 = arith.constant dense<0.000000e+00> : vector<256x128xf32>
    %139 = tpu.matmul %136, %138, %cst_59 {dimension_numbers = #tpu.dot_dimension_numbers<[1], [0], [0], [1], [0, 0, 1, 1], [], []>} : vector<256x128xbf16>, vector<128x128xbf16>, vector<256x128xf32> -> vector<256x128xf32>
    %140 = arith.addf %106, %139 : vector<256x128xf32>
    %c0_60 = arith.constant 0 : index
    %c1_61 = arith.constant 1 : index
    %c1_62 = arith.constant 1 : index
    %c0_63 = arith.constant 0 : index
    %141 = vector.load %arg1[%c0_60, %c1_61, %c1_62, %c0_63] : memref<1x18x18x128xbf16, #tpu.memory_space<vmem>>, vector<1x16x16x128xbf16>
    %142 = vector.shape_cast %141 : vector<1x16x16x128xbf16> to vector<16x16x128xbf16>
    %143 = arith.extf %142 : vector<16x16x128xbf16> to vector<16x16x128xf32>
    %144 = vector.shape_cast %0 : vector<1x128xf32> to vector<1x1x128xf32>
    %145 = vector.broadcast %144 : vector<1x1x128xf32> to vector<16x16x128xf32>
    %146 = arith.mulf %143, %145 : vector<16x16x128xf32>
    %147 = vector.shape_cast %1 : vector<1x128xf32> to vector<1x1x128xf32>
    %148 = vector.broadcast %147 : vector<1x1x128xf32> to vector<16x16x128xf32>
    %149 = arith.addf %146, %148 : vector<16x16x128xf32>
    %cst_64 = arith.constant 0.000000e+00 : f32
    %150 = vector.broadcast %cst_64 : f32 to vector<16x16x128xf32>
    %151 = arith.maximumf %149, %150 : vector<16x16x128xf32>
    %c1_i32_65 = arith.constant 1 : i32
    %152 = vector.broadcast %c1_i32_65 : i32 to vector<16x16x128xi32>
    %153 = arith.addi %2, %152 : vector<16x16x128xi32>
    %c1_i32_66 = arith.constant 1 : i32
    %154 = vector.broadcast %c1_i32_66 : i32 to vector<16x16x128xi32>
    %155 = arith.addi %3, %154 : vector<16x16x128xi32>
    %c1_i32_67 = arith.constant 1 : i32
    %156 = vector.broadcast %c1_i32_67 : i32 to vector<16x16x128xi32>
    %157 = arith.cmpi sge, %153, %156 : vector<16x16x128xi32>
    %c16_i32_68 = arith.constant 16 : i32
    %158 = vector.broadcast %c16_i32_68 : i32 to vector<16x16x128xi32>
    %159 = arith.cmpi sle, %153, %158 : vector<16x16x128xi32>
    %160 = arith.andi %157, %159 : vector<16x16x128xi1>
    %c1_i32_69 = arith.constant 1 : i32
    %161 = vector.broadcast %c1_i32_69 : i32 to vector<16x16x128xi32>
    %162 = arith.cmpi sge, %155, %161 : vector<16x16x128xi32>
    %163 = arith.andi %160, %162 : vector<16x16x128xi1>
    %c16_i32_70 = arith.constant 16 : i32
    %164 = vector.broadcast %c16_i32_70 : i32 to vector<16x16x128xi32>
    %165 = arith.cmpi sle, %155, %164 : vector<16x16x128xi32>
    %166 = arith.andi %163, %165 : vector<16x16x128xi1>
    %cst_71 = arith.constant 0.000000e+00 : f32
    %167 = vector.broadcast %cst_71 : f32 to vector<16x16x128xf32>
    %168 = arith.select %166, %151, %167 : vector<16x16x128xi1>, vector<16x16x128xf32>
    %169 = arith.truncf %168 : vector<16x16x128xf32> to vector<16x16x128xbf16>
    %170 = vector.shape_cast %169 : vector<16x16x128xbf16> to vector<256x128xbf16>
    %c4 = arith.constant 4 : index
    %c0_72 = arith.constant 0 : index
    %c0_73 = arith.constant 0 : index
    %171 = vector.load %arg2[%c4, %c0_72, %c0_73] : memref<9x128x128xbf16, #tpu.memory_space<vmem>>, vector<1x128x128xbf16>
    %172 = vector.shape_cast %171 : vector<1x128x128xbf16> to vector<128x128xbf16>
    %cst_74 = arith.constant dense<0.000000e+00> : vector<256x128xf32>
    %173 = tpu.matmul %170, %172, %cst_74 {dimension_numbers = #tpu.dot_dimension_numbers<[1], [0], [0], [1], [0, 0, 1, 1], [], []>} : vector<256x128xbf16>, vector<128x128xbf16>, vector<256x128xf32> -> vector<256x128xf32>
    %174 = arith.addf %140, %173 : vector<256x128xf32>
    %c0_75 = arith.constant 0 : index
    %c1_76 = arith.constant 1 : index
    %c2_77 = arith.constant 2 : index
    %c0_78 = arith.constant 0 : index
    %175 = vector.load %arg1[%c0_75, %c1_76, %c2_77, %c0_78] : memref<1x18x18x128xbf16, #tpu.memory_space<vmem>>, vector<1x16x16x128xbf16>
    %176 = vector.shape_cast %175 : vector<1x16x16x128xbf16> to vector<16x16x128xbf16>
    %177 = arith.extf %176 : vector<16x16x128xbf16> to vector<16x16x128xf32>
    %178 = vector.shape_cast %0 : vector<1x128xf32> to vector<1x1x128xf32>
    %179 = vector.broadcast %178 : vector<1x1x128xf32> to vector<16x16x128xf32>
    %180 = arith.mulf %177, %179 : vector<16x16x128xf32>
    %181 = vector.shape_cast %1 : vector<1x128xf32> to vector<1x1x128xf32>
    %182 = vector.broadcast %181 : vector<1x1x128xf32> to vector<16x16x128xf32>
    %183 = arith.addf %180, %182 : vector<16x16x128xf32>
    %cst_79 = arith.constant 0.000000e+00 : f32
    %184 = vector.broadcast %cst_79 : f32 to vector<16x16x128xf32>
    %185 = arith.maximumf %183, %184 : vector<16x16x128xf32>
    %c1_i32_80 = arith.constant 1 : i32
    %186 = vector.broadcast %c1_i32_80 : i32 to vector<16x16x128xi32>
    %187 = arith.addi %2, %186 : vector<16x16x128xi32>
    %c2_i32_81 = arith.constant 2 : i32
    %188 = vector.broadcast %c2_i32_81 : i32 to vector<16x16x128xi32>
    %189 = arith.addi %3, %188 : vector<16x16x128xi32>
    %c1_i32_82 = arith.constant 1 : i32
    %190 = vector.broadcast %c1_i32_82 : i32 to vector<16x16x128xi32>
    %191 = arith.cmpi sge, %187, %190 : vector<16x16x128xi32>
    %c16_i32_83 = arith.constant 16 : i32
    %192 = vector.broadcast %c16_i32_83 : i32 to vector<16x16x128xi32>
    %193 = arith.cmpi sle, %187, %192 : vector<16x16x128xi32>
    %194 = arith.andi %191, %193 : vector<16x16x128xi1>
    %c1_i32_84 = arith.constant 1 : i32
    %195 = vector.broadcast %c1_i32_84 : i32 to vector<16x16x128xi32>
    %196 = arith.cmpi sge, %189, %195 : vector<16x16x128xi32>
    %197 = arith.andi %194, %196 : vector<16x16x128xi1>
    %c16_i32_85 = arith.constant 16 : i32
    %198 = vector.broadcast %c16_i32_85 : i32 to vector<16x16x128xi32>
    %199 = arith.cmpi sle, %189, %198 : vector<16x16x128xi32>
    %200 = arith.andi %197, %199 : vector<16x16x128xi1>
    %cst_86 = arith.constant 0.000000e+00 : f32
    %201 = vector.broadcast %cst_86 : f32 to vector<16x16x128xf32>
    %202 = arith.select %200, %185, %201 : vector<16x16x128xi1>, vector<16x16x128xf32>
    %203 = arith.truncf %202 : vector<16x16x128xf32> to vector<16x16x128xbf16>
    %204 = vector.shape_cast %203 : vector<16x16x128xbf16> to vector<256x128xbf16>
    %c5 = arith.constant 5 : index
    %c0_87 = arith.constant 0 : index
    %c0_88 = arith.constant 0 : index
    %205 = vector.load %arg2[%c5, %c0_87, %c0_88] : memref<9x128x128xbf16, #tpu.memory_space<vmem>>, vector<1x128x128xbf16>
    %206 = vector.shape_cast %205 : vector<1x128x128xbf16> to vector<128x128xbf16>
    %cst_89 = arith.constant dense<0.000000e+00> : vector<256x128xf32>
    %207 = tpu.matmul %204, %206, %cst_89 {dimension_numbers = #tpu.dot_dimension_numbers<[1], [0], [0], [1], [0, 0, 1, 1], [], []>} : vector<256x128xbf16>, vector<128x128xbf16>, vector<256x128xf32> -> vector<256x128xf32>
    %208 = arith.addf %174, %207 : vector<256x128xf32>
    %c0_90 = arith.constant 0 : index
    %c2_91 = arith.constant 2 : index
    %c0_92 = arith.constant 0 : index
    %c0_93 = arith.constant 0 : index
    %209 = vector.load %arg1[%c0_90, %c2_91, %c0_92, %c0_93] : memref<1x18x18x128xbf16, #tpu.memory_space<vmem>>, vector<1x16x16x128xbf16>
    %210 = vector.shape_cast %209 : vector<1x16x16x128xbf16> to vector<16x16x128xbf16>
    %211 = arith.extf %210 : vector<16x16x128xbf16> to vector<16x16x128xf32>
    %212 = vector.shape_cast %0 : vector<1x128xf32> to vector<1x1x128xf32>
    %213 = vector.broadcast %212 : vector<1x1x128xf32> to vector<16x16x128xf32>
    %214 = arith.mulf %211, %213 : vector<16x16x128xf32>
    %215 = vector.shape_cast %1 : vector<1x128xf32> to vector<1x1x128xf32>
    %216 = vector.broadcast %215 : vector<1x1x128xf32> to vector<16x16x128xf32>
    %217 = arith.addf %214, %216 : vector<16x16x128xf32>
    %cst_94 = arith.constant 0.000000e+00 : f32
    %218 = vector.broadcast %cst_94 : f32 to vector<16x16x128xf32>
    %219 = arith.maximumf %217, %218 : vector<16x16x128xf32>
    %c2_i32_95 = arith.constant 2 : i32
    %220 = vector.broadcast %c2_i32_95 : i32 to vector<16x16x128xi32>
    %221 = arith.addi %2, %220 : vector<16x16x128xi32>
    %c0_i32_96 = arith.constant 0 : i32
    %222 = vector.broadcast %c0_i32_96 : i32 to vector<16x16x128xi32>
    %223 = arith.addi %3, %222 : vector<16x16x128xi32>
    %c1_i32_97 = arith.constant 1 : i32
    %224 = vector.broadcast %c1_i32_97 : i32 to vector<16x16x128xi32>
    %225 = arith.cmpi sge, %221, %224 : vector<16x16x128xi32>
    %c16_i32_98 = arith.constant 16 : i32
    %226 = vector.broadcast %c16_i32_98 : i32 to vector<16x16x128xi32>
    %227 = arith.cmpi sle, %221, %226 : vector<16x16x128xi32>
    %228 = arith.andi %225, %227 : vector<16x16x128xi1>
    %c1_i32_99 = arith.constant 1 : i32
    %229 = vector.broadcast %c1_i32_99 : i32 to vector<16x16x128xi32>
    %230 = arith.cmpi sge, %223, %229 : vector<16x16x128xi32>
    %231 = arith.andi %228, %230 : vector<16x16x128xi1>
    %c16_i32_100 = arith.constant 16 : i32
    %232 = vector.broadcast %c16_i32_100 : i32 to vector<16x16x128xi32>
    %233 = arith.cmpi sle, %223, %232 : vector<16x16x128xi32>
    %234 = arith.andi %231, %233 : vector<16x16x128xi1>
    %cst_101 = arith.constant 0.000000e+00 : f32
    %235 = vector.broadcast %cst_101 : f32 to vector<16x16x128xf32>
    %236 = arith.select %234, %219, %235 : vector<16x16x128xi1>, vector<16x16x128xf32>
    %237 = arith.truncf %236 : vector<16x16x128xf32> to vector<16x16x128xbf16>
    %238 = vector.shape_cast %237 : vector<16x16x128xbf16> to vector<256x128xbf16>
    %c6 = arith.constant 6 : index
    %c0_102 = arith.constant 0 : index
    %c0_103 = arith.constant 0 : index
    %239 = vector.load %arg2[%c6, %c0_102, %c0_103] : memref<9x128x128xbf16, #tpu.memory_space<vmem>>, vector<1x128x128xbf16>
    %240 = vector.shape_cast %239 : vector<1x128x128xbf16> to vector<128x128xbf16>
    %cst_104 = arith.constant dense<0.000000e+00> : vector<256x128xf32>
    %241 = tpu.matmul %238, %240, %cst_104 {dimension_numbers = #tpu.dot_dimension_numbers<[1], [0], [0], [1], [0, 0, 1, 1], [], []>} : vector<256x128xbf16>, vector<128x128xbf16>, vector<256x128xf32> -> vector<256x128xf32>
    %242 = arith.addf %208, %241 : vector<256x128xf32>
    %c0_105 = arith.constant 0 : index
    %c2_106 = arith.constant 2 : index
    %c1_107 = arith.constant 1 : index
    %c0_108 = arith.constant 0 : index
    %243 = vector.load %arg1[%c0_105, %c2_106, %c1_107, %c0_108] : memref<1x18x18x128xbf16, #tpu.memory_space<vmem>>, vector<1x16x16x128xbf16>
    %244 = vector.shape_cast %243 : vector<1x16x16x128xbf16> to vector<16x16x128xbf16>
    %245 = arith.extf %244 : vector<16x16x128xbf16> to vector<16x16x128xf32>
    %246 = vector.shape_cast %0 : vector<1x128xf32> to vector<1x1x128xf32>
    %247 = vector.broadcast %246 : vector<1x1x128xf32> to vector<16x16x128xf32>
    %248 = arith.mulf %245, %247 : vector<16x16x128xf32>
    %249 = vector.shape_cast %1 : vector<1x128xf32> to vector<1x1x128xf32>
    %250 = vector.broadcast %249 : vector<1x1x128xf32> to vector<16x16x128xf32>
    %251 = arith.addf %248, %250 : vector<16x16x128xf32>
    %cst_109 = arith.constant 0.000000e+00 : f32
    %252 = vector.broadcast %cst_109 : f32 to vector<16x16x128xf32>
    %253 = arith.maximumf %251, %252 : vector<16x16x128xf32>
    %c2_i32_110 = arith.constant 2 : i32
    %254 = vector.broadcast %c2_i32_110 : i32 to vector<16x16x128xi32>
    %255 = arith.addi %2, %254 : vector<16x16x128xi32>
    %c1_i32_111 = arith.constant 1 : i32
    %256 = vector.broadcast %c1_i32_111 : i32 to vector<16x16x128xi32>
    %257 = arith.addi %3, %256 : vector<16x16x128xi32>
    %c1_i32_112 = arith.constant 1 : i32
    %258 = vector.broadcast %c1_i32_112 : i32 to vector<16x16x128xi32>
    %259 = arith.cmpi sge, %255, %258 : vector<16x16x128xi32>
    %c16_i32_113 = arith.constant 16 : i32
    %260 = vector.broadcast %c16_i32_113 : i32 to vector<16x16x128xi32>
    %261 = arith.cmpi sle, %255, %260 : vector<16x16x128xi32>
    %262 = arith.andi %259, %261 : vector<16x16x128xi1>
    %c1_i32_114 = arith.constant 1 : i32
    %263 = vector.broadcast %c1_i32_114 : i32 to vector<16x16x128xi32>
    %264 = arith.cmpi sge, %257, %263 : vector<16x16x128xi32>
    %265 = arith.andi %262, %264 : vector<16x16x128xi1>
    %c16_i32_115 = arith.constant 16 : i32
    %266 = vector.broadcast %c16_i32_115 : i32 to vector<16x16x128xi32>
    %267 = arith.cmpi sle, %257, %266 : vector<16x16x128xi32>
    %268 = arith.andi %265, %267 : vector<16x16x128xi1>
    %cst_116 = arith.constant 0.000000e+00 : f32
    %269 = vector.broadcast %cst_116 : f32 to vector<16x16x128xf32>
    %270 = arith.select %268, %253, %269 : vector<16x16x128xi1>, vector<16x16x128xf32>
    %271 = arith.truncf %270 : vector<16x16x128xf32> to vector<16x16x128xbf16>
    %272 = vector.shape_cast %271 : vector<16x16x128xbf16> to vector<256x128xbf16>
    %c7 = arith.constant 7 : index
    %c0_117 = arith.constant 0 : index
    %c0_118 = arith.constant 0 : index
    %273 = vector.load %arg2[%c7, %c0_117, %c0_118] : memref<9x128x128xbf16, #tpu.memory_space<vmem>>, vector<1x128x128xbf16>
    %274 = vector.shape_cast %273 : vector<1x128x128xbf16> to vector<128x128xbf16>
    %cst_119 = arith.constant dense<0.000000e+00> : vector<256x128xf32>
    %275 = tpu.matmul %272, %274, %cst_119 {dimension_numbers = #tpu.dot_dimension_numbers<[1], [0], [0], [1], [0, 0, 1, 1], [], []>} : vector<256x128xbf16>, vector<128x128xbf16>, vector<256x128xf32> -> vector<256x128xf32>
    %276 = arith.addf %242, %275 : vector<256x128xf32>
    %c0_120 = arith.constant 0 : index
    %c2_121 = arith.constant 2 : index
    %c2_122 = arith.constant 2 : index
    %c0_123 = arith.constant 0 : index
    %277 = vector.load %arg1[%c0_120, %c2_121, %c2_122, %c0_123] : memref<1x18x18x128xbf16, #tpu.memory_space<vmem>>, vector<1x16x16x128xbf16>
    %278 = vector.shape_cast %277 : vector<1x16x16x128xbf16> to vector<16x16x128xbf16>
    %279 = arith.extf %278 : vector<16x16x128xbf16> to vector<16x16x128xf32>
    %280 = vector.shape_cast %0 : vector<1x128xf32> to vector<1x1x128xf32>
    %281 = vector.broadcast %280 : vector<1x1x128xf32> to vector<16x16x128xf32>
    %282 = arith.mulf %279, %281 : vector<16x16x128xf32>
    %283 = vector.shape_cast %1 : vector<1x128xf32> to vector<1x1x128xf32>
    %284 = vector.broadcast %283 : vector<1x1x128xf32> to vector<16x16x128xf32>
    %285 = arith.addf %282, %284 : vector<16x16x128xf32>
    %cst_124 = arith.constant 0.000000e+00 : f32
    %286 = vector.broadcast %cst_124 : f32 to vector<16x16x128xf32>
    %287 = arith.maximumf %285, %286 : vector<16x16x128xf32>
    %c2_i32_125 = arith.constant 2 : i32
    %288 = vector.broadcast %c2_i32_125 : i32 to vector<16x16x128xi32>
    %289 = arith.addi %2, %288 : vector<16x16x128xi32>
    %c2_i32_126 = arith.constant 2 : i32
    %290 = vector.broadcast %c2_i32_126 : i32 to vector<16x16x128xi32>
    %291 = arith.addi %3, %290 : vector<16x16x128xi32>
    %c1_i32_127 = arith.constant 1 : i32
    %292 = vector.broadcast %c1_i32_127 : i32 to vector<16x16x128xi32>
    %293 = arith.cmpi sge, %289, %292 : vector<16x16x128xi32>
    %c16_i32_128 = arith.constant 16 : i32
    %294 = vector.broadcast %c16_i32_128 : i32 to vector<16x16x128xi32>
    %295 = arith.cmpi sle, %289, %294 : vector<16x16x128xi32>
    %296 = arith.andi %293, %295 : vector<16x16x128xi1>
    %c1_i32_129 = arith.constant 1 : i32
    %297 = vector.broadcast %c1_i32_129 : i32 to vector<16x16x128xi32>
    %298 = arith.cmpi sge, %291, %297 : vector<16x16x128xi32>
    %299 = arith.andi %296, %298 : vector<16x16x128xi1>
    %c16_i32_130 = arith.constant 16 : i32
    %300 = vector.broadcast %c16_i32_130 : i32 to vector<16x16x128xi32>
    %301 = arith.cmpi sle, %291, %300 : vector<16x16x128xi32>
    %302 = arith.andi %299, %301 : vector<16x16x128xi1>
    %cst_131 = arith.constant 0.000000e+00 : f32
    %303 = vector.broadcast %cst_131 : f32 to vector<16x16x128xf32>
    %304 = arith.select %302, %287, %303 : vector<16x16x128xi1>, vector<16x16x128xf32>
    %305 = arith.truncf %304 : vector<16x16x128xf32> to vector<16x16x128xbf16>
    %306 = vector.shape_cast %305 : vector<16x16x128xbf16> to vector<256x128xbf16>
    %c8 = arith.constant 8 : index
    %c0_132 = arith.constant 0 : index
    %c0_133 = arith.constant 0 : index
    %307 = vector.load %arg2[%c8, %c0_132, %c0_133] : memref<9x128x128xbf16, #tpu.memory_space<vmem>>, vector<1x128x128xbf16>
    %308 = vector.shape_cast %307 : vector<1x128x128xbf16> to vector<128x128xbf16>
    %cst_134 = arith.constant dense<0.000000e+00> : vector<256x128xf32>
    %309 = tpu.matmul %306, %308, %cst_134 {dimension_numbers = #tpu.dot_dimension_numbers<[1], [0], [0], [1], [0, 0, 1, 1], [], []>} : vector<256x128xbf16>, vector<128x128xbf16>, vector<256x128xf32> -> vector<256x128xf32>
    %310 = arith.addf %276, %309 : vector<256x128xf32>
    %311 = vector.shape_cast %310 : vector<256x128xf32> to vector<32x8x128xf32>
    %cst_135 = arith.constant dense<0.000000e+00> : vector<8x128xf32>
    %312 = vector.multi_reduction <add>, %311, %cst_135 [0] : vector<32x8x128xf32> to vector<8x128xf32>
    %313 = vector.shape_cast %312 : vector<8x128xf32> to vector<1x8x128xf32>
    %c0_136 = arith.constant 0 : index
    %c0_137 = arith.constant 0 : index
    %c0_138 = arith.constant 0 : index
    %314 = vector.load %arg6[%c0_136, %c0_137, %c0_138] : memref<1x8x128xf32, #tpu.memory_space<vmem>>, vector<1x8x128xf32>
    tpu.vector_store %arg6[%c0_136, %c0_137, %c0_138], %313 {strides = array<i32>} : memref<1x8x128xf32, #tpu.memory_space<vmem>>, vector<1x8x128xf32>,
    %315 = arith.mulf %310, %310 : vector<256x128xf32>
    %316 = vector.shape_cast %315 : vector<256x128xf32> to vector<32x8x128xf32>
    %cst_139 = arith.constant dense<0.000000e+00> : vector<8x128xf32>
    %317 = vector.multi_reduction <add>, %316, %cst_139 [0] : vector<32x8x128xf32> to vector<8x128xf32>
    %318 = vector.shape_cast %317 : vector<8x128xf32> to vector<1x8x128xf32>
    %c0_140 = arith.constant 0 : index
    %c0_141 = arith.constant 0 : index
    %c0_142 = arith.constant 0 : index
    %319 = vector.load %arg7[%c0_140, %c0_141, %c0_142] : memref<1x8x128xf32, #tpu.memory_space<vmem>>, vector<1x8x128xf32>
    tpu.vector_store %arg7[%c0_140, %c0_141, %c0_142], %318 {strides = array<i32>} : memref<1x8x128xf32, #tpu.memory_space<vmem>>, vector<1x8x128xf32>,
    %320 = vector.shape_cast %310 : vector<256x128xf32> to vector<16x16x128xf32>
    %321 = arith.truncf %320 : vector<16x16x128xf32> to vector<16x16x128xbf16>
    %322 = vector.shape_cast %321 : vector<16x16x128xbf16> to vector<1x16x16x128xbf16>
    %c0_143 = arith.constant 0 : index
    %c0_144 = arith.constant 0 : index
    %c0_145 = arith.constant 0 : index
    %c0_146 = arith.constant 0 : index
    %323 = vector.load %arg5[%c0_143, %c0_144, %c0_145, %c0_146] : memref<1x16x16x128xbf16, #tpu.memory_space<vmem>>, vector<1x16x16x128xbf16>
    tpu.vector_store %arg5[%c0_143, %c0_144, %c0_145, %c0_146], %322 {strides = array<i32>} : memref<1x16x16x128xbf16, #tpu.memory_space<vmem>>, vector<1x16x16x128xbf16>,
    return
  }
  func.func @transform_0(%arg0: i32) -> (i32, i32, i32, i32) {
    %c0_i32 = arith.constant 0 : i32
    %c0_i32_0 = arith.constant 0 : i32
    %c0_i32_1 = arith.constant 0 : i32
    %c0_i32_2 = arith.constant 0 : i32
    return %arg0, %c0_i32, %c0_i32_0, %c0_i32_1 : i32, i32, i32, i32
  }
  func.func @transform_1(%arg0: i32) -> (i32, i32, i32) {
    %c0_i32 = arith.constant 0 : i32
    %c0_i32_0 = arith.constant 0 : i32
    %c0_i32_1 = arith.constant 0 : i32
    %c0_i32_2 = arith.constant 0 : i32
    return %c0_i32, %c0_i32_0, %c0_i32_1 : i32, i32, i32
  }
  func.func @transform_2(%arg0: i32) -> (i32, i32) {
    %c0_i32 = arith.constant 0 : i32
    %c0_i32_0 = arith.constant 0 : i32
    %c0_i32_1 = arith.constant 0 : i32
    return %c0_i32, %c0_i32_0 : i32, i32
  }
  func.func @transform_3(%arg0: i32) -> (i32, i32) {
    %c0_i32 = arith.constant 0 : i32
    %c0_i32_0 = arith.constant 0 : i32
    %c0_i32_1 = arith.constant 0 : i32
    return %c0_i32, %c0_i32_0 : i32, i32
  }
  func.func @transform_4(%arg0: i32) -> (i32, i32, i32, i32) {
    %c0_i32 = arith.constant 0 : i32
    %c0_i32_0 = arith.constant 0 : i32
    %c0_i32_1 = arith.constant 0 : i32
    %c0_i32_2 = arith.constant 0 : i32
    return %arg0, %c0_i32, %c0_i32_0, %c0_i32_1 : i32, i32, i32, i32
  }
  func.func @transform_5(%arg0: i32) -> (i32, i32, i32) {
    %c0_i32 = arith.constant 0 : i32
    %c0_i32_0 = arith.constant 0 : i32
    %c0_i32_1 = arith.constant 0 : i32
    return %arg0, %c0_i32, %c0_i32_0 : i32, i32, i32
  }
  func.func @transform_6(%arg0: i32) -> (i32, i32, i32) {
    %c0_i32 = arith.constant 0 : i32
    %c0_i32_0 = arith.constant 0 : i32
    %c0_i32_1 = arith.constant 0 : i32
    return %arg0, %c0_i32, %c0_i32_0 : i32, i32, i32
  }
}

</mosaic_0001>

<bundles_post_ra>
// kernel: basic_block_forward.5
= control target key start
LH: loop header
LB: loop body
LE: loop exit
PB: predicated region body
PF: predicated region fallthrough
CT: control target
= control target key end

     0   :  { %s1006_s15 = smov 0   ;;  %s1223_s0 = inlined_call_operand.vmem [shape: bf16[2,16,16,128], index: 0, kind: input, shape index: {}]   ;;  %s1224_s1 = inlined_call_operand.vmem [shape: f32[1,128], index: 1, kind: input, shape index: {}]   ;;  %s1225_s2 = inlined_call_operand.vmem [shape: f32[1,128], index: 2, kind: input, shape index: {}]   ;;  %s1226_s3 = inlined_call_operand.vmem [shape: bf16[2,18,18,128], index: 3, kind: input, shape index: {}]   ;;  %s1227_s4 = inlined_call_operand.vmem [shape: f32[2,16,16,128], index: 4, kind: output, shape index: {}]  }
   0x1 LB: > { %s781_s16 = sadd.s32 4294967295, %s979_s15   ;;  %p785_p0 = scmp.ge.s32.totalorder %s979_s15, 1  ;;  %s979_s15 = sphi %s1006_s15, %s14_s15  }
   0x2   : > { %p172_p1 = scmp.lt.s32.totalorder %s979_s15, 3 }
   0x4   : > { %p173_p2 = pnand %p785_p0, %p172_p1 }
   0x5   : > { %p203_p3 = scmp.lt.s32.totalorder (!%p173_p2), %s781_s16, 1  ;;  %v1032_v1 = vld [vmem:[%s1224_s1] ss:$0 sm:$0xff] (!%p173_p2)  ;;  %vm505_vm0 = vcmask (!%p173_p2), 1046528  }
   0x6   : > { %176 = sbr.rel (%p173_p2) target bundleno = 95 (0x5f), region = 36  ;;  %v1041_v12 = vld [vmem:[%s1225_s2] ss:$0 sm:$0xff] (!%p173_p2) }
   0xd   : > { %s1229_s16 = smov (!%p203_p3, %s781_s16), 1 }
   0xe   : > { %s843_s17 = sshll.u32 %s1229_s16, 7  ;;  %s964_s18 = smul.u32 216, %s1229_s16 }
   0xf   : > { %s1021_s21 = scalar_lea.vmem %s1223_s0, %s843_s17  ;;  %s844_s29 = sshll.u32 %s1229_s16, 8 }
  0x10   : > { %s1026_s24 = scalar_lea.vmem %s1226_s3, %s964_s18  ;;  %v846_v0 = vld [vmem:[%s1021_s21] sm:$0xff]   ;;  %v941_v2 = vld [vmem:[%s1021_s21 + $0x8] sm:$0xff]   ;;  %v942_v24 = vld [vmem:[%s1021_s21 + $0x10] sm:$0xff]   ;;  %s1060_s6 = scalar_lea.vmem %s1227_s4, %s844_s29 }
  0x11   : > { %v847_v3 = vunpack.c.l.bf16 %v846_v0  ;;  %v791_v4 = vld [vmem:[%s1026_s24 + $0xc] sm:$0xff]   ;;  %v848_v5 = vunpack.c.h.bf16 %v846_v0  ;;  %v793_v6 = vld [vmem:[%s1026_s24 + $0x14] sm:$0x1]  ;;  %v851_v7 = vunpack.c.l.bf16 %v941_v2  ;;  %v956_v8 = vld [vmem:[%s1026_s24 + $0x18] sm:$0xff]   ;;  %v852_v9 = vunpack.c.h.bf16 %v941_v2 }
  0x12   : > { %v331_v10 = vunpack.c.l.bf16 %v791_v4  ;;  %v332_v11 = vunpack.c.h.bf16 %v791_v4  ;;  %v333_v13 = vunpack.c.l.bf16 %v793_v6  ;;  %v911_v14 = vunpack.c.l.bf16 %v956_v8  ;;  %v796_v19 = vld [vmem:[%s1026_s24 + $0x20] sm:$0x1]  ;;  %v797_v29 = vld [vmem:[%s1026_s24 + $0x24] sm:$0xff]   ;;  %v799_v42 = vld [vmem:[%s1026_s24 + $0x2c] sm:$0x1] }
  0x13   : > { %v386_v15 = vmul.f32 %v847_v3, %v1032_v1  ;;  %v387_v16 = vmul.f32 %v848_v5, %v1032_v1  ;;  %v912_v17 = vunpack.c.h.bf16 %v956_v8  ;;  %v388_v18 = vmul.f32 %v851_v7, %v1032_v1  ;;  %v943_v47 = vld [vmem:[%s1021_s21 + $0x18] sm:$0xff]   ;;  %v957_v48 = vld [vmem:[%s1026_s24 + $0x30] sm:$0xff]   ;;  %v944_v3 = vld [vmem:[%s1021_s21 + $0x20] sm:$0xff]  }
  0x14   : > { %v506_v20 = vrot.slane %v331_v10, 1  ;;  %v507_v21 = vrot.slane %v332_v11, 1  ;;  %v509_v22 = vrot.slane %v333_v13, 1  ;;  %v511_v23 = vrot.slane %v911_v14, 1  ;;  %v802_v61 = vld [vmem:[%s1026_s24 + $0x38] sm:$0x1] }
  0x15   : > { %v425_v25 = vadd.f32 %v1041_v12, %v386_v15  ;;  %v426_v26 = vadd.f32 %v1041_v12, %v387_v16  ;;  %v427_v27 = vadd.f32 %v1041_v12, %v388_v18  ;;  %v512_v28 = vrot.slane %v912_v17, 1  ;;  %v803_v8 = vld [vmem:[%s1026_s24 + $0x3c] sm:$0xff]   ;;  %v805_v18 = vld [vmem:[%s1026_s24 + $0x44] sm:$0x1] }
  0x16   : > { %v508_v30 = vsel %vm505_vm0, %v506_v20, %v507_v21  ;;  %v510_v31 = vsel %vm505_vm0, %v507_v21, %v509_v22  ;;  %v336_v32 = vunpack.c.l.bf16 %v796_v19  ;;  %v389_v33 = vmul.f32 %v852_v9, %v1032_v1 }
  0x17   : > { %v618_v34 = vadd.f32 %v508_v30, %v425_v25  ;;  %v619_v35 = vadd.f32 %v510_v31, %v426_v26  ;;  %v513_v36 = vsel %vm505_vm0, %v511_v23, %v512_v28  ;;  %v855_v37 = vunpack.c.l.bf16 %v942_v24 }
  0x18   : > { %v620_v38 = vadd.f32 %v513_v36, %v427_v27  ;;  %v428_v39 = vadd.f32 %v1041_v12, %v389_v33  ;;  %v514_v40 = vrot.slane %v336_v32, 1  ;;  %v337_v41 = vunpack.c.l.bf16 %v797_v29  ;;  %v945_v27 = vld [vmem:[%s1021_s21 + $0x28] sm:$0xff]  }
  0x19   : > { %v650_v43 = vmax.f32 %v618_v34, 0.0  ;;  %v651_v44 = vmax.f32 %v619_v35, 0.0  ;;  %v338_v45 = vunpack.c.h.bf16 %v797_v29  ;;  %v390_v46 = vmul.f32 %v855_v37, %v1032_v1 }
  0x1a   : > { %v652_v49 = vmax.f32 %v620_v38, 0.0  ;;  %v515_v50 = vsel %vm505_vm0, %v512_v28, %v514_v40  ;;  %v516_v51 = vrot.slane %v337_v41, 1  ;;  %v856_v52 = vunpack.c.h.bf16 %v942_v24  ;;  %v958_v28 = vld [vmem:[%s1026_s24 + $0x48] sm:$0xff]   ;;  %v808_v41 = vld [vmem:[%s1026_s24 + $0x50] sm:$0x1] }
  0x1b   : > { %682 = vst [vmem:[%s1060_s6] sm:$0xff] %v650_v43  ;;  %683 = vst [vmem:[%s1060_s6 + $0x8] sm:$0xff] %v651_v44  ;;  %v621_v53 = vadd.f32 %v515_v50, %v428_v39  ;;  %v429_v54 = vadd.f32 %v1041_v12, %v390_v46  ;;  %v517_v55 = vrot.slane %v338_v45, 1  ;;  %v339_v56 = vunpack.c.l.bf16 %v799_v42  ;;  %v946_v46 = vld [vmem:[%s1021_s21 + $0x30] sm:$0xff]  }
  0x1c   : > { %684 = vst [vmem:[%s1060_s6 + $0x10] sm:$0xff] %v652_v49  ;;  %v391_v57 = vmul.f32 %v856_v52, %v1032_v1  ;;  %v859_v58 = vunpack.c.l.bf16 %v943_v47  ;;  %v915_v59 = vunpack.c.l.bf16 %v957_v48  ;;  %v916_v60 = vunpack.c.h.bf16 %v957_v48 }
  0x1d   : > { %v653_v62 = vmax.f32 %v621_v53, 0.0  ;;  %v518_v63 = vsel %vm505_vm0, %v516_v51, %v517_v55  ;;  %v519_v0 = vrot.slane %v339_v56, 1  ;;  %v860_v2 = vunpack.c.h.bf16 %v943_v47  ;;  %v809_v51 = vld [vmem:[%s1026_s24 + $0x54] sm:$0xff]  }
  0x1e   : > { %v622_v4 = vadd.f32 %v518_v63, %v429_v54  ;;  %v430_v5 = vadd.f32 %v1041_v12, %v391_v57  ;;  %v392_v6 = vmul.f32 %v859_v58, %v1032_v1  ;;  %v521_v7 = vrot.slane %v915_v59, 1 }
  0x1f   : > { %685 = vst [vmem:[%s1060_s6 + $0x18] sm:$0xff] %v653_v62  ;;  %v520_v9 = vsel %vm505_vm0, %v517_v55, %v519_v0  ;;  %v522_v10 = vrot.slane %v916_v60, 1  ;;  %v342_v11 = vunpack.c.l.bf16 %v802_v61  ;;  %v393_v13 = vmul.f32 %v860_v2, %v1032_v1  ;;  %v811_v60 = vld [vmem:[%s1026_s24 + $0x5c] sm:$0x1] }
  0x20   : > { %v654_v14 = vmax.f32 %v622_v4, 0.0  ;;  %v623_v15 = vadd.f32 %v520_v9, %v430_v5  ;;  %v431_v16 = vadd.f32 %v1041_v12, %v392_v6  ;;  %v863_v17 = vunpack.c.l.bf16 %v944_v3  ;;  %v947_v6 = vld [vmem:[%s1021_s21 + $0x38] sm:$0xff]  }
  0x21   : > { %v523_v19 = vsel %vm505_vm0, %v521_v7, %v522_v10  ;;  %v432_v20 = vadd.f32 %v1041_v12, %v393_v13  ;;  %v524_v21 = vrot.slane %v342_v11, 1  ;;  %v343_v22 = vunpack.c.l.bf16 %v803_v8  ;;  %v959_v7 = vld [vmem:[%s1026_s24 + $0x60] sm:$0xff]  }
  0x22   : > { %686 = vst [vmem:[%s1060_s6 + $0x20] sm:$0xff] %v654_v14  ;;  %v655_v23 = vmax.f32 %v623_v15, 0.0  ;;  %v624_v24 = vadd.f32 %v523_v19, %v431_v16  ;;  %v344_v25 = vunpack.c.h.bf16 %v803_v8  ;;  %v394_v26 = vmul.f32 %v863_v17, %v1032_v1 }
  0x23   : > { %v525_v29 = vsel %vm505_vm0, %v522_v10, %v524_v21  ;;  %v526_v30 = vrot.slane %v343_v22, 1  ;;  %v864_v31 = vunpack.c.h.bf16 %v944_v3  ;;  %v345_v32 = vunpack.c.l.bf16 %v805_v18  ;;  %v814_v21 = vld [vmem:[%s1026_s24 + $0x68] sm:$0x1] }
  0x24   : > { %687 = vst [vmem:[%s1060_s6 + $0x28] sm:$0xff] %v655_v23  ;;  %v656_v33 = vmax.f32 %v624_v24, 0.0  ;;  %v625_v34 = vadd.f32 %v525_v29, %v432_v20  ;;  %v433_v35 = vadd.f32 %v1041_v12, %v394_v26  ;;  %v527_v36 = vrot.slane %v344_v25, 1  ;;  %v948_v26 = vld [vmem:[%s1021_s21 + $0x40] sm:$0xff]  }
  0x25   : > { %v395_v37 = vmul.f32 %v864_v31, %v1032_v1  ;;  %v529_v38 = vrot.slane %v345_v32, 1  ;;  %v867_v39 = vunpack.c.l.bf16 %v945_v27  ;;  %v919_v40 = vunpack.c.l.bf16 %v958_v28  ;;  %v815_v31 = vld [vmem:[%s1026_s24 + $0x6c] sm:$0xff]  }
  0x26   : > { %688 = vst [vmem:[%s1060_s6 + $0x30] sm:$0xff] %v656_v33  ;;  %v657_v42 = vmax.f32 %v625_v34, 0.0  ;;  %v528_v43 = vsel %vm505_vm0, %v526_v30, %v527_v36  ;;  %v920_v44 = vunpack.c.h.bf16 %v958_v28  ;;  %v868_v45 = vunpack.c.h.bf16 %v945_v27 }
  0x27   : > { %v626_v47 = vadd.f32 %v528_v43, %v433_v35  ;;  %v434_v48 = vadd.f32 %v1041_v12, %v395_v37  ;;  %v530_v49 = vsel %vm505_vm0, %v527_v36, %v529_v38  ;;  %v396_v50 = vmul.f32 %v867_v39, %v1032_v1 }
  0x28   : > { %689 = vst [vmem:[%s1060_s6 + $0x38] sm:$0xff] %v657_v42  ;;  %v531_v52 = vrot.slane %v919_v40, 1  ;;  %v532_v53 = vrot.slane %v920_v44, 1  ;;  %v348_v54 = vunpack.c.l.bf16 %v808_v41  ;;  %v397_v55 = vmul.f32 %v868_v45, %v1032_v1  ;;  %v817_v40 = vld [vmem:[%s1026_s24 + $0x74] sm:$0x1] }
  0x29   : > { %v658_v56 = vmax.f32 %v626_v47, 0.0  ;;  %v627_v57 = vadd.f32 %v530_v49, %v434_v48  ;;  %v435_v58 = vadd.f32 %v1041_v12, %v396_v50  ;;  %v871_v59 = vunpack.c.l.bf16 %v946_v46  ;;  %v949_v49 = vld [vmem:[%s1021_s21 + $0x48] sm:$0xff]   ;;  %v960_v50 = vld [vmem:[%s1026_s24 + $0x78] sm:$0xff]  }
  0x2a   : > { %v533_v61 = vsel %vm505_vm0, %v531_v52, %v532_v53  ;;  %v436_v62 = vadd.f32 %v1041_v12, %v397_v55  ;;  %v534_v63 = vrot.slane %v348_v54, 1  ;;  %v349_v0 = vunpack.c.l.bf16 %v809_v51 }
  0x2b   : > { %690 = vst [vmem:[%s1060_s6 + $0x40] sm:$0xff] %v658_v56  ;;  %v659_v2 = vmax.f32 %v627_v57, 0.0  ;;  %v628_v3 = vadd.f32 %v533_v61, %v435_v58  ;;  %v350_v4 = vunpack.c.h.bf16 %v809_v51  ;;  %v398_v5 = vmul.f32 %v871_v59, %v1032_v1 }
  0x2c   : > { %v535_v8 = vsel %vm505_vm0, %v532_v53, %v534_v63  ;;  %v536_v9 = vrot.slane %v349_v0, 1  ;;  %v872_v10 = vunpack.c.h.bf16 %v946_v46  ;;  %v351_v11 = vunpack.c.l.bf16 %v811_v60  ;;  %v820_v63 = vld [vmem:[%s1026_s24 + $0x80] sm:$0x1] }
  0x2d   : > { %691 = vst [vmem:[%s1060_s6 + $0x48] sm:$0xff] %v659_v2  ;;  %v660_v13 = vmax.f32 %v628_v3, 0.0  ;;  %v629_v14 = vadd.f32 %v535_v8, %v436_v62  ;;  %v437_v15 = vadd.f32 %v1041_v12, %v398_v5  ;;  %v537_v16 = vrot.slane %v350_v4, 1  ;;  %v950_v5 = vld [vmem:[%s1021_s21 + $0x50] sm:$0xff]  }
  0x2e   : > { %v399_v17 = vmul.f32 %v872_v10, %v1032_v1  ;;  %v539_v18 = vrot.slane %v351_v11, 1  ;;  %v875_v19 = vunpack.c.l.bf16 %v947_v6  ;;  %v923_v20 = vunpack.c.l.bf16 %v959_v7  ;;  %v821_v10 = vld [vmem:[%s1026_s24 + $0x84] sm:$0xff]  }
  0x2f   : > { %692 = vst [vmem:[%s1060_s6 + $0x50] sm:$0xff] %v660_v13  ;;  %v661_v22 = vmax.f32 %v629_v14, 0.0  ;;  %v538_v23 = vsel %vm505_vm0, %v536_v9, %v537_v16  ;;  %v924_v24 = vunpack.c.h.bf16 %v959_v7  ;;  %v876_v25 = vunpack.c.h.bf16 %v947_v6 }
  0x30   : > { %v630_v27 = vadd.f32 %v538_v23, %v437_v15  ;;  %v438_v28 = vadd.f32 %v1041_v12, %v399_v17  ;;  %v540_v29 = vsel %vm505_vm0, %v537_v16, %v539_v18  ;;  %v400_v30 = vmul.f32 %v875_v19, %v1032_v1 }
  0x31   : > { %693 = vst [vmem:[%s1060_s6 + $0x58] sm:$0xff] %v661_v22  ;;  %v541_v32 = vrot.slane %v923_v20, 1  ;;  %v542_v33 = vrot.slane %v924_v24, 1  ;;  %v354_v34 = vunpack.c.l.bf16 %v814_v21  ;;  %v401_v35 = vmul.f32 %v876_v25, %v1032_v1  ;;  %v823_v20 = vld [vmem:[%s1026_s24 + $0x8c] sm:$0x1] }
  0x32   : > { %v662_v36 = vmax.f32 %v630_v27, 0.0  ;;  %v631_v37 = vadd.f32 %v540_v29, %v438_v28  ;;  %v439_v38 = vadd.f32 %v1041_v12, %v400_v30  ;;  %v879_v39 = vunpack.c.l.bf16 %v948_v26  ;;  %v951_v29 = vld [vmem:[%s1021_s21 + $0x58] sm:$0xff]   ;;  %v961_v30 = vld [vmem:[%s1026_s24 + $0x90] sm:$0xff]  }
  0x33   : > { %v543_v41 = vsel %vm505_vm0, %v541_v32, %v542_v33  ;;  %v440_v42 = vadd.f32 %v1041_v12, %v401_v35  ;;  %v544_v43 = vrot.slane %v354_v34, 1  ;;  %v355_v44 = vunpack.c.l.bf16 %v815_v31 }
  0x34   : > { %694 = vst [vmem:[%s1060_s6 + $0x60] sm:$0xff] %v662_v36  ;;  %v663_v45 = vmax.f32 %v631_v37, 0.0  ;;  %v632_v46 = vadd.f32 %v543_v41, %v439_v38  ;;  %v356_v47 = vunpack.c.h.bf16 %v815_v31  ;;  %v402_v48 = vmul.f32 %v879_v39, %v1032_v1 }
  0x35   : > { %v545_v51 = vsel %vm505_vm0, %v542_v33, %v544_v43  ;;  %v546_v52 = vrot.slane %v355_v44, 1  ;;  %v880_v53 = vunpack.c.h.bf16 %v948_v26  ;;  %v357_v54 = vunpack.c.l.bf16 %v817_v40  ;;  %v826_v43 = vld [vmem:[%s1026_s24 + $0x98] sm:$0x1] }
  0x36   : > { %695 = vst [vmem:[%s1060_s6 + $0x68] sm:$0xff] %v663_v45  ;;  %v664_v55 = vmax.f32 %v632_v46, 0.0  ;;  %v633_v56 = vadd.f32 %v545_v51, %v440_v42  ;;  %v441_v57 = vadd.f32 %v1041_v12, %v402_v48  ;;  %v547_v58 = vrot.slane %v356_v47, 1  ;;  %v952_v48 = vld [vmem:[%s1021_s21 + $0x60] sm:$0xff]  }
  0x37   : > { %v403_v59 = vmul.f32 %v880_v53, %v1032_v1  ;;  %v549_v60 = vrot.slane %v357_v54, 1  ;;  %v883_v61 = vunpack.c.l.bf16 %v949_v49  ;;  %v927_v62 = vunpack.c.l.bf16 %v960_v50  ;;  %v827_v53 = vld [vmem:[%s1026_s24 + $0x9c] sm:$0xff]  }
  0x38   : > { %696 = vst [vmem:[%s1060_s6 + $0x70] sm:$0xff] %v664_v55  ;;  %v665_v0 = vmax.f32 %v633_v56, 0.0  ;;  %v548_v2 = vsel %vm505_vm0, %v546_v52, %v547_v58  ;;  %v928_v3 = vunpack.c.h.bf16 %v960_v50  ;;  %v884_v4 = vunpack.c.h.bf16 %v949_v49 }
  0x39   : > { %v634_v6 = vadd.f32 %v548_v2, %v441_v57  ;;  %v442_v7 = vadd.f32 %v1041_v12, %v403_v59  ;;  %v550_v8 = vsel %vm505_vm0, %v547_v58, %v549_v60  ;;  %v404_v9 = vmul.f32 %v883_v61, %v1032_v1 }
  0x3a   : > { %697 = vst [vmem:[%s1060_s6 + $0x78] sm:$0xff] %v665_v0  ;;  %v551_v11 = vrot.slane %v927_v62, 1  ;;  %v552_v13 = vrot.slane %v928_v3, 1  ;;  %v360_v14 = vunpack.c.l.bf16 %v820_v63  ;;  %v405_v15 = vmul.f32 %v884_v4, %v1032_v1  ;;  %v829_v62 = vld [vmem:[%s1026_s24 + $0xa4] sm:$0x1] }
  0x3b   : > { %v666_v16 = vmax.f32 %v634_v6, 0.0  ;;  %v635_v17 = vadd.f32 %v550_v8, %v442_v7  ;;  %v443_v18 = vadd.f32 %v1041_v12, %v404_v9  ;;  %v887_v19 = vunpack.c.l.bf16 %v950_v5  ;;  %v953_v8 = vld [vmem:[%s1021_s21 + $0x68] sm:$0xff]  }
  0x3c   : > { %v553_v21 = vsel %vm505_vm0, %v551_v11, %v552_v13  ;;  %v444_v22 = vadd.f32 %v1041_v12, %v405_v15  ;;  %v554_v23 = vrot.slane %v360_v14, 1  ;;  %v361_v24 = vunpack.c.l.bf16 %v821_v10  ;;  %v962_v9 = vld [vmem:[%s1026_s24 + $0xa8] sm:$0xff]  }
  0x3d   : > { %698 = vst [vmem:[%s1060_s6 + $0x80] sm:$0xff] %v666_v16  ;;  %v667_v25 = vmax.f32 %v635_v17, 0.0  ;;  %v636_v26 = vadd.f32 %v553_v21, %v443_v18  ;;  %v362_v27 = vunpack.c.h.bf16 %v821_v10  ;;  %v406_v28 = vmul.f32 %v887_v19, %v1032_v1 }
  0x3e   : > { %v555_v31 = vsel %vm505_vm0, %v552_v13, %v554_v23  ;;  %v556_v32 = vrot.slane %v361_v24, 1  ;;  %v888_v33 = vunpack.c.h.bf16 %v950_v5  ;;  %v363_v34 = vunpack.c.l.bf16 %v823_v20  ;;  %v832_v23 = vld [vmem:[%s1026_s24 + $0xb0] sm:$0x1] }
  0x3f   : > { %699 = vst [vmem:[%s1060_s6 + $0x88] sm:$0xff] %v667_v25  ;;  %v668_v35 = vmax.f32 %v636_v26, 0.0  ;;  %v637_v36 = vadd.f32 %v555_v31, %v444_v22  ;;  %v445_v37 = vadd.f32 %v1041_v12, %v406_v28  ;;  %v557_v38 = vrot.slane %v362_v27, 1  ;;  %v954_v28 = vld [vmem:[%s1021_s21 + $0x70] sm:$0xff]  }
  0x40   : > { %v407_v39 = vmul.f32 %v888_v33, %v1032_v1  ;;  %v559_v40 = vrot.slane %v363_v34, 1  ;;  %v891_v41 = vunpack.c.l.bf16 %v951_v29  ;;  %v931_v42 = vunpack.c.l.bf16 %v961_v30  ;;  %v833_v33 = vld [vmem:[%s1026_s24 + $0xb4] sm:$0xff]  }
  0x41   : > { %700 = vst [vmem:[%s1060_s6 + $0x90] sm:$0xff] %v668_v35  ;;  %v669_v44 = vmax.f32 %v637_v36, 0.0  ;;  %v558_v45 = vsel %vm505_vm0, %v556_v32, %v557_v38  ;;  %v932_v46 = vunpack.c.h.bf16 %v961_v30  ;;  %v892_v47 = vunpack.c.h.bf16 %v951_v29 }
  0x42   : > { %v638_v49 = vadd.f32 %v558_v45, %v445_v37  ;;  %v446_v50 = vadd.f32 %v1041_v12, %v407_v39  ;;  %v560_v51 = vsel %vm505_vm0, %v557_v38, %v559_v40  ;;  %v408_v52 = vmul.f32 %v891_v41, %v1032_v1 }
  0x43   : > { %701 = vst [vmem:[%s1060_s6 + $0x98] sm:$0xff] %v669_v44  ;;  %v561_v54 = vrot.slane %v931_v42, 1  ;;  %v562_v55 = vrot.slane %v932_v46, 1  ;;  %v366_v56 = vunpack.c.l.bf16 %v826_v43  ;;  %v409_v57 = vmul.f32 %v892_v47, %v1032_v1  ;;  %v835_v42 = vld [vmem:[%s1026_s24 + $0xbc] sm:$0x1] }
  0x44   : > { %v670_v58 = vmax.f32 %v638_v49, 0.0  ;;  %v639_v59 = vadd.f32 %v560_v51, %v446_v50  ;;  %v447_v60 = vadd.f32 %v1041_v12, %v408_v52  ;;  %v895_v61 = vunpack.c.l.bf16 %v952_v48  ;;  %v955_v51 = vld [vmem:[%s1021_s21 + $0x78] sm:$0xff]   ;;  %v963_v52 = vld [vmem:[%s1026_s24 + $0xc0] sm:$0xff]  }
  0x45   : > { %v563_v63 = vsel %vm505_vm0, %v561_v54, %v562_v55  ;;  %v448_v0 = vadd.f32 %v1041_v12, %v409_v57  ;;  %v564_v2 = vrot.slane %v366_v56, 1  ;;  %v367_v3 = vunpack.c.l.bf16 %v827_v53 }
  0x46   : > { %702 = vst [vmem:[%s1060_s6 + $0xa0] sm:$0xff] %v670_v58  ;;  %v671_v4 = vmax.f32 %v639_v59, 0.0  ;;  %v640_v5 = vadd.f32 %v563_v63, %v447_v60  ;;  %v368_v6 = vunpack.c.h.bf16 %v827_v53  ;;  %v410_v7 = vmul.f32 %v895_v61, %v1032_v1 }
  0x47   : > { %v565_v10 = vsel %vm505_vm0, %v562_v55, %v564_v2  ;;  %v566_v11 = vrot.slane %v367_v3, 1  ;;  %v896_v13 = vunpack.c.h.bf16 %v952_v48  ;;  %v369_v14 = vunpack.c.l.bf16 %v829_v62  ;;  %v838_v2 = vld [vmem:[%s1026_s24 + $0xc8] sm:$0x1] }
  0x48   : > { %703 = vst [vmem:[%s1060_s6 + $0xa8] sm:$0xff] %v671_v4  ;;  %v672_v15 = vmax.f32 %v640_v5, 0.0  ;;  %v641_v16 = vadd.f32 %v565_v10, %v448_v0  ;;  %v449_v17 = vadd.f32 %v1041_v12, %v410_v7  ;;  %v567_v18 = vrot.slane %v368_v6, 1 }
  0x49   : > { %v411_v19 = vmul.f32 %v896_v13, %v1032_v1  ;;  %v569_v20 = vrot.slane %v369_v14, 1  ;;  %v899_v21 = vunpack.c.l.bf16 %v953_v8  ;;  %v935_v22 = vunpack.c.l.bf16 %v962_v9 }
  0x4a   : > { %704 = vst [vmem:[%s1060_s6 + $0xb0] sm:$0xff] %v672_v15  ;;  %v673_v24 = vmax.f32 %v641_v16, 0.0  ;;  %v568_v25 = vsel %vm505_vm0, %v566_v11, %v567_v18  ;;  %v936_v26 = vunpack.c.h.bf16 %v962_v9  ;;  %v900_v27 = vunpack.c.h.bf16 %v953_v8 }
  0x4b   : > { %v642_v29 = vadd.f32 %v568_v25, %v449_v17  ;;  %v450_v30 = vadd.f32 %v1041_v12, %v411_v19  ;;  %v570_v31 = vsel %vm505_vm0, %v567_v18, %v569_v20  ;;  %v412_v32 = vmul.f32 %v899_v21, %v1032_v1 }
  0x4c   : > { %705 = vst [vmem:[%s1060_s6 + $0xb8] sm:$0xff] %v673_v24  ;;  %v571_v34 = vrot.slane %v935_v22, 1  ;;  %v572_v35 = vrot.slane %v936_v26, 1  ;;  %v372_v36 = vunpack.c.l.bf16 %v832_v23  ;;  %v413_v37 = vmul.f32 %v900_v27, %v1032_v1 }
  0x4d   : > { %v674_v38 = vmax.f32 %v642_v29, 0.0  ;;  %v643_v39 = vadd.f32 %v570_v31, %v450_v30  ;;  %v451_v40 = vadd.f32 %v1041_v12, %v412_v32  ;;  %v903_v41 = vunpack.c.l.bf16 %v954_v28 }
  0x4e   : > { %v573_v43 = vsel %vm505_vm0, %v571_v34, %v572_v35  ;;  %v452_v44 = vadd.f32 %v1041_v12, %v413_v37  ;;  %v574_v45 = vrot.slane %v372_v36, 1  ;;  %v373_v46 = vunpack.c.l.bf16 %v833_v33 }
  0x4f   : > { %706 = vst [vmem:[%s1060_s6 + $0xc0] sm:$0xff] %v674_v38  ;;  %v675_v47 = vmax.f32 %v643_v39, 0.0  ;;  %v644_v48 = vadd.f32 %v573_v43, %v451_v40  ;;  %v374_v49 = vunpack.c.h.bf16 %v833_v33  ;;  %v414_v50 = vmul.f32 %v903_v41, %v1032_v1 }
  0x50   : > { %v575_v53 = vsel %vm505_vm0, %v572_v35, %v574_v45  ;;  %v576_v54 = vrot.slane %v373_v46, 1  ;;  %v904_v55 = vunpack.c.h.bf16 %v954_v28  ;;  %v375_v56 = vunpack.c.l.bf16 %v835_v42 }
  0x51   : > { %707 = vst [vmem:[%s1060_s6 + $0xc8] sm:$0xff] %v675_v47  ;;  %v676_v57 = vmax.f32 %v644_v48, 0.0  ;;  %v645_v58 = vadd.f32 %v575_v53, %v452_v44  ;;  %v453_v59 = vadd.f32 %v1041_v12, %v414_v50  ;;  %v577_v60 = vrot.slane %v374_v49, 1 }
  0x52   : > { %v415_v61 = vmul.f32 %v904_v55, %v1032_v1  ;;  %v579_v62 = vrot.slane %v375_v56, 1  ;;  %v907_v63 = vunpack.c.l.bf16 %v955_v51  ;;  %v939_v0 = vunpack.c.l.bf16 %v963_v52 }
  0x53   : > { %708 = vst [vmem:[%s1060_s6 + $0xd0] sm:$0xff] %v676_v57  ;;  %v677_v3 = vmax.f32 %v645_v58, 0.0  ;;  %v578_v4 = vsel %vm505_vm0, %v576_v54, %v577_v60  ;;  %v940_v5 = vunpack.c.h.bf16 %v963_v52  ;;  %v908_v6 = vunpack.c.h.bf16 %v955_v51 }
  0x54   : > { %v646_v7 = vadd.f32 %v578_v4, %v453_v59  ;;  %v454_v8 = vadd.f32 %v1041_v12, %v415_v61  ;;  %v580_v9 = vsel %vm505_vm0, %v577_v60, %v579_v62  ;;  %v416_v10 = vmul.f32 %v907_v63, %v1032_v1 }
  0x55   : > { %709 = vst [vmem:[%s1060_s6 + $0xd8] sm:$0xff] %v677_v3  ;;  %v581_v11 = vrot.slane %v939_v0, 1  ;;  %v582_v13 = vrot.slane %v940_v5, 1  ;;  %v378_v14 = vunpack.c.l.bf16 %v838_v2  ;;  %v417_v15 = vmul.f32 %v908_v6, %v1032_v1 }
  0x56   : > { %v678_v16 = vmax.f32 %v646_v7, 0.0  ;;  %v647_v17 = vadd.f32 %v580_v9, %v454_v8  ;;  %v455_v18 = vadd.f32 %v1041_v12, %v416_v10 }
  0x57   : > { %v583_v19 = vsel %vm505_vm0, %v581_v11, %v582_v13  ;;  %v456_v20 = vadd.f32 %v1041_v12, %v417_v15  ;;  %v584_v21 = vrot.slane %v378_v14, 1 }
  0x58   : > { %710 = vst [vmem:[%s1060_s6 + $0xe0] sm:$0xff] %v678_v16  ;;  %v679_v22 = vmax.f32 %v647_v17, 0.0  ;;  %v648_v23 = vadd.f32 %v583_v19, %v455_v18 }
  0x59   : > { %v585_v24 = vsel %vm505_vm0, %v582_v13, %v584_v21 }
  0x5a   : > { %711 = vst [vmem:[%s1060_s6 + $0xe8] sm:$0xff] %v679_v22  ;;  %v680_v25 = vmax.f32 %v648_v23, 0.0  ;;  %v649_v26 = vadd.f32 %v585_v24, %v456_v20 }
  0x5c   : > { %712 = vst [vmem:[%s1060_s6 + $0xf0] sm:$0xff] %v680_v25  ;;  %v681_v1 = vmax.f32 %v649_v26, 0.0 }
  0x5e   : > { %713 = vst [vmem:[%s1060_s6 + $0xf8] sm:$0xff] %v681_v1 }
  0x5f PF: > { %s14_s15 = sadd.s32 1, %s979_s15  }
  0x60   : > { %p11_p4 = scmp.ge.s32.totalorder %s14_s15, 4  }
  0x62   :  { %13 = sbr.rel (!%p11_p4) target bundleno = 1 (0x1), region = 70 }

// kernel: basic_block_forward.3
= control target key start
LH: loop header
LB: loop body
LE: loop exit
PB: predicated region body
PF: predicated region fallthrough
CT: control target
= control target key end

     0   :  { %s7726_s15 = smov 0   ;;  %s9941_s0 = inlined_call_operand.vmem [shape: bf16[2,18,18,128], index: 0, kind: input, shape index: {}]   ;;  %s9942_s1 = inlined_call_operand.vmem [shape: bf16[9,128,128], index: 1, kind: input, shape index: {}]   ;;  %s9943_s2 = inlined_call_operand.vmem [shape: bf16[2,18,18,128], index: 2, kind: output, shape index: {0}]   ;;  %s9944_s3 = inlined_call_operand.vmem [shape: f32[2,8,128], index: 3, kind: output, shape index: {1}]   ;;  %s9945_s4 = inlined_call_operand.vmem [shape: f32[2,8,128], index: 4, kind: output, shape index: {2}]  }
   0x1 LB: > { %s5833_s16 = sadd.s32 4294967295, %s7698_s15   ;;  %p5837_p0 = scmp.ge.s32.totalorder %s7698_s15, 1  ;;  %s7698_s15 = sphi %s7726_s15, %s15_s15  }
   0x2   : > { %p167_p1 = scmp.lt.s32.totalorder %s7698_s15, 3 }
   0x4   : > { %p168_p2 = pnand %p5837_p0, %p167_p1 }
   0x6   : > { %171 = sbr.rel (%p168_p2) target bundleno = 619 (0x26b), region = 28 }
   0xd   : > { %v7502_v0 = vld [vmem:[%s9942_s1 + $0x40] sm:$0xff]   ;;  %p201_p3 = scmp.lt.s32.totalorder %s5833_s16, 1  ;;  %v7504_v2 = vld [vmem:[%s9942_s1 + $0x48] sm:$0xff]   ;;  %v7506_v4 = vld [vmem:[%s9942_s1 + $0x50] sm:$0xff]   ;;  %vm284_vm0 = vsmask.f32 3328 }
   0xe   : > { %v7503_v1 = vld [vmem:[%s9942_s1 + $0x100] sm:$0xff]   ;;  %6788 = vmatprep.subr.bf16.mxu1 %v7502_v0  ;;  %v7505_v3 = vld [vmem:[%s9942_s1 + $0x108] sm:$0xff]   ;;  %v7507_v5 = vld [vmem:[%s9942_s1 + $0x110] sm:$0xff]   ;;  %vm285_vm1 = vsmask.f32 7440  ;;  %vm1314_vm3 = vcmask 1042432  }
   0xf   : > { %6980 = vmatprep.subr.bf16.mxu0 %v7503_v1  ;;  %6789 = vmatpush3.bf16.msra.mxu1 %v7502_v0  ;;  %s10019_s16 = smov (!%p201_p3, %s5833_s16), 1  ;;  %v7508_v6 = vld [vmem:[%s9942_s1 + $0x58] sm:$0xff]   ;;  %v7510_v8 = vld [vmem:[%s9942_s1 + $0x60] sm:$0xff]   ;;  %v7512_v10 = vld [vmem:[%s9942_s1 + $0x68] sm:$0xff]   ;;  %vm1315_vm4 = vcmask 1046532   ;;  %v7700_v37 = vmov 0  }
  0x10   : > { %6981 = vmatpush3.bf16.msra.mxu0 %v7503_v1  ;;  %6790 = vmatprep.subr.bf16.mxu1 %v7504_v2  ;;  %v7509_v7 = vld [vmem:[%s9942_s1 + $0x118] sm:$0xff]   ;;  %s7492_s7 = smul.u32 216, %s10019_s16  ;;  %v7511_v9 = vld [vmem:[%s9942_s1 + $0x120] sm:$0xff]   ;;  %v7513_v11 = vld [vmem:[%s9942_s1 + $0x128] sm:$0xff]   ;;  %vm5599_vm6 = vcmask 1043456   ;;  %vm5606_vm10 = vcmask 1040384  }
  0x11   : > { %6982 = vmatprep.subr.bf16.mxu0 %v7505_v3  ;;  %v7514_v25 = vld [vmem:[%s9942_s1 + $0x70] sm:$0xff]   ;;  %v7516_v36 = vld [vmem:[%s9942_s1 + $0x78] sm:$0xff]   ;;  %vm7804_vm2 = vmor %vm284_vm0, %vm285_vm1  ;;  %vm5600_vm7 = vsmask.f32 7938  ;;  %vm5275_vm8 = vsmask.f32 256 }
  0x12   : > { %s7772_s14 = scalar_lea.vmem %s9941_s0, %s7492_s7  ;;  %v7515_v30 = vld [vmem:[%s9942_s1 + $0x130] sm:$0xff]   ;;  %v7517_v51 = vld [vmem:[%s9942_s1 + $0x138] sm:$0xff]   ;;  %vm8050_vm5 = vmor %vm1314_vm3, %vm1315_vm4  ;;  %s9505_s26 = scalar_lea.vmem %s9943_s2, %s7492_s7  ;;  %vm5276_vm9 = vsmask.f32 4368 }
  0x13   : > { %6791 = vmatpush3.bf16.msra.mxu1 %v7504_v2  ;;  %v220_v12 = vld [vmem:[%s7772_s14] sm:$0xf]  ;;  %v221_v13 = vld [vmem:[%s7772_s14 + $0x4] sm:$0xf]  ;;  %v268_v14 = vld [vmem:[%s7772_s14 + $0x8] sm:$0x1] }
  0x14   : > { %6983 = vmatpush3.bf16.msra.mxu0 %v7505_v3  ;;  %6792 = vmatprep.subr.bf16.mxu1 %v7506_v4  ;;  %v288_v15 = vshrl.u32 %v220_v12, 16  ;;  %v291_v16 = vshll.u32 %v220_v12, 16  ;;  %v297_v17 = vshll.u32 %v221_v13, 16  ;;  %v301_v18 = vshrl.u32 %v221_v13, 16  ;;  %v6034_v20 = vld [vmem:[%s7772_s14 + $0xc] sm:$0xf]  ;;  %vm9587_vm11 = vmand %vm5599_vm6, %vm5600_vm7 }
  0x15   : > { %6984 = vmatprep.subr.bf16.mxu0 %v7507_v5  ;;  %v307_v19 = vshll.u32 %v268_v14, 16  ;;  %v7785_v23 = vld [vmem:[%s7772_s14 + $0x10] sm:$0xf]  ;;  %v7788_v24 = vld [vmem:[%s7772_s14 + $0x14] sm:$0x1]  ;;  %v2187_v29 = vshrl.u32 %v6034_v20, 16  ;;  %vm9595_vm12 = vmor %vm5275_vm8, %vm5276_vm9 }
  0x16   : > { %v290_v21 = vrot.slane %v288_v15, 4  ;;  %v293_v22 = vrot.slane %v291_v16, 5  ;;  %v299_v26 = vrot.slane %v297_v17, 5  ;;  %v303_v27 = vrot.slane %v301_v18, 4  ;;  %v222_v35 = vld [vmem:[%s7772_s14 + $0xc] sm:$0xf]  ;;  %vm9601_vm13 = vmand %vm5606_vm10, %vm5275_vm8 }
  0x17   : > { %6793 = vmatpush3.bf16.msra.mxu1 %v7506_v4  ;;  %v309_v28 = vrot.slane %v307_v19, 5  ;;  %v2190_v32 = vshll.u32 %v6034_v20, 16  ;;  %v2196_v33 = vshll.u32 %v7785_v23, 16  ;;  %v2200_v34 = vshrl.u32 %v7785_v23, 16  ;;  %v223_v42 = vld [vmem:[%s7772_s14 + $0x10] sm:$0xf] }
  0x18   : > { %6985 = vmatpush3.bf16.msra.mxu0 %v7507_v5  ;;  %6794 = vmatprep.subr.bf16.mxu1 %v7508_v6  ;;  %v294_v31 = vor.u32 %v293_v22, %v290_v21  ;;  %v304_v38 = vor.u32 %v303_v27, %v299_v26  ;;  %v2189_v39 = vrot.slane %v2187_v29, 4  ;;  %v2206_v40 = vshll.u32 %v7788_v24, 16  ;;  %v269_v55 = vld [vmem:[%s7772_s14 + $0x14] sm:$0x1]  ;;  %v6037_v57 = vld [vmem:[%s7772_s14 + $0x18] sm:$0xf] }
  0x19   : > { %6986 = vmatprep.subr.bf16.mxu0 %v7509_v7  ;;  %v2961_v41 = vrot.slane %v7788_v24, 5  ;;  %v2192_v44 = vrot.slane %v2190_v32, 5  ;;  %v2198_v45 = vrot.slane %v2196_v33, 5  ;;  %v2202_v46 = vrot.slane %v2200_v34, 4  ;;  %v7821_v62 = vld [vmem:[%s7772_s14 + $0x1c] sm:$0xf] }
  0x1a   : > { %v295_v43 = vrot.slane %v294_v31, 4  ;;  %v305_v47 = vrot.slane %v304_v38, 4  ;;  %v2208_v48 = vrot.slane %v2206_v40, 5  ;;  %v312_v49 = vshrl.u32 %v222_v35, 16  ;;  %v7518_v3 = vld [vmem:[%s9942_s1] sm:$0xff]   ;;  %5141 = vst [vmem:[%s9505_s26] sm:$0xf] %v7700_v37 }
  0x1b   : > { %6795 = vmatpush3.bf16.msra.mxu1 %v7508_v6  ;;  %v315_v50 = vshll.u32 %v222_v35, 16  ;;  %v2193_v53 = vor.u32 %v2192_v44, %v2189_v39  ;;  %v2203_v54 = vor.u32 %v2202_v46, %v2198_v45  ;;  %v321_v56 = vshll.u32 %v223_v42, 16  ;;  %v7829_v4 = vld [vmem:[%s9942_s1 + $0x140] sm:$0xff]   ;;  %v224_v21 = vld [vmem:[%s7772_s14 + $0x18] sm:$0xf]  ;;  %v7521_v46 = vld [vmem:[%s9942_s1 + $0x8] sm:$0xff]  }
  0x1c   : > { %6987 = vmatpush3.bf16.msra.mxu0 %v7509_v7  ;;  %6796 = vmatprep.subr.bf16.mxu1 %v7510_v8  ;;  %v300_v52 = vsel %vm7804_vm2, %v295_v43, %v299_v26  ;;  %v310_v58 = vsel %vm7804_vm2, %v305_v47, %v309_v28  ;;  %v314_v59 = vrot.slane %v312_v49, 4  ;;  %v325_v61 = vshrl.u32 %v223_v42, 16  ;;  %v225_v28 = vld [vmem:[%s7772_s14 + $0x1c] sm:$0xf]  ;;  %v270_v33 = vld [vmem:[%s7772_s14 + $0x20] sm:$0x1] }
  0x1d   : > { %6988 = vmatprep.subr.bf16.mxu0 %v7511_v9  ;;  %v317_v60 = vrot.slane %v315_v50, 5  ;;  %v5858_v63 = vcombine.low %v300_v52, %v310_v58  ;;  %v2194_v0 = vrot.slane %v2193_v53, 4  ;;  %v2204_v1 = vrot.slane %v2203_v54, 4  ;;  %v6040_v39 = vld [vmem:[%s7772_s14 + $0x24] sm:$0xf]  ;;  %s5840_s7 = sshll.u32 %s10019_s16, 3 }
  0x1e   : > { %v323_v2 = vrot.slane %v321_v56, 5  ;;  %v327_v6 = vrot.slane %v325_v61, 4  ;;  %v331_v7 = vshll.u32 %v269_v55, 16  ;;  %v2214_v12 = vshll.u32 %v6037_v57, 16  ;;  %v226_v52 = vld [vmem:[%s7772_s14 + $0x24] sm:$0xf]  ;;  %s214_s28 = scalar_lea.vmem %s9944_s3, %s5840_s7  ;;  %s218_s5 = scalar_lea.vmem %s9945_s4, %s5840_s7 }
  0x1f   : > { %6797 = vmatpush3.bf16.msra.mxu1 %v7510_v8  ;;  %v318_v5 = vor.u32 %v317_v60, %v314_v59  ;;  %v7832_v8 = vld [vmem:[%s7772_s14 + $0x20] sm:$0x1]  ;;  %6804 = vmatprep.mubr.bf16.mxu1 %v5858_v63  ;;  %v2220_v19 = vshll.u32 %v7821_v62, 16  ;;  %v2224_v20 = vshrl.u32 %v7821_v62, 16  ;;  %v2965_v27 = vrot.slane %v7821_v62, 5  ;;  %v7520_v63 = vld [vmem:[%s9942_s1 + $0x148] sm:$0xff]  }
  0x20   : > { %6989 = vmatpush3.bf16.msra.mxu0 %v7511_v9  ;;  %6798 = vmatprep.subr.bf16.mxu1 %v7512_v10  ;;  %v2199_v9 = vsel %vm7804_vm2, %v2194_v0, %v2198_v45  ;;  %v328_v15 = vor.u32 %v327_v6, %v323_v2  ;;  %v333_v16 = vrot.slane %v331_v7, 5  ;;  %v2216_v18 = vrot.slane %v2214_v12, 5  ;;  %v7857_v45 = vld [vmem:[%s7772_s14 + $0x28] sm:$0xf]  ;;  %5147 = vst [vmem:[%s9505_s26 + $0x18] sm:$0xf] %v7700_v37 }
  0x21   : > { %6990 = vmatprep.subr.bf16.mxu0 %v7513_v11  ;;  %v319_v14 = vrot.slane %v318_v5, 4  ;;  %v2230_v26 = vshll.u32 %v7832_v8, 16  ;;  %v2226_v31 = vrot.slane %v2224_v20, 4  ;;  %v2968_v32 = vrot.slane %v7832_v8, 5  ;;  %v227_v5 = vld [vmem:[%s7772_s14 + $0x28] sm:$0xf] }
  0x22   : > { %v336_v38 = vshrl.u32 %v224_v21, 16  ;;  %v339_v44 = vshll.u32 %v224_v21, 16  ;;  %v349_v49 = vshrl.u32 %v225_v28, 16  ;;  %v355_v50 = vshll.u32 %v270_v33, 16  ;;  %v7888_v33 = vld [vmem:[%s7772_s14 + $0x34] sm:$0xf] }
  0x23   : > { %6799 = vmatpush3.bf16.msra.mxu1 %v7512_v10  ;;  %v2209_v10 = vsel %vm7804_vm2, %v2204_v1, %v2208_v48  ;;  %v324_v22 = vsel %vm7804_vm2, %v319_v14, %v323_v2  ;;  %v2232_v35 = vrot.slane %v2230_v26, 5  ;;  %v345_v48 = vshll.u32 %v225_v28, 16  ;;  %5142 = vst [vmem:[%s9505_s26 + $0x4] sm:$0xf] %v7700_v37  ;;  %5143 = vst [vmem:[%s9505_s26 + $0x8] sm:$0x1] %v7700_v37 }
  0x24   : > { %6991 = vmatpush3.bf16.msra.mxu0 %v7513_v11  ;;  %6800 = vmatprep.subr.bf16.mxu1 %v7514_v25  ;;  %v2211_v11 = vshrl.u32 %v6037_v57, 16  ;;  %v6098_v13 = vcombine.low %v2199_v9, %v2209_v10  ;;  %v338_v47 = vrot.slane %v336_v38, 4  ;;  %v341_v55 = vrot.slane %v339_v44, 5  ;;  %5144 = vst [vmem:[%s9505_s26 + $0xc] sm:$0xf] %v7700_v37 }
  0x25   : > { %6992 = vmatprep.subr.bf16.mxu0 %v7515_v30  ;;  %v2235_v56 = vshrl.u32 %v6040_v39, 16  ;;  %v347_v57 = vrot.slane %v345_v48, 5  ;;  %v351_v58 = vrot.slane %v349_v49, 4  ;;  %v357_v59 = vrot.slane %v355_v50, 5  ;;  %v7523_v48 = vld [vmem:[%s9942_s1 + $0x158] sm:$0xff]  }
  0x26   : > { %v2213_v17 = vrot.slane %v2211_v11, 4  ;;  %6996 = vmatprep.mubr.bf16.mxu0 %v6098_v13  ;;  %v2238_v60 = vshll.u32 %v6040_v39, 16  ;;  %v342_v0 = vor.u32 %v341_v55, %v338_v47  ;;  %v2244_v2 = vshll.u32 %v7857_v45, 16  ;;  %v271_v11 = vld [vmem:[%s7772_s14 + $0x2c] sm:$0x1] }
  0x27   : > { %6801 = vmatpush3.bf16.msra.mxu1 %v7514_v25  ;;  %v329_v25 = vrot.slane %v328_v15, 4  ;;  %v2237_v1 = vrot.slane %v2235_v56, 4  ;;  %v352_v7 = vor.u32 %v351_v58, %v347_v57  ;;  %v2248_v10 = vshrl.u32 %v7857_v45, 16  ;;  %5145 = vst [vmem:[%s9505_s26 + $0x10] sm:$0xf] %v7700_v37 }
  0x28   : > { %6993 = vmatpush3.bf16.msra.mxu0 %v7515_v30  ;;  %6802 = vmatprep.subr.bf16.mxu1 %v7516_v36  ;;  %v2217_v29 = vor.u32 %v2216_v18, %v2213_v17  ;;  %v2222_v30 = vrot.slane %v2220_v19, 5  ;;  %v2240_v9 = vrot.slane %v2238_v60, 5  ;;  %v343_v12 = vrot.slane %v342_v0, 4  ;;  %v7530_v60 = vld [vmem:[%s9942_s1 + $0x20] sm:$0xff]   ;;  %5146 = vst [vmem:[%s9505_s26 + $0x14] sm:$0x1] %v7700_v37 }
  0x29   : > { %6994 = vmatprep.subr.bf16.mxu0 %v7517_v51  ;;  %v334_v34 = vsel %vm7804_vm2, %v329_v25, %v333_v16  ;;  %v2246_v13 = vrot.slane %v2244_v2, 5  ;;  %v360_v15 = vshrl.u32 %v226_v52, 16  ;;  %v6043_v16 = vld [vmem:[%s7772_s14 + $0x30] sm:$0xf]  ;;  %v353_v17 = vrot.slane %v352_v7, 4 }
  0x2a   : > { %v5859_v40 = vcombine.low %v324_v22, %v334_v34  ;;  %v2218_v42 = vrot.slane %v2217_v29, 4  ;;  %v2227_v43 = vor.u32 %v2226_v31, %v2222_v30  ;;  %v2241_v18 = vor.u32 %v2240_v9, %v2237_v1  ;;  %v7527_v34 = vld [vmem:[%s9942_s1 + $0x18] sm:$0xff]   ;;  %5148 = vst [vmem:[%s9505_s26 + $0x1c] sm:$0xf] %v7700_v37  ;;  %5149 = vst [vmem:[%s9505_s26 + $0x20] sm:$0x1] %v7700_v37 }
  0x2b   : > { %6803 = vmatpush3.bf16.msra.mxu1 %v7516_v36  ;;  %v7853_v36 = vrot.slane %v2965_v27, 4  ;;  %v2250_v19 = vrot.slane %v2248_v10, 4  ;;  %v363_v20 = vshll.u32 %v226_v52, 16  ;;  %v348_v21 = vsel %vm7804_vm2, %v343_v12, %v347_v57  ;;  %v272_v2 = vld [vmem:[%s7772_s14 + $0x38] sm:$0x1] }
  0x2c   : > { %6995 = vmatpush3.bf16.msra.mxu0 %v7517_v51  ;;  %6836 = vmatprep.subr.bf16.mxu1 %v7518_v3  ;;  %v7863_v51 = vld [vmem:[%s7772_s14 + $0x2c] sm:$0x1]  ;;  %v2223_v53 = vsel %vm7804_vm2, %v2218_v42, %v2222_v30  ;;  %v2228_v54 = vrot.slane %v2227_v43, 4  ;;  %v362_v25 = vrot.slane %v360_v15, 4  ;;  %v369_v26 = vshll.u32 %v227_v5, 16 }
  0x2d   : > { %7028 = vmatprep.subr.bf16.mxu0 %v7829_v4  ;;  %v2254_v14 = vshll.u32 %v7863_v51, 16  ;;  %v358_v28 = vsel %vm7804_vm2, %v353_v17, %v357_v59  ;;  %v2242_v29 = vrot.slane %v2241_v18, 4  ;;  %v2251_v30 = vor.u32 %v2250_v19, %v2246_v13  ;;  %v229_v59 = vld [vmem:[%s7772_s14 + $0x34] sm:$0xf]  ;;  %v6046_v9 = vld [vmem:[%s7772_s14 + $0x3c] sm:$0xf] }
  0x2e   : > { %6805 = vmatmul.mubr.bf16.vlgmr.msra.gmra.mrb[0].mxu1 %v5859_v40  ;;  %v2233_v61 = vsel %vm7804_vm2, %v2228_v54, %v2232_v35  ;;  %v365_v31 = vrot.slane %v363_v20, 5  ;;  %v5860_v35 = vcombine.low %v348_v21, %v358_v28  ;;  %v371_v38 = vrot.slane %v369_v26, 5  ;;  %v228_v54 = vld [vmem:[%s7772_s14 + $0x30] sm:$0xf]  ;;  %v7922_v19 = vld [vmem:[%s7772_s14 + $0x40] sm:$0xf] }
  0x2f   : > { %6837 = vmatpush3.bf16.msra.mxu1 %v7518_v3  ;;  %v7524_v3 = vld [vmem:[%s9942_s1 + $0x10] sm:$0xff]   ;;  %v6099_v6 = vcombine.low %v2223_v53, %v2233_v61  ;;  %v2256_v22 = vrot.slane %v2254_v14, 5  ;;  %v373_v39 = vshrl.u32 %v227_v5, 16  ;;  %v379_v40 = vshll.u32 %v271_v11, 16  ;;  %v7532_v14 = vld [vmem:[%s9942_s1 + $0x28] sm:$0xff]   ;;  %v7525_v20 = vld [vmem:[%s9942_s1 + $0x160] sm:$0xff]  }
  0x30   : > { %6838 = vmatprep.subr.bf16.mxu1 %v7521_v46  ;;  %v2247_v42 = vsel %vm7804_vm2, %v2242_v29, %v2246_v13  ;;  %v2252_v43 = vrot.slane %v2251_v30, 4  ;;  %v366_v44 = vor.u32 %v365_v31, %v362_v25  ;;  %v2259_v47 = vshrl.u32 %v6043_v16, 16  ;;  %6808 = vmatprep.mubr.bf16.mxu1 %v5860_v35  ;;  %v7930_v28 = vld [vmem:[%s7772_s14 + $0x44] sm:$0x1]  ;;  %v7534_v35 = vld [vmem:[%s9942_s1 + $0x30] sm:$0xff]  }
  0x31   : > { %6997 = vmatmul.mubr.bf16.vlgmr.msra.gmra.mrb[0].mxu0 %v6099_v6  ;;  %v375_v49 = vrot.slane %v373_v39, 4  ;;  %v381_v50 = vrot.slane %v379_v40, 5  ;;  %v2262_v52 = vshll.u32 %v6043_v16, 16  ;;  %v2268_v53 = vshll.u32 %v7888_v33, 16  ;;  %5150 = vst [vmem:[%s9505_s26 + $0x24] sm:$0xf] %v7700_v37 }
  0x32   : > { %7029 = vmatpush3.bf16.msra.mxu0 %v7829_v4  ;;  %v7522_v4 = vld [vmem:[%s9942_s1 + $0x150] sm:$0xff]   ;;  %v2257_v55 = vsel %vm7804_vm2, %v2252_v43, %v2256_v22  ;;  %v367_v56 = vrot.slane %v366_v44, 4  ;;  %v2261_v57 = vrot.slane %v2259_v47, 4  ;;  %v2272_v58 = vshrl.u32 %v7888_v33, 16  ;;  %5151 = vst [vmem:[%s9505_s26 + $0x28] sm:$0xf] %v7700_v37 }
  0x33   : > { %6839 = vmatpush3.bf16.msra.mxu1 %v7521_v46  ;;  %7030 = vmatprep.subr.bf16.mxu0 %v7520_v63  ;;  %v7899_v46 = vld [vmem:[%s7772_s14 + $0x38] sm:$0x1]  ;;  %v6100_v61 = vcombine.low %v2247_v42, %v2257_v55  ;;  %v2264_v0 = vrot.slane %v2262_v52, 5  ;;  %v2270_v1 = vrot.slane %v2268_v53, 5  ;;  %v384_v7 = vshrl.u32 %v228_v54, 16 }
  0x34   : > { %6840 = vmatprep.subr.bf16.mxu1 %v7524_v3  ;;  %v372_v5 = vsel %vm7804_vm2, %v367_v56, %v371_v38  ;;  %v2278_v6 = vshll.u32 %v7899_v46, 16  ;;  %v387_v12 = vshll.u32 %v228_v54, 16  ;;  %v393_v13 = vshll.u32 %v229_v59, 16  ;;  %v231_v55 = vld [vmem:[%s7772_s14 + $0x40] sm:$0xf] }
  0x35   : > { %7000 = vmatprep.mubr.bf16.mxu0 %v6100_v61  ;;  %v2265_v11 = vor.u32 %v2264_v0, %v2261_v57  ;;  %v386_v17 = vrot.slane %v384_v7, 4  ;;  %v397_v18 = vshrl.u32 %v229_v59, 16  ;;  %v2283_v40 = vshrl.u32 %v6046_v9, 16  ;;  %5152 = vst [vmem:[%s9505_s26 + $0x2c] sm:$0x1] %v7700_v37 }
  0x36   : > { %7031 = vmatpush3.bf16.msra.mxu0 %v7520_v63  ;;  %v376_v63 = vor.u32 %v375_v49, %v371_v38  ;;  %v2280_v16 = vrot.slane %v2278_v6, 5  ;;  %v389_v25 = vrot.slane %v387_v12, 5  ;;  %v395_v26 = vrot.slane %v393_v13, 5  ;;  %5153 = vst [vmem:[%s9505_s26 + $0x30] sm:$0xf] %v7700_v37 }
  0x37   : > { %6841 = vmatpush3.bf16.msra.mxu1 %v7524_v3  ;;  %7032 = vmatprep.subr.bf16.mxu0 %v7522_v4  ;;  %v2274_v3 = vrot.slane %v2272_v58, 4  ;;  %v2266_v22 = vrot.slane %v2265_v11, 4  ;;  %v399_v31 = vrot.slane %v397_v18, 4  ;;  %v2286_v42 = vshll.u32 %v6046_v9, 16  ;;  %v6049_v9 = vld [vmem:[%s7772_s14 + $0x48] sm:$0xf] }
  0x38   : > { %6842 = vmatprep.subr.bf16.mxu1 %v7527_v34  ;;  %v377_v10 = vrot.slane %v376_v63, 4  ;;  %v390_v39 = vor.u32 %v389_v25, %v386_v17  ;;  %v2292_v49 = vshll.u32 %v7922_v19, 16  ;;  %v2285_v53 = vrot.slane %v2283_v40, 4  ;;  %v273_v63 = vld [vmem:[%s7772_s14 + $0x44] sm:$0x1] }
  0x39   : > { %v2275_v15 = vor.u32 %v2274_v3, %v2270_v1  ;;  %v2271_v38 = vsel %vm7804_vm2, %v2266_v22, %v2270_v1  ;;  %v400_v44 = vor.u32 %v399_v31, %v395_v26  ;;  %v2288_v54 = vrot.slane %v2286_v42, 5  ;;  %v7963_v22 = vld [vmem:[%s7772_s14 + $0x50] sm:$0x1]  ;;  %v7529_v31 = vld [vmem:[%s9942_s1 + $0x178] sm:$0xff]   ;;  %5154 = vst [vmem:[%s9505_s26 + $0x34] sm:$0xf] %v7700_v37 }
  0x3a   : > { %7033 = vmatpush3.bf16.msra.mxu0 %v7522_v4  ;;  %v382_v21 = vsel %vm7804_vm2, %v377_v10, %v381_v50  ;;  %v403_v4 = vshll.u32 %v272_v2, 16  ;;  %v391_v52 = vrot.slane %v390_v39, 4  ;;  %v2294_v57 = vrot.slane %v2292_v49, 5  ;;  %v7536_v2 = vld [vmem:[%s9942_s1 + $0x38] sm:$0xff]   ;;  %5155 = vst [vmem:[%s9505_s26 + $0x38] sm:$0x1] %v7700_v37 }
  0x3b   : > { %6843 = vmatpush3.bf16.msra.mxu1 %v7527_v34  ;;  %7034 = vmatprep.subr.bf16.mxu0 %v7523_v48  ;;  %v5861_v29 = vcombine.low %v372_v5, %v382_v21  ;;  %v2276_v30 = vrot.slane %v2275_v15, 4  ;;  %v230_v34 = vld [vmem:[%s7772_s14 + $0x3c] sm:$0xf]  ;;  %v401_v56 = vrot.slane %v400_v44, 4  ;;  %v2296_v58 = vshrl.u32 %v7922_v19, 16  ;;  %v7528_v15 = vld [vmem:[%s9942_s1 + $0x170] sm:$0xff]  }
  0x3c   : > { %6844 = vmatprep.subr.bf16.mxu1 %v7530_v60  ;;  %v405_v47 = vrot.slane %v403_v4, 5  ;;  %v2302_v59 = vshll.u32 %v7930_v28, 16  ;;  %v2289_v61 = vor.u32 %v2288_v54, %v2285_v53  ;;  %v408_v0 = vshrl.u32 %v230_v34, 16  ;;  %v7974_v4 = vld [vmem:[%s9942_s1 + $0x80] sm:$0xff]   ;;  %v233_v53 = vld [vmem:[%s7772_s14 + $0x4c] sm:$0xf] }
  0x3d   : > { %6809 = vmatmul.mubr.bf16.gmra.mrb[4].mxu1 %v5861_v29  ;;  %v2281_v43 = vsel %vm7804_vm2, %v2276_v30, %v2280_v16  ;;  %v411_v1 = vshll.u32 %v230_v34, 16  ;;  %v2298_v3 = vrot.slane %v2296_v58, 4  ;;  %v417_v7 = vshll.u32 %v231_v55, 16  ;;  %v232_v30 = vld [vmem:[%s7772_s14 + $0x48] sm:$0xf] }
  0x3e   : > { %7035 = vmatpush3.bf16.msra.mxu0 %v7523_v48  ;;  %v6101_v50 = vcombine.low %v2271_v38, %v2281_v43  ;;  %v7526_v48 = vld [vmem:[%s9942_s1 + $0x168] sm:$0xff]   ;;  %v406_v5 = vsel %vm7804_vm2, %v401_v56, %v405_v47  ;;  %v2304_v6 = vrot.slane %v2302_v59, 5  ;;  %v2290_v11 = vrot.slane %v2289_v61, 4  ;;  %v274_v54 = vld [vmem:[%s7772_s14 + $0x50] sm:$0x1] }
  0x3f   : > { %6845 = vmatpush3.bf16.msra.mxu1 %v7530_v60  ;;  %7036 = vmatprep.subr.bf16.mxu0 %v7525_v20  ;;  %v396_v60 = vsel %vm7804_vm2, %v391_v52, %v395_v26  ;;  %v410_v12 = vrot.slane %v408_v0, 4  ;;  %v413_v13 = vrot.slane %v411_v1, 5  ;;  %v2299_v16 = vor.u32 %v2298_v3, %v2294_v57  ;;  %v6052_v58 = vld [vmem:[%s7772_s14 + $0x54] sm:$0xf]  ;;  %v7988_v0 = vld [vmem:[%s7772_s14 + $0x58] sm:$0xf] }
  0x40   : > { %6846 = vmatprep.subr.bf16.mxu1 %v7532_v14  ;;  %7001 = vmatmul.mubr.bf16.gmra.mrb[4].mxu0 %v6101_v50  ;;  %v5862_v10 = vcombine.low %v396_v60, %v406_v5  ;;  %v419_v17 = vrot.slane %v417_v7, 5  ;;  %v421_v18 = vshrl.u32 %v231_v55, 16  ;;  %v427_v21 = vshll.u32 %v273_v63, 16  ;;  %5156 = vst [vmem:[%s9505_s26 + $0x3c] sm:$0xf] %v7700_v37 }
  0x41   : > { %v414_v25 = vor.u32 %v413_v13, %v410_v12  ;;  %v2307_v26 = vshrl.u32 %v6049_v9, 16  ;;  %v2310_v29 = vshll.u32 %v6049_v9, 16  ;;  %v2300_v34 = vrot.slane %v2299_v16, 4  ;;  %5157 = vst [vmem:[%s9505_s26 + $0x40] sm:$0xf] %v7700_v37 }
  0x42   : > { %7037 = vmatpush3.bf16.msra.mxu0 %v7525_v20  ;;  %6812 = vmatprep.mubr.bf16.mxu1 %v5862_v10  ;;  %v2295_v20 = vsel %vm7804_vm2, %v2290_v11, %v2294_v57  ;;  %v429_v38 = vrot.slane %v427_v21, 5  ;;  %v2326_v52 = vshll.u32 %v7963_v22, 16  ;;  %v432_v61 = vshrl.u32 %v232_v30, 16  ;;  %5158 = vst [vmem:[%s9505_s26 + $0x44] sm:$0x1] %v7700_v37 }
  0x43   : > { %6847 = vmatpush3.bf16.msra.mxu1 %v7532_v14  ;;  %v7957_v14 = vld [vmem:[%s7772_s14 + $0x4c] sm:$0xf]  ;;  %7038 = vmatprep.subr.bf16.mxu0 %v7526_v48  ;;  %v415_v40 = vrot.slane %v414_v25, 4  ;;  %v2309_v42 = vrot.slane %v2307_v26, 4  ;;  %v2312_v43 = vrot.slane %v2310_v29, 5  ;;  %v2305_v47 = vsel %vm7804_vm2, %v2300_v34, %v2304_v6  ;;  %v7993_v6 = vld [vmem:[%s9942_s1 + $0x180] sm:$0xff]  }
  0x44   : > { %6848 = vmatprep.subr.bf16.mxu1 %v7534_v35  ;;  %v2316_v39 = vshll.u32 %v7957_v14, 16  ;;  %v2320_v44 = vshrl.u32 %v7957_v14, 16  ;;  %v6102_v55 = vcombine.low %v2295_v20, %v2305_v47  ;;  %v2328_v60 = vrot.slane %v2326_v52, 5  ;;  %v8000_v20 = vld [vmem:[%s7772_s14 + $0x5c] sm:$0x1] }
  0x45   : > { %v2313_v56 = vor.u32 %v2312_v43, %v2309_v42  ;;  %v435_v63 = vshll.u32 %v232_v30, 16  ;;  %v445_v3 = vshrl.u32 %v233_v53, 16  ;;  %v434_v9 = vrot.slane %v432_v61, 4  ;;  %v235_v43 = vld [vmem:[%s7772_s14 + $0x58] sm:$0xf] }
  0x46   : > { %7039 = vmatpush3.bf16.msra.mxu0 %v7526_v48  ;;  %v2318_v50 = vrot.slane %v2316_v39, 5  ;;  %v420_v48 = vsel %vm7804_vm2, %v415_v40, %v419_v17  ;;  %v2322_v57 = vrot.slane %v2320_v44, 4  ;;  %7004 = vmatprep.mubr.bf16.mxu0 %v6102_v55  ;;  %v451_v11 = vshll.u32 %v274_v54, 16  ;;  %v6055_v52 = vld [vmem:[%s7772_s14 + $0x60] sm:$0xf] }
  0x47   : > { %6849 = vmatpush3.bf16.msra.mxu1 %v7534_v35  ;;  %v423_v35 = vrot.slane %v421_v18, 4  ;;  %7040 = vmatprep.subr.bf16.mxu0 %v7528_v15  ;;  %v2314_v1 = vrot.slane %v2313_v56, 4  ;;  %v437_v10 = vrot.slane %v435_v63, 5  ;;  %v447_v18 = vrot.slane %v445_v3, 4  ;;  %5159 = vst [vmem:[%s9505_s26 + $0x48] sm:$0xf] %v7700_v37 }
  0x48   : > { %6850 = vmatprep.subr.bf16.mxu1 %v7536_v2  ;;  %v2323_v5 = vor.u32 %v2322_v57, %v2318_v50  ;;  %v453_v21 = vrot.slane %v451_v11, 5  ;;  %v2331_v25 = vshrl.u32 %v6052_v58, 16  ;;  %v2334_v29 = vshll.u32 %v6052_v58, 16  ;;  %5160 = vst [vmem:[%s9505_s26 + $0x4c] sm:$0xf] %v7700_v37 }
  0x49   : > { %v424_v49 = vor.u32 %v423_v35, %v419_v17  ;;  %v2319_v13 = vsel %vm7804_vm2, %v2314_v1, %v2318_v50  ;;  %v438_v17 = vor.u32 %v437_v10, %v434_v9  ;;  %v2340_v30 = vshll.u32 %v7988_v0, 16  ;;  %v234_v35 = vld [vmem:[%s7772_s14 + $0x54] sm:$0xf]  ;;  %v275_v50 = vld [vmem:[%s7772_s14 + $0x5c] sm:$0x1] }
  0x4a   : > { %7041 = vmatpush3.bf16.msra.mxu0 %v7528_v15  ;;  %v2324_v15 = vrot.slane %v2323_v5, 4  ;;  %v2344_v34 = vshrl.u32 %v7988_v0, 16  ;;  %v2333_v42 = vrot.slane %v2331_v25, 4  ;;  %v456_v55 = vshrl.u32 %v234_v35, 16  ;;  %v8028_v25 = vld [vmem:[%s7772_s14 + $0x60] sm:$0xf] }
  0x4b   : > { %6851 = vmatpush3.bf16.msra.mxu1 %v7536_v2  ;;  %v425_v59 = vrot.slane %v424_v49, 4  ;;  %v441_v2 = vshll.u32 %v233_v53, 16  ;;  %7042 = vmatprep.subr.bf16.mxu0 %v7529_v31  ;;  %v439_v39 = vrot.slane %v438_v17, 4  ;;  %v2342_v44 = vrot.slane %v2340_v30, 5  ;;  %v8024_v17 = vld [vmem:[%s7772_s14 + $0x68] sm:$0x1] }
  0x4c   : > { %6884 = vmatprep.subr.bf16.mxu1 %v7974_v4  ;;  %v2329_v26 = vsel %vm7804_vm2, %v2324_v15, %v2328_v60  ;;  %v2346_v47 = vrot.slane %v2344_v34, 4  ;;  %v2350_v49 = vshll.u32 %v8000_v20, 16  ;;  %v8015_v60 = vld [vmem:[%s7772_s14 + $0x64] sm:$0xf]  ;;  %v458_v63 = vrot.slane %v456_v55, 4 }
  0x4d   : > { %v430_v7 = vsel %vm7804_vm2, %v425_v59, %v429_v38  ;;  %v443_v16 = vrot.slane %v441_v2, 5  ;;  %v6103_v38 = vcombine.low %v2319_v13, %v2329_v26  ;;  %v465_v59 = vshll.u32 %v235_v43, 16  ;;  %5161 = vst [vmem:[%s9505_s26 + $0x50] sm:$0x1] %v7700_v37  ;;  %5162 = vst [vmem:[%s9505_s26 + $0x54] sm:$0xf] %v7700_v37 }
  0x4e   : > { %v5863_v12 = vcombine.low %v420_v48, %v430_v7  ;;  %7043 = vmatpush3.bf16.msra.mxu0 %v7529_v31  ;;  %v2336_v31 = vrot.slane %v2334_v29, 5  ;;  %v459_v48 = vshll.u32 %v234_v35, 16  ;;  %v2347_v57 = vor.u32 %v2346_v47, %v2342_v44  ;;  %v8031_v35 = vld [vmem:[%s7772_s14 + $0x64] sm:$0xf]  ;;  %5163 = vst [vmem:[%s9505_s26 + $0x58] sm:$0xf] %v7700_v37 }
  0x4f   : > { %7076 = vmatprep.subr.bf16.mxu0 %v7993_v6  ;;  %v448_v40 = vor.u32 %v447_v18, %v443_v16  ;;  %7005 = vmatmul.mubr.bf16.gmra.mrb[8].mxu0 %v6103_v38  ;;  %v444_v53 = vsel %vm7804_vm2, %v439_v39, %v443_v16  ;;  %v2352_v58 = vrot.slane %v2350_v49, 5  ;;  %v469_v5 = vshrl.u32 %v235_v43, 16  ;;  %v276_v43 = vld [vmem:[%s7772_s14 + $0x68] sm:$0x1]  ;;  %5164 = vst [vmem:[%s9505_s26 + $0x5c] sm:$0x1] %v7700_v37 }
  0x50   : > { %6813 = vmatmul.mubr.bf16.gmra.mrb[8].mxu1 %v5863_v12  ;;  %v2337_v56 = vor.u32 %v2336_v31, %v2333_v42  ;;  %v461_v1 = vrot.slane %v459_v48, 5  ;;  %v2348_v7 = vrot.slane %v2347_v57, 4  ;;  %v467_v9 = vrot.slane %v465_v59, 5  ;;  %5165 = vst [vmem:[%s9505_s26 + $0x60] sm:$0xf] %v7700_v37 }
  0x51   : > { %v449_v54 = vrot.slane %v448_v40, 4  ;;  %v471_v11 = vrot.slane %v469_v5, 4  ;;  %v475_v12 = vshll.u32 %v275_v50, 16  ;;  %v2355_v13 = vshrl.u32 %v6055_v52, 16  ;;  %v6122_v50 = vld [vmem:[%s7772_s14 + $0xc] sm:$0xe] }
  0x52   : > { %v2338_v3 = vrot.slane %v2337_v56, 4  ;;  %v462_v10 = vor.u32 %v461_v1, %v458_v63  ;;  %v2353_v16 = vsel %vm7804_vm2, %v2348_v7, %v2352_v58  ;;  %v2358_v18 = vshll.u32 %v6055_v52, 16  ;;  %v8046_v5 = vld [vmem:[%s7772_s14 + $0x6c] sm:$0xf]  ;;  %5166 = vst [vmem:[%s9505_s26 + $0x64] sm:$0xf] %v7700_v37 }
  0x53   : > { %v454_v61 = vsel %vm7804_vm2, %v449_v54, %v453_v21  ;;  %v2364_v21 = vshll.u32 %v8015_v60, 16  ;;  %v472_v30 = vor.u32 %v471_v11, %v467_v9  ;;  %v477_v34 = vrot.slane %v475_v12, 5  ;;  %5167 = vst [vmem:[%s9505_s26 + $0x68] sm:$0x1] %v7700_v37  ;;  %5168 = vst [vmem:[%s9505_s26 + $0x6c] sm:$0xf] %v7700_v37 }
  0x54   : > { %v5864_v2 = vcombine.low %v444_v53, %v454_v61  ;;  %v2343_v15 = vsel %vm7804_vm2, %v2338_v3, %v2342_v44  ;;  %v463_v29 = vrot.slane %v462_v10, 4  ;;  %v2357_v38 = vrot.slane %v2355_v13, 4  ;;  %5169 = vst [vmem:[%s9505_s26 + $0x70] sm:$0xf] %v7700_v37  ;;  %5170 = vst [vmem:[%s9505_s26 + $0x74] sm:$0x1] %v7700_v37 }
  0x55   : > { %v6104_v26 = vcombine.low %v2343_v15, %v2353_v16  ;;  %v2360_v39 = vrot.slane %v2358_v18, 5  ;;  %v2366_v40 = vrot.slane %v2364_v21, 5  ;;  %v2368_v42 = vshrl.u32 %v8015_v60, 16  ;;  %v8058_v21 = vld [vmem:[%s7772_s14 + $0x70] sm:$0xf] }
  0x56   : > { %6816 = vmatprep.mubr.bf16.mxu1 %v5864_v2  ;;  %v468_v31 = vsel %vm7804_vm2, %v463_v29, %v467_v9  ;;  %v473_v44 = vrot.slane %v472_v30, 4  ;;  %v2374_v47 = vshll.u32 %v8024_v17, 16  ;;  %v480_v49 = vshrl.u32 %v8028_v25, 16  ;;  %v7620_v9 = vld [vmem:[%s7772_s14 + $0xb4] sm:$0xff]   ;;  %5171 = vst [vmem:[%s9505_s26 + $0x78] sm:$0xf] %v7700_v37 }
  0x57   : > { %7008 = vmatprep.mubr.bf16.mxu0 %v6104_v26  ;;  %v2361_v52 = vor.u32 %v2360_v39, %v2357_v38  ;;  %v2370_v53 = vrot.slane %v2368_v42, 4  ;;  %v483_v54 = vshll.u32 %v8028_v25, 16  ;;  %v489_v55 = vshll.u32 %v8031_v35, 16  ;;  %5172 = vst [vmem:[%s9505_s26 + $0x7c] sm:$0xf] %v7700_v37 }
  0x58   : > { %v478_v48 = vsel %vm7804_vm2, %v473_v44, %v477_v34  ;;  %v2376_v56 = vrot.slane %v2374_v47, 5  ;;  %v482_v57 = vrot.slane %v480_v49, 4  ;;  %v493_v58 = vshrl.u32 %v8031_v35, 16  ;;  %v8069_v47 = vld [vmem:[%s7772_s14 + $0x78] sm:$0xf] }
  0x59   : > { %v5865_v59 = vcombine.low %v468_v31, %v478_v48  ;;  %v2362_v61 = vrot.slane %v2361_v52, 4  ;;  %v2371_v63 = vor.u32 %v2370_v53, %v2366_v40  ;;  %v485_v1 = vrot.slane %v483_v54, 5  ;;  %v8080_v54 = vld [vmem:[%s7772_s14 + $0x7c] sm:$0xf]  ;;  %5173 = vst [vmem:[%s9505_s26 + $0x80] sm:$0x1] %v7700_v37 }
  0x5a   : > { %v491_v2 = vrot.slane %v489_v55, 5  ;;  %v495_v3 = vrot.slane %v493_v58, 4  ;;  %v499_v7 = vshll.u32 %v276_v43, 16  ;;  %v6138_v10 = vrot.slane %v6122_v50, 9  ;;  %v278_v58 = vld [vmem:[%s7772_s14 + $0x80] sm:$0x1] }
  0x5b   : > { %6817 = vmatmul.mubr.bf16.gmra.mrb[12].mxu1 %v5865_v59  ;;  %v2367_v11 = vsel %vm7804_vm2, %v2362_v61, %v2366_v40  ;;  %v2372_v12 = vrot.slane %v2371_v63, 4  ;;  %v486_v13 = vor.u32 %v485_v1, %v482_v57  ;;  %v2958_v15 = vrot.slane %v7785_v23, 5  ;;  %v277_v40 = vld [vmem:[%s7772_s14 + $0x74] sm:$0x1]  ;;  %v6123_v23 = vld [vmem:[%s7772_s14 + $0x18] sm:$0xe] }
  0x5c   : > { %v496_v16 = vor.u32 %v495_v3, %v491_v2  ;;  %v501_v18 = vrot.slane %v499_v7, 5  ;;  %v504_v26 = vshrl.u32 %v8046_v5, 16  ;;  %v507_v29 = vshll.u32 %v8046_v5, 16  ;;  %5174 = vst [vmem:[%s9505_s26 + $0x84] sm:$0xf] %v7700_v37 }
  0x5d   : > { %v2377_v30 = vsel %vm7804_vm2, %v2372_v12, %v2376_v56  ;;  %v487_v34 = vrot.slane %v486_v13, 4  ;;  %v2959_v38 = vsel %vm8050_vm5, %v6138_v10, %v2958_v15  ;;  %v2960_v39 = vrot.slane %v2958_v15, 4  ;;  %v6124_v13 = vld [vmem:[%s7772_s14 + $0x24] sm:$0xe]  ;;  %5175 = vst [vmem:[%s9505_s26 + $0x88] sm:$0xf] %v7700_v37 }
  0x5e   : > { %v6105_v42 = vcombine.low %v2367_v11, %v2377_v30  ;;  %v497_v43 = vrot.slane %v496_v16, 4  ;;  %v506_v31 = vrot.slane %v504_v26, 4  ;;  %v509_v44 = vrot.slane %v507_v29, 5  ;;  %v8102_v16 = vld [vmem:[%s7772_s14 + $0x84] sm:$0xf]  ;;  %v7533_v29 = vld [vmem:[%s9942_s1 + $0x188] sm:$0xff]  }
  0x5f   : > { %v492_v49 = vsel %vm7804_vm2, %v487_v34, %v491_v2  ;;  %v2962_v50 = vsel %vm8050_vm5, %v2960_v39, %v2961_v41  ;;  %v513_v52 = vshll.u32 %v8058_v21, 16  ;;  %v517_v53 = vshrl.u32 %v8058_v21, 16  ;;  %5176 = vst [vmem:[%s9505_s26 + $0x8c] sm:$0x1] %v7700_v37  ;;  %5177 = vst [vmem:[%s9505_s26 + $0x90] sm:$0xf] %v7700_v37 }
  0x60   : > { %7009 = vmatmul.mubr.bf16.gmra.mrb[12].mxu0 %v6105_v42  ;;  %v502_v55 = vsel %vm7804_vm2, %v497_v43, %v501_v18  ;;  %v6170_v48 = vcombine.low %v2959_v38, %v2962_v50  ;;  %v510_v56 = vor.u32 %v509_v44, %v506_v31  ;;  %v523_v57 = vshll.u32 %v277_v40, 16  ;;  %v8110_v40 = vld [vmem:[%s7772_s14 + $0x88] sm:$0xf]  ;;  %v279_v31 = vld [vmem:[%s7772_s14 + $0x8c] sm:$0x1] }
  0x61   : > { %v5866_v59 = vcombine.low %v492_v49, %v502_v55  ;;  %v515_v24 = vrot.slane %v513_v52, 5  ;;  %v519_v61 = vrot.slane %v517_v53, 4  ;;  %v6139_v63 = vrot.slane %v6123_v23, 9  ;;  %5178 = vst [vmem:[%s9505_s26 + $0x94] sm:$0xf] %v7700_v37 }
  0x62   : > { %7044 = vmatprep.mubr.bf16.mxu0 %v6170_v48  ;;  %v511_v41 = vrot.slane %v510_v56, 4  ;;  %v525_v1 = vrot.slane %v523_v57, 5  ;;  %v2969_v2 = vsel %vm8050_vm5, %v7853_v36, %v2968_v32  ;;  %v528_v3 = vshrl.u32 %v8069_v47, 16  ;;  %5179 = vst [vmem:[%s9505_s26 + $0x98] sm:$0x1] %v7700_v37 }
  0x63   : > { %6820 = vmatprep.mubr.bf16.mxu1 %v5866_v59  ;;  %v520_v7 = vor.u32 %v519_v61, %v515_v24  ;;  %v2966_v10 = vsel %vm8050_vm5, %v6139_v63, %v2965_v27  ;;  %v531_v11 = vshll.u32 %v8069_v47, 16  ;;  %v537_v12 = vshll.u32 %v8080_v54, 16  ;;  %5180 = vst [vmem:[%s9505_s26 + $0x9c] sm:$0xf] %v7700_v37  ;;  %5181 = vst [vmem:[%s9505_s26 + $0xa0] sm:$0xf] %v7700_v37 }
  0x64   : > { %v516_v8 = vsel %vm7804_vm2, %v511_v41, %v515_v24  ;;  %v6171_v15 = vcombine.low %v2966_v10, %v2969_v2  ;;  %v530_v32 = vrot.slane %v528_v3, 4  ;;  %v541_v36 = vshrl.u32 %v8080_v54, 16  ;;  %v8131_v2 = vld [vmem:[%s7772_s14 + $0x90] sm:$0xf]  ;;  %v8134_v3 = vld [vmem:[%s7772_s14 + $0x94] sm:$0xf] }
  0x65   : > { %v521_v62 = vrot.slane %v520_v7, 4  ;;  %v533_v18 = vrot.slane %v531_v11, 5  ;;  %v539_v26 = vrot.slane %v537_v12, 5  ;;  %v547_v27 = vshll.u32 %v278_v58, 16  ;;  %5182 = vst [vmem:[%s9505_s26 + $0xa4] sm:$0x1] %v7700_v37 }
  0x66   : > { %v543_v30 = vrot.slane %v541_v36, 4  ;;  %v6140_v34 = vrot.slane %v6124_v13, 9  ;;  %v2972_v38 = vrot.slane %v7857_v45, 5  ;;  %v2975_v39 = vrot.slane %v7863_v51, 5  ;;  %v6125_v45 = vld [vmem:[%s7772_s14 + $0x30] sm:$0xe] }
  0x67   : > { %v526_v23 = vsel %vm7804_vm2, %v521_v62, %v525_v1  ;;  %v534_v42 = vor.u32 %v533_v18, %v530_v32  ;;  %v549_v43 = vrot.slane %v547_v27, 5  ;;  %v552_v44 = vshrl.u32 %v8102_v16, 16  ;;  %v280_v62 = vld [vmem:[%s7772_s14 + $0x98] sm:$0x1]  ;;  %5183 = vst [vmem:[%s9505_s26 + $0xa8] sm:$0xf] %v7700_v37 }
  0x68   : > { %v5867_v49 = vcombine.low %v516_v8, %v526_v23  ;;  %7045 = vmatmul.mubr.bf16.vlgmr.msra.gmra.mrb[0].mxu0 %v6171_v15  ;;  %v544_v50 = vor.u32 %v543_v30, %v539_v26  ;;  %v2973_v52 = vsel %vm8050_vm5, %v6140_v34, %v2972_v38  ;;  %v2974_v53 = vrot.slane %v2972_v38, 4  ;;  %v7537_v30 = vld [vmem:[%s9942_s1 + $0x198] sm:$0xff]   ;;  %5184 = vst [vmem:[%s9505_s26 + $0xac] sm:$0xf] %v7700_v37 }
  0x69   : > { %7077 = vmatpush3.bf16.msra.mxu0 %v7993_v6  ;;  %v535_v51 = vrot.slane %v534_v42, 4  ;;  %v554_v55 = vrot.slane %v552_v44, 4  ;;  %v555_v48 = vshll.u32 %v8102_v16, 16  ;;  %v561_v56 = vshll.u32 %v8110_v40, 16  ;;  %v7535_v6 = vld [vmem:[%s9942_s1 + $0x190] sm:$0xff]  }
  0x6a   : > { %6821 = vmatmul.mubr.bf16.gmra.mrb[16].mxu1 %v5867_v49  ;;  %v545_v57 = vrot.slane %v544_v50, 4  ;;  %v2976_v58 = vsel %vm8050_vm5, %v2974_v53, %v2975_v39  ;;  %v565_v59 = vshrl.u32 %v8110_v40, 16  ;;  %v571_v24 = vshll.u32 %v279_v31, 16  ;;  %7078 = vmatprep.subr.bf16.mxu0 %v7533_v29  ;;  %v6126_v38 = vld [vmem:[%s7772_s14 + $0x3c] sm:$0xe] }
  0x6b   : > { %v540_v61 = vsel %vm7804_vm2, %v535_v51, %v539_v26  ;;  %v6172_v63 = vcombine.low %v2973_v52, %v2976_v58  ;;  %v557_v41 = vrot.slane %v555_v48, 5  ;;  %v563_v1 = vrot.slane %v561_v56, 5  ;;  %v8152_v31 = vld [vmem:[%s7772_s14 + $0x9c] sm:$0xf]  ;;  %v8161_v48 = vld [vmem:[%s7772_s14 + $0xa0] sm:$0xf] }
  0x6c   : > { %v550_v7 = vsel %vm7804_vm2, %v545_v57, %v549_v43  ;;  %v567_v10 = vrot.slane %v565_v59, 4  ;;  %v573_v11 = vrot.slane %v571_v24, 5  ;;  %v6141_v12 = vrot.slane %v6125_v45, 9  ;;  %v7541_v56 = vld [vmem:[%s9942_s1 + $0x1a0] sm:$0xff]   ;;  %5185 = vst [vmem:[%s9505_s26 + $0xb0] sm:$0x1] %v7700_v37 }
  0x6d   : > { %v5868_v13 = vcombine.low %v540_v61, %v550_v7  ;;  %7048 = vmatprep.mubr.bf16.mxu0 %v6172_v63  ;;  %v558_v8 = vor.u32 %v557_v41, %v554_v55  ;;  %v2979_v15 = vrot.slane %v7888_v33, 5  ;;  %v2982_v32 = vrot.slane %v7899_v46, 5  ;;  %7079 = vmatpush3.bf16.msra.mxu0 %v7533_v29  ;;  %v281_v61 = vld [vmem:[%s7772_s14 + $0xa4] sm:$0x1]  ;;  %5186 = vst [vmem:[%s9505_s26 + $0xb4] sm:$0xf] %v7700_v37 }
  0x6e   : > { %v568_v36 = vor.u32 %v567_v10, %v563_v1  ;;  %v576_v18 = vshrl.u32 %v8131_v2, 16  ;;  %v579_v26 = vshll.u32 %v8131_v2, 16  ;;  %v585_v27 = vshll.u32 %v8134_v3, 16  ;;  %7080 = vmatprep.subr.bf16.mxu0 %v7535_v6  ;;  %5187 = vst [vmem:[%s9505_s26 + $0xb8] sm:$0xf] %v7700_v37 }
  0x6f   : > { %6824 = vmatprep.mubr.bf16.mxu1 %v5868_v13  ;;  %v559_v34 = vrot.slane %v558_v8, 4  ;;  %v2980_v33 = vsel %vm8050_vm5, %v6141_v12, %v2979_v15  ;;  %v2981_v46 = vrot.slane %v2979_v15, 4  ;;  %v589_v29 = vshrl.u32 %v8134_v3, 16  ;;  %v6127_v15 = vld [vmem:[%s7772_s14 + $0x48] sm:$0xe] }
  0x70   : > { %v569_v39 = vrot.slane %v568_v36, 4  ;;  %v578_v23 = vrot.slane %v576_v18, 4  ;;  %v581_v42 = vrot.slane %v579_v26, 5  ;;  %v587_v43 = vrot.slane %v585_v27, 5  ;;  %v8186_v27 = vld [vmem:[%s7772_s14 + $0xa8] sm:$0xf] }
  0x71   : > { %v564_v44 = vsel %vm7804_vm2, %v559_v34, %v563_v1  ;;  %v2983_v49 = vsel %vm8050_vm5, %v2981_v46, %v2982_v32  ;;  %v591_v50 = vrot.slane %v589_v29, 4  ;;  %v595_v52 = vshll.u32 %v280_v62, 16  ;;  %7081 = vmatpush3.bf16.msra.mxu0 %v7535_v6  ;;  %v7545_v32 = vld [vmem:[%s9942_s1 + $0x1a8] sm:$0xff]   ;;  %5188 = vst [vmem:[%s9505_s26 + $0xbc] sm:$0x1] %v7700_v37 }
  0x72   : > { %v574_v53 = vsel %vm7804_vm2, %v569_v39, %v573_v11  ;;  %v6173_v45 = vcombine.low %v2980_v33, %v2983_v49  ;;  %v582_v51 = vor.u32 %v581_v42, %v578_v23  ;;  %v6142_v55 = vrot.slane %v6126_v38, 9  ;;  %7082 = vmatprep.subr.bf16.mxu0 %v7537_v30  ;;  %v8189_v29 = vld [vmem:[%s7772_s14 + $0xac] sm:$0xf]  ;;  %5189 = vst [vmem:[%s9505_s26 + $0xc0] sm:$0xf] %v7700_v37 }
  0x73   : > { %v5869_v57 = vcombine.low %v564_v44, %v574_v53  ;;  %v592_v58 = vor.u32 %v591_v50, %v587_v43  ;;  %v597_v59 = vrot.slane %v595_v52, 5  ;;  %v2986_v24 = vrot.slane %v7922_v19, 5  ;;  %v6128_v53 = vld [vmem:[%s7772_s14 + $0x54] sm:$0xe]  ;;  %5190 = vst [vmem:[%s9505_s26 + $0xc4] sm:$0xf] %v7700_v37 }
  0x74   : > { %7049 = vmatmul.mubr.bf16.gmra.mrb[4].mxu0 %v6173_v45  ;;  %v583_v6 = vrot.slane %v582_v51, 4  ;;  %v2989_v63 = vrot.slane %v7930_v28, 5  ;;  %v600_v41 = vshrl.u32 %v8152_v31, 16  ;;  %v603_v1 = vshll.u32 %v8152_v31, 16  ;;  %v7549_v45 = vld [vmem:[%s9942_s1 + $0x1b0] sm:$0xff]  }
  0x75   : > { %6825 = vmatmul.mubr.bf16.gmra.mrb[20].mxu1 %v5869_v57  ;;  %v593_v7 = vrot.slane %v592_v58, 4  ;;  %v2987_v10 = vsel %vm8050_vm5, %v6142_v55, %v2986_v24  ;;  %v2988_v11 = vrot.slane %v2986_v24, 4  ;;  %v609_v12 = vshll.u32 %v8161_v48, 16  ;;  %7083 = vmatpush3.bf16.msra.mxu0 %v7537_v30  ;;  %5191 = vst [vmem:[%s9505_s26 + $0xc8] sm:$0x1] %v7700_v37 }
  0x76   : > { %v588_v19 = vsel %vm7804_vm2, %v583_v6, %v587_v43  ;;  %v602_v13 = vrot.slane %v600_v41, 4  ;;  %v605_v28 = vrot.slane %v603_v1, 5  ;;  %v613_v8 = vshrl.u32 %v8161_v48, 16  ;;  %7084 = vmatprep.subr.bf16.mxu0 %v7541_v56  ;;  %v282_v43 = vld [vmem:[%s7772_s14 + $0xb0] sm:$0x1] }
  0x77   : > { %v598_v36 = vsel %vm7804_vm2, %v593_v7, %v597_v59  ;;  %v2990_v62 = vsel %vm8050_vm5, %v2988_v11, %v2989_v63  ;;  %v611_v18 = vrot.slane %v609_v12, 5  ;;  %v619_v26 = vshll.u32 %v281_v61, 16  ;;  %v8209_v41 = vld [vmem:[%s7772_s14 + $0xb4] sm:$0xf]  ;;  %v8214_v12 = vld [vmem:[%s7772_s14 + $0xb8] sm:$0xf] }
  0x78   : > { %v5870_v30 = vcombine.low %v588_v19, %v598_v36  ;;  %v6174_v34 = vcombine.low %v2987_v10, %v2990_v62  ;;  %v606_v33 = vor.u32 %v605_v28, %v602_v13  ;;  %v615_v46 = vrot.slane %v613_v8, 4  ;;  %v283_v19 = vld [vmem:[%s7772_s14 + $0xbc] sm:$0x1]  ;;  %5192 = vst [vmem:[%s9505_s26 + $0xcc] sm:$0xf] %v7700_v37 }
  0x79   : > { %v621_v38 = vrot.slane %v619_v26, 5  ;;  %v6143_v39 = vrot.slane %v6127_v15, 9  ;;  %v2993_v23 = vrot.slane %v7957_v14, 5  ;;  %v2996_v42 = vrot.slane %v7963_v22, 5  ;;  %7085 = vmatpush3.bf16.msra.mxu0 %v7541_v56  ;;  %v7553_v13 = vld [vmem:[%s9942_s1 + $0x1b8] sm:$0xff]  }
  0x7a   : > { %6828 = vmatprep.mubr.bf16.mxu1 %v5870_v30  ;;  %7052 = vmatprep.mubr.bf16.mxu0 %v6174_v34  ;;  %v607_v44 = vrot.slane %v606_v33, 4  ;;  %v616_v49 = vor.u32 %v615_v46, %v611_v18  ;;  %v624_v50 = vshrl.u32 %v8186_v27, 16  ;;  %v627_v52 = vshll.u32 %v8186_v27, 16  ;;  %v6129_v30 = vld [vmem:[%s7772_s14 + $0x60] sm:$0xe] }
  0x7b   : > { %v2994_v14 = vsel %vm8050_vm5, %v6143_v39, %v2993_v23  ;;  %v2995_v22 = vrot.slane %v2993_v23, 4  ;;  %v633_v51 = vshll.u32 %v8189_v29, 16  ;;  %v637_v55 = vshrl.u32 %v8189_v29, 16  ;;  %7086 = vmatprep.subr.bf16.mxu0 %v7545_v32  ;;  %v6059_v39 = vld [vmem:[%s7772_s14 + $0x70] sm:$0xf] }
  0x7c   : > { %v612_v56 = vsel %vm7804_vm2, %v607_v44, %v611_v18  ;;  %v617_v57 = vrot.slane %v616_v49, 4  ;;  %v626_v58 = vrot.slane %v624_v50, 4  ;;  %v629_v59 = vrot.slane %v627_v52, 5  ;;  %v8236_v44 = vld [vmem:[%s9942_s1 + $0x1c0] sm:$0xff]   ;;  %5193 = vst [vmem:[%s9505_s26 + $0xd0] sm:$0xf] %v7700_v37 }
  0x7d   : > { %v2997_v24 = vsel %vm8050_vm5, %v2995_v22, %v2996_v42  ;;  %v635_v61 = vrot.slane %v633_v51, 5  ;;  %v639_v6 = vrot.slane %v637_v55, 4  ;;  %v643_v63 = vshll.u32 %v282_v43, 16  ;;  %7087 = vmatpush3.bf16.msra.mxu0 %v7545_v32  ;;  %v6130_v43 = vld [vmem:[%s7772_s14 + $0x6c] sm:$0xe] }
  0x7e   : > { %v622_v1 = vsel %vm7804_vm2, %v617_v57, %v621_v38  ;;  %v6175_v7 = vcombine.low %v2994_v14, %v2997_v24  ;;  %v630_v10 = vor.u32 %v629_v59, %v626_v58  ;;  %v6144_v11 = vrot.slane %v6128_v53, 9  ;;  %7088 = vmatprep.subr.bf16.mxu0 %v7549_v45  ;;  %v6060_v55 = vld [vmem:[%s7772_s14 + $0x74] sm:$0x1]  ;;  %v6131_v24 = vld [vmem:[%s7772_s14 + $0x78] sm:$0xe] }
  0x7f   : > { %v5871_v28 = vcombine.low %v612_v56, %v622_v1  ;;  %v640_v8 = vor.u32 %v639_v6, %v635_v61  ;;  %v645_v15 = vrot.slane %v643_v63, 5  ;;  %v3000_v32 = vrot.slane %v7988_v0, 5  ;;  %5194 = vst [vmem:[%s9505_s26 + $0xd4] sm:$0x1] %v7700_v37 }
  0x80   : > { %7053 = vmatmul.mubr.bf16.gmra.mrb[8].mxu0 %v6175_v7  ;;  %v631_v36 = vrot.slane %v630_v10, 4  ;;  %v3003_v62 = vrot.slane %v8000_v20, 5  ;;  %v648_v18 = vshrl.u32 %v8209_v41, 16  ;;  %v651_v26 = vshll.u32 %v8209_v41, 16 }
  0x81   : > { %6829 = vmatmul.mubr.bf16.gmra.mrb[24].mxu1 %v5871_v28  ;;  %v641_v34 = vrot.slane %v640_v8, 4  ;;  %v3001_v33 = vsel %vm8050_vm5, %v6144_v11, %v3000_v32  ;;  %v3002_v46 = vrot.slane %v3000_v32, 4  ;;  %v657_v38 = vshll.u32 %v8214_v12, 16  ;;  %7089 = vmatpush3.bf16.msra.mxu0 %v7549_v45  ;;  %v8249_v11 = vld [vmem:[%s7772_s14 + $0x7c] sm:$0xf] }
  0x82   : > { %v636_v0 = vsel %vm7804_vm2, %v631_v36, %v635_v61  ;;  %v650_v20 = vrot.slane %v648_v18, 4  ;;  %v653_v23 = vrot.slane %v651_v26, 5  ;;  %v661_v42 = vshrl.u32 %v8214_v12, 16  ;;  %7090 = vmatprep.subr.bf16.mxu0 %v7553_v13  ;;  %v7622_v36 = vld [vmem:[%s7772_s14] sm:$0xf] }
  0x83   : > { %v646_v49 = vsel %vm7804_vm2, %v641_v34, %v645_v15  ;;  %v3004_v50 = vsel %vm8050_vm5, %v3002_v46, %v3003_v62  ;;  %v659_v52 = vrot.slane %v657_v38, 5  ;;  %v667_v53 = vshll.u32 %v283_v19, 16  ;;  %v6065_v15 = vld [vmem:[%s7772_s14 + $0x88] sm:$0xf]  ;;  %v8264_v62 = vld [vmem:[%s7772_s14 + $0x4] sm:$0xf] }
  0x84   : > { %v5872_v45 = vcombine.low %v636_v0, %v646_v49  ;;  %v6176_v14 = vcombine.low %v3001_v33, %v3004_v50  ;;  %v654_v22 = vor.u32 %v653_v23, %v650_v20  ;;  %v663_v51 = vrot.slane %v661_v42, 4  ;;  %v6066_v26 = vld [vmem:[%s7772_s14 + $0x8c] sm:$0x1]  ;;  %v6069_v23 = vld [vmem:[%s7772_s14 + $0x98] sm:$0x1] }
  0x85   : > { %v669_v56 = vrot.slane %v667_v53, 5  ;;  %v6145_v57 = vrot.slane %v6129_v30, 9  ;;  %v3007_v58 = vrot.slane %v8015_v60, 5  ;;  %v3010_v59 = vrot.slane %v8024_v17, 5  ;;  %7091 = vmatpush3.bf16.msra.mxu0 %v7553_v13  ;;  %v8252_v17 = vld [vmem:[%s7772_s14 + $0x80] sm:$0x1] }
  0x86   : > { %6832 = vmatprep.mubr.bf16.mxu1 %v5872_v45  ;;  %7056 = vmatprep.mubr.bf16.mxu0 %v6176_v14  ;;  %v655_v61 = vrot.slane %v654_v22, 4  ;;  %v664_v6 = vor.u32 %v663_v51, %v659_v52  ;;  %v6146_v63 = vrot.slane %v6130_v43, 9  ;;  %v3014_v1 = vrot.slane %v6059_v39, 5  ;;  %v6132_v30 = vld [vmem:[%s7772_s14 + $0x84] sm:$0xe] }
  0x87   : > { %v3008_v7 = vsel %vm8050_vm5, %v6145_v57, %v3007_v58  ;;  %v3009_v10 = vrot.slane %v3007_v58, 4  ;;  %v3017_v60 = vrot.slane %v6060_v55, 5  ;;  %7124 = vmatprep.subr.bf16.mxu0 %v8236_v44  ;;  %v5882_v18 = vcombine.low %v7622_v36, %v8264_v62  ;;  %v6068_v39 = vld [vmem:[%s7772_s14 + $0x94] sm:$0xf]  ;;  %v6133_v42 = vld [vmem:[%s7772_s14 + $0x90] sm:$0xe] }
  0x88   : > { %v660_v19 = vsel %vm7804_vm2, %v655_v61, %v659_v52  ;;  %v665_v13 = vrot.slane %v664_v6, 4  ;;  %v3015_v28 = vsel %vm8050_vm5, %v6146_v63, %v3014_v1  ;;  %v3016_v8 = vrot.slane %v3014_v1, 4  ;;  %v6134_v50 = vld [vmem:[%s7772_s14 + $0x9c] sm:$0xe]  ;;  %v6071_v14 = vld [vmem:[%s7772_s14 + $0xa0] sm:$0xf] }
  0x89   : > { %v3011_v32 = vsel %vm8050_vm5, %v3009_v10, %v3010_v59  ;;  %v6147_v38 = vrot.slane %v6131_v24, 9  ;;  %v3021_v43 = vrot.slane %v8249_v11, 5  ;;  %v3024_v49 = vrot.slane %v8252_v17, 5  ;;  %v6072_v22 = vld [vmem:[%s7772_s14 + $0xa4] sm:$0x1] }
  0x8a   : > { %v670_v34 = vsel %vm7804_vm2, %v665_v13, %v669_v56  ;;  %v6177_v33 = vcombine.low %v3008_v7, %v3011_v32  ;;  %v3018_v46 = vsel %vm8050_vm5, %v3016_v8, %v3017_v60  ;;  %v6148_v52 = vrot.slane %v6132_v30, 9  ;;  %v6074_v59 = vld [vmem:[%s7772_s14 + $0xac] sm:$0xf]  ;;  %v8288_v61 = vld [vmem:[%s7772_s14 + $0x10] sm:$0xf] }
  0x8b   : > { %v5873_v0 = vcombine.low %v660_v19, %v670_v34  ;;  %v6178_v20 = vcombine.low %v3015_v28, %v3018_v46  ;;  %v3028_v53 = vrot.slane %v6065_v15, 5  ;;  %v3031_v45 = vrot.slane %v6066_v26, 5  ;;  %v7624_v24 = vld [vmem:[%s7772_s14 + $0xc] sm:$0xf]  ;;  %v7626_v8 = vld [vmem:[%s7772_s14 + $0x18] sm:$0xf] }
  0x8c   : > { %7057 = vmatmul.mubr.bf16.gmra.mrb[12].mxu0 %v6177_v33  ;;  %v3022_v51 = vsel %vm8050_vm5, %v6147_v38, %v3021_v43  ;;  %v3023_v55 = vrot.slane %v3021_v43, 4  ;;  %v3035_v58 = vrot.slane %v6068_v39, 5  ;;  %v5883_v6 = vcombine.low %v7624_v24, %v8288_v61  ;;  %v7544_v19 = vld [vmem:[%s9942_s1 + $0x88] sm:$0xff]   ;;  %v8300_v15 = vld [vmem:[%s7772_s14 + $0x1c] sm:$0xf] }
  0x8d   : > { %6833 = vmatmul.mubr.bf16.gmra.mrb[28].mxu1 %v5873_v0  ;;  %7060 = vmatprep.mubr.bf16.mxu0 %v6178_v20  ;;  %v3029_v56 = vsel %vm8050_vm5, %v6148_v52, %v3028_v53  ;;  %v3030_v57 = vrot.slane %v3028_v53, 4  ;;  %v6149_v1 = vrot.slane %v6133_v42, 9  ;;  %v3038_v7 = vrot.slane %v6069_v23, 5  ;;  %v6075_v30 = vld [vmem:[%s7772_s14 + $0xb0] sm:$0x1] }
  0x8e   : > { %6852 = vmatprep.mubr.bf16.mxu1 %v5882_v18  ;;  %v3025_v63 = vsel %vm8050_vm5, %v3023_v55, %v3024_v49  ;;  %v3037_v13 = vrot.slane %v3035_v58, 4  ;;  %v6150_v28 = vrot.slane %v6134_v50, 9  ;;  %v5884_v32 = vcombine.low %v7626_v8, %v8300_v15  ;;  %v6135_v34 = vld [vmem:[%s7772_s14 + $0xa8] sm:$0xe]  ;;  %v6077_v33 = vld [vmem:[%s7772_s14 + $0xb8] sm:$0xf] }
  0x8f   : > { %v6179_v10 = vcombine.low %v3022_v51, %v3025_v63  ;;  %v3032_v60 = vsel %vm8050_vm5, %v3030_v57, %v3031_v45  ;;  %v3042_v18 = vrot.slane %v6071_v14, 5  ;;  %v3045_v26 = vrot.slane %v6072_v22, 5  ;;  %v6078_v20 = vld [vmem:[%s7772_s14 + $0xbc] sm:$0x1]  ;;  %v6136_v23 = vld [vmem:[%s7772_s14 + $0xb4] sm:$0xe] }
  0x90   : > { %v6180_v36 = vcombine.low %v3029_v56, %v3032_v60  ;;  %v3049_v38 = vrot.slane %v6074_v59, 5  ;;  %v3036_v39 = vsel %vm8050_vm5, %v6149_v1, %v3035_v58  ;;  %v3039_v0 = vsel %vm8050_vm5, %v3037_v13, %v3038_v7  ;;  %v7548_v50 = vld [vmem:[%s9942_s1 + $0x90] sm:$0xff]   ;;  %v6080_v53 = vld [vmem:[%s7772_s14 + $0xc4] sm:$0xf]  ;;  %v8323_v51 = vld [vmem:[%s7772_s14 + $0x28] sm:$0xf] }
  0x91   : > { %v3044_v46 = vrot.slane %v3042_v18, 4  ;;  %v3043_v42 = vsel %vm8050_vm5, %v6150_v28, %v3042_v18  ;;  %v3056_v49 = vrot.slane %v6077_v33, 5  ;;  %v6151_v52 = vrot.slane %v6135_v34, 9  ;;  %v7628_v22 = vld [vmem:[%s7772_s14 + $0x24] sm:$0xf]  ;;  %v7552_v1 = vld [vmem:[%s9942_s1 + $0x98] sm:$0xff]  }
  0x92   : > { %v6181_v45 = vcombine.low %v3036_v39, %v3039_v0  ;;  %v3051_v14 = vrot.slane %v3049_v38, 4  ;;  %v5885_v55 = vcombine.low %v7628_v22, %v8323_v51  ;;  %v7630_v57 = vld [vmem:[%s7772_s14 + $0x30] sm:$0xf]  ;;  %v8328_v58 = vld [vmem:[%s7772_s14 + $0x34] sm:$0xf]  ;;  %v6152_v24 = vrot.slane %v6136_v23, 9 }
  0x93   : > { %v3046_v43 = vsel %vm8050_vm5, %v3044_v46, %v3045_v26  ;;  %v5886_v59 = vcombine.low %v7630_v57, %v8328_v58  ;;  %v3059_v63 = vrot.slane %v6078_v20, 5  ;;  %v6137_v7 = vld [vmem:[%s7772_s14 + $0xc0] sm:$0xe]  ;;  %v3050_v60 = vsel %vm8050_vm5, %v6151_v52, %v3049_v38  ;;  %v6081_v8 = vld [vmem:[%s7772_s14 + $0xc8] sm:$0x1]  ;;  %v7555_v22 = vld [vmem:[%s7772_s14 + $0x18] sm:$0xff]  }
  0x94   : > { %7061 = vmatmul.mubr.bf16.gmra.mrb[16].mxu0 %v6179_v10  ;;  %v6182_v56 = vcombine.low %v3043_v42, %v3046_v43  ;;  %v3063_v10 = vrot.slane %v6080_v53, 5  ;;  %v3057_v13 = vsel %vm8050_vm5, %v6152_v24, %v3056_v49  ;;  %v6153_v18 = vrot.slane %v6137_v7, 9  ;;  %v7632_v26 = vld [vmem:[%s7772_s14 + $0x3c] sm:$0xf]  ;;  %v7634_v39 = vld [vmem:[%s7772_s14 + $0x48] sm:$0xf] }
  0x95   : > { %6853 = vmatmul.mubr.bf16.vlgmr.msra.gmra.mrb[0].mxu1 %v5883_v6  ;;  %7064 = vmatprep.mubr.bf16.mxu0 %v6180_v36  ;;  %v3058_v6 = vrot.slane %v3056_v49, 4  ;;  %v3066_v38 = vrot.slane %v6081_v8, 5  ;;  %v8354_v0 = vld [vmem:[%s7772_s14 + $0x4c] sm:$0xf]  ;;  %v7569_v49 = vld [vmem:[%s9942_s1 + $0xb0] sm:$0xff]   ;;  %v2416_v52 = vshrl.u32 %v8249_v11, 16 }
  0x96   : > { %6885 = vmatpush3.bf16.msra.mxu1 %v7974_v4  ;;  %6856 = vmatprep.mubr.bf16.mxu1 %v5884_v32  ;;  %v3052_v4 = vrot.slane %v6075_v30, 5  ;;  %v7557_v32 = vld [vmem:[%s9942_s1 + $0xa0] sm:$0xff]   ;;  %v3065_v46 = vrot.slane %v3063_v10, 4  ;;  %v5888_v20 = vcombine.low %v7634_v39, %v8354_v0  ;;  %v7563_v23 = vld [vmem:[%s9942_s1 + $0xa8] sm:$0xff]   ;;  %v3064_v42 = vsel %vm8050_vm5, %v6153_v18, %v3063_v10  ;;  %v7561_v18 = vld [vmem:[%s7772_s14 + $0x30] sm:$0xff]  }
  0x97   : > { %6886 = vmatprep.subr.bf16.mxu1 %v7544_v19  ;;  %v3060_v28 = vsel %vm8050_vm5, %v3058_v6, %v3059_v63  ;;  %v8349_v30 = vld [vmem:[%s7772_s14 + $0x40] sm:$0xf]  ;;  %v8382_v57 = vrot.slane %v2416_v52, 4  ;;  %v7558_v6 = vld [vmem:[%s7772_s14 + $0x24] sm:$0xff]   ;;  %v1326_v7 = vrot.slane %v8288_v61, 5  ;;  %v2422_v8 = vshll.u32 %v8252_v17, 16 }
  0x98   : > { %v5887_v34 = vcombine.low %v7632_v26, %v8349_v30  ;;  %v6184_v33 = vcombine.low %v3057_v13, %v3060_v28  ;;  %v3067_v43 = vsel %vm8050_vm5, %v3065_v46, %v3066_v38  ;;  %v1266_v63 = vld [vmem:[%s7772_s14] sm:$0xe]  ;;  %v1267_v10 = vld [vmem:[%s7772_s14 + $0xc] sm:$0xe]  ;;  %v1333_v13 = vrot.slane %v8300_v15, 5 }
  0x99   : > { %v6185_v53 = vcombine.low %v3064_v42, %v3067_v43  ;;  %v1269_v61 = vld [vmem:[%s7772_s14 + $0x24] sm:$0xe]  ;;  %v5893_v15 = vcombine.low %v8102_v16, %v8110_v40  ;;  %v5894_v26 = vcombine.low %v8131_v2, %v8134_v3  ;;  %v5906_v17 = vrot.slane %v1266_v63, 9  ;;  %v7640_v38 = vld [vmem:[%s7772_s14 + $0x20] sm:$0x1]  ;;  %v7570_v2 = vld [vmem:[%s7772_s14 + $0x54] sm:$0xff]  }
  0x9a   : > { %6887 = vmatpush3.bf16.msra.mxu1 %v7544_v19  ;;  %v3053_v19 = vsel %vm8050_vm5, %v3051_v14, %v3052_v4  ;;  %v8371_v14 = vld [vmem:[%s7772_s14 + $0x58] sm:$0xf]  ;;  %v1335_v46 = vrot.slane %v1333_v13, 4  ;;  %v1336_v39 = vrot.slane %v7640_v38, 5  ;;  %v7641_v43 = vld [vmem:[%s7772_s14 + $0x2c] sm:$0x1] }
  0x9b   : > { %6888 = vmatprep.subr.bf16.mxu1 %v7548_v50  ;;  %v6183_v36 = vcombine.low %v3050_v60, %v3053_v19  ;;  %v8397_v60 = vld [vmem:[%s9942_s1 + $0xc0] sm:$0xff]   ;;  %v1268_v19 = vld [vmem:[%s7772_s14 + $0x18] sm:$0xe]  ;;  %v7644_v38 = vld [vmem:[%s7772_s14 + $0x50] sm:$0x1]  ;;  %v1368_v16 = vrot.slane %v8371_v14, 5 }
  0x9c   : > { %7065 = vmatmul.mubr.bf16.gmra.mrb[20].mxu0 %v6181_v45  ;;  %v7636_v45 = vld [vmem:[%s7772_s14 + $0x54] sm:$0xf]  ;;  %v8520_v40 = vld [vmem:[%s7772_s14 + $0x64] sm:$0xf] }
  0x9d   : > { %6857 = vmatmul.mubr.bf16.gmra.mrb[4].mxu1 %v5885_v55  ;;  %7068 = vmatprep.mubr.bf16.mxu0 %v6182_v56  ;;  %v5889_v4 = vcombine.low %v7636_v45, %v8371_v14  ;;  %v5890_v55 = vcombine.low %v8028_v25, %v8031_v35  ;;  %v7575_v56 = vld [vmem:[%s9942_s1 + $0xb8] sm:$0xff]   ;;  %v7639_v25 = vld [vmem:[%s7772_s14 + $0x14] sm:$0x1]  ;;  %v7573_v3 = vld [vmem:[%s7772_s14 + $0x60] sm:$0xff]  }
  0x9e   : > { %6860 = vmatprep.mubr.bf16.mxu1 %v5886_v59  ;;  %6889 = vmatpush3.bf16.msra.mxu1 %v7548_v50  ;;  %v2412_v50 = vshll.u32 %v8249_v11, 16  ;;  %v8385_v59 = vld [vmem:[%s7772_s14 + $0x8] sm:$0x1]  ;;  %v1329_v35 = vrot.slane %v7639_v25, 5 }
  0x9f   : > { %6890 = vmatprep.subr.bf16.mxu1 %v7552_v1  ;;  %v1322_v24 = vrot.slane %v8385_v59, 5 }
  0xa0   : > { %v8380_v11 = vrot.slane %v2412_v50, 5 }
  0xa2   : > { %6891 = vmatpush3.bf16.msra.mxu1 %v7552_v1  ;;  %v1319_v1 = vrot.slane %v8264_v62, 5  ;;  %v5891_v62 = vcombine.low %v8046_v5, %v8058_v21  ;;  %v5907_v21 = vrot.slane %v1267_v10, 9  ;;  %v6266_v10 = vld [vmem:[%s7772_s14 + $0x18] sm:$0xf] }
  0xa3   : > { %6892 = vmatprep.subr.bf16.mxu1 %v7557_v32 }
  0xa4   : > { %7069 = vmatmul.mubr.bf16.gmra.mrb[24].mxu0 %v6183_v36  ;;  %v5892_v36 = vcombine.low %v8069_v47, %v8080_v54  ;;  %v1321_v5 = vrot.slane %v1319_v1, 4  ;;  %v7565_v47 = vld [vmem:[%s9942_s1 + $0x1c8] sm:$0xff]   ;;  %v5908_v54 = vrot.slane %v1268_v19, 9  ;;  %v8440_v59 = vsel %vm8050_vm5, %v5906_v17, %v1319_v1  ;;  %v6267_v19 = vld [vmem:[%s7772_s14 + $0x1c] sm:$0xf] }
  0xa5   : > { %6861 = vmatmul.mubr.bf16.gmra.mrb[8].mxu1 %v5887_v34  ;;  %7072 = vmatprep.mubr.bf16.mxu0 %v6184_v33  ;;  %v1347_v34 = vrot.slane %v8328_v58, 5  ;;  %v1328_v33 = vrot.slane %v1326_v7, 4  ;;  %v5909_v58 = vrot.slane %v1269_v61, 9  ;;  %v1361_v1 = vrot.slane %v8354_v0, 5  ;;  %v7567_v0 = vld [vmem:[%s7772_s14 + $0x48] sm:$0xff]  }
  0xa6   : > { %6864 = vmatprep.mubr.bf16.mxu1 %v5888_v20  ;;  %6893 = vmatpush3.bf16.msra.mxu1 %v7557_v32  ;;  %v1340_v32 = vrot.slane %v8323_v51, 5  ;;  %v1270_v51 = vld [vmem:[%s7772_s14 + $0x30] sm:$0xe]  ;;  %v5895_v20 = vcombine.low %v8152_v31, %v8161_v48  ;;  %v8448_v25 = vsel %vm8050_vm5, %v1321_v5, %v1322_v24  ;;  %v8456_v63 = vsel %vm8050_vm5, %v5908_v54, %v1333_v13  ;;  %v1272_v13 = vld [vmem:[%s7772_s14 + $0x48] sm:$0xe] }
  0xa7   : > { %6894 = vmatprep.subr.bf16.mxu1 %v7563_v23  ;;  %v5910_v50 = vrot.slane %v1270_v51, 9  ;;  %v1349_v52 = vrot.slane %v1347_v34, 4  ;;  %v3826_v5 = vshrl.u32 %v6266_v10, 16  ;;  %v3839_v51 = vshrl.u32 %v6267_v19, 16  ;;  %v7576_v48 = vld [vmem:[%s7772_s14 + $0x6c] sm:$0xff]  }
  0xa8   : > { %v1342_v42 = vrot.slane %v1340_v32, 4  ;;  %v8468_v24 = vsel %vm8050_vm5, %v5909_v58, %v1340_v32  ;;  %v7643_v32 = vld [vmem:[%s7772_s14 + $0x44] sm:$0x1]  ;;  %v5912_v54 = vrot.slane %v1272_v13, 9  ;;  %v6270_v13 = vld [vmem:[%s7772_s14 + $0x28] sm:$0xf] }
  0xa9   : > { %v8478_v61 = vsel %vm8050_vm5, %v5910_v50, %v1347_v34  ;;  %v1357_v17 = vrot.slane %v7643_v32, 5  ;;  %v6268_v50 = vld [vmem:[%s7772_s14 + $0x20] sm:$0x1]  ;;  %v1274_v32 = vld [vmem:[%s7772_s14 + $0x60] sm:$0xe] }
  0xaa   : > { %6895 = vmatpush3.bf16.msra.mxu1 %v7563_v23  ;;  %v5896_v23 = vcombine.low %v8186_v27, %v8189_v29 }
  0xab   : > { %6896 = vmatprep.subr.bf16.mxu1 %v7569_v49 }
  0xac   : > { %7073 = vmatmul.mubr.bf16.gmra.mrb[28].mxu0 %v6185_v53  ;;  %v7642_v53 = vld [vmem:[%s7772_s14 + $0x38] sm:$0x1] }
  0xad   : > { %6865 = vmatmul.mubr.bf16.gmra.mrb[12].mxu1 %v5889_v4  ;;  %7092 = vmatprep.mubr.bf16.mxu0 %v7555_v22  ;;  %v1350_v45 = vrot.slane %v7642_v53, 5  ;;  %v1271_v4 = vld [vmem:[%s7772_s14 + $0x3c] sm:$0xe]  ;;  %v1354_v22 = vrot.slane %v8349_v30, 5  ;;  %v8444_v30 = vsel %vm8050_vm5, %v5907_v21, %v1326_v7  ;;  %v3829_v21 = vshll.u32 %v6266_v10, 16  ;;  %v7581_v53 = vld [vmem:[%s9942_s1 + $0x1e0] sm:$0xff]  }
  0xae   : > { %6868 = vmatprep.mubr.bf16.mxu1 %v5890_v55  ;;  %6897 = vmatpush3.bf16.msra.mxu1 %v7569_v49  ;;  %v1343_v49 = vrot.slane %v7641_v43, 5  ;;  %v8431_v55 = vrot.slane %v2422_v8, 5  ;;  %v7564_v7 = vld [vmem:[%s7772_s14 + $0x3c] sm:$0xff]   ;;  %v8464_v8 = vsel %vm8050_vm5, %v1335_v46, %v1336_v39  ;;  %v1363_v46 = vrot.slane %v1361_v1, 4  ;;  %v6272_v43 = vld [vmem:[%s7772_s14 + $0x30] sm:$0xf] }
  0xaf   : > { %6898 = vmatprep.subr.bf16.mxu1 %v7575_v56  ;;  %v1364_v39 = vrot.slane %v7644_v38, 5  ;;  %v3828_v10 = vrot.slane %v3826_v5, 4 }
  0xb0   : > { %9964 = vst [vmem:[#allocation2_spill] sm:$0xff] %v8431_v55 }
  0xb2   : > { %6899 = vmatpush3.bf16.msra.mxu1 %v7575_v56  ;;  %v7571_v56 = vld [vmem:[%s9942_s1 + $0x1d0] sm:$0xff]  }
  0xb3   : > { %6932 = vmatprep.subr.bf16.mxu1 %v8397_v60 }
  0xb4   : > { %7093 = vmatmul.mubr.bf16.vlgmr.msra.gmra.mrb[0].mxu0 %v7558_v6  ;;  %v8452_v6 = vsel %vm8050_vm5, %v1328_v33, %v1329_v35  ;;  %v8472_v35 = vsel %vm8050_vm5, %v1342_v42, %v1343_v49  ;;  %v3835_v33 = vshll.u32 %v6267_v19, 16  ;;  %v3831_v19 = vrot.slane %v3829_v21, 5  ;;  %v1275_v21 = vld [vmem:[%s7772_s14 + $0x6c] sm:$0xe] }
  0xb5   : > { %6869 = vmatmul.mubr.bf16.gmra.mrb[16].mxu1 %v5891_v62  ;;  %7125 = vmatpush3.bf16.msra.mxu0 %v8236_v44  ;;  %v5911_v62 = vrot.slane %v1271_v4, 9  ;;  %v5915_v58 = vrot.slane %v1275_v21, 9 }
  0xb6   : > { %6872 = vmatprep.mubr.bf16.mxu1 %v5892_v36  ;;  %7096 = vmatprep.mubr.bf16.mxu0 %v7561_v18  ;;  %v8482_v36 = vsel %vm8050_vm5, %v1349_v52, %v1350_v45  ;;  %v1356_v18 = vrot.slane %v1354_v22, 4  ;;  %v6269_v52 = vld [vmem:[%s7772_s14 + $0x24] sm:$0xf]  ;;  %v3863_v45 = vshrl.u32 %v6270_v13, 16 }
  0xb7   : > { %7126 = vmatprep.subr.bf16.mxu0 %v7565_v47  ;;  %v8499_v49 = vsel %vm8050_vm5, %v5911_v62, %v1354_v22  ;;  %v8516_v22 = vld [vmem:[%s7772_s14 + $0x54] sm:$0xe]  ;;  %v3841_v62 = vrot.slane %v3839_v51, 4  ;;  %v3850_v38 = vshrl.u32 %v6269_v52, 16  ;;  %v3853_v28 = vshll.u32 %v6269_v52, 16 }
  0xb8   : > { %v8513_v4 = vsel %vm8050_vm5, %v1356_v18, %v1357_v17  ;;  %v3845_v17 = vshll.u32 %v6268_v50, 16  ;;  %v5913_v5 = vrot.slane %v8516_v22, 9  ;;  %v7585_v50 = vld [vmem:[%s9942_s1 + $0x1e8] sm:$0xff]   ;;  %v1370_v52 = vrot.slane %v1368_v16, 4 }
  0xb9   : > { %7127 = vmatpush3.bf16.msra.mxu0 %v7565_v47  ;;  %v7577_v47 = vld [vmem:[%s9942_s1 + $0x1d8] sm:$0xff]   ;;  %v3832_v22 = vor.u32 %v3831_v19, %v3828_v10  ;;  %v3852_v34 = vrot.slane %v3850_v38, 4  ;;  %v3855_v44 = vrot.slane %v3853_v28, 5  ;;  %v7649_v10 = vld [vmem:[%s7772_s14 + $0x74] sm:$0x1]  ;;  %v3865_v28 = vrot.slane %v3863_v45, 4 }
  0xba   : > { %7128 = vmatprep.subr.bf16.mxu0 %v7571_v56  ;;  %v8554_v42 = vrot.slane %v3845_v17, 5  ;;  %v1385_v19 = vrot.slane %v7649_v10, 5  ;;  %v3874_v38 = vshrl.u32 %v6272_v43, 16  ;;  %v8579_v27 = vsel %vm8050_vm5, %v5913_v5, %v1368_v16 }
  0xbb   : > { %v3833_v21 = vrot.slane %v3832_v22, 4 }
  0xbc   : > { %7097 = vmatmul.mubr.bf16.gmra.mrb[4].mxu0 %v7564_v7  ;;  %v8526_v7 = vrot.slane %v3835_v33, 5  ;;  %v7647_v33 = vld [vmem:[%s7772_s14 + $0x70] sm:$0xf] }
  0xbd   : > { %6873 = vmatmul.mubr.bf16.gmra.mrb[20].mxu1 %v5893_v15  ;;  %7100 = vmatprep.mubr.bf16.mxu0 %v7567_v0  ;;  %v1375_v15 = vrot.slane %v8520_v40, 5  ;;  %v7646_v0 = vld [vmem:[%s7772_s14 + $0x5c] sm:$0x1]  ;;  %v1382_v51 = vrot.slane %v7647_v33, 5 }
  0xbe   : > { %6876 = vmatprep.mubr.bf16.mxu1 %v5894_v26  ;;  %7129 = vmatpush3.bf16.msra.mxu0 %v7571_v56  ;;  %v1371_v18 = vrot.slane %v7646_v0, 5  ;;  %v8535_v26 = vsel %vm8050_vm5, %v5912_v54, %v1361_v1  ;;  %v8539_v56 = vsel %vm8050_vm5, %v1363_v46, %v1364_v39  ;;  %v7648_v1 = vld [vmem:[%s7772_s14 + $0x68] sm:$0x1]  ;;  %v3859_v0 = vshll.u32 %v6270_v13, 16  ;;  %v7593_v40 = vld [vmem:[%s9942_s1 + $0x1f8] sm:$0xff]  }
  0xbf   : > { %7130 = vmatprep.subr.bf16.mxu0 %v7577_v47  ;;  %v1378_v54 = vrot.slane %v7648_v1, 5  ;;  %v5914_v46 = vrot.slane %v1274_v32, 9  ;;  %v1377_v39 = vrot.slane %v1375_v15, 4  ;;  %v3842_v33 = vor.u32 %v3841_v62, %v8526_v7  ;;  %v6273_v1 = vld [vmem:[%s7772_s14 + $0x34] sm:$0xf] }
  0xc0   : > { %v1384_v32 = vrot.slane %v1382_v51, 4  ;;  %v6271_v62 = vld [vmem:[%s7772_s14 + $0x2c] sm:$0x1]  ;;  %v8566_v17 = vrot.slane %v3859_v0, 5  ;;  %v3883_v13 = vshll.u32 %v6273_v1, 16  ;;  %v3887_v31 = vshrl.u32 %v6273_v1, 16 }
  0xc1   : > { %v3843_v10 = vrot.slane %v3842_v33, 4  ;;  %v8583_v29 = vsel %vm8050_vm5, %v1370_v52, %v1371_v18  ;;  %v8590_v45 = vsel %vm8050_vm5, %v5914_v46, %v1375_v15  ;;  %v8594_v14 = vsel %vm8050_vm5, %v1377_v39, %v1378_v54  ;;  %v1276_v18 = vld [vmem:[%s7772_s14 + $0x78] sm:$0xe] }
  0xc2   : > { %7131 = vmatpush3.bf16.msra.mxu0 %v7577_v47  ;;  %v8598_v16 = vsel %vm8050_vm5, %v5915_v58, %v1382_v51  ;;  %v8608_v15 = vsel %vm8050_vm5, %v1384_v32, %v1385_v19  ;;  %v3866_v5 = vor.u32 %v3865_v28, %v8566_v17  ;;  %v3876_v52 = vrot.slane %v3874_v38, 4  ;;  %v6275_v58 = vld [vmem:[%s7772_s14 + $0x3c] sm:$0xf]  ;;  %v6276_v51 = vld [vmem:[%s7772_s14 + $0x40] sm:$0xf] }
  0xc3   : > { %7132 = vmatprep.subr.bf16.mxu0 %v7581_v53  ;;  %v3838_v0 = vsel %vm7804_vm2, %v3833_v21, %v8526_v7  ;;  %v3848_v46 = vsel %vm7804_vm2, %v3843_v10, %v8554_v42  ;;  %v8619_v39 = vrot.slane %v3883_v13, 5  ;;  %v3889_v22 = vrot.slane %v3887_v31, 4  ;;  %v7651_v19 = vld [vmem:[%s7772_s14 + $0x80] sm:$0x1]  ;;  %v8778_v47 = vld [vmem:[%s7772_s14 + $0x68] sm:$0x1] }
  0xc4   : > { %7101 = vmatmul.mubr.bf16.gmra.mrb[8].mxu0 %v7570_v2  ;;  %v3877_v2 = vshll.u32 %v6272_v43, 16  ;;  %v3869_v43 = vshll.u32 %v6271_v62, 16  ;;  %v5916_v32 = vrot.slane %v1276_v18, 9  ;;  %v1277_v62 = vld [vmem:[%s7772_s14 + $0x84] sm:$0xe]  ;;  %v3898_v28 = vshrl.u32 %v6275_v58, 16 }
  0xc5   : > { %6877 = vmatmul.mubr.bf16.gmra.mrb[24].mxu1 %v5895_v20  ;;  %7104 = vmatprep.mubr.bf16.mxu0 %v7573_v3  ;;  %v7589_v20 = vld [vmem:[%s9942_s1 + $0x1f0] sm:$0xff]   ;;  %v7650_v3 = vld [vmem:[%s7772_s14 + $0x7c] sm:$0xf]  ;;  %v3901_v7 = vshll.u32 %v6275_v58, 16  ;;  %v3907_v38 = vshll.u32 %v6276_v51, 16  ;;  %v9965_v42 = vcombine.low %v8209_v41, %v8214_v12  ;;  %v8630_v13 = vrot.slane %v3866_v5, 4 }
  0xc6   : > { %6880 = vmatprep.mubr.bf16.mxu1 %v5896_v23  ;;  %7133 = vmatpush3.bf16.msra.mxu0 %v7581_v53  ;;  %v3856_v23 = vor.u32 %v3855_v44, %v3852_v34  ;;  %v7578_v53 = vld [vmem:[%s7772_s14 + $0x78] sm:$0xff]   ;;  %v1389_v44 = vrot.slane %v7650_v3, 5  ;;  %v3879_v54 = vrot.slane %v3877_v2, 5  ;;  %v8623_v1 = vrot.slane %v3869_v43, 5  ;;  %v8635_v21 = vld [vmem:[%s9942_s1 + $0x200] sm:$0xff]   ;;  %9973 = vst [vmem:[#allocation5_spill] sm:$0xff] %v8778_v47 }
  0xc7   : > { %7134 = vmatprep.subr.bf16.mxu0 %v7585_v50  ;;  %v6274_v34 = vld [vmem:[%s7772_s14 + $0x38] sm:$0x1]  ;;  %v3911_v2 = vshrl.u32 %v6276_v51, 16  ;;  %v7580_v43 = vld [vmem:[%s7772_s14 + $0x84] sm:$0xff]   ;;  %v3890_v12 = vor.u32 %v3889_v22, %v8619_v39  ;;  %v3903_v58 = vrot.slane %v3901_v7, 5  ;;  %v8657_v51 = vrot.slane %v3907_v38, 5 }
  0xc8   : > { %v8621_v33 = vrot.slane %v3856_v23, 4  ;;  %v1391_v10 = vrot.slane %v1389_v44, 4  ;;  %v3880_v31 = vor.u32 %v3879_v54, %v3876_v52  ;;  %v9966_v23 = vcombine.low %v8440_v59, %v8448_v25  ;;  %v7652_v18 = vld [vmem:[%s7772_s14 + $0x88] sm:$0xf]  ;;  %v6277_v5 = vld [vmem:[%s7772_s14 + $0x44] sm:$0x1] }
  0xc9   : > { %v1396_v3 = vrot.slane %v7652_v18, 5  ;;  %v8648_v59 = vcombine.low %v3838_v0, %v3848_v46  ;;  %v6278_v52 = vld [vmem:[%s7772_s14 + $0x48] sm:$0xf]  ;;  %v3900_v54 = vrot.slane %v3898_v28, 4  ;;  %v3913_v22 = vrot.slane %v3911_v2, 4 }
  0xca   : > { %7135 = vmatpush3.bf16.msra.mxu0 %v7585_v50  ;;  %v1392_v50 = vrot.slane %v7651_v19, 5  ;;  %v7582_v19 = vld [vmem:[%s7772_s14 + $0x90] sm:$0xff]   ;;  %v3862_v0 = vsel %vm7804_vm2, %v8621_v33, %v8566_v17  ;;  %v3881_v46 = vrot.slane %v3880_v31, 4  ;;  %v3872_v28 = vsel %vm7804_vm2, %v8630_v13, %v8623_v1  ;;  %v8679_v33 = vld [vmem:[%s7772_s14 + $0x58] sm:$0xf]  ;;  %v7583_v31 = vld [vmem:[%s9942_s1 + $0xc8] sm:$0xff]  }
  0xcb   : > { %7136 = vmatprep.subr.bf16.mxu0 %v7589_v20  ;;  %v3891_v38 = vrot.slane %v3890_v12, 4  ;;  %v1398_v2 = vrot.slane %v1396_v3, 4  ;;  %v6281_v17 = vld [vmem:[%s7772_s14 + $0x54] sm:$0xf]  ;;  %v3917_v1 = vshll.u32 %v6277_v5, 16  ;;  %v3922_v13 = vshrl.u32 %v6278_v52, 16 }
  0xcc   : > { %7105 = vmatmul.mubr.bf16.gmra.mrb[12].mxu0 %v7576_v48  ;;  %v3893_v48 = vshll.u32 %v6274_v34, 16  ;;  %v8675_v7 = vsel %vm8050_vm5, %v1391_v10, %v1392_v50  ;;  %v3925_v50 = vshll.u32 %v6278_v52, 16  ;;  %v3904_v10 = vor.u32 %v3903_v58, %v3900_v54  ;;  %v7584_v54 = vld [vmem:[%s7772_s14 + $0x9c] sm:$0xff]   ;;  %v7658_v41 = vld [vmem:[%s7772_s14 + $0xac] sm:$0xf] }
  0xcd   : > { %6881 = vmatmul.mubr.bf16.gmra.mrb[28].mxu1 %v9965_v42  ;;  %7108 = vmatprep.mubr.bf16.mxu0 %v7578_v53  ;;  %v5917_v53 = vrot.slane %v1277_v62, 9  ;;  %v7653_v42 = vld [vmem:[%s7772_s14 + $0x8c] sm:$0x1]  ;;  %v3955_v5 = vshll.u32 %v8679_v33, 16  ;;  %v9968_v52 = vcombine.low %v8456_v63, %v8464_v8  ;;  %v8715_v63 = vld [vmem:[%s7772_s14 + $0x50] sm:$0x1] }
  0xce   : > { %6900 = vmatprep.mubr.bf16.mxu1 %v9966_v23  ;;  %7137 = vmatpush3.bf16.msra.mxu0 %v7589_v20  ;;  %v8654_v20 = vsel %vm8050_vm5, %v5916_v32, %v1389_v44  ;;  %v3895_v62 = vrot.slane %v3893_v48, 5  ;;  %v1399_v23 = vrot.slane %v7653_v42, 5  ;;  %v1278_v44 = vld [vmem:[%s7772_s14 + $0x90] sm:$0xe]  ;;  %v8667_v32 = vld [vmem:[%s7772_s14 + $0x4c] sm:$0xf]  ;;  %v3914_v48 = vor.u32 %v3913_v22, %v8657_v51 }
  0xcf   : > { %7138 = vmatprep.subr.bf16.mxu0 %v7593_v40  ;;  %v3931_v12 = vshll.u32 %v8667_v32, 16  ;;  %v3935_v18 = vshrl.u32 %v8667_v32, 16  ;;  %v9967_v42 = vcombine.low %v8444_v30, %v8452_v6  ;;  %v7587_v30 = vld [vmem:[%s9942_s1 + $0xd0] sm:$0xff]   ;;  %v3886_v6 = vsel %vm7804_vm2, %v3881_v46, %v8619_v39  ;;  %v7586_v8 = vld [vmem:[%s7772_s14 + $0xa8] sm:$0xff]   ;;  %v8722_v39 = vld [vmem:[%s7772_s14 + $0x5c] sm:$0x1] }
  0xd0   : > { %v3896_v58 = vsel %vm7804_vm2, %v3891_v38, %v3895_v62  ;;  %v5918_v22 = vrot.slane %v1278_v44, 9  ;;  %v3927_v25 = vrot.slane %v3925_v50, 5  ;;  %9969 = vst [vmem:[#allocation3_spill] sm:$0xff] %v8722_v39  ;;  %v3905_v46 = vrot.slane %v3904_v10, 4 }
  0xd1   : > { %v3915_v62 = vrot.slane %v3914_v48, 4  ;;  %v8724_v38 = vrot.slane %v3931_v12, 5  ;;  %v8726_v34 = vrot.slane %v3955_v5, 5  ;;  %v8731_v50 = vcombine.low %v3862_v0, %v3872_v28  ;;  %v6284_v28 = vld [vmem:[%s7772_s14 + $0x60] sm:$0xf] }
  0xd2   : > { %7139 = vmatpush3.bf16.msra.mxu0 %v7593_v40  ;;  %v8687_v40 = vsel %vm8050_vm5, %v5917_v53, %v1396_v3  ;;  %v3946_v53 = vshrl.u32 %v6281_v17, 16  ;;  %v3949_v3 = vshll.u32 %v6281_v17, 16  ;;  %v7654_v17 = vld [vmem:[%s7772_s14 + $0x94] sm:$0xf]  ;;  %v8735_v48 = vcombine.low %v3886_v6, %v3896_v58 }
  0xd3   : > { %7172 = vmatprep.subr.bf16.mxu0 %v8635_v21  ;;  %v3941_v0 = vshll.u32 %v8715_v63, 16  ;;  %v3910_v6 = vsel %vm7804_vm2, %v3905_v46, %v8657_v51  ;;  %v9972_v46 = vcombine.low %v8478_v61, %v8482_v36 }
  0xd4   : > { %7109 = vmatmul.mubr.bf16.gmra.mrb[16].mxu0 %v7580_v43  ;;  %v3959_v43 = vshrl.u32 %v8679_v33, 16  ;;  %v3948_v44 = vrot.slane %v3946_v53, 4  ;;  %v7655_v53 = vld [vmem:[%s7772_s14 + $0x98] sm:$0x1] }
  0xd5   : > { %6901 = vmatmul.mubr.bf16.vlgmr.msra.gmra.mrb[0].mxu1 %v9967_v42  ;;  %7112 = vmatprep.mubr.bf16.mxu0 %v7582_v19  ;;  %v8718_v19 = vrot.slane %v3917_v1, 5  ;;  %v1403_v42 = vrot.slane %v7654_v17, 5  ;;  %v7656_v17 = vld [vmem:[%s7772_s14 + $0xa0] sm:$0xf]  ;;  %v3943_v36 = vrot.slane %v3941_v0, 5 }
  0xd6   : > { %6933 = vmatpush3.bf16.msra.mxu1 %v8397_v60  ;;  %6904 = vmatprep.mubr.bf16.mxu1 %v9968_v52  ;;  %v8712_v60 = vsel %vm8050_vm5, %v1398_v2, %v1399_v23  ;;  %v3924_v52 = vrot.slane %v3922_v13, 4  ;;  %v3937_v23 = vrot.slane %v3935_v18, 4  ;;  %v3951_v2 = vrot.slane %v3949_v3, 5  ;;  %v7591_v13 = vld [vmem:[%s9942_s1 + $0xd8] sm:$0xff]  }
  0xd7   : > { %6934 = vmatprep.subr.bf16.mxu1 %v7583_v31  ;;  %v3961_v1 = vrot.slane %v3959_v43, 4  ;;  %v1279_v18 = vld [vmem:[%s7772_s14 + $0x9c] sm:$0xe]  ;;  %v1406_v3 = vrot.slane %v7655_v53, 5  ;;  %v8748_v43 = vld [vmem:[%s7772_s14 + $0x64] sm:$0xf] }
  0xd8   : > { %v3928_v5 = vor.u32 %v3927_v25, %v3924_v52  ;;  %9970 = vst [vmem:[#allocation4_spill] sm:$0xff] %v8748_v43  ;;  %v3938_v58 = vor.u32 %v3937_v23, %v8724_v38  ;;  %v1410_v12 = vrot.slane %v7656_v17, 5  ;;  %v9971_v25 = vcombine.low %v8468_v24, %v8472_v35  ;;  %v7588_v23 = vld [vmem:[%s7772_s14 + $0xb4] sm:$0xff]   ;;  %v7594_v24 = vld [vmem:[%s9942_s1 + $0xe0] sm:$0xff]   ;;  %v6287_v17 = vld [vmem:[%s7772_s14 + $0x6c] sm:$0xf] }
  0xd9   : > { %v1405_v52 = vrot.slane %v1403_v42, 4  ;;  %v3952_v53 = vor.u32 %v3951_v2, %v3948_v44  ;;  %v3962_v51 = vor.u32 %v3961_v1, %v8726_v34  ;;  %v3970_v35 = vshrl.u32 %v6284_v28, 16  ;;  %v7657_v2 = vld [vmem:[%s7772_s14 + $0xa4] sm:$0x1] }
  0xda   : > { %6935 = vmatpush3.bf16.msra.mxu1 %v7583_v31  ;;  %v8742_v31 = vsel %vm8050_vm5, %v5918_v22, %v1403_v42  ;;  %v3965_v22 = vshll.u32 %v8722_v39, 16  ;;  %v3983_v42 = vshrl.u32 %v8748_v43, 16  ;;  %v3929_v61 = vrot.slane %v3928_v5, 4  ;;  %v8917_v39 = vld [vmem:[%s7772_s14 + $0x98] sm:$0x1] }
  0xdb   : > { %6936 = vmatprep.subr.bf16.mxu1 %v7587_v30  ;;  %v5919_v44 = vrot.slane %v1279_v18, 9  ;;  %v1413_v1 = vrot.slane %v7657_v2, 5  ;;  %v3953_v5 = vrot.slane %v3952_v53, 4  ;;  %v3963_v18 = vrot.slane %v3962_v51, 4  ;;  %9986 = vst [vmem:[#allocation14_spill] sm:$0xff] %v8917_v39 }
  0xdc   : > { %7113 = vmatmul.mubr.bf16.gmra.mrb[20].mxu0 %v7584_v54  ;;  %v3920_v54 = vsel %vm7804_vm2, %v3915_v62, %v8718_v19  ;;  %v3979_v19 = vshll.u32 %v8748_v43, 16  ;;  %v7590_v62 = vld [vmem:[%s7772_s14 + $0xc0] sm:$0xff]   ;;  %v3967_v10 = vrot.slane %v3965_v22, 5  ;;  %v8784_v43 = vsel %vm8050_vm5, %v1405_v52, %v1406_v3 }
  0xdd   : > { %6905 = vmatmul.mubr.bf16.gmra.mrb[4].mxu1 %v9971_v25  ;;  %7116 = vmatprep.mubr.bf16.mxu0 %v7586_v8  ;;  %v3973_v8 = vshll.u32 %v6284_v28, 16  ;;  %v3939_v25 = vrot.slane %v3938_v58, 4  ;;  %v1417_v28 = vrot.slane %v7658_v41, 5  ;;  %v8780_v55 = vcombine.low %v3910_v6, %v3920_v54  ;;  %v7596_v41 = vld [vmem:[%s9942_s1 + $0xe8] sm:$0xff]  }
  0xde   : > { %6908 = vmatprep.mubr.bf16.mxu1 %v9972_v46  ;;  %6937 = vmatpush3.bf16.msra.mxu1 %v7587_v30  ;;  %v1280_v30 = vld [vmem:[%s7772_s14 + $0xa8] sm:$0xe]  ;;  %v1412_v46 = vrot.slane %v1410_v12, 4  ;;  %v3972_v0 = vrot.slane %v3970_v35, 4  ;;  %v8786_v58 = vrot.slane %v3979_v19, 5  ;;  %v3985_v22 = vrot.slane %v3983_v42, 4 }
  0xdf   : > { %6938 = vmatprep.subr.bf16.mxu1 %v7591_v13  ;;  %v3975_v2 = vrot.slane %v3973_v8, 5  ;;  %v3934_v3 = vsel %vm7804_vm2, %v3929_v61, %v8724_v38  ;;  %v8796_v6 = vsel %vm8050_vm5, %v5919_v44, %v1410_v12  ;;  %v3994_v54 = vshrl.u32 %v6287_v17, 16  ;;  %v7659_v38 = vld [vmem:[%s7772_s14 + $0xb0] sm:$0x1]  ;;  %v1281_v19 = vld [vmem:[%s7772_s14 + $0xb4] sm:$0xe] }
  0xe0   : > { %v3997_v52 = vshll.u32 %v6287_v17, 16  ;;  %v3944_v53 = vsel %vm7804_vm2, %v3939_v25, %v3943_v36  ;;  %v8805_v51 = vsel %vm8050_vm5, %v1412_v46, %v1413_v1  ;;  %v5920_v35 = vrot.slane %v1280_v30, 9  ;;  %v8827_v30 = vld [vmem:[%s7772_s14 + $0x74] sm:$0x1]  ;;  %v7660_v25 = vld [vmem:[%s7772_s14 + $0xb8] sm:$0xf] }
  0xe1   : > { %v1420_v8 = vrot.slane %v7659_v38, 5  ;;  %v9975_v12 = vcombine.low %v8499_v49, %v8513_v4  ;;  %v3958_v42 = vsel %vm7804_vm2, %v3953_v5, %v8726_v34  ;;  %v3968_v61 = vsel %vm7804_vm2, %v3963_v18, %v3967_v10  ;;  %v7592_v4 = vld [vmem:[%s7772_s14 + $0xcc] sm:$0xff]   ;;  %9977 = vst [vmem:[#allocation7_spill] sm:$0xff] %v8827_v30  ;;  %v6293_v38 = vld [vmem:[%s7772_s14 + $0x84] sm:$0xf] }
  0xe2   : > { %6939 = vmatpush3.bf16.msra.mxu1 %v7591_v13  ;;  %v8799_v13 = vld [vmem:[%s7772_s14 + $0x70] sm:$0xf]  ;;  %v1419_v36 = vrot.slane %v1417_v28, 4  ;;  %v3989_v44 = vshll.u32 %v8778_v47, 16  ;;  %v9976_v49 = vcombine.low %v8535_v26, %v8539_v56  ;;  %v3986_v1 = vor.u32 %v3985_v22, %v8786_v58  ;;  %v8844_v22 = vld [vmem:[%s7772_s14 + $0x7c] sm:$0xf] }
  0xe3   : > { %6940 = vmatprep.subr.bf16.mxu1 %v7594_v24  ;;  %9974 = vst [vmem:[#allocation6_spill] sm:$0xff] %v8799_v13  ;;  %v4003_v34 = vshll.u32 %v8799_v13, 16  ;;  %v4007_v10 = vshrl.u32 %v8799_v13, 16  ;;  %v5921_v17 = vrot.slane %v1281_v19, 9  ;;  %v1424_v46 = vrot.slane %v7660_v25, 5  ;;  %9978 = vst [vmem:[#allocation8_spill] sm:$0xff] %v8844_v22 }
  0xe4   : > { %7117 = vmatmul.mubr.bf16.gmra.mrb[24].mxu0 %v7588_v23  ;;  %v7598_v23 = vld [vmem:[%s9942_s1 + $0xf0] sm:$0xff]   ;;  %v3996_v26 = vrot.slane %v3994_v54, 4  ;;  %v3999_v56 = vrot.slane %v3997_v52, 5  ;;  %v8835_v18 = vcombine.low %v3934_v3, %v3944_v53  ;;  %v8847_v19 = vcombine.low %v3958_v42, %v3968_v61  ;;  %v7661_v3 = vld [vmem:[%s7772_s14 + $0xbc] sm:$0x1] }
  0xe5   : > { %6909 = vmatmul.mubr.bf16.gmra.mrb[8].mxu1 %v9975_v12  ;;  %7120 = vmatprep.mubr.bf16.mxu0 %v7590_v62  ;;  %v3976_v62 = vor.u32 %v3975_v2, %v3972_v0  ;;  %v8841_v2 = vsel %vm8050_vm5, %v5920_v35, %v1417_v28  ;;  %v8851_v54 = vsel %vm8050_vm5, %v1419_v36, %v1420_v8  ;;  %v8853_v52 = vrot.slane %v3989_v44, 5  ;;  %v7600_v12 = vld [vmem:[%s9942_s1 + $0xf8] sm:$0xff]   ;;  %v8860_v28 = vld [vmem:[%s7772_s14 + $0x88] sm:$0xf] }
  0xe6   : > { %6912 = vmatprep.mubr.bf16.mxu1 %v9976_v49  ;;  %6941 = vmatpush3.bf16.msra.mxu1 %v7594_v24  ;;  %v6290_v24 = vld [vmem:[%s7772_s14 + $0x78] sm:$0xf]  ;;  %v1427_v53 = vrot.slane %v7661_v3, 5  ;;  %9979 = vst [vmem:[#allocation9_spill] sm:$0xff] %v8860_v28  ;;  %v8864_v42 = vrot.slane %v3986_v1, 4  ;;  %v8866_v61 = vrot.slane %v4003_v34, 5  ;;  %v8870_v36 = vsel %vm8050_vm5, %v5921_v17, %v1424_v46 }
  0xe7   : > { %6942 = vmatprep.subr.bf16.mxu1 %v7596_v41  ;;  %v8862_v35 = vrot.slane %v3976_v62, 4  ;;  %v4009_v8 = vrot.slane %v4007_v10, 4  ;;  %v1426_v44 = vrot.slane %v1424_v46, 4  ;;  %v4000_v49 = vor.u32 %v3999_v56, %v3996_v26  ;;  %v6296_v3 = vld [vmem:[%s7772_s14 + $0x90] sm:$0xf] }
  0xe8   : > { %v4013_v25 = vshll.u32 %v8827_v30, 16  ;;  %v4021_v0 = vshll.u32 %v6290_v24, 16  ;;  %v4027_v62 = vshll.u32 %v8844_v22, 16  ;;  %v4031_v1 = vshrl.u32 %v8844_v22, 16  ;;  %v8877_v34 = vld [vmem:[%s7772_s14 + $0x94] sm:$0xf] }
  0xe9   : > { %9980 = vst [vmem:[#allocation10_spill] sm:$0xff] %v8877_v34  ;;  %v9981_v10 = vcombine.low %v8579_v27, %v8583_v29  ;;  %v4042_v17 = vshrl.u32 %v6293_v38, 16  ;;  %v4045_v46 = vshll.u32 %v6293_v38, 16  ;;  %v4055_v26 = vshrl.u32 %v8860_v28, 16  ;;  %v6299_v38 = vld [vmem:[%s7772_s14 + $0x9c] sm:$0xf] }
  0xea   : > { %6943 = vmatpush3.bf16.msra.mxu1 %v7596_v41  ;;  %v4018_v41 = vshrl.u32 %v6290_v24, 16  ;;  %v9982_v56 = vcombine.low %v8590_v45, %v8594_v14  ;;  %v4010_v29 = vor.u32 %v4009_v8, %v8866_v61  ;;  %v4069_v24 = vshll.u32 %v6296_v3, 16  ;;  %v8899_v45 = vld [vmem:[%s7772_s14 + $0x80] sm:$0x1] }
  0xeb   : > { %6944 = vmatprep.subr.bf16.mxu1 %v7598_v23  ;;  %v8896_v5 = vrot.slane %v4013_v25, 5  ;;  %9983 = vst [vmem:[#allocation11_spill] sm:$0xff] %v8899_v45  ;;  %v4075_v14 = vshll.u32 %v8877_v34, 16  ;;  %v4023_v27 = vrot.slane %v4021_v0, 5  ;;  %v4033_v8 = vrot.slane %v4031_v1, 4 }
  0xec   : > { %7121 = vmatmul.mubr.bf16.gmra.mrb[28].mxu0 %v7592_v4  ;;  %v4051_v4 = vshll.u32 %v8860_v28, 16  ;;  %v8903_v28 = vrot.slane %v4027_v62, 5  ;;  %v8909_v22 = vld [vmem:[%s7772_s14 + $0xa0] sm:$0xf]  ;;  %v4044_v25 = vrot.slane %v4042_v17, 4  ;;  %v4047_v30 = vrot.slane %v4045_v46, 5 }
  0xed   : > { %6913 = vmatmul.mubr.bf16.gmra.mrb[12].mxu1 %v9981_v10  ;;  %7140 = vmatprep.mubr.bf16.mxu0 %v8648_v59  ;;  %v4066_v59 = vshrl.u32 %v6296_v3, 16  ;;  %v8894_v10 = vrot.slane %v4000_v49, 4  ;;  %v8906_v3 = vld [vmem:[%s7772_s14 + $0x8c] sm:$0x1]  ;;  %9985 = vst [vmem:[#allocation13_spill] sm:$0xff] %v8909_v22  ;;  %v4057_v47 = vrot.slane %v4055_v26, 4  ;;  %v8926_v62 = vsel %vm8050_vm5, %v1426_v44, %v1427_v53 }
  0xee   : > { %6916 = vmatprep.mubr.bf16.mxu1 %v9982_v56  ;;  %6945 = vmatpush3.bf16.msra.mxu1 %v7598_v23  ;;  %v4079_v23 = vshrl.u32 %v8877_v34, 16  ;;  %v4020_v56 = vrot.slane %v4018_v41, 4  ;;  %9984 = vst [vmem:[#allocation12_spill] sm:$0xff] %v8906_v3  ;;  %v7597_v49 = vld [vmem:[%s9942_s1 + $0x208] sm:$0xff]   ;;  %v8914_v13 = vrot.slane %v4051_v4, 5  ;;  %v4071_v34 = vrot.slane %v4069_v24, 5 }
  0xef   : > { %6946 = vmatprep.subr.bf16.mxu1 %v7600_v12  ;;  %v6302_v41 = vld [vmem:[%s7772_s14 + $0xa8] sm:$0xf]  ;;  %v4068_v1 = vrot.slane %v4066_v59, 4  ;;  %v8931_v17 = vld [vmem:[%s9942_s1 + $0x100] sm:$0xff]   ;;  %v8934_v46 = vrot.slane %v4075_v14, 5  ;;  %v4090_v26 = vshrl.u32 %v6299_v38, 16  ;;  %v9988_v24 = vcombine.low %v8598_v16, %v8608_v15 }
  0xf0   : > { %9987 = vst [vmem:[#allocation15_spill] sm:$0xff] %v8931_v17  ;;  %v4081_v4 = vrot.slane %v4079_v23, 4  ;;  %v4093_v0 = vshll.u32 %v6299_v38, 16  ;;  %v8937_v53 = vrot.slane %v4010_v29, 4  ;;  %v4099_v44 = vshll.u32 %v8909_v22, 16  ;;  %v7599_v16 = vld [vmem:[%s9942_s1 + $0x210] sm:$0xff]  }
  0xf1   : > { %v4103_v59 = vshrl.u32 %v8909_v22, 16  ;;  %v4024_v14 = vor.u32 %v4023_v27, %v4020_v56  ;;  %v4034_v38 = vor.u32 %v4033_v8, %v8903_v28  ;;  %v4048_v23 = vor.u32 %v4047_v30, %v4044_v25  ;;  %v8949_v29 = vld [vmem:[%s7772_s14 + $0xac] sm:$0xf]  ;;  %v8962_v25 = vld [vmem:[%s7772_s14 + $0xa4] sm:$0x1] }
  0xf2   : > { %6947 = vmatpush3.bf16.msra.mxu1 %v7600_v12  ;;  %v4037_v12 = vshll.u32 %v8899_v45, 16  ;;  %9989 = vst [vmem:[#allocation16_spill] sm:$0xff] %v8949_v29  ;;  %v4058_v15 = vor.u32 %v4057_v47, %v8914_v13  ;;  %v4114_v27 = vshrl.u32 %v6302_v41, 16  ;;  %v4117_v30 = vshll.u32 %v6302_v41, 16 }
  0xf3   : > { %7220 = vmatprep.subr.bf16.mxu1 %v8931_v17  ;;  %v9990_v17 = vcombine.low %v8654_v20, %v8675_v7  ;;  %v4072_v56 = vor.u32 %v4071_v34, %v4068_v1  ;;  %v4082_v8 = vor.u32 %v4081_v4, %v8934_v46  ;;  %v4092_v20 = vrot.slane %v4090_v26, 4 }
  0xf4   : > { %7141 = vmatmul.mubr.bf16.vlgmr.msra.gmra.mrb[0].mxu0 %v8731_v50  ;;  %v4061_v50 = vshll.u32 %v8906_v3, 16  ;;  %v4095_v7 = vrot.slane %v4093_v0, 5  ;;  %v4127_v22 = vshrl.u32 %v8949_v29, 16  ;;  %v4025_v47 = vrot.slane %v4024_v14, 4  ;;  %v7601_v0 = vld [vmem:[%s9942_s1 + $0x218] sm:$0xff]  }
  0xf5   : > { %6917 = vmatmul.mubr.bf16.gmra.mrb[16].mxu1 %v9988_v24  ;;  %7173 = vmatpush3.bf16.msra.mxu0 %v8635_v21  ;;  %v4085_v21 = vshll.u32 %v8917_v39, 16  ;;  %v4123_v24 = vshll.u32 %v8949_v29, 16  ;;  %v4035_v39 = vrot.slane %v4034_v38, 4  ;;  %v4039_v3 = vrot.slane %v4037_v12, 5 }
  0xf6   : > { %6920 = vmatprep.mubr.bf16.mxu1 %v9990_v17  ;;  %7144 = vmatprep.mubr.bf16.mxu0 %v8735_v48  ;;  %v8964_v17 = vrot.slane %v4099_v44, 5  ;;  %v4105_v48 = vrot.slane %v4103_v59, 4  ;;  %v4063_v41 = vrot.slane %v4061_v50, 5  ;;  %v4049_v34 = vrot.slane %v4048_v23, 4 }
  0xf7   : > { %7174 = vmatprep.subr.bf16.mxu0 %v7597_v49  ;;  %v4059_v1 = vrot.slane %v4058_v15, 4  ;;  %v4116_v4 = vrot.slane %v4114_v27, 4  ;;  %v4119_v45 = vrot.slane %v4117_v30, 5  ;;  %v4073_v26 = vrot.slane %v4072_v56, 4  ;;  %v9030_v27 = vld [vmem:[%s7772_s14 + $0xbc] sm:$0x1] }
  0xf8   : > { %v4087_v44 = vrot.slane %v4085_v21, 5  ;;  %v4096_v59 = vor.u32 %v4095_v7, %v4092_v20  ;;  %v4109_v29 = vshll.u32 %v8962_v25, 16  ;;  %v4106_v12 = vor.u32 %v4105_v48, %v8964_v17  ;;  %v8997_v21 = vld [vmem:[%s7772_s14 + $0xb0] sm:$0x1] }
  0xf9   : > { %7175 = vmatpush3.bf16.msra.mxu0 %v7597_v49  ;;  %v4083_v49 = vrot.slane %v4082_v8, 4  ;;  %v8974_v14 = vrot.slane %v4123_v24, 5  ;;  %v4129_v38 = vrot.slane %v4127_v22, 4  ;;  %v9991_v23 = vor.u32 %v8382_v57, %v8380_v11 }
  0xfa   : > { %7176 = vmatprep.subr.bf16.mxu0 %v7599_v16  ;;  %v9992_v15 = vcombine.low %v8687_v40, %v8712_v60  ;;  %v4016_v22 = vsel %vm7804_vm2, %v8937_v53, %v8896_v5  ;;  %v4030_v57 = vsel %vm7804_vm2, %v4025_v47, %v8903_v28  ;;  %v9993_v40 = vcombine.low %v8742_v31, %v8784_v43  ;;  %v7604_v31 = vld [vmem:[%s9942_s1 + $0x220] sm:$0xff]  }
  0xfb   : > { %v8979_v50 = vrot.slane %v9991_v23, 4  ;;  %v4040_v60 = vsel %vm7804_vm2, %v4035_v39, %v4039_v3  ;;  %v4120_v5 = vor.u32 %v4119_v45, %v4116_v4  ;;  %v4064_v28 = vsel %vm7804_vm2, %v4059_v1, %v4063_v41  ;;  %v6358_v41 = vld [vmem:[%s7772_s14 + $0x48] sm:$0xe] }
  0xfc   : > { %7145 = vmatmul.mubr.bf16.gmra.mrb[4].mxu0 %v8780_v55  ;;  %v4006_v55 = vsel %vm7804_vm2, %v8894_v10, %v8866_v61  ;;  %v6305_v61 = vld [vmem:[%s7772_s14 + $0xb4] sm:$0xf]  ;;  %v9009_v10 = vld [vmem:[%s7772_s14 + $0xb8] sm:$0xf]  ;;  %v4078_v39 = vsel %vm7804_vm2, %v4073_v26, %v8934_v46  ;;  %v9019_v43 = vrot.slane %v4096_v59, 4  ;;  %v9021_v3 = vrot.slane %v4109_v29, 5 }
  0xfd   : > { %6921 = vmatmul.mubr.bf16.gmra.mrb[20].mxu1 %v9992_v15  ;;  %7148 = vmatprep.mubr.bf16.mxu0 %v8835_v18  ;;  %v4054_v18 = vsel %vm7804_vm2, %v4049_v34, %v8914_v13  ;;  %v4088_v13 = vsel %vm7804_vm2, %v4083_v49, %v4087_v44  ;;  %v9025_v45 = vrot.slane %v4106_v12, 4  ;;  %v4130_v53 = vor.u32 %v4129_v38, %v8974_v14  ;;  %v6359_v26 = vld [vmem:[%s7772_s14 + $0x54] sm:$0xe] }
  0xfe   : > { %6924 = vmatprep.mubr.bf16.mxu1 %v9993_v40  ;;  %7177 = vmatpush3.bf16.msra.mxu0 %v7599_v16  ;;  %v4133_v16 = vshll.u32 %v8997_v21, 16  ;;  %v9994_v46 = vsel %vm7804_vm2, %v8864_v42, %v8853_v52  ;;  %v9995_v29 = vsel %vm7804_vm2, %v8862_v35, %v8786_v58  ;;  %v4138_v56 = vshrl.u32 %v6305_v61, 16 }
  0xff   : > { %7178 = vmatprep.subr.bf16.mxu0 %v7601_v0  ;;  %v6336_v30 = vcombine.low %v9995_v29, %v9994_v46  ;;  %v4141_v8 = vshll.u32 %v6305_v61, 16  ;;  %v4147_v20 = vshll.u32 %v9009_v10, 16  ;;  %v5952_v7 = vcombine.low %v8841_v2, %v8851_v54  ;;  %v7607_v2 = vld [vmem:[%s9942_s1 + $0x228] sm:$0xff]   ;;  %v6308_v54 = vld [vmem:[%s7772_s14 + $0xc0] sm:$0xf]  ;;  %v9999_v29 = vld [vmem:[#allocation5_spill] sm:$0xff] }
 0x100   : > { %v5953_v48 = vcombine.low %v8870_v36, %v8926_v62  ;;  %v6337_v24 = vcombine.low %v4006_v55, %v4016_v22  ;;  %v9047_v52 = vrot.slane %v4120_v5, 4  ;;  %v6338_v42 = vcombine.low %v4030_v57, %v4040_v60 }
 0x101   : > { %v9049_v58 = vcombine.low %v4054_v18, %v4064_v28  ;;  %v9051_v35 = vcombine.low %v4078_v39, %v4088_v13  ;;  %v4102_v47 = vsel %vm7804_vm2, %v9019_v43, %v8964_v17  ;;  %v4112_v34 = vsel %vm7804_vm2, %v9025_v45, %v9021_v3  ;;  %v6361_v28 = vld [vmem:[%s7772_s14 + $0x6c] sm:$0xe] }
 0x102   : > { %7179 = vmatpush3.bf16.msra.mxu0 %v7601_v0  ;;  %v9067_v1 = vrot.slane %v4130_v53, 4  ;;  %v9069_v4 = vrot.slane %v4133_v16, 5  ;;  %v4151_v0 = vshrl.u32 %v9009_v10, 16  ;;  %v9996_v44 = vcombine.low %v8796_v6, %v8805_v51  ;;  %v7610_v6 = vld [vmem:[%s9942_s1 + $0x230] sm:$0xff]   ;;  %v9091_v51 = vld [vmem:[%s7772_s14 + $0xc4] sm:$0xf] }
 0x103   : > { %7180 = vmatprep.subr.bf16.mxu0 %v7604_v31  ;;  %v9076_v59 = vrot.slane %v4138_v56, 4  ;;  %v9080_v49 = vrot.slane %v4147_v20, 5  ;;  %v4157_v12 = vshll.u32 %v9030_v27, 16  ;;  %v4126_v38 = vsel %vm7804_vm2, %v9047_v52, %v8974_v14  ;;  %v6360_v14 = vld [vmem:[%s7772_s14 + $0x60] sm:$0xe]  ;;  %v9997_v39 = vld [vmem:[#allocation3_spill] sm:$0xff] }
 0x104   : > { %7149 = vmatmul.mubr.bf16.gmra.mrb[8].mxu0 %v8847_v19  ;;  %v9078_v19 = vrot.slane %v4141_v8, 5  ;;  %v4162_v23 = vshrl.u32 %v6308_v54, 16  ;;  %v6374_v15 = vrot.slane %v6358_v41, 9  ;;  %v4625_v55 = vrot.slane %v8667_v32, 5  ;;  %v7602_v13 = vld [vmem:[%s7772_s14 + $0xc] sm:$0xff]   ;;  %v7613_v56 = vld [vmem:[%s9942_s1 + $0x238] sm:$0xff]  }
 0x105   : > { %6925 = vmatmul.mubr.bf16.gmra.mrb[24].mxu1 %v9996_v44  ;;  %7152 = vmatprep.mubr.bf16.mxu0 %v6336_v30  ;;  %v4165_v22 = vshll.u32 %v6308_v54, 16  ;;  %v4628_v57 = vrot.slane %v8715_v63, 5  ;;  %v6375_v40 = vrot.slane %v6359_v26, 9  ;;  %v4632_v60 = vrot.slane %v8679_v33, 5  ;;  %v9998_v16 = vld [vmem:[#allocation4_spill] sm:$0xff]  ;;  %v10000_v52 = vld [vmem:[#allocation6_spill] sm:$0xff] }
 0x106   : > { %6928 = vmatprep.mubr.bf16.mxu1 %v5952_v7  ;;  %7181 = vmatpush3.bf16.msra.mxu0 %v7604_v31  ;;  %v4136_v18 = vsel %vm7804_vm2, %v9067_v1, %v9069_v4  ;;  %v9101_v5 = vrot.slane %v4151_v0, 4  ;;  %v9105_v61 = vsel %vm8050_vm5, %v6374_v15, %v4625_v55  ;;  %v4627_v32 = vrot.slane %v4625_v55, 4  ;;  %v10001_v4 = vld [vmem:[#allocation7_spill] sm:$0xff] }
 0x107   : > { %7182 = vmatprep.subr.bf16.mxu0 %v7607_v2  ;;  %v4171_v31 = vshll.u32 %v9091_v51, 16  ;;  %v9111_v63 = vsel %vm8050_vm5, %v6375_v40, %v4632_v60  ;;  %v4634_v33 = vrot.slane %v4632_v60, 4  ;;  %v4635_v3 = vrot.slane %v9997_v39, 5  ;;  %v9142_v26 = vld [vmem:[%s7772_s14 + $0xc8] sm:$0x1]  ;;  %v7603_v40 = vld [vmem:[%s7772_s14 + $0x18] sm:$0xff]  }
 0x108   : > { %v9117_v45 = vsel %vm8050_vm5, %v4627_v32, %v4628_v57  ;;  %v6376_v53 = vrot.slane %v6360_v14, 9  ;;  %v4639_v46 = vrot.slane %v9998_v16, 5  ;;  %v4642_v30 = vrot.slane %v9999_v29, 5  ;;  %v7605_v39 = vld [vmem:[%s7772_s14 + $0x24] sm:$0xff]  }
 0x109   : > { %v6406_v8 = vcombine.low %v9105_v61, %v9117_v45  ;;  %v9128_v20 = vsel %vm8050_vm5, %v4634_v33, %v4635_v3  ;;  %v6377_v7 = vrot.slane %v6361_v28, 9  ;;  %v4649_v0 = vrot.slane %v10001_v4, 5  ;;  %v10003_v28 = vld [vmem:[#allocation11_spill] sm:$0xff]  ;;  %v6067_v61 = vld [vmem:[%s7772_s14 + $0x90] sm:$0xf] }
 0x10a   : > { %7183 = vmatpush3.bf16.msra.mxu0 %v7607_v2  ;;  %v4646_v2 = vrot.slane %v10000_v52, 5  ;;  %v6407_v54 = vcombine.low %v9111_v63, %v9128_v20  ;;  %v9135_v41 = vsel %vm8050_vm5, %v6376_v53, %v4639_v46  ;;  %v4641_v1 = vrot.slane %v4639_v46, 4  ;;  %v10004_v53 = vld [vmem:[#allocation2_spill] sm:$0xff]  ;;  %v7619_v45 = vld [vmem:[%s7772_s14 + $0xa8] sm:$0xff]  }
 0x10b   : > { %7184 = vmatprep.subr.bf16.mxu0 %v7610_v6  ;;  %v9144_v44 = vrot.slane %v4162_v23, 4  ;;  %v9157_v36 = vcombine.low %v4102_v47, %v4112_v34  ;;  %v4144_v62 = vor.u32 %v9078_v19, %v9076_v59  ;;  %v6362_v23 = vld [vmem:[%s7772_s14 + $0x78] sm:$0xe]  ;;  %v9169_v57 = vrot.slane %v4157_v12, 5  ;;  %v6311_v12 = vld [vmem:[%s7772_s14 + $0xcc] sm:$0xf] }
 0x10c   : > { %7153 = vmatmul.mubr.bf16.gmra.mrb[12].mxu0 %v6337_v24  ;;  %v9146_v24 = vrot.slane %v4165_v22, 5  ;;  %v9150_v15 = vsel %vm8050_vm5, %v6377_v7, %v4646_v2  ;;  %v4648_v55 = vrot.slane %v4646_v2, 4  ;;  %v9167_v22 = vcombine.low %v4126_v38, %v4136_v18  ;;  %v6061_v47 = vld [vmem:[%s7772_s14 + $0x78] sm:$0xf]  ;;  %v10002_v18 = vld [vmem:[#allocation8_spill] sm:$0xff] }
 0x10d   : > { %6929 = vmatmul.mubr.bf16.gmra.mrb[28].mxu1 %v5953_v48  ;;  %7156 = vmatprep.mubr.bf16.mxu0 %v6338_v42  ;;  %v4175_v48 = vshrl.u32 %v9091_v51, 16  ;;  %v9164_v42 = vsel %vm8050_vm5, %v4641_v1, %v4642_v30  ;;  %v4154_v34 = vor.u32 %v9101_v5, %v9080_v49  ;;  %v9180_v59 = vrot.slane %v4171_v31, 5  ;;  %v9194_v31 = vld [vmem:[%s7772_s14 + $0xd0] sm:$0xf]  ;;  %v10005_v1 = vld [vmem:[#allocation9_spill] sm:$0xff] }
 0x10e   : > { %6948 = vmatprep.mubr.bf16.mxu1 %v7602_v13  ;;  %7185 = vmatpush3.bf16.msra.mxu0 %v7610_v6  ;;  %v6408_v17 = vcombine.low %v9135_v41, %v9164_v42  ;;  %v9175_v43 = vsel %vm8050_vm5, %v4648_v55, %v4649_v0  ;;  %v4181_v19 = vshll.u32 %v9142_v26, 16  ;;  %v6363_v6 = vld [vmem:[%s7772_s14 + $0x84] sm:$0xe]  ;;  %v4168_v60 = vor.u32 %v9146_v24, %v9144_v44  ;;  %v10006_v24 = vld [vmem:[#allocation12_spill] sm:$0xff]  ;;  %v7683_v63 = vld [vmem:[%s7772_s14 + $0x8c] sm:$0x1] }
 0x10f   : > { %7186 = vmatprep.subr.bf16.mxu0 %v7613_v56  ;;  %v6409_v38 = vcombine.low %v9150_v15, %v9175_v43  ;;  %v6378_v14 = vrot.slane %v6362_v23, 9  ;;  %v4653_v32 = vrot.slane %v10002_v18, 5  ;;  %v4656_v33 = vrot.slane %v10003_v28, 5 }
 0x110   : > { %v4177_v5 = vrot.slane %v4175_v48, 4  ;;  %v2403_v3 = vshrl.u32 %v6061_v47, 16  ;;  %v2406_v13 = vshll.u32 %v6061_v47, 16  ;;  %v2425_v16 = vsel %vm7804_vm2, %v8979_v50, %v10004_v53 }
 0x111   : > { %v4186_v46 = vshrl.u32 %v6311_v12, 16  ;;  %v9202_v29 = vsel %vm8050_vm5, %v6378_v14, %v4653_v32  ;;  %v4655_v30 = vrot.slane %v4653_v32, 4  ;;  %v6379_v7 = vrot.slane %v6363_v6, 9  ;;  %v7663_v6 = vld [vmem:[%s9942_s1 + $0x108] sm:$0xff]  }
 0x112   : > { %7187 = vmatpush3.bf16.msra.mxu0 %v7613_v56  ;;  %v4189_v52 = vshll.u32 %v6311_v12, 16  ;;  %v2405_v2 = vrot.slane %v2403_v3, 4  ;;  %v2408_v56 = vrot.slane %v2406_v13, 5  ;;  %v4660_v4 = vrot.slane %v10005_v1, 5  ;;  %v6364_v12 = vld [vmem:[%s7772_s14 + $0x90] sm:$0xe] }
 0x113   : > { %v4195_v50 = vshll.u32 %v9194_v31, 16  ;;  %v4199_v0 = vshrl.u32 %v9194_v31, 16  ;;  %v9211_v44 = vsel %vm8050_vm5, %v4655_v30, %v4656_v33  ;;  %v4663_v55 = vrot.slane %v10006_v24, 5  ;;  %v7606_v3 = vld [vmem:[%s7772_s14 + $0x30] sm:$0xff]  }
 0x114   : > { %7157 = vmatmul.mubr.bf16.gmra.mrb[16].mxu0 %v9049_v58  ;;  %v10007_v58 = vld [vmem:[#allocation15_spill] sm:$0xff]  ;;  %v4178_v48 = vor.u32 %v4177_v5, %v9180_v59  ;;  %v2409_v23 = vor.u32 %v2408_v56, %v2405_v2  ;;  %v4662_v47 = vrot.slane %v4660_v4, 4  ;;  %v4155_v14 = vrot.slane %v4154_v34, 4  ;;  %v9232_v13 = vld [vmem:[%s7772_s14 + $0xd4] sm:$0x1]  ;;  %v10008_v2 = vld [vmem:[#allocation10_spill] sm:$0xff] }
 0x115   : > { %6949 = vmatmul.mubr.bf16.vlgmr.msra.gmra.mrb[0].mxu1 %v7603_v40  ;;  %7160 = vmatprep.mubr.bf16.mxu0 %v9051_v35  ;;  %v6410_v35 = vcombine.low %v9202_v29, %v9211_v44  ;;  %v4145_v40 = vrot.slane %v4144_v62, 4  ;;  %v4183_v18 = vrot.slane %v4181_v19, 5  ;;  %v9224_v32 = vsel %vm8050_vm5, %v6379_v7, %v4660_v4  ;;  %v7608_v19 = vld [vmem:[%s7772_s14 + $0x3c] sm:$0xff]   ;;  %v7664_v1 = vld [vmem:[%s9942_s1 + $0x110] sm:$0xff]  }
 0x116   : > { %7228 = vmatpush3.bf16.msra.mxu1 %v10007_v58  ;;  %6952 = vmatprep.mubr.bf16.mxu1 %v7605_v39  ;;  %v4188_v28 = vrot.slane %v4186_v46, 4  ;;  %v4191_v33 = vrot.slane %v4189_v52, 5  ;;  %v2410_v39 = vrot.slane %v2409_v23, 4  ;;  %v9228_v5 = vsel %vm8050_vm5, %v4662_v47, %v4663_v55  ;;  %v7665_v47 = vld [vmem:[%s7772_s14 + $0x1c] sm:$0xf] }
 0x117   : > { %7221 = vmatprep.subr.bf16.mxu1 %v7663_v6  ;;  %v9234_v53 = vrot.slane %v4195_v50, 5  ;;  %v4201_v30 = vrot.slane %v4199_v0, 4  ;;  %v6411_v62 = vcombine.low %v9224_v32, %v9228_v5  ;;  %v6380_v34 = vrot.slane %v6364_v12, 9 }
 0x118   : > { %v4169_v7 = vrot.slane %v4168_v60, 4  ;;  %v4179_v46 = vrot.slane %v4178_v48, 4  ;;  %v2415_v52 = vsel %vm7804_vm2, %v2410_v39, %v8380_v11  ;;  %v4667_v56 = vrot.slane %v10008_v2, 5  ;;  %v10009_v11 = vld [vmem:[#allocation14_spill] sm:$0xff]  ;;  %v7609_v39 = vld [vmem:[%s7772_s14 + $0x48] sm:$0xff]  }
 0x119   : > { %v4150_v4 = vsel %vm7804_vm2, %v4145_v40, %v9080_v49  ;;  %v4160_v60 = vsel %vm7804_vm2, %v4155_v14, %v9169_v57  ;;  %v9252_v50 = vcombine.low %v2415_v52, %v2425_v16  ;;  %v4670_v0 = vrot.slane %v10009_v11, 5  ;;  %v6354_v57 = vld [vmem:[%s7772_s14 + $0x18] sm:$0xe]  ;;  %v6365_v16 = vld [vmem:[%s7772_s14 + $0x9c] sm:$0xe] }
 0x11a   : > { %7229 = vmatpush3.bf16.msra.mxu1 %v7663_v6  ;;  %v4192_v24 = vor.u32 %v4191_v33, %v4188_v28  ;;  %v4205_v55 = vshll.u32 %v9232_v13, 16  ;;  %v9259_v58 = vsel %vm8050_vm5, %v6380_v34, %v4667_v56  ;;  %v4669_v48 = vrot.slane %v4667_v56, 4  ;;  %v7666_v40 = vld [vmem:[%s9942_s1 + $0x118] sm:$0xff]   ;;  %v7667_v2 = vld [vmem:[%s7772_s14 + $0x20] sm:$0x1] }
 0x11b   : > { %7222 = vmatprep.subr.bf16.mxu1 %v7664_v1  ;;  %v4202_v49 = vor.u32 %v4201_v30, %v9234_v53  ;;  %v4184_v23 = vsel %vm7804_vm2, %v4179_v46, %v4183_v18  ;;  %v4597_v12 = vrot.slane %v7665_v47, 5  ;;  %v6343_v6 = vcombine.low %v4150_v4, %v4160_v60  ;;  %v10010_v34 = vld [vmem:[#allocation13_spill] sm:$0xff]  ;;  %v6366_v11 = vld [vmem:[%s7772_s14 + $0xa8] sm:$0xe] }
 0x11c   : > { %7161 = vmatmul.mubr.bf16.gmra.mrb[20].mxu0 %v9157_v36  ;;  %v4174_v36 = vsel %vm7804_vm2, %v4169_v7, %v9180_v59  ;;  %v4193_v14 = vrot.slane %v4192_v24, 4  ;;  %v4207_v28 = vrot.slane %v4205_v55, 5  ;;  %v6370_v18 = vrot.slane %v6354_v57, 9  ;;  %v7611_v46 = vld [vmem:[%s7772_s14 + $0x54] sm:$0xff]   ;;  %v6355_v55 = vld [vmem:[%s7772_s14 + $0x24] sm:$0xe] }
 0x11d   : > { %6953 = vmatmul.mubr.bf16.gmra.mrb[4].mxu1 %v7606_v3  ;;  %7164 = vmatprep.mubr.bf16.mxu0 %v9167_v22  ;;  %v9273_v22 = vsel %vm8050_vm5, %v4669_v48, %v4670_v0  ;;  %v6381_v33 = vrot.slane %v6365_v16, 9  ;;  %v6344_v3 = vcombine.low %v4174_v36, %v4184_v23  ;;  %v4203_v30 = vrot.slane %v4202_v49, 4  ;;  %v7669_v48 = vld [vmem:[%s7772_s14 + $0x28] sm:$0xf]  ;;  %v7670_v36 = vld [vmem:[%s7772_s14 + $0x34] sm:$0xf] }
 0x11e   : > { %6956 = vmatprep.mubr.bf16.mxu1 %v7608_v19  ;;  %7230 = vmatpush3.bf16.msra.mxu1 %v7664_v1  ;;  %v6412_v59 = vcombine.low %v9259_v58, %v9273_v22  ;;  %v4674_v19 = vrot.slane %v10010_v34, 5  ;;  %v4677_v7 = vrot.slane %v8962_v25, 5  ;;  %v4599_v52 = vrot.slane %v4597_v12, 4  ;;  %v7668_v1 = vld [vmem:[%s9942_s1 + $0x120] sm:$0xff]  }
 0x11f   : > { %7223 = vmatprep.subr.bf16.mxu1 %v7666_v40  ;;  %v4600_v56 = vrot.slane %v7667_v2, 5  ;;  %v4598_v25 = vsel %vm8050_vm5, %v6370_v18, %v4597_v12  ;;  %v4198_v0 = vsel %vm7804_vm2, %v4193_v14, %v9234_v53  ;;  %v4208_v24 = vsel %vm7804_vm2, %v4203_v30, %v4207_v28  ;;  %v6356_v12 = vld [vmem:[%s7772_s14 + $0x30] sm:$0xe]  ;;  %v7612_v30 = vld [vmem:[%s7772_s14 + $0x60] sm:$0xff]  }
 0x120   : > { %v9290_v4 = vsel %vm8050_vm5, %v6381_v33, %v4674_v19  ;;  %v4676_v60 = vrot.slane %v4674_v19, 4  ;;  %v4604_v49 = vrot.slane %v7669_v48, 5  ;;  %v4611_v23 = vrot.slane %v7670_v36, 5  ;;  %v7672_v33 = vld [vmem:[%s7772_s14 + $0x2c] sm:$0x1] }
 0x121   : > { %v4601_v16 = vsel %vm8050_vm5, %v4599_v52, %v4600_v56  ;;  %v6382_v47 = vrot.slane %v6366_v11, 9  ;;  %v6345_v28 = vcombine.low %v4198_v0, %v4208_v24  ;;  %v6371_v18 = vrot.slane %v6355_v55, 9  ;;  %v7614_v52 = vld [vmem:[%s7772_s14 + $0x6c] sm:$0xff]   ;;  %v6367_v11 = vld [vmem:[%s7772_s14 + $0xb4] sm:$0xe] }
 0x122   : > { %7231 = vmatpush3.bf16.msra.mxu1 %v7666_v40  ;;  %v9304_v57 = vsel %vm8050_vm5, %v4676_v60, %v4677_v7  ;;  %v10011_v40 = vld [vmem:[#allocation16_spill] sm:$0xff]  ;;  %v6402_v34 = vcombine.low %v4598_v25, %v4601_v16  ;;  %v4606_v19 = vrot.slane %v4604_v49, 4  ;;  %v6372_v2 = vrot.slane %v6356_v12, 9  ;;  %v6357_v0 = vld [vmem:[%s7772_s14 + $0x3c] sm:$0xe] }
 0x123   : > { %7224 = vmatprep.subr.bf16.mxu1 %v7668_v1  ;;  %v6413_v53 = vcombine.low %v9290_v4, %v9304_v57  ;;  %v4681_v14 = vrot.slane %v10011_v40, 5  ;;  %v4613_v56 = vrot.slane %v4611_v23, 4  ;;  %v7674_v24 = vld [vmem:[%s7772_s14 + $0x40] sm:$0xf]  ;;  %v4605_v48 = vsel %vm8050_vm5, %v6371_v18, %v4604_v49  ;;  %v7676_v18 = vld [vmem:[%s7772_s14 + $0x44] sm:$0x1] }
 0x124   : > { %7165 = vmatmul.mubr.bf16.gmra.mrb[24].mxu0 %v6343_v6  ;;  %v7671_v6 = vld [vmem:[%s9942_s1 + $0x128] sm:$0xff]   ;;  %v4618_v55 = vrot.slane %v7674_v24, 5  ;;  %v4688_v12 = vrot.slane %v9009_v10, 5  ;;  %v4612_v49 = vsel %vm8050_vm5, %v6372_v2, %v4611_v23  ;;  %v7677_v10 = vld [vmem:[%s9942_s1 + $0x138] sm:$0xff]   ;;  %v6368_v23 = vld [vmem:[%s7772_s14 + $0xc0] sm:$0xe] }
 0x125   : > { %6957 = vmatmul.mubr.bf16.gmra.mrb[8].mxu1 %v7609_v39  ;;  %7168 = vmatprep.mubr.bf16.mxu0 %v6344_v3  ;;  %v4607_v39 = vrot.slane %v7672_v33, 5  ;;  %v4684_v3 = vrot.slane %v8997_v21, 5  ;;  %v9321_v7 = vsel %vm8050_vm5, %v6382_v47, %v4681_v14  ;;  %v7675_v21 = vld [vmem:[%s9942_s1 + $0x130] sm:$0xff]   ;;  %v6383_v47 = vrot.slane %v6367_v11, 9 }
 0x126   : > { %6960 = vmatprep.mubr.bf16.mxu1 %v7611_v46  ;;  %7232 = vmatpush3.bf16.msra.mxu1 %v7668_v1  ;;  %v4683_v46 = vrot.slane %v4681_v14, 4  ;;  %v7673_v1 = vld [vmem:[%s7772_s14 + $0x38] sm:$0x1]  ;;  %v6373_v14 = vrot.slane %v6357_v0, 9  ;;  %v4621_v33 = vrot.slane %v7676_v18, 5  ;;  %v4695_v11 = vrot.slane %v9091_v51, 5 }
 0x127   : > { %7225 = vmatprep.subr.bf16.mxu1 %v7671_v6  ;;  %v4614_v60 = vrot.slane %v7673_v1, 5  ;;  %v4608_v36 = vsel %vm8050_vm5, %v4606_v19, %v4607_v39  ;;  %v4690_v39 = vrot.slane %v4688_v12, 4  ;;  %v6058_v19 = vld [vmem:[%s7772_s14 + $0x6c] sm:$0xf]  ;;  %v7617_v18 = vld [vmem:[%s7772_s14 + $0x90] sm:$0xff]   ;;  %v2446_v20 = vshll.u32 %v7683_v63, 16 }
 0x128   : > { %v9333_v25 = vsel %vm8050_vm5, %v4683_v46, %v4684_v3  ;;  %v6403_v3 = vcombine.low %v4605_v48, %v4608_v36  ;;  %v4619_v1 = vsel %vm8050_vm5, %v6373_v14, %v4618_v55  ;;  %v2379_v0 = vshrl.u32 %v6058_v19, 16  ;;  %v6369_v51 = vld [vmem:[%s7772_s14 + $0xcc] sm:$0xe] }
 0x129   : > { %v6414_v16 = vcombine.low %v9321_v7, %v9333_v25  ;;  %v4615_v40 = vsel %vm8050_vm5, %v4613_v56, %v4614_v60  ;;  %v6384_v56 = vrot.slane %v6368_v23, 9  ;;  %v2382_v24 = vshll.u32 %v6058_v19, 16 }
 0x12a   : > { %7233 = vmatpush3.bf16.msra.mxu1 %v7671_v6  ;;  %v4691_v6 = vrot.slane %v9030_v27, 5  ;;  %v9353_v27 = vsel %vm8050_vm5, %v6383_v47, %v4688_v12  ;;  %v4698_v36 = vrot.slane %v9142_v26, 5  ;;  %v4697_v12 = vrot.slane %v4695_v11, 4 }
 0x12b   : > { %7226 = vmatprep.subr.bf16.mxu1 %v7675_v21  ;;  %v2384_v26 = vrot.slane %v2382_v24, 5  ;;  %v4705_v23 = vrot.slane %v9232_v13, 5 }
 0x12c   : > { %7169 = vmatmul.mubr.bf16.gmra.mrb[28].mxu0 %v6345_v28  ;;  %v4620_v28 = vrot.slane %v4618_v55, 4  ;;  %v9360_v46 = vsel %vm8050_vm5, %v4690_v39, %v4691_v6  ;;  %v9374_v55 = vsel %vm8050_vm5, %v6384_v56, %v4695_v11  ;;  %v4702_v39 = vrot.slane %v9194_v31, 5  ;;  %v7679_v56 = vld [vmem:[%s7772_s14 + $0x74] sm:$0x1] }
 0x12d   : > { %6961 = vmatmul.mubr.bf16.gmra.mrb[12].mxu1 %v7612_v30  ;;  %7188 = vmatprep.mubr.bf16.mxu0 %v6402_v34  ;;  %v7615_v30 = vld [vmem:[%s7772_s14 + $0x78] sm:$0xff]   ;;  %v6404_v34 = vcombine.low %v4612_v49, %v4615_v40  ;;  %v6415_v2 = vcombine.low %v9353_v27, %v9360_v46  ;;  %v9379_v49 = vsel %vm8050_vm5, %v4697_v12, %v4698_v36  ;;  %v2381_v40 = vrot.slane %v2379_v0, 4  ;;  %v7680_v0 = vld [vmem:[%s7772_s14 + $0x88] sm:$0xf] }
 0x12e   : > { %6964 = vmatprep.mubr.bf16.mxu1 %v7614_v52  ;;  %7234 = vmatpush3.bf16.msra.mxu1 %v7675_v21  ;;  %v7616_v52 = vld [vmem:[%s7772_s14 + $0x84] sm:$0xff]   ;;  %v4622_v60 = vsel %vm8050_vm5, %v4620_v28, %v4621_v33  ;;  %v7678_v21 = vld [vmem:[%s7772_s14 + $0x70] sm:$0xf]  ;;  %v6416_v28 = vcombine.low %v9374_v55, %v9379_v49  ;;  %v4704_v19 = vrot.slane %v4702_v39, 4  ;;  %v2436_v24 = vshll.u32 %v7680_v0, 16 }
 0x12f   : > { %7227 = vmatprep.subr.bf16.mxu1 %v7677_v10  ;;  %v2388_v48 = vshll.u32 %v7678_v21, 16  ;;  %v2392_v47 = vshrl.u32 %v7678_v21, 16  ;;  %v6405_v6 = vcombine.low %v4619_v1, %v4622_v60  ;;  %v2398_v1 = vshll.u32 %v7679_v56, 16 }
 0x130   : > { %v9401_v11 = vsel %vm8050_vm5, %v4704_v19, %v4705_v23  ;;  %v2440_v21 = vshrl.u32 %v7680_v0, 16  ;;  %v7682_v19 = vld [vmem:[%s7772_s14 + $0xa0] sm:$0xf] }
 0x131   : > { %v9381_v14 = vrot.slane %v2388_v48, 5  ;;  %v2394_v33 = vrot.slane %v2392_v47, 4  ;;  %v2488_v56 = vshrl.u32 %v7682_v19, 16 }
 0x132   : > { %7235 = vmatpush3.bf16.msra.mxu1 %v7677_v10  ;;  %v6385_v10 = vrot.slane %v6369_v51, 9 }
 0x133   : > { %v2395_v31 = vor.u32 %v2394_v33, %v9381_v14  ;;  %v2454_v33 = vshll.u32 %v6067_v61, 16 }
 0x134   : > { %7189 = vmatmul.mubr.bf16.vlgmr.msra.gmra.mrb[0].mxu0 %v6403_v3  ;;  %v7618_v3 = vld [vmem:[%s7772_s14 + $0x9c] sm:$0xff]  }
 0x135   : > { %6965 = vmatmul.mubr.bf16.gmra.mrb[16].mxu1 %v7615_v30  ;;  %7192 = vmatprep.mubr.bf16.mxu0 %v6404_v34  ;;  %v6064_v30 = vld [vmem:[%s7772_s14 + $0x84] sm:$0xf]  ;;  %v9392_v34 = vsel %vm8050_vm5, %v6385_v10, %v4702_v39  ;;  %v2396_v47 = vrot.slane %v2395_v31, 4  ;;  %v7681_v10 = vld [vmem:[%s7772_s14 + $0x94] sm:$0xf]  ;;  %v2456_v0 = vrot.slane %v2454_v33, 5 }
 0x136   : > { %6968 = vmatprep.mubr.bf16.mxu1 %v7616_v52  ;;  %v2385_v52 = vor.u32 %v2384_v26, %v2381_v40  ;;  %v2427_v13 = vshrl.u32 %v6064_v30, 16  ;;  %v2430_v60 = vshll.u32 %v6064_v30, 16  ;;  %v6417_v48 = vcombine.low %v9392_v34, %v9401_v11 }
 0x137   : > { %v9410_v40 = vrot.slane %v2436_v24, 5  ;;  %v2442_v26 = vrot.slane %v2440_v21, 4  ;;  %v2460_v39 = vshll.u32 %v7681_v10, 16  ;;  %v2464_v23 = vshrl.u32 %v7681_v10, 16  ;;  %v7685_v10 = vld [vmem:[%s7772_s14 + $0xa4] sm:$0x1] }
 0x138   : > { %v2386_v36 = vrot.slane %v2385_v52, 4  ;;  %v2429_v12 = vrot.slane %v2427_v13, 4  ;;  %v2432_v51 = vrot.slane %v2430_v60, 5  ;;  %v2484_v52 = vshll.u32 %v7682_v19, 16  ;;  %v7686_v19 = vld [vmem:[%s7772_s14 + $0xac] sm:$0xf] }
 0x139   : > { %v2443_v13 = vor.u32 %v2442_v26, %v9410_v40  ;;  %v9427_v41 = vrot.slane %v2460_v39, 5  ;;  %v2466_v42 = vrot.slane %v2464_v23, 4  ;;  %v2490_v21 = vrot.slane %v2488_v56, 4  ;;  %v6076_v23 = vld [vmem:[%s7772_s14 + $0xb4] sm:$0xf] }
 0x13a   : > { %v2494_v39 = vshll.u32 %v7685_v10, 16  ;;  %v2512_v15 = vshrl.u32 %v7686_v19, 16  ;;  %v2526_v63 = vshll.u32 %v6076_v23, 16 }
 0x13b   : > { %v2467_v26 = vor.u32 %v2466_v42, %v9427_v41 }
 0x13c   : > { %7193 = vmatmul.mubr.bf16.gmra.mrb[4].mxu0 %v6405_v6  ;;  %v6070_v6 = vld [vmem:[%s7772_s14 + $0x9c] sm:$0xf] }
 0x13d   : > { %6969 = vmatmul.mubr.bf16.gmra.mrb[20].mxu1 %v7617_v18  ;;  %7196 = vmatprep.mubr.bf16.mxu0 %v6406_v8  ;;  %v2400_v8 = vrot.slane %v2398_v1, 5  ;;  %v2451_v18 = vshrl.u32 %v6067_v61, 16  ;;  %v2478_v30 = vshll.u32 %v6070_v6, 16  ;;  %v2391_v1 = vsel %vm7804_vm2, %v2386_v36, %v9381_v14  ;;  %v7621_v61 = vld [vmem:[%s7772_s14 + $0xc0] sm:$0xff]  }
 0x13e   : > { %6972 = vmatprep.mubr.bf16.mxu1 %v7618_v3  ;;  %v2475_v3 = vshrl.u32 %v6070_v6, 16  ;;  %v9429_v14 = vrot.slane %v2484_v52, 5  ;;  %v2508_v52 = vshll.u32 %v7686_v19, 16 }
 0x13f   : > { %v2401_v31 = vsel %vm7804_vm2, %v2396_v47, %v2400_v8  ;;  %v2453_v60 = vrot.slane %v2451_v18, 4  ;;  %v2480_v24 = vrot.slane %v2478_v30, 5  ;;  %v2448_v8 = vrot.slane %v2446_v20, 5  ;;  %v7687_v20 = vld [vmem:[%s7772_s14 + $0xb8] sm:$0xf] }
 0x140   : > { %v2444_v47 = vrot.slane %v2443_v13, 4  ;;  %v2491_v33 = vor.u32 %v2490_v21, %v9429_v14  ;;  %v2532_v29 = vshll.u32 %v7687_v20, 16  ;;  %v2536_v44 = vshrl.u32 %v7687_v20, 16 }
 0x142   : > { %v2492_v13 = vrot.slane %v2491_v33, 4 }
 0x144   : > { %7197 = vmatmul.mubr.bf16.gmra.mrb[8].mxu0 %v6407_v54  ;;  %v2433_v54 = vor.u32 %v2432_v51, %v2429_v12  ;;  %v2457_v12 = vor.u32 %v2456_v0, %v2453_v60  ;;  %v7684_v51 = vld [vmem:[%s7772_s14 + $0x98] sm:$0x1]  ;;  %v2496_v60 = vrot.slane %v2494_v39, 5 }
 0x145   : > { %6973 = vmatmul.mubr.bf16.gmra.mrb[24].mxu1 %v7619_v45  ;;  %7200 = vmatprep.mubr.bf16.mxu0 %v6408_v17  ;;  %v2477_v17 = vrot.slane %v2475_v3, 4  ;;  %v6106_v45 = vcombine.low %v2391_v1, %v2401_v31  ;;  %v2470_v6 = vshll.u32 %v7684_v51, 16  ;;  %v2523_v31 = vshrl.u32 %v6076_v23, 16 }
 0x146   : > { %6976 = vmatprep.mubr.bf16.mxu1 %v7620_v9  ;;  %v2434_v36 = vrot.slane %v2433_v54, 4  ;;  %v6073_v9 = vld [vmem:[%s7772_s14 + $0xa8] sm:$0xf]  ;;  %v2458_v56 = vrot.slane %v2457_v12, 4  ;;  %v2497_v32 = vsel %vm7804_vm2, %v2492_v13, %v2496_v60 }
 0x147   : > { %v2481_v18 = vor.u32 %v2480_v24, %v2477_v17  ;;  %v2499_v3 = vshrl.u32 %v6073_v9, 16  ;;  %v2502_v30 = vshll.u32 %v6073_v9, 16  ;;  %v2472_v1 = vrot.slane %v2470_v6, 5 }
 0x148   : > { %v2439_v43 = vsel %vm7804_vm2, %v2434_v36, %v9410_v40  ;;  %v2510_v17 = vrot.slane %v2508_v52, 5  ;;  %v2514_v24 = vrot.slane %v2512_v15, 4  ;;  %v2525_v21 = vrot.slane %v2523_v31, 4  ;;  %v6079_v36 = vld [vmem:[%s7772_s14 + $0xc0] sm:$0xf] }
 0x149   : > { %v2482_v54 = vrot.slane %v2481_v18, 4  ;;  %v2501_v0 = vrot.slane %v2499_v3, 4  ;;  %v2504_v42 = vrot.slane %v2502_v30, 5  ;;  %v2547_v9 = vshrl.u32 %v6079_v36, 16  ;;  %v7689_v18 = vld [vmem:[%s7772_s14 + $0xc4] sm:$0xf] }
 0x14a   : > { %v2556_v33 = vshll.u32 %v7689_v18, 16 }
 0x14b   : > { %v2487_v51 = vsel %vm7804_vm2, %v2482_v54, %v9429_v14  ;;  %v2505_v5 = vor.u32 %v2504_v42, %v2501_v0  ;;  %v2560_v14 = vshrl.u32 %v7689_v18, 16  ;;  %v2549_v19 = vrot.slane %v2547_v9, 4 }
 0x14c   : > { %7201 = vmatmul.mubr.bf16.gmra.mrb[12].mxu0 %v6409_v38  ;;  %v2449_v38 = vsel %vm7804_vm2, %v2444_v47, %v2448_v8  ;;  %v2538_v8 = vrot.slane %v2536_v44, 4  ;;  %v2463_v47 = vsel %vm7804_vm2, %v2458_v56, %v9427_v41  ;;  %v7688_v41 = vld [vmem:[%s7772_s14 + $0xb0] sm:$0x1]  ;;  %v6110_v58 = vcombine.low %v2487_v51, %v2497_v32  ;;  %v7691_v44 = vld [vmem:[%s7772_s14 + $0xc8] sm:$0x1] }
 0x14d   : > { %6977 = vmatmul.mubr.bf16.gmra.mrb[28].mxu1 %v7621_v61  ;;  %7204 = vmatprep.mubr.bf16.mxu0 %v6410_v35  ;;  %v2468_v35 = vrot.slane %v2467_v26, 4  ;;  %v6108_v40 = vcombine.low %v2439_v43, %v2449_v38  ;;  %v2528_v61 = vrot.slane %v2526_v63, 5  ;;  %v2518_v6 = vshll.u32 %v7688_v41, 16 }
 0x14e   : > { %7012 = vmatprep.mubr.bf16.mxu1 %v6106_v45  ;;  %v2534_v45 = vrot.slane %v2532_v29, 5  ;;  %v2550_v26 = vshll.u32 %v6079_v36, 16  ;;  %v2506_v22 = vrot.slane %v2505_v5, 4  ;;  %v2558_v15 = vrot.slane %v2556_v33, 5 }
 0x14f   : > { %v2473_v12 = vsel %vm7804_vm2, %v2468_v35, %v2472_v1  ;;  %v2529_v10 = vor.u32 %v2528_v61, %v2525_v21  ;;  %v2520_v30 = vrot.slane %v2518_v6, 5  ;;  %v2562_v43 = vrot.slane %v2560_v14, 4 }
 0x150   : > { %v2539_v39 = vor.u32 %v2538_v8, %v2534_v45  ;;  %v6109_v3 = vcombine.low %v2463_v47, %v2473_v12  ;;  %v2552_v52 = vrot.slane %v2550_v26, 5  ;;  %v2511_v31 = vsel %vm7804_vm2, %v2506_v22, %v2510_v17 }
 0x151   : > { %v2530_v38 = vrot.slane %v2529_v10, 4  ;;  %v2563_v29 = vor.u32 %v2562_v43, %v2558_v15  ;;  %v2566_v35 = vshll.u32 %v7691_v44, 16 }
 0x152   : > { %v2540_v56 = vrot.slane %v2539_v39, 4  ;;  %v2553_v20 = vor.u32 %v2552_v52, %v2549_v19  ;;  %v6463_v19 = vld [vmem:[%s9505_s26 + $0x18] sm:$0xf] }
 0x153   : > { %v2535_v4 = vsel %vm7804_vm2, %v2530_v38, %v2534_v45  ;;  %v2568_v54 = vrot.slane %v2566_v35, 5 }
 0x154   : > { %7205 = vmatmul.mubr.bf16.gmra.mrb[16].mxu0 %v6411_v62  ;;  %v2515_v62 = vor.u32 %v2514_v24, %v2510_v17  ;;  %v2554_v25 = vrot.slane %v2553_v20, 4 }
 0x155   : > { %7013 = vmatmul.mubr.bf16.vlgmr.msra.gmra.mrb[16].mxu1 %v9252_v50  ;;  %7208 = vmatprep.mubr.bf16.mxu0 %v6412_v59  ;;  %v7690_v50 = vld [vmem:[%s7772_s14 + $0xbc] sm:$0x1] }
 0x156   : > { %7016 = vmatprep.mubr.bf16.mxu1 %v6108_v40  ;;  %v2542_v23 = vshll.u32 %v7690_v50, 16  ;;  %v2516_v59 = vrot.slane %v2515_v62, 4  ;;  %v2559_v13 = vsel %vm7804_vm2, %v2554_v25, %v2558_v15 }
 0x158   : > { %v2544_v1 = vrot.slane %v2542_v23, 5  ;;  %v2521_v63 = vsel %vm7804_vm2, %v2516_v59, %v2520_v30 }
 0x15a   : > { %v2545_v57 = vsel %vm7804_vm2, %v2540_v56, %v2544_v1 }
 0x15b   : > { %v6112_v7 = vcombine.low %v2535_v4, %v2545_v57 }
 0x15c   : > { %7209 = vmatmul.mubr.bf16.gmra.mrb[20].mxu0 %v6413_v53  ;;  %v6111_v53 = vcombine.low %v2511_v31, %v2521_v63  ;;  %v6458_v63 = vld [vmem:[%s9505_s26 + $0xc] sm:$0xf] }
 0x15d   : > { %7017 = vmatmul.mubr.bf16.gmra.mrb[20].mxu1 %v6109_v3  ;;  %7212 = vmatprep.mubr.bf16.mxu0 %v6414_v16  ;;  %v2564_v16 = vrot.slane %v2563_v29, 4 }
 0x15e   : > { %7020 = vmatprep.mubr.bf16.mxu1 %v6110_v58 }
 0x15f   : > { %v2569_v60 = vsel %vm7804_vm2, %v2564_v16, %v2568_v54 }
 0x160   : > { %v6113_v0 = vcombine.low %v2559_v13, %v2569_v60 }
 0x164   : > { %7213 = vmatmul.mubr.bf16.gmra.mrb[24].mxu0 %v6415_v2 }
 0x165   : > { %7021 = vmatmul.mubr.bf16.gmra.mrb[24].mxu1 %v6111_v53  ;;  %7216 = vmatprep.mubr.bf16.mxu0 %v6416_v28 }
 0x166   : > { %7024 = vmatprep.mubr.bf16.mxu1 %v6112_v7  ;;  %v6466_v7 = vld [vmem:[%s9505_s26 + $0x20] sm:$0x1] }
 0x16c   : > { %7217 = vmatmul.mubr.bf16.gmra.mrb[28].mxu0 %v6417_v48 }
 0x16d   : > { %7025 = vmatmul.mubr.bf16.gmra.mrb[28].mxu1 %v6113_v0 }
 0x1e8   : > { %v6950_v27 = vpop.f32.mrb[0].mxu1 }
 0x1e9   : > { %v1979_v46 = vpop.f32.mrb[1].mxu1 }
 0x1ea   : > { %v6951_v2 = vpop.f32.mrb[2].mxu1 }
 0x1eb   : > { %v1982_v55 = vpop.f32.mrb[3].mxu1 }
 0x1f0   : > { %v9561_v49 = vpop.f32.mrb[4].mxu1 }
 0x1f1   : > { %v9563_v28 = vpop.f32.mrb[5].mxu1 }
 0x1f2   : > { %v9565_v34 = vpop.f32.mrb[6].mxu1 }
 0x1f3   : > { %v9567_v11 = vpop.f32.mrb[7].mxu1 }
 0x1f8   : > { %v9569_v48 = vpop.f32.mrb[8].mxu1 }
 0x1f9   : > { %v9571_v42 = vpop.f32.mrb[9].mxu1 }
 0x1fa   : > { %v9573_v17 = vpop.f32.mrb[10].mxu1 }
 0x1fb   : > { %v9575_v24 = vpop.f32.mrb[11].mxu1 }
 0x200   : > { %v9577_v40 = vpop.f32.mrb[12].mxu1 }
 0x201   : > { %v9579_v21 = vpop.f32.mrb[13].mxu1 }
 0x202   : > { %v9581_v61 = vpop.f32.mrb[14].mxu1 }
 0x203   : > { %v9583_v45 = vpop.f32.mrb[15].mxu1 }
 0x207   : > { %v7190_v8 = vpop.f32.mrb[0].mxu0 }
 0x208   : > { %v7236_v36 = vadd.f32 %v7190_v8, %v6950_v27  ;;  %v4870_v47 = vpop.f32.mrb[1].mxu0 }
 0x209   : > { %v7237_v12 = vadd.f32 %v4870_v47, %v1979_v46  ;;  %v7191_v51 = vpop.f32.mrb[2].mxu0 }
 0x20a   : > { %v6542_v32 = vpack.c.bf16 %v7236_v36, %v7236_v36  ;;  %v7238_v5 = vadd.f32 %v7191_v51, %v6951_v2  ;;  %v4873_v62 = vpop.f32.mrb[3].mxu0  ;;  %v5063_v41 = vmul.f32 %v7236_v36, %v7236_v36  ;;  %v6461_v2 = vld [vmem:[%s9505_s26 + $0x14] sm:$0x1] }
 0x20b   : > { %v6540_v6 = vpack.c.bf16 %v7237_v12, %v7237_v12  ;;  %v7239_v9 = vadd.f32 %v4873_v62, %v1982_v55  ;;  %v5061_v33 = vmul.f32 %v7237_v12, %v7237_v12 }
 0x20c   : > { %v5296_v26 = vshrl.u32 %v6542_v32, 16  ;;  %v5299_v18 = vshll.u32 %v6542_v32, 16  ;;  %v6543_v14 = vpack.c.bf16 %v7238_v5, %v7238_v5  ;;  %v5064_v39 = vmul.f32 %v7238_v5, %v7238_v5 }
 0x20d   : > { %v5279_v10 = vshrl.u32 %v6540_v6, 16  ;;  %v5029_v50 = vadd.f32 %v7239_v9, %v7237_v12  ;;  %v5062_v23 = vmul.f32 %v7239_v9, %v7239_v9  ;;  %v5282_v58 = vshll.u32 %v6540_v6, 16 }
 0x20e   : > { %v5298_v3 = vrot.slane %v5296_v26, 7  ;;  %v5304_v22 = vshrl.u32 %v6543_v14, 16  ;;  %v6541_v59 = vpack.c.bf16 %v7239_v9, %v7239_v9  ;;  %v5307_v15 = vshll.u32 %v6543_v14, 16 }
 0x20f   : > { %v5281_v52 = vrot.slane %v5279_v10, 7  ;;  %v5030_v43 = vadd.f32 %v7236_v36, %v5029_v50  ;;  %v5093_v38 = vadd.f32 %v5062_v23, %v5061_v33  ;;  %v7194_v56 = vpop.f32.mrb[4].mxu0 }
 0x210   : > { %v5301_v1 = vor.u32 %v5299_v18, %v5298_v3  ;;  %v5302_v31 = vrot.slane %v5298_v3, 4  ;;  %v5306_v29 = vrot.slane %v5304_v22, 7  ;;  %v5287_v44 = vshrl.u32 %v6541_v59, 16  ;;  %v4886_v35 = vpop.f32.mrb[5].mxu0 }
 0x211   : > { %v5284_v4 = vor.u32 %v5282_v58, %v5281_v52  ;;  %v5285_v57 = vrot.slane %v5281_v52, 4  ;;  %v5094_v25 = vadd.f32 %v5093_v38, %v5063_v41  ;;  %v5290_v16 = vshll.u32 %v6541_v59, 16  ;;  %v7195_v54 = vpop.f32.mrb[6].mxu0 }
 0x212   : > { %v5612_v13 = vsel %vm9587_vm11, %v5301_v1, %v6463_v19  ;;  %v5309_v60 = vor.u32 %v5307_v15, %v5306_v29  ;;  %v5311_v0 = vrot.slane %v5306_v29, 4  ;;  %v5289_v37 = vrot.slane %v5287_v44, 7  ;;  %v4889_v27 = vpop.f32.mrb[7].mxu0  ;;  %v6468_v29 = vld [vmem:[%s9505_s26 + $0x24] sm:$0xf] }
 0x213   : > { %6464 = vst [vmem:[%s9505_s26 + $0x18] sm:$0xf] %v5612_v13  ;;  %v5603_v46 = vsel %vm9587_vm11, %v5284_v4, %v6458_v63  ;;  %v7240_v55 = vadd.f32 %v7194_v56, %v9561_v49  ;;  %v7241_v8 = vadd.f32 %v4886_v35, %v9563_v28  ;;  %v5031_v36 = vadd.f32 %v7238_v5, %v5030_v43  ;;  %v6473_v43 = vld [vmem:[%s9505_s26 + $0x30] sm:$0xf] }
 0x214   : > { %6459 = vst [vmem:[%s9505_s26 + $0xc] sm:$0xf] %v5603_v46  ;;  %v5310_v47 = vsel %vm9595_vm12, %v5302_v31, %v5309_v60  ;;  %v5616_v12 = vsel %vm9601_vm13, %v5311_v0, %v6466_v7  ;;  %v5292_v51 = vor.u32 %v5290_v16, %v5289_v37  ;;  %v5294_v32 = vrot.slane %v5289_v37, 4  ;;  %v6476_v0 = vld [vmem:[%s9505_s26 + $0x38] sm:$0x1] }
 0x215   : > { %6465 = vst [vmem:[%s9505_s26 + $0x1c] sm:$0xf] %v5310_v47  ;;  %6467 = vst [vmem:[%s9505_s26 + $0x20] sm:$0x1] %v5616_v12  ;;  %v6546_v62 = vpack.c.bf16 %v7240_v55, %v7240_v55  ;;  %v5032_v41 = vadd.f32 %v7241_v8, %v5031_v36  ;;  %v5065_v6 = vmul.f32 %v7241_v8, %v7241_v8  ;;  %v6471_v12 = vld [vmem:[%s9505_s26 + $0x2c] sm:$0x1] }
 0x216   : > { %v5293_v49 = vsel %vm9595_vm12, %v5285_v57, %v5292_v51  ;;  %v5609_v28 = vsel %vm9601_vm13, %v5294_v32, %v6461_v2  ;;  %v5095_v5 = vadd.f32 %v5094_v25, %v5064_v39  ;;  %v6544_v9 = vpack.c.bf16 %v7241_v8, %v7241_v8 }
 0x217   : > { %6460 = vst [vmem:[%s9505_s26 + $0x10] sm:$0xf] %v5293_v49  ;;  %6462 = vst [vmem:[%s9505_s26 + $0x14] sm:$0x1] %v5609_v28  ;;  %v5067_v26 = vmul.f32 %v7240_v55, %v7240_v55  ;;  %v5330_v18 = vshrl.u32 %v6546_v62, 16  ;;  %v7242_v33 = vadd.f32 %v7195_v54, %v9565_v34  ;;  %v7243_v14 = vadd.f32 %v4889_v27, %v9567_v11  ;;  %v7198_v10 = vpop.f32.mrb[8].mxu0 }
 0x218   : > { %v5333_v50 = vshll.u32 %v6546_v62, 16  ;;  %v5096_v23 = vadd.f32 %v5095_v5, %v5065_v6  ;;  %v5313_v3 = vshrl.u32 %v6544_v9, 16  ;;  %v9630_v58 = vadd.f32 %v7198_v10, %v9569_v48  ;;  %v4902_v22 = vpop.f32.mrb[9].mxu0 }
 0x219   : > { %v5332_v39 = vrot.slane %v5330_v18, 7  ;;  %v5316_v59 = vshll.u32 %v6544_v9, 16  ;;  %v6547_v19 = vpack.c.bf16 %v7242_v33, %v7242_v33  ;;  %v5033_v52 = vadd.f32 %v7243_v14, %v5032_v41  ;;  %v7199_v15 = vpop.f32.mrb[10].mxu0 }
 0x21a   : > { %v5315_v38 = vrot.slane %v5313_v3, 7  ;;  %v5068_v56 = vmul.f32 %v7242_v33, %v7242_v33  ;;  %v5066_v34 = vmul.f32 %v7243_v14, %v7243_v14  ;;  %v6545_v11 = vpack.c.bf16 %v7243_v14, %v7243_v14  ;;  %v4905_v1 = vpop.f32.mrb[11].mxu0  ;;  %v6483_v3 = vld [vmem:[%s9505_s26 + $0x48] sm:$0xf] }
 0x21b   : > { %v5335_v31 = vor.u32 %v5333_v50, %v5332_v39  ;;  %v5336_v63 = vrot.slane %v5332_v39, 4  ;;  %v5338_v44 = vshrl.u32 %v6547_v19, 16  ;;  %v5341_v48 = vshll.u32 %v6547_v19, 16 }
 0x21c   : > { %v5318_v35 = vor.u32 %v5316_v59, %v5315_v38  ;;  %v5319_v4 = vrot.slane %v5315_v38, 4  ;;  %v5034_v57 = vadd.f32 %v7240_v55, %v5033_v52  ;;  %v5097_v7 = vadd.f32 %v5096_v23, %v5066_v34 }
 0x21d   : > { %v5626_v25 = vsel %vm9587_vm11, %v5335_v31, %v6473_v43  ;;  %v5340_v16 = vrot.slane %v5338_v44, 7  ;;  %v5321_v54 = vshrl.u32 %v6545_v11, 16  ;;  %v5324_v13 = vshll.u32 %v6545_v11, 16  ;;  %v6478_v31 = vld [vmem:[%s9505_s26 + $0x3c] sm:$0xf] }
 0x21e   : > { %6474 = vst [vmem:[%s9505_s26 + $0x30] sm:$0xf] %v5626_v25  ;;  %v5619_v60 = vsel %vm9587_vm11, %v5318_v35, %v6468_v29  ;;  %v5098_v37 = vadd.f32 %v5097_v7, %v5067_v26  ;;  %v6550_v27 = vpack.c.bf16 %v9630_v58, %v9630_v58  ;;  %v7245_v46 = vadd.f32 %v4902_v22, %v9571_v42 }
 0x21f   : > { %6469 = vst [vmem:[%s9505_s26 + $0x24] sm:$0xf] %v5619_v60  ;;  %v5343_v2 = vor.u32 %v5341_v48, %v5340_v16  ;;  %v5345_v55 = vrot.slane %v5340_v16, 4  ;;  %v5323_v8 = vrot.slane %v5321_v54, 7  ;;  %v5035_v36 = vadd.f32 %v7242_v33, %v5034_v57  ;;  %v7202_v47 = vpop.f32.mrb[12].mxu0 }
 0x220   : > { %v5364_v51 = vshrl.u32 %v6550_v27, 16  ;;  %v5367_v32 = vshll.u32 %v6550_v27, 16  ;;  %v5069_v62 = vmul.f32 %v7245_v46, %v7245_v46  ;;  %v5099_v41 = vadd.f32 %v5098_v37, %v5068_v56  ;;  %v4918_v6 = vpop.f32.mrb[13].mxu0 }
 0x221   : > { %v5344_v49 = vsel %vm9595_vm12, %v5336_v63, %v5343_v2  ;;  %v5630_v42 = vsel %vm9601_vm13, %v5345_v55, %v6476_v0  ;;  %v5326_v28 = vor.u32 %v5324_v13, %v5323_v8  ;;  %v5328_v5 = vrot.slane %v5323_v8, 4  ;;  %v9649_v9 = vpop.f32.mrb[14].mxu0 }
 0x222   : > { %6475 = vst [vmem:[%s9505_s26 + $0x34] sm:$0xf] %v5344_v49  ;;  %6477 = vst [vmem:[%s9505_s26 + $0x38] sm:$0x1] %v5630_v42  ;;  %v9653_v26 = vrot.slane %v5364_v51, 7  ;;  %v5036_v18 = vadd.f32 %v7245_v46, %v5035_v36  ;;  %v5100_v33 = vadd.f32 %v5099_v41, %v5069_v62  ;;  %v6548_v14 = vpack.c.bf16 %v7245_v46, %v7245_v46  ;;  %v9655_v10 = vpop.f32.mrb[15].mxu0 }
 0x223   : > { %v5327_v50 = vsel %vm9595_vm12, %v5319_v4, %v5326_v28  ;;  %v5623_v23 = vsel %vm9601_vm13, %v5328_v5, %v6471_v12  ;;  %v7246_v22 = vadd.f32 %v7199_v15, %v9573_v17  ;;  %v7247_v39 = vadd.f32 %v4905_v1, %v9575_v24  ;;  %v6486_v46 = vld [vmem:[%s9505_s26 + $0x50] sm:$0x1] }
 0x224   : > { %6470 = vst [vmem:[%s9505_s26 + $0x28] sm:$0xf] %v5327_v50  ;;  %6472 = vst [vmem:[%s9505_s26 + $0x2c] sm:$0x1] %v5623_v23  ;;  %v5071_v59 = vmul.f32 %v9630_v58, %v9630_v58  ;;  %v5369_v19 = vor.u32 %v5367_v32, %v9653_v26  ;;  %v5370_v52 = vrot.slane %v9653_v26, 4  ;;  %v5347_v43 = vshrl.u32 %v6548_v14, 16 }
 0x225   : > { %v5350_v38 = vshll.u32 %v6548_v14, 16  ;;  %v6551_v56 = vpack.c.bf16 %v7246_v22, %v7246_v22  ;;  %v5037_v34 = vadd.f32 %v7247_v39, %v5036_v18  ;;  %v5070_v11 = vmul.f32 %v7247_v39, %v7247_v39  ;;  %v6481_v32 = vld [vmem:[%s9505_s26 + $0x44] sm:$0x1]  ;;  %v6493_v23 = vld [vmem:[%s9505_s26 + $0x60] sm:$0xf] }
 0x226   : > { %v5640_v17 = vsel %vm9587_vm11, %v5369_v19, %v6483_v3  ;;  %v5349_v15 = vrot.slane %v5347_v43, 7  ;;  %v6549_v24 = vpack.c.bf16 %v7247_v39, %v7247_v39  ;;  %v9673_v1 = vadd.f32 %v7202_v47, %v9577_v40 }
 0x227   : > { %6484 = vst [vmem:[%s9505_s26 + $0x48] sm:$0xf] %v5640_v17  ;;  %v5072_v63 = vmul.f32 %v7246_v22, %v7246_v22  ;;  %v5372_v29 = vshrl.u32 %v6551_v56, 16  ;;  %v5038_v44 = vadd.f32 %v9630_v58, %v5037_v34  ;;  %v5101_v48 = vadd.f32 %v5100_v33, %v5070_v11  ;;  %v9678_v35 = vpop.f32.mrb[16].mxu0 }
 0x228   : > { %v5352_v4 = vor.u32 %v5350_v38, %v5349_v15  ;;  %v5353_v57 = vrot.slane %v5349_v15, 4  ;;  %v5375_v7 = vshll.u32 %v6551_v56, 16  ;;  %v5355_v25 = vshrl.u32 %v6549_v24, 16  ;;  %v7014_v16 = vpop.f32.mrb[16].mxu1  ;;  %v9680_v54 = vpop.f32.mrb[17].mxu0 }
 0x229   : > { %v5374_v40 = vrot.slane %v5372_v29, 7  ;;  %v5102_v13 = vadd.f32 %v5101_v48, %v5071_v59  ;;  %v5358_v60 = vshll.u32 %v6549_v24, 16  ;;  %v6554_v0 = vpack.c.bf16 %v9673_v1, %v9673_v1  ;;  %v9684_v58 = vpop.f32.mrb[17].mxu1  ;;  %v9686_v37 = vpop.f32.mrb[18].mxu0 }
 0x22a   : > { %v5633_v27 = vsel %vm9587_vm11, %v5352_v4, %v6478_v31  ;;  %v5357_v2 = vrot.slane %v5355_v25, 7  ;;  %v7249_v55 = vadd.f32 %v4918_v6, %v9579_v21  ;;  %v5039_v8 = vadd.f32 %v7246_v22, %v5038_v44  ;;  %v9692_v36 = vpop.f32.mrb[18].mxu1  ;;  %v9694_v47 = vpop.f32.mrb[19].mxu0 }
 0x22b   : > { %6479 = vst [vmem:[%s9505_s26 + $0x3c] sm:$0xf] %v5633_v27  ;;  %v5377_v12 = vor.u32 %v5375_v7, %v5374_v40  ;;  %v5379_v51 = vrot.slane %v5374_v40, 4  ;;  %v5398_v62 = vshrl.u32 %v6554_v0, 16  ;;  %v5401_v41 = vshll.u32 %v6554_v0, 16  ;;  %v9698_v49 = vpop.f32.mrb[19].mxu1 }
 0x22c   : > { %v5360_v42 = vor.u32 %v5358_v60, %v5357_v2  ;;  %v5362_v21 = vrot.slane %v5357_v2, 4  ;;  %v5040_v6 = vadd.f32 %v7249_v55, %v5039_v8  ;;  %v5073_v28 = vmul.f32 %v7249_v55, %v7249_v55  ;;  %v6488_v7 = vld [vmem:[%s9505_s26 + $0x54] sm:$0xf] }
 0x22d   : > { %v5378_v5 = vsel %vm9595_vm12, %v5370_v52, %v5377_v12  ;;  %v5644_v26 = vsel %vm9601_vm13, %v5379_v51, %v6486_v46  ;;  %v9704_v18 = vrot.slane %v5398_v62, 7  ;;  %v5103_v33 = vadd.f32 %v5102_v13, %v5072_v63 }
 0x22e   : > { %6485 = vst [vmem:[%s9505_s26 + $0x4c] sm:$0xf] %v5378_v5  ;;  %6487 = vst [vmem:[%s9505_s26 + $0x50] sm:$0x1] %v5644_v26  ;;  %v5361_v14 = vsel %vm9595_vm12, %v5353_v57, %v5360_v42  ;;  %v5637_v50 = vsel %vm9601_vm13, %v5362_v21, %v6481_v32  ;;  %v6552_v3 = vpack.c.bf16 %v7249_v55, %v7249_v55 }
 0x22f   : > { %v7250_v22 = vadd.f32 %v9649_v9, %v9581_v61  ;;  %6480 = vst [vmem:[%s9505_s26 + $0x40] sm:$0xf] %v5361_v14  ;;  %6482 = vst [vmem:[%s9505_s26 + $0x44] sm:$0x1] %v5637_v50  ;;  %v5075_v39 = vmul.f32 %v9673_v1, %v9673_v1  ;;  %v5403_v59 = vor.u32 %v5401_v41, %v9704_v18  ;;  %v9722_v43 = vpop.f32.mrb[20].mxu0  ;;  %v5404_v38 = vrot.slane %v9704_v18, 4 }
 0x230   : > { %v5104_v19 = vadd.f32 %v5103_v33, %v5073_v28  ;;  %v7251_v52 = vadd.f32 %v9655_v10, %v9583_v45  ;;  %v5381_v56 = vshrl.u32 %v6552_v3, 16  ;;  %v5384_v34 = vshll.u32 %v6552_v3, 16  ;;  %v7018_v61 = vpop.f32.mrb[20].mxu1  ;;  %v9725_v9 = vpop.f32.mrb[21].mxu0  ;;  %v6491_v41 = vld [vmem:[%s9505_s26 + $0x5c] sm:$0x1] }
 0x231   : > { %v6555_v11 = vpack.c.bf16 %v7250_v22, %v7250_v22  ;;  %v5654_v17 = vsel %vm9587_vm11, %v5403_v59, %v6493_v23  ;;  %v2813_v63 = vpop.f32.mrb[21].mxu1  ;;  %v9729_v29 = vpop.f32.mrb[22].mxu0  ;;  %v5076_v10 = vmul.f32 %v7250_v22, %v7250_v22  ;;  %v9733_v48 = vadd.f32 %v9678_v35, %v7014_v16  ;;  %v6496_v35 = vld [vmem:[%s9505_s26 + $0x68] sm:$0x1] }
 0x232   : > { %v5041_v15 = vadd.f32 %v7251_v52, %v5040_v6  ;;  %v5074_v24 = vmul.f32 %v7251_v52, %v7251_v52  ;;  %v6553_v31 = vpack.c.bf16 %v7251_v52, %v7251_v52  ;;  %6494 = vst [vmem:[%s9505_s26 + $0x60] sm:$0xf] %v5654_v17  ;;  %v5383_v45 = vrot.slane %v5381_v56, 7  ;;  %v9735_v4 = vpop.f32.mrb[22].mxu1  ;;  %v9737_v57 = vpop.f32.mrb[23].mxu0 }
 0x233   : > { %v5406_v44 = vshrl.u32 %v6555_v11, 16  ;;  %v5409_v25 = vshll.u32 %v6555_v11, 16  ;;  %v9741_v0 = vpop.f32.mrb[23].mxu1  ;;  %v6558_v12 = vpack.c.bf16 %v9733_v48, %v9733_v48  ;;  %v7253_v51 = vadd.f32 %v9680_v54, %v9684_v58  ;;  %v6503_v52 = vld [vmem:[%s9505_s26 + $0x78] sm:$0xf] }
 0x234   : > { %v5042_v40 = vadd.f32 %v9673_v1, %v5041_v15  ;;  %v5105_v13 = vadd.f32 %v5104_v19, %v5074_v24  ;;  %v5389_v60 = vshrl.u32 %v6553_v31, 16  ;;  %v5386_v27 = vor.u32 %v5384_v34, %v5383_v45 }
 0x235   : > { %v5387_v46 = vrot.slane %v5383_v45, 4  ;;  %v5408_v2 = vrot.slane %v5406_v44, 7  ;;  %v5392_v55 = vshll.u32 %v6553_v31, 16  ;;  %v5432_v28 = vshrl.u32 %v6558_v12, 16 }
 0x236   : > { %v5106_v16 = vadd.f32 %v5105_v13, %v5075_v39  ;;  %v5391_v8 = vrot.slane %v5389_v60, 7  ;;  %v5647_v1 = vsel %vm9587_vm11, %v5386_v27, %v6488_v7  ;;  %v5043_v42 = vadd.f32 %v7250_v22, %v5042_v40 }
 0x237   : > { %v5411_v32 = vor.u32 %v5409_v25, %v5408_v2  ;;  %v5413_v62 = vrot.slane %v5408_v2, 4  ;;  %6489 = vst [vmem:[%s9505_s26 + $0x54] sm:$0xf] %v5647_v1  ;;  %v5435_v5 = vshll.u32 %v6558_v12, 16  ;;  %v9752_v26 = vpop.f32.mrb[24].mxu0  ;;  %v5077_v33 = vmul.f32 %v7253_v51, %v7253_v51 }
 0x238   : > { %v5394_v21 = vor.u32 %v5392_v55, %v5391_v8  ;;  %v5396_v6 = vrot.slane %v5391_v8, 4  ;;  %v5044_v18 = vadd.f32 %v7253_v51, %v5043_v42  ;;  %v9758_v14 = vpop.f32.mrb[24].mxu1  ;;  %v9760_v50 = vpop.f32.mrb[25].mxu0  ;;  %v9768_v22 = vrot.slane %v5432_v28, 7 }
 0x239   : > { %v5412_v54 = vsel %vm9595_vm12, %v5404_v38, %v5411_v32  ;;  %v5658_v58 = vsel %vm9601_vm13, %v5413_v62, %v6496_v35  ;;  %v5107_v39 = vadd.f32 %v5106_v16, %v5076_v10  ;;  %v9770_v59 = vpop.f32.mrb[25].mxu1  ;;  %v9772_v19 = vpop.f32.mrb[26].mxu0  ;;  %v6556_v38 = vpack.c.bf16 %v7253_v51, %v7253_v51  ;;  %v6506_v62 = vld [vmem:[%s9505_s26 + $0x80] sm:$0x1] }
 0x23a   : > { %6495 = vst [vmem:[%s9505_s26 + $0x64] sm:$0xf] %v5412_v54  ;;  %6497 = vst [vmem:[%s9505_s26 + $0x68] sm:$0x1] %v5658_v58  ;;  %v5395_v23 = vsel %vm9595_vm12, %v5387_v46, %v5394_v21  ;;  %v5651_v3 = vsel %vm9601_vm13, %v5396_v6, %v6491_v41  ;;  %v7254_v56 = vadd.f32 %v9686_v37, %v9692_v36  ;;  %v9784_v17 = vpop.f32.mrb[26].mxu1  ;;  %v9786_v15 = vpop.f32.mrb[27].mxu0 }
 0x23b   : > { %6490 = vst [vmem:[%s9505_s26 + $0x58] sm:$0xf] %v5395_v23  ;;  %6492 = vst [vmem:[%s9505_s26 + $0x5c] sm:$0x1] %v5651_v3  ;;  %v7255_v34 = vadd.f32 %v9694_v47, %v9698_v49  ;;  %v9782_v11 = vadd.f32 %v9722_v43, %v7018_v61  ;;  %v5079_v24 = vmul.f32 %v9733_v48, %v9733_v48  ;;  %v9792_v36 = vpop.f32.mrb[27].mxu1  ;;  %v5438_v47 = vrot.slane %v9768_v22, 4 }
 0x23c   : > { %v5437_v31 = vor.u32 %v5435_v5, %v9768_v22  ;;  %v5108_v45 = vadd.f32 %v5107_v39, %v5077_v33  ;;  %v7257_v37 = vadd.f32 %v9725_v9, %v2813_v63  ;;  %v5415_v49 = vshrl.u32 %v6556_v38, 16  ;;  %v6498_v9 = vld [vmem:[%s9505_s26 + $0x6c] sm:$0xf] }
 0x23d   : > { %v5418_v43 = vshll.u32 %v6556_v38, 16  ;;  %v6559_v61 = vpack.c.bf16 %v7254_v56, %v7254_v56  ;;  %v5045_v44 = vadd.f32 %v7255_v34, %v5044_v18  ;;  %v5078_v7 = vmul.f32 %v7255_v34, %v7255_v34  ;;  %v6501_v18 = vld [vmem:[%s9505_s26 + $0x74] sm:$0x1] }
 0x23e   : > { %v5668_v10 = vsel %vm9587_vm11, %v5437_v31, %v6503_v52  ;;  %v6557_v25 = vpack.c.bf16 %v7255_v34, %v7255_v34  ;;  %v5417_v40 = vrot.slane %v5415_v49, 7  ;;  %v5080_v13 = vmul.f32 %v7254_v56, %v7254_v56 }
 0x23f   : > { %6504 = vst [vmem:[%s9505_s26 + $0x78] sm:$0xf] %v5668_v10  ;;  %v5440_v60 = vshrl.u32 %v6559_v61, 16  ;;  %v5443_v27 = vshll.u32 %v6559_v61, 16  ;;  %v5046_v63 = vadd.f32 %v9733_v48, %v5045_v44  ;;  %v5109_v46 = vadd.f32 %v5108_v45, %v5078_v7  ;;  %v9800_v35 = vpop.f32.mrb[28].mxu0 }
 0x240   : > { %v5423_v2 = vshrl.u32 %v6557_v25, 16  ;;  %v5426_v55 = vshll.u32 %v6557_v25, 16  ;;  %v5420_v16 = vor.u32 %v5418_v43, %v5417_v40  ;;  %v5421_v8 = vrot.slane %v5417_v40, 4  ;;  %v9804_v1 = vpop.f32.mrb[28].mxu1  ;;  %v9806_v32 = vpop.f32.mrb[29].mxu0 }
 0x241   : > { %v5442_v12 = vrot.slane %v5440_v60, 7  ;;  %v6562_v51 = vpack.c.bf16 %v9782_v11, %v9782_v11  ;;  %v5110_v41 = vadd.f32 %v5109_v46, %v5079_v24  ;;  %v5047_v42 = vadd.f32 %v7254_v56, %v5046_v63  ;;  %v9809_v6 = vpop.f32.mrb[29].mxu1  ;;  %v9811_v28 = vpop.f32.mrb[30].mxu0  ;;  %v6513_v61 = vld [vmem:[%s9505_s26 + $0x90] sm:$0xf] }
 0x242   : > { %v5425_v48 = vrot.slane %v5423_v2, 7  ;;  %v5081_v21 = vmul.f32 %v7257_v37, %v7257_v37  ;;  %v5661_v5 = vsel %vm9587_vm11, %v5420_v16, %v6498_v9  ;;  %v9816_v23 = vpop.f32.mrb[30].mxu1  ;;  %v9818_v3 = vpop.f32.mrb[31].mxu0  ;;  %v6560_v10 = vpack.c.bf16 %v7257_v37, %v7257_v37 }
 0x243   : > { %v5445_v54 = vor.u32 %v5443_v27, %v5442_v12  ;;  %v5447_v58 = vrot.slane %v5442_v12, 4  ;;  %v5466_v33 = vshrl.u32 %v6562_v51, 16  ;;  %6499 = vst [vmem:[%s9505_s26 + $0x6c] sm:$0xf] %v5661_v5  ;;  %v5469_v52 = vshll.u32 %v6562_v51, 16  ;;  %v9821_v56 = vpop.f32.mrb[31].mxu1 }
 0x244   : > { %v5428_v22 = vor.u32 %v5426_v55, %v5425_v48  ;;  %v5430_v39 = vrot.slane %v5425_v48, 4  ;;  %v5048_v38 = vadd.f32 %v7257_v37, %v5047_v42  ;;  %v5111_v45 = vadd.f32 %v5110_v41, %v5080_v13 }
 0x245   : > { %v5446_v34 = vsel %vm9595_vm12, %v5438_v47, %v5445_v54  ;;  %v5672_v24 = vsel %vm9601_vm13, %v5447_v58, %v6506_v62  ;;  %v5468_v31 = vrot.slane %v5466_v33, 7  ;;  %v7258_v44 = vadd.f32 %v9729_v29, %v9735_v4  ;;  %v6511_v33 = vld [vmem:[%s9505_s26 + $0x8c] sm:$0x1] }
 0x246   : > { %6505 = vst [vmem:[%s9505_s26 + $0x7c] sm:$0xf] %v5446_v34  ;;  %6507 = vst [vmem:[%s9505_s26 + $0x80] sm:$0x1] %v5672_v24  ;;  %v5429_v49 = vsel %vm9595_vm12, %v5421_v8, %v5428_v22  ;;  %v5665_v43 = vsel %vm9601_vm13, %v5430_v39, %v6501_v18  ;;  %v5083_v47 = vmul.f32 %v9782_v11, %v9782_v11  ;;  %v5449_v60 = vshrl.u32 %v6560_v10, 16 }
 0x247   : > { %6500 = vst [vmem:[%s9505_s26 + $0x70] sm:$0xf] %v5429_v49  ;;  %6502 = vst [vmem:[%s9505_s26 + $0x74] sm:$0x1] %v5665_v43  ;;  %v5471_v7 = vor.u32 %v5469_v52, %v5468_v31  ;;  %v5112_v25 = vadd.f32 %v5111_v45, %v5081_v21  ;;  %v7259_v40 = vadd.f32 %v9737_v57, %v9741_v0  ;;  %v5472_v13 = vrot.slane %v5468_v31, 4 }
 0x248   : > { %v5452_v27 = vshll.u32 %v6560_v10, 16  ;;  %v6563_v9 = vpack.c.bf16 %v7258_v44, %v7258_v44  ;;  %v5451_v46 = vrot.slane %v5449_v60, 7  ;;  %v5084_v2 = vmul.f32 %v7258_v44, %v7258_v44  ;;  %v6508_v8 = vld [vmem:[%s9505_s26 + $0x84] sm:$0xf]  ;;  %v6516_v21 = vld [vmem:[%s9505_s26 + $0x98] sm:$0x1] }
 0x249   : > { %v5682_v37 = vsel %vm9587_vm11, %v5471_v7, %v6513_v61  ;;  %v5049_v63 = vadd.f32 %v7259_v40, %v5048_v38  ;;  %v5082_v29 = vmul.f32 %v7259_v40, %v7259_v40  ;;  %v6561_v4 = vpack.c.bf16 %v7259_v40, %v7259_v40  ;;  %v6523_v10 = vld [vmem:[%s9505_s26 + $0xa8] sm:$0xf] }
 0x24a   : > { %6514 = vst [vmem:[%s9505_s26 + $0x90] sm:$0xf] %v5682_v37  ;;  %v5474_v55 = vshrl.u32 %v6563_v9, 16  ;;  %v7260_v16 = vadd.f32 %v9752_v26, %v9758_v14  ;;  %v5477_v57 = vshll.u32 %v6563_v9, 16  ;;  %v5454_v62 = vor.u32 %v5452_v27, %v5451_v46 }
 0x24b   : > { %v5050_v0 = vadd.f32 %v9782_v11, %v5049_v63  ;;  %v5113_v12 = vadd.f32 %v5112_v25, %v5082_v29  ;;  %v5457_v51 = vshrl.u32 %v6561_v4, 16  ;;  %v5455_v41 = vrot.slane %v5451_v46, 4 }
 0x24c   : > { %v5476_v48 = vrot.slane %v5474_v55, 7  ;;  %v5460_v42 = vshll.u32 %v6561_v4, 16  ;;  %v6566_v58 = vpack.c.bf16 %v7260_v16, %v7260_v16  ;;  %v7261_v26 = vadd.f32 %v9760_v50, %v9770_v59 }
 0x24d   : > { %v5114_v5 = vadd.f32 %v5113_v12, %v5083_v47  ;;  %v5459_v54 = vrot.slane %v5457_v51, 7  ;;  %v5675_v14 = vsel %vm9587_vm11, %v5454_v62, %v6508_v8  ;;  %v5051_v22 = vadd.f32 %v7258_v44, %v5050_v0  ;;  %v6526_v62 = vld [vmem:[%s9505_s26 + $0xb0] sm:$0x1] }
 0x24e   : > { %v5479_v11 = vor.u32 %v5477_v57, %v5476_v48  ;;  %v5481_v18 = vrot.slane %v5476_v48, 4  ;;  %6509 = vst [vmem:[%s9505_s26 + $0x84] sm:$0xf] %v5675_v14  ;;  %v5500_v38 = vshrl.u32 %v6566_v58, 16  ;;  %v5503_v34 = vshll.u32 %v6566_v58, 16 }
 0x24f   : > { %v5462_v39 = vor.u32 %v5460_v42, %v5459_v54  ;;  %v5464_v52 = vrot.slane %v5459_v54, 4  ;;  %v5052_v59 = vadd.f32 %v7261_v26, %v5051_v22  ;;  %v5085_v31 = vmul.f32 %v7261_v26, %v7261_v26  ;;  %v6521_v58 = vld [vmem:[%s9505_s26 + $0xa4] sm:$0x1] }
 0x250   : > { %v5480_v24 = vsel %vm9595_vm12, %v5472_v13, %v5479_v11  ;;  %v5686_v50 = vsel %vm9601_vm13, %v5481_v18, %v6516_v21  ;;  %v5502_v43 = vrot.slane %v5500_v38, 7  ;;  %v5115_v61 = vadd.f32 %v5114_v5, %v5084_v2  ;;  %v6518_v2 = vld [vmem:[%s9505_s26 + $0x9c] sm:$0xf] }
 0x251   : > { %6515 = vst [vmem:[%s9505_s26 + $0x94] sm:$0xf] %v5480_v24  ;;  %6517 = vst [vmem:[%s9505_s26 + $0x98] sm:$0x1] %v5686_v50  ;;  %v5463_v45 = vsel %vm9595_vm12, %v5455_v41, %v5462_v39  ;;  %v5679_v49 = vsel %vm9601_vm13, %v5464_v52, %v6511_v33  ;;  %v6564_v44 = vpack.c.bf16 %v7261_v26, %v7261_v26  ;;  %v6533_v50 = vld [vmem:[%s9505_s26 + $0xc0] sm:$0xf] }
 0x252   : > { %6510 = vst [vmem:[%s9505_s26 + $0x88] sm:$0xf] %v5463_v45  ;;  %6512 = vst [vmem:[%s9505_s26 + $0x8c] sm:$0x1] %v5679_v49  ;;  %v7262_v47 = vadd.f32 %v9772_v19, %v9784_v17  ;;  %v7263_v7 = vadd.f32 %v9786_v15, %v9792_v36  ;;  %v9875_v25 = vadd.f32 %v9800_v35, %v9804_v1  ;;  %v5506_v9 = vrot.slane %v5502_v43, 4 }
 0x253   : > { %v5087_v40 = vmul.f32 %v7260_v16, %v7260_v16  ;;  %v5505_v13 = vor.u32 %v5503_v34, %v5502_v43  ;;  %v5116_v60 = vadd.f32 %v5115_v61, %v5085_v31  ;;  %v7265_v27 = vadd.f32 %v9806_v32, %v9809_v6 }
 0x254   : > { %v5483_v37 = vshrl.u32 %v6564_v44, 16  ;;  %v5486_v63 = vshll.u32 %v6564_v44, 16  ;;  %v6567_v29 = vpack.c.bf16 %v7262_v47, %v7262_v47  ;;  %v5053_v17 = vadd.f32 %v7263_v7, %v5052_v59 }
 0x255   : > { %v5696_v19 = vsel %vm9587_vm11, %v5505_v13, %v6523_v10  ;;  %v5086_v15 = vmul.f32 %v7263_v7, %v7263_v7  ;;  %v6565_v36 = vpack.c.bf16 %v7263_v7, %v7263_v7  ;;  %v5088_v1 = vmul.f32 %v7262_v47, %v7262_v47 }
 0x256   : > { %6524 = vst [vmem:[%s9505_s26 + $0xa8] sm:$0xf] %v5696_v19  ;;  %v5485_v35 = vrot.slane %v5483_v37, 7  ;;  %v5508_v4 = vshrl.u32 %v6567_v29, 16  ;;  %v5511_v46 = vshll.u32 %v6567_v29, 16  ;;  %v5054_v55 = vadd.f32 %v7260_v16, %v5053_v17 }
 0x257   : > { %v5117_v32 = vadd.f32 %v5116_v60, %v5086_v15  ;;  %v5491_v6 = vshrl.u32 %v6565_v36, 16  ;;  %v5494_v8 = vshll.u32 %v6565_v36, 16  ;;  %v6570_v51 = vpack.c.bf16 %v9875_v25, %v9875_v25  ;;  %v6536_v17 = vld [vmem:[%s9505_s26 + $0xc8] sm:$0x1] }
 0x258   : > { %v5488_v57 = vor.u32 %v5486_v63, %v5485_v35  ;;  %v5489_v0 = vrot.slane %v5485_v35, 4  ;;  %v5510_v12 = vrot.slane %v5508_v4, 7  ;;  %v5055_v42 = vadd.f32 %v7262_v47, %v5054_v55  ;;  %v6531_v55 = vld [vmem:[%s9505_s26 + $0xbc] sm:$0x1] }
 0x259   : > { %v5118_v41 = vadd.f32 %v5117_v32, %v5087_v40  ;;  %v5493_v48 = vrot.slane %v5491_v6, 7  ;;  %v5089_v21 = vmul.f32 %v7265_v27, %v7265_v27  ;;  %v5534_v26 = vshrl.u32 %v6570_v51, 16 }
 0x25a   : > { %v5689_v16 = vsel %vm9587_vm11, %v5488_v57, %v6518_v2  ;;  %v5513_v5 = vor.u32 %v5511_v46, %v5510_v12  ;;  %v5515_v54 = vrot.slane %v5510_v12, 4  ;;  %v5537_v18 = vshll.u32 %v6570_v51, 16 }
 0x25b   : > { %6519 = vst [vmem:[%s9505_s26 + $0x9c] sm:$0xf] %v5689_v16  ;;  %v5496_v14 = vor.u32 %v5494_v8, %v5493_v48  ;;  %v5498_v11 = vrot.slane %v5493_v48, 4  ;;  %v5056_v33 = vadd.f32 %v7265_v27, %v5055_v42  ;;  %v5536_v52 = vrot.slane %v5534_v26, 7 }
 0x25c   : > { %v5514_v22 = vsel %vm9595_vm12, %v5506_v9, %v5513_v5  ;;  %v5700_v39 = vsel %vm9601_vm13, %v5515_v54, %v6526_v62  ;;  %v5119_v38 = vadd.f32 %v5118_v41, %v5088_v1  ;;  %v6568_v59 = vpack.c.bf16 %v7265_v27, %v7265_v27  ;;  %v6528_v27 = vld [vmem:[%s9505_s26 + $0xb4] sm:$0xf] }
 0x25d   : > { %6525 = vst [vmem:[%s9505_s26 + $0xac] sm:$0xf] %v5514_v22  ;;  %6527 = vst [vmem:[%s9505_s26 + $0xb0] sm:$0x1] %v5700_v39  ;;  %v5497_v34 = vsel %vm9595_vm12, %v5489_v0, %v5496_v14  ;;  %v5693_v24 = vsel %vm9601_vm13, %v5498_v11, %v6521_v58  ;;  %v7266_v31 = vadd.f32 %v9811_v28, %v9816_v23 }
 0x25e   : > { %6520 = vst [vmem:[%s9505_s26 + $0xa0] sm:$0xf] %v5497_v34  ;;  %6522 = vst [vmem:[%s9505_s26 + $0xa4] sm:$0x1] %v5693_v24  ;;  %v5539_v45 = vor.u32 %v5537_v18, %v5536_v52  ;;  %v5120_v49 = vadd.f32 %v5119_v38, %v5089_v21  ;;  %v7267_v43 = vadd.f32 %v9818_v3, %v9821_v56  ;;  %v5517_v61 = vshrl.u32 %v6568_v59, 16 }
 0x25f   : > { %v6571_v10 = vpack.c.bf16 %v7266_v31, %v7266_v31  ;;  %v5520_v23 = vshll.u32 %v6568_v59, 16  ;;  %v5091_v60 = vmul.f32 %v9875_v25, %v9875_v25  ;;  %v5092_v63 = vmul.f32 %v7266_v31, %v7266_v31 }
 0x260   : > { %v5710_v44 = vsel %vm9587_vm11, %v5539_v45, %v6533_v50  ;;  %v5057_v47 = vadd.f32 %v7267_v43, %v5056_v33  ;;  %v5090_v7 = vmul.f32 %v7267_v43, %v7267_v43  ;;  %v6569_v40 = vpack.c.bf16 %v7267_v43, %v7267_v43 }
 0x261   : > { %6534 = vst [vmem:[%s9505_s26 + $0xc0] sm:$0xf] %v5710_v44  ;;  %v5519_v28 = vrot.slane %v5517_v61, 7  ;;  %v5542_v13 = vshrl.u32 %v6571_v10, 16  ;;  %v5545_v19 = vshll.u32 %v6571_v10, 16 }
 0x262   : > { %v5058_v3 = vadd.f32 %v9875_v25, %v5057_v47  ;;  %v5121_v56 = vadd.f32 %v5120_v49, %v5090_v7  ;;  %v5525_v9 = vshrl.u32 %v6569_v40, 16  ;;  %v5528_v1 = vshll.u32 %v6569_v40, 16 }
 0x263   : > { %v5522_v37 = vor.u32 %v5520_v23, %v5519_v28  ;;  %v5544_v29 = vrot.slane %v5542_v13, 7  ;;  %v5540_v25 = vrot.slane %v5536_v52, 4  ;;  %v5523_v32 = vrot.slane %v5519_v28, 4 }
 0x264   : > { %v5059_v15 = vadd.f32 %v7266_v31, %v5058_v3  ;;  %v5122_v36 = vadd.f32 %v5121_v56, %v5091_v60  ;;  %v5527_v35 = vrot.slane %v5525_v9, 7 }
 0x265   : > { %v5703_v4 = vsel %vm9587_vm11, %v5522_v37, %v6528_v27  ;;  %v5547_v46 = vor.u32 %v5545_v19, %v5544_v29  ;;  %v5549_v2 = vrot.slane %v5544_v29, 4 }
 0x266   : > { %6529 = vst [vmem:[%s9505_s26 + $0xb4] sm:$0xf] %v5703_v4  ;;  %5060 = vst [vmem:[%s214_s28] sm:$0xff] %v5059_v15  ;;  %v5123_v6 = vadd.f32 %v5122_v36, %v5092_v63  ;;  %v5530_v8 = vor.u32 %v5528_v1, %v5527_v35  ;;  %v5532_v57 = vrot.slane %v5527_v35, 4 }
 0x267   : > { %v5548_v0 = vsel %vm9595_vm12, %v5540_v25, %v5547_v46  ;;  %v5714_v30 = vsel %vm9601_vm13, %v5549_v2, %v6536_v17 }
 0x268   : > { %6535 = vst [vmem:[%s9505_s26 + $0xc4] sm:$0xf] %v5548_v0  ;;  %6537 = vst [vmem:[%s9505_s26 + $0xc8] sm:$0x1] %v5714_v30  ;;  %v5531_v12 = vsel %vm9595_vm12, %v5523_v32, %v5530_v8  ;;  %v5707_v51 = vsel %vm9601_vm13, %v5532_v57, %v6531_v55 }
 0x269   : > { %5124 = vst [vmem:[%s218_s5] sm:$0xff] %v5123_v6  ;;  %6530 = vst [vmem:[%s9505_s26 + $0xb8] sm:$0xf] %v5531_v12 }
 0x26a   : > { %6532 = vst [vmem:[%s9505_s26 + $0xbc] sm:$0x1] %v5707_v51 }
 0x26b PF: > { %s15_s15 = sadd.s32 1, %s7698_s15  }
 0x26c   : > { %p12_p4 = scmp.ge.s32.totalorder %s15_s15, 4  }
 0x26e   :  { %14 = sbr.rel (!%p12_p4) target bundleno = 1 (0x1), region = 93 }

// kernel: basic_block_forward.4
= control target key start
LH: loop header
LB: loop body
LE: loop exit
PB: predicated region body
PF: predicated region fallthrough
CT: control target
= control target key end

     0   :  { %s7643_s21 = smov 0   ;;  %s9842_s0 = inlined_call_operand.vmem [shape: bf16[2,18,18,128], index: 0, kind: input, shape index: {}]   ;;  %s9843_s1 = inlined_call_operand.vmem [shape: bf16[9,128,128], index: 1, kind: input, shape index: {}]   ;;  %s9844_s2 = inlined_call_operand.vmem [shape: f32[1,128], index: 2, kind: input, shape index: {}]   ;;  %s9845_s3 = inlined_call_operand.vmem [shape: f32[1,128], index: 3, kind: input, shape index: {}]   ;;  %s9846_s4 = inlined_call_operand.vmem [shape: bf16[2,16,16,128], index: 4, kind: output, shape index: {0}]   ;;  %s9847_s5 = inlined_call_operand.vmem [shape: f32[2,8,128], index: 5, kind: output, shape index: {1}]   ;;  %s9848_s6 = inlined_call_operand.vmem [shape: f32[2,8,128], index: 6, kind: output, shape index: {2}]  }
   0x1 LB: > { %s5541_s22 = sadd.s32 4294967295, %s7604_s21   ;;  %p5545_p0 = scmp.ge.s32.totalorder %s7604_s21, 1  ;;  %s7604_s21 = sphi %s7643_s21, %s17_s21  }
   0x2   : > { %p217_p1 = scmp.lt.s32.totalorder %s7604_s21, 3 }
   0x4   : > { %p218_p2 = pnand %p5545_p0, %p217_p1 }
   0x6   : > { %221 = sbr.rel (%p218_p2) target bundleno = 640 (0x280), region = 36 }
   0xd   : > { %v7509_v0 = vld [vmem:[%s9843_s1 + $0x40] sm:$0xff]   ;;  %v9859_v2 = vmov 0.0|0.0   ;;  %p255_p3 = scmp.lt.s32.totalorder %s5541_s22, 1  ;;  %v7511_v3 = vld [vmem:[%s9843_s1 + $0x48] sm:$0xff]   ;;  %v7513_v5 = vld [vmem:[%s9843_s1 + $0x50] sm:$0xff]   ;;  %v276_v7 = vlaneseq  ;;  %vm669_vm0 = vcmask 1046528  }
   0xe   : > { %v7510_v1 = vld [vmem:[%s9843_s1 + $0x100] sm:$0xff]   ;;  %6810 = vmatprep.mubr.bf16.mxu1 %v9859_v2  ;;  %6794 = vmatprep.subr.bf16.mxu1 %v7509_v0  ;;  %v7512_v4 = vld [vmem:[%s9843_s1 + $0x108] sm:$0xff]   ;;  %v7514_v6 = vld [vmem:[%s9843_s1 + $0x110] sm:$0xff]   ;;  %vm1375_vm1 = vcmask 1045504   ;;  %vm7607_vm3 = vmmov 1  }
   0xf   : > { %6986 = vmatprep.subr.bf16.mxu0 %v7510_v1  ;;  %6795 = vmatpush3.bf16.msra.mxu1 %v7509_v0  ;;  %s10108_s22 = smov (!%p255_p3, %s5541_s22), 1  ;;  %v7515_v8 = vld [vmem:[%s9843_s1 + $0x58] sm:$0xff]   ;;  %v7679_v10 = vshrl.u32 %v276_v7, 7  ;;  %v7517_v11 = vld [vmem:[%s9843_s1 + $0x60] sm:$0xff]   ;;  %v7519_v13 = vld [vmem:[%s9843_s1 + $0x68] sm:$0xff]  }
  0x10   : > { %6987 = vmatpush3.bf16.msra.mxu0 %v7510_v1  ;;  %6796 = vmatprep.subr.bf16.mxu1 %v7511_v3  ;;  %v7516_v9 = vld [vmem:[%s9843_s1 + $0x118] sm:$0xff]   ;;  %s7498_s15 = smul.u32 216, %s10108_s22  ;;  %v7518_v12 = vld [vmem:[%s9843_s1 + $0x120] sm:$0xff]   ;;  %v7520_v15 = vld [vmem:[%s9843_s1 + $0x128] sm:$0xff]   ;;  %s5549_s13 = sshll.u32 %s10108_s22, 3 }
  0x11   : > { %6988 = vmatprep.subr.bf16.mxu0 %v7512_v4  ;;  %v278_v14 = vadd.s32 8, %v7679_v10  ;;  %v7702_v16 = vld [vmem:[%s9844_s2] ss:$0 sm:$0xff]  ;;  %v7521_v33 = vld [vmem:[%s9843_s1 + $0x70] sm:$0xff]   ;;  %v7523_v47 = vld [vmem:[%s9843_s1 + $0x78] sm:$0xff]   ;;  %vm451_vm5 = vcmp.ge.s32.totalorder %v7679_v10, 1  ;;  %s268_s16 = scalar_lea.vmem %s9847_s5, %s5549_s13  ;;  %s272_s19 = scalar_lea.vmem %s9848_s6, %s5549_s13 }
  0x12   : > { %s7690_s24 = scalar_lea.vmem %s9842_s0, %s7498_s15  ;;  %v7711_v23 = vld [vmem:[%s9845_s3] ss:$0 sm:$0xff]  ;;  %v7522_v38 = vld [vmem:[%s9843_s1 + $0x130] sm:$0xff]   ;;  %v7524_v52 = vld [vmem:[%s9843_s1 + $0x138] sm:$0xff]  }
  0x13   : > { %6797 = vmatpush3.bf16.msra.mxu1 %v7511_v3  ;;  %v5803_v17 = vld [vmem:[%s7690_s24 + $0xc] sm:$0xff]   ;;  %v5805_v18 = vld [vmem:[%s7690_s24 + $0x14] sm:$0x1]  ;;  %v6539_v30 = vld [vmem:[%s7690_s24 + $0x18] sm:$0xff]   ;;  %v7717_v32 = vadd.s32 2, %v278_v14 }
  0x14   : > { %6989 = vmatpush3.bf16.msra.mxu0 %v7512_v4  ;;  %6798 = vmatprep.subr.bf16.mxu1 %v7513_v5  ;;  %v2309_v19 = vunpack.c.l.bf16 %v5803_v17  ;;  %v2310_v20 = vunpack.c.h.bf16 %v5803_v17  ;;  %v281_v21 = vld [vmem:[%s7690_s24 + $0xc] sm:$0xff]   ;;  %v528_v22 = vld [vmem:[%s7690_s24 + $0x14] sm:$0x1]  ;;  %v2311_v24 = vunpack.c.l.bf16 %v5805_v18  ;;  %v5808_v31 = vld [vmem:[%s7690_s24 + $0x20] sm:$0x1]  ;;  %v6350_v37 = vunpack.c.l.bf16 %v6539_v30 }
  0x15   : > { %6990 = vmatprep.subr.bf16.mxu0 %v7514_v6  ;;  %v313_v25 = vunpack.c.l.bf16 %v281_v21  ;;  %v314_v26 = vunpack.c.h.bf16 %v281_v21  ;;  %v544_v27 = vunpack.c.l.bf16 %v528_v22  ;;  %v6351_v42 = vunpack.c.h.bf16 %v6539_v30  ;;  %v5876_v61 = vld [vmem:[%s7690_s24 + $0x18] sm:$0xe]  ;;  %v7525_v3 = vld [vmem:[%s9843_s1] sm:$0xff]   ;;  %v5811_v21 = vld [vmem:[%s7690_s24 + $0x2c] sm:$0x1] }
  0x16   : > { %v2357_v28 = vmul.f32 %v7702_v16, %v2309_v19  ;;  %v2358_v29 = vmul.f32 %v7702_v16, %v2310_v20  ;;  %v2359_v34 = vmul.f32 %v7702_v16, %v2311_v24  ;;  %v2314_v46 = vunpack.c.l.bf16 %v5808_v31  ;;  %v529_v4 = vld [vmem:[%s7690_s24 + $0x20] sm:$0x1]  ;;  %v5809_v14 = vld [vmem:[%s7690_s24 + $0x24] sm:$0xff]   ;;  %vm8454_vm6 = vmpackc.low %vm7607_vm3, %vm451_vm5 }
  0x17   : > { %6799 = vmatpush3.bf16.msra.mxu1 %v7513_v5  ;;  %v351_v35 = vmul.f32 %v7702_v16, %v313_v25  ;;  %v352_v36 = vmul.f32 %v7702_v16, %v314_v26  ;;  %v560_v41 = vmul.f32 %v7702_v16, %v544_v27  ;;  %v2360_v51 = vmul.f32 %v6350_v37, %v7702_v16  ;;  %v7526_v20 = vld [vmem:[%s9843_s1 + $0x140] sm:$0xff]   ;;  %v5826_v2 = vld [vmem:[%s7690_s24 + $0x68] sm:$0x1] }
  0x18   : > { %6991 = vmatpush3.bf16.msra.mxu0 %v7514_v6  ;;  %6800 = vmatprep.subr.bf16.mxu1 %v7515_v8  ;;  %v2405_v39 = vadd.f32 %v7711_v23, %v2357_v28  ;;  %v2406_v40 = vadd.f32 %v7711_v23, %v2358_v29  ;;  %v2407_v43 = vadd.f32 %v7711_v23, %v2359_v34  ;;  %v2984_v26 = vunpack.c.l.bf16 %v5876_v61  ;;  %v7547_v10 = vld [vmem:[%s9843_s1 + $0x88] sm:$0xff]  }
  0x19   : > { %6992 = vmatprep.subr.bf16.mxu0 %v7516_v9  ;;  %v389_v44 = vadd.f32 %v7711_v23, %v351_v35  ;;  %v390_v45 = vadd.f32 %v7711_v23, %v352_v36  ;;  %v576_v50 = vadd.f32 %v7711_v23, %v560_v41  ;;  %v2361_v56 = vmul.f32 %v6351_v42, %v7702_v16  ;;  %v7528_v36 = vld [vmem:[%s9843_s1 + $0x8] sm:$0xff]  }
  0x1a   : > { %v2453_v48 = vmax.f32 %v2405_v39, 0.0  ;;  %v2454_v49 = vmax.f32 %v2406_v40, 0.0  ;;  %v2455_v53 = vmax.f32 %v2407_v43, 0.0  ;;  %v7766_v18 = vadd.f32 %v7711_v23, %v2360_v51 }
  0x1b   : > { %6801 = vmatpush3.bf16.msra.mxu1 %v7515_v8  ;;  %v421_v54 = vmax.f32 %v389_v44, 0.0  ;;  %v7742_v55 = vmax.f32 %v390_v45, 0.0  ;;  %v592_v60 = vmax.f32 %v576_v50, 0.0  ;;  %v2409_v19 = vadd.f32 %v7711_v23, %v2361_v56  ;;  %v7531_v56 = vld [vmem:[%s9843_s1 + $0x10] sm:$0xff]  }
  0x1c   : > { %6993 = vmatpush3.bf16.msra.mxu0 %v7516_v9  ;;  %6802 = vmatprep.subr.bf16.mxu1 %v7517_v11  ;;  %v2549_v57 = vrot.slane %v2453_v48, 1  ;;  %v2550_v58 = vrot.slane %v2454_v49, 1  ;;  %v7745_v59 = vrot.slane %v2454_v49, 2  ;;  %v2552_v62 = vrot.slane %v2455_v53, 1  ;;  %v285_v49 = vld [vmem:[%s7690_s24 + $0x24] sm:$0xff]  }
  0x1d   : > { %6994 = vmatprep.subr.bf16.mxu0 %v7518_v12  ;;  %v7748_v63 = vrot.slane %v2455_v53, 2  ;;  %v675_v0 = vrot.slane %v421_v54, 1  ;;  %v676_v1 = vrot.slane %v7742_v55, 1  ;;  %v678_v6 = vrot.slane %v592_v60, 1 }
  0x1e   : > { %v2551_v5 = vsel %vm669_vm0, %v2549_v57, %v2550_v58  ;;  %v7757_v7 = vpack.c.bf16 %v7742_v55, %v421_v54  ;;  %v9852_v8 = vrot.slane %v7742_v55, 2  ;;  %v2553_v9 = vsel %vm669_vm0, %v2550_v58, %v2552_v62  ;;  %v530_v54 = vld [vmem:[%s7690_s24 + $0x2c] sm:$0x1] }
  0x1f   : > { %6803 = vmatpush3.bf16.msra.mxu1 %v7517_v11  ;;  %v677_v11 = vsel %vm669_vm0, %v675_v0, %v676_v1  ;;  %v679_v17 = vsel %vm669_vm0, %v676_v1, %v678_v6  ;;  %v9858_v27 = vmax.f32 %v7766_v18, 0.0  ;;  %v7780_v28 = vmax.f32 %v2409_v19, 0.0  ;;  %v7527_v58 = vld [vmem:[%s9843_s1 + $0x148] sm:$0xff]  }
  0x20   : > { %6995 = vmatpush3.bf16.msra.mxu0 %v7518_v12  ;;  %6804 = vmatprep.subr.bf16.mxu1 %v7519_v13  ;;  %v1384_v12 = vrot.slane %v592_v60, 2  ;;  %v815_v22 = vpack.c.bf16 %v679_v17, %v677_v11  ;;  %v545_v29 = vunpack.c.l.bf16 %v529_v4  ;;  %v2315_v30 = vunpack.c.l.bf16 %v5809_v14 }
  0x21   : > { %6996 = vmatprep.subr.bf16.mxu0 %v7520_v15  ;;  %v2316_v34 = vunpack.c.h.bf16 %v5809_v14  ;;  %v2317_v35 = vunpack.c.l.bf16 %v5811_v21  ;;  %v2554_v37 = vrot.slane %v9858_v27, 1  ;;  %v7790_v39 = vrot.slane %v7780_v28, 2  ;;  %v7529_v14 = vld [vmem:[%s9843_s1 + $0x150] sm:$0xff]  }
  0x22   : > { %v7776_v24 = vsel %vm1375_vm1, %v9852_v8, %v1384_v12  ;;  %v561_v40 = vmul.f32 %v7702_v16, %v545_v29  ;;  %v2363_v44 = vmul.f32 %v7702_v16, %v2315_v30  ;;  %v318_v4 = vunpack.c.h.bf16 %v285_v49 }
  0x23   : > { %6805 = vmatpush3.bf16.msra.mxu1 %v7519_v13  ;;  %v2362_v13 = vmul.f32 %v7702_v16, %v2314_v46  ;;  %v2365_v48 = vmul.f32 %v7702_v16, %v2317_v35  ;;  %v546_v12 = vunpack.c.l.bf16 %v530_v54  ;;  %v531_v35 = vld [vmem:[%s7690_s24 + $0x38] sm:$0x1]  ;;  %v5817_v54 = vld [vmem:[%s7690_s24 + $0x44] sm:$0x1]  ;;  %vm1354_vm2 = vcmp.le.s32.totalorder %v7717_v32, 16 }
  0x24   : > { %6997 = vmatpush3.bf16.msra.mxu0 %v7520_v15  ;;  %6806 = vmatprep.subr.bf16.mxu1 %v7521_v33  ;;  %v2693_v15 = vpack.c.bf16 %v2553_v9, %v2551_v5  ;;  %v7797_v46 = vadd.f32 %v7711_v23, %v561_v40  ;;  %v2411_v53 = vadd.f32 %v7711_v23, %v2363_v44  ;;  %v6540_v5 = vld [vmem:[%s7690_s24 + $0x30] sm:$0xff]   ;;  %vm8114_vm4 = vmpackc.low %vm1354_vm2, %vm7607_vm3 }
  0x25   : > { %6998 = vmatprep.subr.bf16.mxu0 %v7522_v38  ;;  %v2410_v25 = vadd.f32 %v7711_v23, %v2362_v13  ;;  %v7820_v62 = vadd.f32 %v7711_v23, %v2365_v48  ;;  %v5814_v13 = vld [vmem:[%s7690_s24 + $0x38] sm:$0x1]  ;;  %v356_v21 = vmul.f32 %v7702_v16, %v318_v4  ;;  %v562_v29 = vmul.f32 %v7702_v16, %v546_v12 }
  0x26   : > { %7002 = vmatprep.mubr.bf16.mxu0 %v2693_v15  ;;  %v9853_v60 = vmax.f32 %v7797_v46, 0.0  ;;  %v2459_v1 = vmax.f32 %v2411_v53, 0.0  ;;  %v547_v53 = vunpack.c.l.bf16 %v531_v35 }
  0x27   : > { %6807 = vmatpush3.bf16.msra.mxu1 %v7521_v33  ;;  %v2458_v31 = vmax.f32 %v2410_v25, 0.0  ;;  %v3000_v33 = vmul.f32 %v7702_v16, %v2984_v26  ;;  %v9871_v11 = vmax.f32 %v7820_v62, 0.0  ;;  %v7855_v40 = vadd.f32 %v7711_v23, %v562_v29 }
  0x28   : > { %6999 = vmatpush3.bf16.msra.mxu0 %v7522_v38  ;;  %6808 = vmatprep.subr.bf16.mxu1 %v7523_v47  ;;  %v2555_v38 = vrot.slane %v7780_v28, 1  ;;  %v683_v6 = vrot.slane %v9853_v60, 1  ;;  %v2559_v17 = vrot.slane %v2459_v1, 1 }
  0x29   : > { %7000 = vmatprep.subr.bf16.mxu0 %v7524_v52  ;;  %v2557_v41 = vrot.slane %v2458_v31, 1  ;;  %v3016_v42 = vadd.f32 %v7711_v23, %v3000_v33  ;;  %v3071_v43 = vrot.slane %v2458_v31, 2  ;;  %v394_v33 = vadd.f32 %v7711_v23, %v356_v21 }
  0x2a   : > { %v2556_v45 = vsel %vm669_vm0, %v2554_v37, %v2555_v38  ;;  %v684_v25 = vsel %vm669_vm0, %v2555_v38, %v683_v6  ;;  %v9850_v48 = vmax.f32 %v7855_v40, 0.0 }
  0x2b   : > { %6809 = vmatpush3.bf16.msra.mxu1 %v7523_v47  ;;  %v2364_v47 = vmul.f32 %v7702_v16, %v2316_v34  ;;  %v2558_v50 = vsel %vm669_vm0, %v2555_v38, %v2557_v41  ;;  %v3032_v51 = vmax.f32 %v3016_v42, 0.0  ;;  %v816_v30 = vpack.c.bf16 %v684_v25, %v2556_v45  ;;  %v7537_v42 = vld [vmem:[%s9843_s1 + $0x20] sm:$0xff]  }
  0x2c   : > { %7001 = vmatpush3.bf16.msra.mxu0 %v7524_v52  ;;  %6842 = vmatprep.subr.bf16.mxu1 %v7525_v3  ;;  %v7805_v52 = vsel %vm1375_vm1, %v7790_v39, %v3071_v43  ;;  %v2694_v57 = vpack.c.bf16 %v2558_v50, %v2556_v45  ;;  %v6354_v34 = vunpack.c.l.bf16 %v6540_v5  ;;  %v6355_v41 = vunpack.c.h.bf16 %v6540_v5 }
  0x2d   : > { %7034 = vmatprep.subr.bf16.mxu0 %v7526_v20  ;;  %v7817_v61 = vadd.f32 %v7711_v23, %v2364_v47  ;;  %v3068_v0 = vrot.slane %v3032_v51, 2  ;;  %v7861_v45 = vmax.f32 %v394_v33, 0.0  ;;  %v2320_v47 = vunpack.c.l.bf16 %v5814_v13  ;;  %v7530_v51 = vld [vmem:[%s9843_s1 + $0x158] sm:$0xff]  }
  0x2e   : > { %6811 = vmatmul.mubr.bf16.vlgmr.msra.gmra.mrb[0].mxu1 %v815_v22  ;;  %v7534_v22 = vld [vmem:[%s9843_s1 + $0x18] sm:$0xff]   ;;  %v2367_v50 = vmul.f32 %v6355_v41, %v7702_v16  ;;  %v688_v1 = vrot.slane %v9850_v48, 1  ;;  %v563_v5 = vmul.f32 %v7702_v16, %v547_v53 }
  0x2f   : > { %6843 = vmatpush3.bf16.msra.mxu1 %v7525_v3  ;;  %v317_v3 = vunpack.c.l.bf16 %v285_v49  ;;  %7003 = vmatmul.mubr.bf16.vlgmr.msra.gmra.mrb[0].mxu0 %v2694_v57  ;;  %v9872_v9 = vmax.f32 %v7817_v61, 0.0  ;;  %v7833_v15 = vsel %vm1375_vm1, %v3068_v0, %v7790_v39  ;;  %v2366_v49 = vmul.f32 %v6354_v34, %v7702_v16 }
  0x30   : > { %6844 = vmatprep.subr.bf16.mxu1 %v7528_v36  ;;  %7035 = vmatpush3.bf16.msra.mxu0 %v7526_v20  ;;  %v2562_v20 = vrot.slane %v9871_v11, 1  ;;  %v686_v57 = vrot.slane %v7861_v45, 1  ;;  %v2415_v4 = vadd.f32 %v7711_v23, %v2367_v50  ;;  %v7541_v50 = vld [vmem:[%s9843_s1 + $0x30] sm:$0xff]   ;;  %v8091_v11 = vld [vmem:[%s7690_s24 + $0x78] sm:$0xff]  }
  0x31   : > { %v355_v19 = vmul.f32 %v7702_v16, %v317_v3  ;;  %7036 = vmatprep.subr.bf16.mxu0 %v7527_v58  ;;  %v2560_v26 = vrot.slane %v9872_v9, 1  ;;  %6814 = vmatprep.mubr.bf16.mxu1 %v816_v30  ;;  %v7877_v3 = vadd.f32 %v7711_v23, %v2366_v49  ;;  %9969 = vst [vmem:[#allocation6_spill] sm:$0xff] %v8091_v11 }
  0x32   : > { %v689_v21 = vsel %vm669_vm0, %v686_v57, %v688_v1 }
  0x33   : > { %6845 = vmatpush3.bf16.msra.mxu1 %v7528_v36  ;;  %v7847_v31 = vadd.f32 %v7711_v23, %v355_v19  ;;  %v5815_v36 = vld [vmem:[%s7690_s24 + $0x3c] sm:$0xff]   ;;  %v2561_v37 = vsel %vm669_vm0, %v2559_v17, %v2560_v26  ;;  %v2563_v38 = vsel %vm669_vm0, %v2560_v26, %v2562_v20  ;;  %v2323_v17 = vunpack.c.l.bf16 %v5817_v54 }
  0x34   : > { %6846 = vmatprep.subr.bf16.mxu1 %v7531_v56  ;;  %7037 = vmatpush3.bf16.msra.mxu0 %v7527_v58  ;;  %v2695_v43 = vpack.c.bf16 %v2563_v38, %v2561_v37  ;;  %v2368_v58 = vmul.f32 %v7702_v16, %v2320_v47  ;;  %v2321_v0 = vunpack.c.l.bf16 %v5815_v36  ;;  %v2322_v13 = vunpack.c.h.bf16 %v5815_v36  ;;  %v289_v19 = vld [vmem:[%s7690_s24 + $0x3c] sm:$0xff]  }
  0x35   : > { %v9857_v44 = vmax.f32 %v7847_v31, 0.0  ;;  %7038 = vmatprep.subr.bf16.mxu0 %v7529_v14  ;;  %v9856_v25 = vmax.f32 %v7877_v3, 0.0  ;;  %v7888_v26 = vmax.f32 %v2415_v4, 0.0  ;;  %v7891_v20 = vadd.f32 %v7711_v23, %v563_v5  ;;  %v6541_v5 = vld [vmem:[%s7690_s24 + $0x48] sm:$0xff]  }
  0x36   : > { %7006 = vmatprep.mubr.bf16.mxu0 %v2695_v43  ;;  %v7883_v12 = vadd.f32 %v7711_v23, %v2368_v58  ;;  %v2369_v33 = vmul.f32 %v7702_v16, %v2321_v0  ;;  %v2370_v34 = vmul.f32 %v7702_v16, %v2322_v13  ;;  %v2371_v38 = vmul.f32 %v7702_v16, %v2323_v17 }
  0x37   : > { %6847 = vmatpush3.bf16.msra.mxu1 %v7531_v56  ;;  %v685_v56 = vrot.slane %v9857_v44, 1  ;;  %v2564_v35 = vrot.slane %v9856_v25, 1  ;;  %v2565_v36 = vrot.slane %v7888_v26, 1  ;;  %v9849_v37 = vmax.f32 %v7891_v20, 0.0 }
  0x38   : > { %6848 = vmatprep.subr.bf16.mxu1 %v7534_v22  ;;  %7039 = vmatpush3.bf16.msra.mxu0 %v7529_v14  ;;  %v7539_v14 = vld [vmem:[%s9843_s1 + $0x28] sm:$0xff]   ;;  %v9869_v30 = vmax.f32 %v7883_v12, 0.0  ;;  %v2417_v43 = vadd.f32 %v7711_v23, %v2369_v33  ;;  %v7911_v47 = vadd.f32 %v7711_v23, %v2370_v34  ;;  %v321_v49 = vunpack.c.l.bf16 %v289_v19 }
  0x39   : > { %v687_v6 = vsel %vm669_vm0, %v685_v56, %v686_v57  ;;  %7040 = vmatprep.subr.bf16.mxu0 %v7530_v51  ;;  %v2566_v53 = vsel %vm669_vm0, %v2564_v35, %v2565_v36  ;;  %v7920_v54 = vadd.f32 %v7711_v23, %v2371_v38  ;;  %v532_v56 = vld [vmem:[%s7690_s24 + $0x44] sm:$0x1]  ;;  %v7533_v57 = vld [vmem:[%s9843_s1 + $0x168] sm:$0xff]  }
  0x3a   : > { %v817_v29 = vpack.c.bf16 %v689_v21, %v687_v6  ;;  %v2567_v41 = vrot.slane %v9869_v30, 1  ;;  %v2465_v0 = vmax.f32 %v2417_v43, 0.0  ;;  %v9868_v1 = vmax.f32 %v7911_v47, 0.0  ;;  %v5820_v21 = vld [vmem:[%s7690_s24 + $0x50] sm:$0x1] }
  0x3b   : > { %6849 = vmatpush3.bf16.msra.mxu1 %v7534_v22  ;;  %v7532_v22 = vld [vmem:[%s9843_s1 + $0x160] sm:$0xff]   ;;  %v359_v4 = vmul.f32 %v7702_v16, %v321_v49  ;;  %v9866_v17 = vmax.f32 %v7920_v54, 0.0  ;;  %v6358_v43 = vunpack.c.l.bf16 %v6541_v5  ;;  %v7535_v49 = vld [vmem:[%s9843_s1 + $0x170] sm:$0xff]  }
  0x3c   : > { %6850 = vmatprep.subr.bf16.mxu1 %v7537_v42  ;;  %6815 = vmatmul.mubr.bf16.gmra.mrb[4].mxu1 %v817_v29  ;;  %v2568_v58 = vsel %vm669_vm0, %v2565_v36, %v2567_v41  ;;  %v7543_v29 = vld [vmem:[%s9843_s1 + $0x38] sm:$0xff]   ;;  %v2569_v34 = vrot.slane %v2465_v0, 1  ;;  %v2570_v35 = vrot.slane %v9868_v1, 1  ;;  %v548_v41 = vunpack.c.l.bf16 %v532_v56 }
  0x3d   : > { %7041 = vmatpush3.bf16.msra.mxu0 %v7530_v51  ;;  %v322_v51 = vunpack.c.h.bf16 %v289_v19  ;;  %v2696_v6 = vpack.c.bf16 %v2568_v58, %v2566_v53  ;;  %v7940_v38 = vadd.f32 %v7711_v23, %v359_v4  ;;  %v533_v58 = vld [vmem:[%s7690_s24 + $0x50] sm:$0x1] }
  0x3e   : > { %7042 = vmatprep.subr.bf16.mxu0 %v7532_v22  ;;  %v564_v56 = vmul.f32 %v7702_v16, %v548_v41  ;;  %v5823_v41 = vld [vmem:[%s7690_s24 + $0x5c] sm:$0x1] }
  0x3f   : > { %6851 = vmatpush3.bf16.msra.mxu1 %v7537_v42  ;;  %v693_v42 = vrot.slane %v9849_v37, 1  ;;  %v360_v19 = vmul.f32 %v7702_v16, %v322_v51  ;;  %7007 = vmatmul.mubr.bf16.gmra.mrb[4].mxu0 %v2696_v6  ;;  %v2326_v51 = vunpack.c.l.bf16 %v5820_v21  ;;  %v2372_v6 = vmul.f32 %v6358_v43, %v7702_v16  ;;  %v7964_v21 = vld [vmem:[%s9843_s1 + $0x80] sm:$0xff]  }
  0x40   : > { %6852 = vmatprep.subr.bf16.mxu1 %v7539_v14  ;;  %v2329_v48 = vunpack.c.l.bf16 %v5823_v41 }
  0x41   : > { %v694_v13 = vsel %vm669_vm0, %v2565_v36, %v693_v42  ;;  %7043 = vmatpush3.bf16.msra.mxu0 %v7532_v22  ;;  %v2572_v36 = vrot.slane %v9866_v17, 1  ;;  %v9855_v22 = vmax.f32 %v7940_v38, 0.0  ;;  %v6359_v42 = vunpack.c.h.bf16 %v6541_v5 }
  0x42   : > { %v818_v33 = vpack.c.bf16 %v694_v13, %v2566_v53  ;;  %7044 = vmatprep.subr.bf16.mxu0 %v7533_v57  ;;  %v2571_v53 = vsel %vm669_vm0, %v2569_v34, %v2570_v35  ;;  %v5821_v13 = vld [vmem:[%s7690_s24 + $0x54] sm:$0xff]   ;;  %v2374_v5 = vmul.f32 %v7702_v16, %v2326_v51 }
  0x43   : > { %6853 = vmatpush3.bf16.msra.mxu1 %v7539_v14  ;;  %v398_v14 = vadd.f32 %v7711_v23, %v360_v19  ;;  %v2573_v0 = vsel %vm669_vm0, %v2570_v35, %v2572_v36  ;;  %v2373_v34 = vmul.f32 %v6359_v42, %v7702_v16  ;;  %v7967_v35 = vadd.f32 %v7711_v23, %v564_v56 }
  0x44   : > { %6854 = vmatprep.subr.bf16.mxu1 %v7541_v50  ;;  %6818 = vmatprep.mubr.bf16.mxu1 %v818_v33  ;;  %v2697_v19 = vpack.c.bf16 %v2573_v0, %v2571_v53  ;;  %v695_v33 = vrot.slane %v9855_v22, 1  ;;  %v7971_v36 = vadd.f32 %v7711_v23, %v2372_v6  ;;  %v7979_v53 = vadd.f32 %v7711_v23, %v2374_v5  ;;  %v293_v5 = vld [vmem:[%s7690_s24 + $0x54] sm:$0xff]  }
  0x45   : > { %v7952_v4 = vmax.f32 %v398_v14, 0.0  ;;  %7045 = vmatpush3.bf16.msra.mxu0 %v7533_v57  ;;  %9965 = vst [vmem:[#allocation2_spill] sm:$0xff] %v7967_v35  ;;  %v549_v14 = vunpack.c.l.bf16 %v533_v58  ;;  %v7536_v57 = vld [vmem:[%s9843_s1 + $0x178] sm:$0xff]   ;;  %v2421_v43 = vadd.f32 %v7711_v23, %v2373_v34  ;;  %v2327_v42 = vunpack.c.l.bf16 %v5821_v13 }
  0x46   : > { %7046 = vmatprep.subr.bf16.mxu0 %v7535_v49  ;;  %7010 = vmatprep.mubr.bf16.mxu0 %v2697_v19  ;;  %v2328_v51 = vunpack.c.h.bf16 %v5821_v13  ;;  %v9851_v0 = vmax.f32 %v7967_v35, 0.0  ;;  %v9854_v58 = vmax.f32 %v7971_v36, 0.0  ;;  %v9862_v19 = vmax.f32 %v7979_v53, 0.0 }
  0x47   : > { %6855 = vmatpush3.bf16.msra.mxu1 %v7541_v50  ;;  %v696_v50 = vrot.slane %v7952_v4, 1  ;;  %v565_v6 = vmul.f32 %v7702_v16, %v549_v14  ;;  %v7985_v37 = vmax.f32 %v2421_v43, 0.0  ;;  %v2375_v34 = vmul.f32 %v7702_v16, %v2327_v42 }
  0x48   : > { %6856 = vmatprep.subr.bf16.mxu1 %v7543_v29  ;;  %v698_v13 = vrot.slane %v9851_v0, 1  ;;  %v2376_v14 = vmul.f32 %v7702_v16, %v2328_v51  ;;  %v2577_v43 = vrot.slane %v9862_v19, 1  ;;  %v2377_v42 = vmul.f32 %v7702_v16, %v2329_v48  ;;  %v6542_v48 = vld [vmem:[%s7690_s24 + $0x60] sm:$0xff]  }
  0x49   : > { %v697_v56 = vsel %vm669_vm0, %v695_v33, %v696_v50  ;;  %7047 = vmatpush3.bf16.msra.mxu0 %v7535_v49  ;;  %v2574_v33 = vrot.slane %v9854_v58, 1  ;;  %v8002_v49 = vld [vmem:[%s9843_s1 + $0x180] sm:$0xff]   ;;  %v2575_v41 = vrot.slane %v7985_v37, 1  ;;  %v2423_v0 = vadd.f32 %v7711_v23, %v2375_v34  ;;  %v534_v58 = vld [vmem:[%s7690_s24 + $0x5c] sm:$0x1] }
  0x4a   : > { %7048 = vmatprep.subr.bf16.mxu0 %v7536_v57  ;;  %v8012_v8 = vadd.f32 %v7711_v23, %v2376_v14  ;;  %v325_v60 = vunpack.c.l.bf16 %v293_v5  ;;  %v8018_v27 = vadd.f32 %v7711_v23, %v2377_v42  ;;  %v550_v42 = vunpack.c.l.bf16 %v534_v58 }
  0x4b   : > { %6857 = vmatpush3.bf16.msra.mxu1 %v7543_v29  ;;  %v7996_v29 = vadd.f32 %v7711_v23, %v565_v6  ;;  %v699_v6 = vsel %vm669_vm0, %v696_v50, %v698_v13  ;;  %v2576_v25 = vsel %vm669_vm0, %v2574_v33, %v2575_v41  ;;  %v2578_v44 = vsel %vm669_vm0, %v2575_v41, %v2577_v43 }
  0x4c   : > { %6890 = vmatprep.subr.bf16.mxu1 %v7964_v21  ;;  %v819_v22 = vpack.c.bf16 %v699_v6, %v697_v56  ;;  %v2698_v34 = vpack.c.bf16 %v2578_v44, %v2576_v25  ;;  %v2471_v13 = vmax.f32 %v2423_v0, 0.0  ;;  %v9864_v14 = vmax.f32 %v8012_v8, 0.0 }
  0x4d   : > { %9966 = vst [vmem:[#allocation3_spill] sm:$0xff] %v7996_v29  ;;  %v9861_v51 = vmax.f32 %v7996_v29, 0.0  ;;  %7049 = vmatpush3.bf16.msra.mxu0 %v7536_v57  ;;  %v9863_v56 = vmax.f32 %v8018_v27, 0.0  ;;  %v326_v33 = vunpack.c.h.bf16 %v293_v5  ;;  %v363_v43 = vmul.f32 %v7702_v16, %v325_v60 }
  0x4e   : > { %7082 = vmatprep.subr.bf16.mxu0 %v8002_v49  ;;  %6819 = vmatmul.mubr.bf16.gmra.mrb[8].mxu1 %v819_v22  ;;  %v2579_v57 = vrot.slane %v2471_v13, 1  ;;  %v2580_v0 = vrot.slane %v9864_v14, 1  ;;  %v6362_v6 = vunpack.c.l.bf16 %v6542_v48  ;;  %v566_v58 = vmul.f32 %v7702_v16, %v550_v42 }
  0x4f   : > { %v703_v50 = vrot.slane %v9861_v51, 1  ;;  %7011 = vmatmul.mubr.bf16.gmra.mrb[8].mxu0 %v2698_v34  ;;  %v2582_v22 = vrot.slane %v9863_v56, 1  ;;  %v364_v19 = vmul.f32 %v7702_v16, %v326_v33  ;;  %v8035_v5 = vadd.f32 %v7711_v23, %v363_v43  ;;  %v5875_v33 = vld [vmem:[%s7690_s24 + $0xc] sm:$0xe] }
  0x50   : > { %v2581_v60 = vsel %vm669_vm0, %v2579_v57, %v2580_v0  ;;  %v2332_v34 = vunpack.c.l.bf16 %v5826_v2  ;;  %v2378_v56 = vmul.f32 %v6362_v6, %v7702_v16  ;;  %v8046_v14 = vadd.f32 %v7711_v23, %v566_v58  ;;  %v297_v58 = vld [vmem:[%s7690_s24 + $0x6c] sm:$0xff]  }
  0x51   : > { %v704_v44 = vsel %vm669_vm0, %v2575_v41, %v703_v50  ;;  %v6363_v41 = vunpack.c.h.bf16 %v6542_v48  ;;  %v535_v50 = vld [vmem:[%s7690_s24 + $0x68] sm:$0x1]  ;;  %v2583_v13 = vsel %vm669_vm0, %v2580_v0, %v2582_v22 }
  0x52   : > { %v820_v51 = vpack.c.bf16 %v704_v44, %v2576_v25  ;;  %v402_v25 = vadd.f32 %v7711_v23, %v364_v19  ;;  %v9865_v44 = vmax.f32 %v8035_v5, 0.0  ;;  %v2699_v43 = vpack.c.bf16 %v2583_v13, %v2581_v60  ;;  %9967 = vst [vmem:[#allocation4_spill] sm:$0xff] %v8046_v14  ;;  %v536_v13 = vld [vmem:[%s7690_s24 + $0x74] sm:$0x1] }
  0x53   : > { %v2379_v42 = vmul.f32 %v6363_v41, %v7702_v16  ;;  %v2380_v2 = vmul.f32 %v7702_v16, %v2332_v34  ;;  %v8055_v48 = vadd.f32 %v7711_v23, %v2378_v56  ;;  %v551_v57 = vunpack.c.l.bf16 %v535_v50 }
  0x54   : > { %6822 = vmatprep.mubr.bf16.mxu1 %v820_v51  ;;  %v8050_v51 = vmax.f32 %v402_v25, 0.0  ;;  %v705_v19 = vrot.slane %v9865_v44, 1  ;;  %7014 = vmatprep.mubr.bf16.mxu0 %v2699_v43  ;;  %v9867_v0 = vmax.f32 %v8046_v14, 0.0  ;;  %v2983_v60 = vunpack.c.l.bf16 %v5875_v33 }
  0x55   : > { %v2427_v6 = vadd.f32 %v7711_v23, %v2379_v42  ;;  %v8061_v22 = vadd.f32 %v7711_v23, %v2380_v2  ;;  %v9870_v34 = vmax.f32 %v8055_v48, 0.0  ;;  %v567_v56 = vmul.f32 %v7702_v16, %v551_v57 }
  0x56   : > { %v706_v41 = vrot.slane %v8050_v51, 1  ;;  %v3067_v50 = vsel %vm1375_vm1, %v7745_v59, %v7748_v63  ;;  %v708_v25 = vrot.slane %v9867_v0, 1  ;;  %v2999_v42 = vmul.f32 %v7702_v16, %v2983_v60 }
  0x57   : > { %v8073_v43 = vmax.f32 %v2427_v6, 0.0  ;;  %v9873_v33 = vmax.f32 %v8061_v22, 0.0  ;;  %v2584_v57 = vrot.slane %v9870_v34, 1  ;;  %v8081_v44 = vadd.f32 %v7711_v23, %v567_v56 }
  0x58   : > { %v707_v2 = vsel %vm669_vm0, %v705_v19, %v706_v41  ;;  %v329_v63 = vunpack.c.l.bf16 %v297_v58  ;;  %v709_v17 = vsel %vm669_vm0, %v706_v41, %v708_v25  ;;  %v3015_v1 = vadd.f32 %v7711_v23, %v2999_v42 }
  0x59   : > { %9968 = vst [vmem:[#allocation5_spill] sm:$0xff] %v8081_v44  ;;  %v2585_v0 = vrot.slane %v8073_v43, 1  ;;  %v2587_v6 = vrot.slane %v9873_v33, 1  ;;  %v821_v30 = vpack.c.bf16 %v709_v17, %v707_v2  ;;  %v9875_v60 = vmax.f32 %v8081_v44, 0.0 }
  0x5a   : > { %v330_v19 = vunpack.c.h.bf16 %v297_v58  ;;  %v367_v34 = vmul.f32 %v7702_v16, %v329_v63  ;;  %v3031_v25 = vmax.f32 %v3015_v1, 0.0  ;;  %v552_v9 = vunpack.c.l.bf16 %v536_v13  ;;  %v537_v13 = vld [vmem:[%s7690_s24 + $0x80] sm:$0x1] }
  0x5b   : > { %v2586_v56 = vsel %vm669_vm0, %v2584_v57, %v2585_v0  ;;  %v2588_v41 = vsel %vm669_vm0, %v2585_v0, %v2587_v6  ;;  %6823 = vmatmul.mubr.bf16.gmra.mrb[12].mxu1 %v821_v30  ;;  %v713_v17 = vrot.slane %v9875_v60, 1  ;;  %v5919_v57 = vpack.c.bf16 %v7805_v52, %v7833_v15  ;;  %v538_v60 = vld [vmem:[%s7690_s24 + $0x8c] sm:$0x1] }
  0x5c   : > { %v2700_v33 = vpack.c.bf16 %v2588_v41, %v2586_v56  ;;  %v368_v42 = vmul.f32 %v7702_v16, %v330_v19  ;;  %v8099_v58 = vadd.f32 %v7711_v23, %v367_v34  ;;  %v3063_v2 = vrot.slane %v3031_v25, 2  ;;  %v5877_v34 = vld [vmem:[%s7690_s24 + $0x24] sm:$0xe] }
  0x5d   : > { %v568_v63 = vmul.f32 %v7702_v16, %v552_v9  ;;  %v9874_v1 = vunpack.c.l.bf16 %v8091_v11  ;;  %v714_v30 = vsel %vm669_vm0, %v2585_v0, %v713_v17  ;;  %v6307_v19 = vunpack.c.h.bf16 %v8091_v11 }
  0x5e   : > { %7015 = vmatmul.mubr.bf16.gmra.mrb[12].mxu0 %v2700_v33  ;;  %v406_v6 = vadd.f32 %v7711_v23, %v368_v42  ;;  %v9876_v41 = vmax.f32 %v8099_v58, 0.0  ;;  %v822_v25 = vpack.c.bf16 %v714_v30, %v2586_v56  ;;  %v3065_v9 = vsel %vm1375_vm1, %v3063_v2, %v7745_v59  ;;  %v301_v30 = vld [vmem:[%s7690_s24 + $0x84] sm:$0xff]  }
  0x5f   : > { %v8121_v15 = vadd.f32 %v7711_v23, %v568_v63  ;;  %v369_v0 = vmul.f32 %v9874_v1, %v7702_v16  ;;  %v5916_v33 = vpack.c.bf16 %v3067_v50, %v3065_v9  ;;  %v370_v17 = vmul.f32 %v6307_v19, %v7702_v16 }
  0x60   : > { %v8126_v56 = vmax.f32 %v406_v6, 0.0  ;;  %v715_v32 = vrot.slane %v9876_v41, 1  ;;  %6826 = vmatprep.mubr.bf16.mxu1 %v822_v25  ;;  %v553_v2 = vunpack.c.l.bf16 %v537_v13  ;;  %v2985_v63 = vunpack.c.l.bf16 %v5877_v34 }
  0x61   : > { %9972 = vst [vmem:[#allocation7_spill] sm:$0xff] %v8121_v15  ;;  %v9878_v42 = vmax.f32 %v8121_v15, 0.0  ;;  %v8133_v59 = vadd.f32 %v7711_v23, %v369_v0  ;;  %7050 = vmatprep.mubr.msk.bf16.mxu0 %vm8114_vm4, %v5916_v33  ;;  %v408_v6 = vadd.f32 %v7711_v23, %v370_v17  ;;  %v9973_v9 = vmax.f32 %v7817_v61, 0.0 }
  0x62   : > { %v716_v50 = vrot.slane %v8126_v56, 1  ;;  %v9974_v25 = vmax.f32 %v7820_v62, 0.0  ;;  %v569_v0 = vmul.f32 %v7702_v16, %v553_v2  ;;  %v3001_v33 = vmul.f32 %v7702_v16, %v2985_v63  ;;  %v7540_v62 = vld [vmem:[%s9843_s1 + $0x188] sm:$0xff]  }
  0x63   : > { %v3074_v19 = vrot.slane %v9973_v9, 2  ;;  %v718_v13 = vrot.slane %v9878_v42, 1  ;;  %v9879_v34 = vmax.f32 %v8133_v59, 0.0  ;;  %v8151_v11 = vmax.f32 %v408_v6, 0.0  ;;  %v5878_v9 = vld [vmem:[%s7690_s24 + $0x30] sm:$0xe] }
  0x64   : > { %v3076_v1 = vrot.slane %v9974_v25, 2  ;;  %v717_v41 = vsel %vm669_vm0, %v715_v32, %v716_v50  ;;  %v333_v17 = vunpack.c.l.bf16 %v301_v30  ;;  %v8160_v42 = vadd.f32 %v7711_v23, %v569_v0  ;;  %v6529_v0 = vld [vmem:[%s7690_s24 + $0x90] sm:$0xff]  }
  0x65   : > { %v719_v25 = vsel %vm669_vm0, %v716_v50, %v718_v13  ;;  %v720_v16 = vrot.slane %v9879_v34, 1  ;;  %v3017_v32 = vadd.f32 %v7711_v23, %v3001_v33  ;;  %v334_v63 = vunpack.c.h.bf16 %v301_v30  ;;  %v8173_v50 = vld [vmem:[%s9844_s2] ss:$0 sm:$0xff]  ;;  %v5879_v34 = vld [vmem:[%s7690_s24 + $0x3c] sm:$0xe] }
  0x66   : > { %v3077_v61 = vsel %vm1375_vm1, %v3074_v19, %v3076_v1  ;;  %9975 = vst [vmem:[#allocation8_spill] sm:$0xff] %v8160_v42  ;;  %v823_v2 = vpack.c.bf16 %v719_v25, %v717_v41  ;;  %7051 = vmatmul.mubr.msk.bf16.vlgmr.msra.gmra.mrb[0].mxu0 %vm8114_vm4, %v5919_v57  ;;  %v8168_v1 = vrot.slane %v8151_v11, 1  ;;  %v371_v6 = vmul.f32 %v8173_v50, %v333_v17  ;;  %v8185_v17 = vld [vmem:[%s9845_s3] ss:$0 sm:$0xff] }
  0x67   : > { %7083 = vmatpush3.bf16.msra.mxu0 %v8002_v49  ;;  %v9885_v13 = vmax.f32 %v8160_v42, 0.0  ;;  %v3033_v23 = vmax.f32 %v3017_v32, 0.0  ;;  %v554_v41 = vunpack.c.l.bf16 %v538_v60  ;;  %v2986_v57 = vunpack.c.l.bf16 %v5878_v9  ;;  %v7542_v60 = vld [vmem:[%s9843_s1 + $0x190] sm:$0xff]  }
  0x68   : > { %9976 = vst [vmem:[#allocation9_spill] sm:$0xff] %v8168_v1  ;;  %6827 = vmatmul.mubr.bf16.gmra.mrb[16].mxu1 %v823_v2  ;;  %v722_v30 = vsel %vm669_vm0, %v720_v16, %v8168_v1  ;;  %v372_v33 = vmul.f32 %v8173_v50, %v334_v63  ;;  %v8188_v49 = vadd.f32 %v8185_v17, %v371_v6  ;;  %v8191_v25 = vrot.slane %v7888_v26, 2  ;;  %v539_v63 = vld [vmem:[%s7690_s24 + $0x98] sm:$0x1] }
  0x69   : > { %7084 = vmatprep.subr.bf16.mxu0 %v7540_v62  ;;  %v723_v9 = vrot.slane %v9885_v13, 1  ;;  %v3073_v16 = vrot.slane %v3033_v23, 2  ;;  %v570_v32 = vmul.f32 %v8173_v50, %v554_v41  ;;  %v3002_v2 = vmul.f32 %v8173_v50, %v2986_v57 }
  0x6a   : > { %9977 = vst [vmem:[#allocation10_spill] sm:$0xff] %v8191_v25  ;;  %v410_v6 = vadd.f32 %v8185_v17, %v372_v33  ;;  %v9887_v15 = vmax.f32 %v8188_v49, 0.0  ;;  %v9978_v44 = vmax.f32 %v7883_v12, 0.0  ;;  %v6310_v29 = vunpack.c.l.bf16 %v6529_v0 }
  0x6b   : > { %v724_v35 = vsel %vm669_vm0, %v8168_v1, %v723_v9  ;;  %v3075_v13 = vsel %vm1375_vm1, %v3073_v16, %v3074_v19  ;;  %v8210_v23 = vadd.f32 %v8185_v17, %v570_v32  ;;  %v3018_v41 = vadd.f32 %v8185_v17, %v3002_v2  ;;  %7085 = vmatpush3.bf16.msra.mxu0 %v7540_v62  ;;  %v5881_v1 = vld [vmem:[%s7690_s24 + $0x54] sm:$0xe] }
  0x6c   : > { %v3081_v14 = vrot.slane %v9978_v44, 2  ;;  %v824_v57 = vpack.c.bf16 %v724_v35, %v722_v30  ;;  %v5922_v42 = vpack.c.bf16 %v3077_v61, %v3075_v13  ;;  %v8213_v33 = vmax.f32 %v410_v6, 0.0  ;;  %7086 = vmatprep.subr.bf16.mxu0 %v7542_v60  ;;  %v7544_v44 = vld [vmem:[%s9843_s1 + $0x198] sm:$0xff]  }
  0x6d   : > { %9979 = vst [vmem:[#allocation11_spill] sm:$0xff] %v8210_v23  ;;  %v725_v12 = vrot.slane %v9887_v15, 1  ;;  %v9888_v19 = vmax.f32 %v8210_v23, 0.0  ;;  %v3034_v9 = vmax.f32 %v3018_v41, 0.0  ;;  %v6311_v35 = vunpack.c.h.bf16 %v6529_v0  ;;  %v305_v41 = vld [vmem:[%s7690_s24 + $0x9c] sm:$0xff]  }
  0x6e   : > { %v3082_v62 = vsel %vm1375_vm1, %v8191_v25, %v3081_v14  ;;  %6830 = vmatprep.mubr.bf16.mxu1 %v824_v57  ;;  %7054 = vmatprep.mubr.msk.bf16.mxu0 %vm8114_vm4, %v5922_v42  ;;  %v726_v61 = vrot.slane %v8213_v33, 1  ;;  %v373_v13 = vmul.f32 %v8173_v50, %v6310_v29  ;;  %v555_v30 = vunpack.c.l.bf16 %v539_v63  ;;  %v540_v57 = vld [vmem:[%s7690_s24 + $0xa4] sm:$0x1]  ;;  %v5880_v63 = vld [vmem:[%s7690_s24 + $0x48] sm:$0xe] }
  0x6f   : > { %v2987_v16 = vunpack.c.l.bf16 %v5879_v34  ;;  %v728_v32 = vrot.slane %v9888_v19, 1  ;;  %v3078_v2 = vrot.slane %v3034_v9, 2  ;;  %v374_v6 = vmul.f32 %v8173_v50, %v6311_v35  ;;  %7087 = vmatpush3.bf16.msra.mxu0 %v7542_v60 }
  0x70   : > { %v9980_v14 = vmax.f32 %v7911_v47, 0.0  ;;  %v727_v42 = vsel %vm669_vm0, %v725_v12, %v726_v61  ;;  %v8236_v15 = vadd.f32 %v8185_v17, %v373_v13  ;;  %v571_v29 = vmul.f32 %v8173_v50, %v555_v30  ;;  %7088 = vmatprep.subr.bf16.mxu0 %v7544_v44  ;;  %v7546_v12 = vld [vmem:[%s9843_s1 + $0x1a0] sm:$0xff]  }
  0x71   : > { %v3003_v34 = vmul.f32 %v8173_v50, %v2987_v16  ;;  %v729_v9 = vsel %vm669_vm0, %v726_v61, %v728_v32  ;;  %v3080_v47 = vsel %vm1375_vm1, %v3078_v2, %v8191_v25  ;;  %v412_v35 = vadd.f32 %v8185_v17, %v374_v6 }
  0x72   : > { %v3084_v0 = vrot.slane %v9980_v14, 2  ;;  %v9981_v60 = vmax.f32 %v7920_v54, 0.0  ;;  %v825_v13 = vpack.c.bf16 %v729_v9, %v727_v42  ;;  %v5925_v30 = vpack.c.bf16 %v3082_v62, %v3080_v47 }
  0x73   : > { %v9889_v16 = vmax.f32 %v8236_v15, 0.0  ;;  %v8252_v19 = vadd.f32 %v8185_v17, %v571_v29  ;;  %v8254_v61 = vmax.f32 %v412_v35, 0.0  ;;  %v3019_v32 = vadd.f32 %v8185_v17, %v3003_v34  ;;  %7089 = vmatpush3.bf16.msra.mxu0 %v7544_v44  ;;  %v7548_v34 = vld [vmem:[%s9843_s1 + $0x1a8] sm:$0xff]  }
  0x74   : > { %v3086_v14 = vrot.slane %v9981_v60, 2  ;;  %v337_v6 = vunpack.c.l.bf16 %v305_v41  ;;  %6831 = vmatmul.mubr.bf16.gmra.mrb[20].mxu1 %v825_v13  ;;  %7055 = vmatmul.mubr.msk.bf16.gmra.mrb[4].mxu0 %vm8114_vm4, %v5925_v30  ;;  %v338_v42 = vunpack.c.h.bf16 %v305_v41  ;;  %v556_v29 = vunpack.c.l.bf16 %v540_v57 }
  0x75   : > { %9982 = vst [vmem:[#allocation12_spill] sm:$0xff] %v8252_v19  ;;  %v9892_v54 = vmax.f32 %v8252_v19, 0.0  ;;  %v730_v62 = vrot.slane %v9889_v16, 1  ;;  %v8267_v44 = vrot.slane %v8254_v61, 1  ;;  %v3035_v9 = vmax.f32 %v3019_v32, 0.0  ;;  %7090 = vmatprep.subr.bf16.mxu0 %v7546_v12 }
  0x76   : > { %v3087_v2 = vsel %vm1375_vm1, %v3084_v0, %v3086_v14  ;;  %v375_v47 = vmul.f32 %v8173_v50, %v337_v6  ;;  %v2988_v35 = vunpack.c.l.bf16 %v5880_v63  ;;  %v376_v41 = vmul.f32 %v8173_v50, %v338_v42  ;;  %v6530_v6 = vld [vmem:[%s7690_s24 + $0xa8] sm:$0xff]   ;;  %v541_v16 = vld [vmem:[%s7690_s24 + $0xb0] sm:$0x1] }
  0x77   : > { %9983 = vst [vmem:[#allocation13_spill] sm:$0xff] %v8267_v44  ;;  %v733_v60 = vrot.slane %v9892_v54, 1  ;;  %v572_v57 = vmul.f32 %v8173_v50, %v556_v29  ;;  %v8275_v14 = vrot.slane %v7985_v37, 2  ;;  %v732_v13 = vsel %vm669_vm0, %v730_v62, %v8267_v44  ;;  %7091 = vmatpush3.bf16.msra.mxu0 %v7546_v12 }
  0x78   : > { %v3083_v30 = vrot.slane %v3035_v9, 2  ;;  %v8280_v32 = vadd.f32 %v8185_v17, %v375_v47  ;;  %v3004_v63 = vmul.f32 %v8173_v50, %v2988_v35  ;;  %v414_v29 = vadd.f32 %v8185_v17, %v376_v41  ;;  %7092 = vmatprep.subr.bf16.mxu0 %v7548_v34  ;;  %v7550_v47 = vld [vmem:[%s9843_s1 + $0x1b0] sm:$0xff]  }
  0x79   : > { %9984 = vst [vmem:[#allocation14_spill] sm:$0xff] %v8275_v14  ;;  %v734_v42 = vsel %vm669_vm0, %v8267_v44, %v733_v60  ;;  %v8290_v54 = vadd.f32 %v8185_v17, %v572_v57  ;;  %v9986_v62 = vmax.f32 %v7979_v53, 0.0 }
  0x7a   : > { %v826_v35 = vpack.c.bf16 %v734_v42, %v732_v13  ;;  %v3085_v19 = vsel %vm1375_vm1, %v3083_v30, %v3084_v0  ;;  %v9898_v12 = vmax.f32 %v8280_v32, 0.0  ;;  %v3020_v60 = vadd.f32 %v8185_v17, %v3004_v63  ;;  %v7552_v63 = vld [vmem:[%s9843_s1 + $0x1b8] sm:$0xff]  }
  0x7b   : > { %9985 = vst [vmem:[#allocation15_spill] sm:$0xff] %v8290_v54  ;;  %v3091_v9 = vrot.slane %v9986_v62, 2  ;;  %v5928_v44 = vpack.c.bf16 %v3087_v2, %v3085_v19  ;;  %v8300_v41 = vmax.f32 %v414_v29, 0.0  ;;  %v9897_v57 = vmax.f32 %v8290_v54, 0.0  ;;  %7093 = vmatpush3.bf16.msra.mxu0 %v7548_v34 }
  0x7c   : > { %6834 = vmatprep.mubr.bf16.mxu1 %v826_v35  ;;  %v735_v62 = vrot.slane %v9898_v12, 1  ;;  %v3036_v23 = vmax.f32 %v3020_v60, 0.0  ;;  %v6314_v13 = vunpack.c.l.bf16 %v6530_v6  ;;  %v6315_v42 = vunpack.c.h.bf16 %v6530_v6  ;;  %7094 = vmatprep.subr.bf16.mxu0 %v7550_v47 }
  0x7d   : > { %v3092_v53 = vsel %vm1375_vm1, %v8275_v14, %v3091_v9  ;;  %7058 = vmatprep.mubr.msk.bf16.mxu0 %vm8114_vm4, %v5928_v44  ;;  %v736_v19 = vrot.slane %v8300_v41, 1  ;;  %v738_v0 = vrot.slane %v9897_v57, 1  ;;  %v557_v2 = vunpack.c.l.bf16 %v541_v16  ;;  %v309_v57 = vld [vmem:[%s7690_s24 + $0xb4] sm:$0xff]  }
  0x7e   : > { %v2989_v30 = vunpack.c.l.bf16 %v5881_v1  ;;  %v3088_v29 = vrot.slane %v3036_v23, 2  ;;  %v377_v34 = vmul.f32 %v8173_v50, %v6314_v13  ;;  %v378_v6 = vmul.f32 %v8173_v50, %v6315_v42  ;;  %v542_v42 = vld [vmem:[%s7690_s24 + $0xbc] sm:$0x1] }
  0x7f   : > { %v9987_v44 = vmax.f32 %v8012_v8, 0.0  ;;  %v737_v35 = vsel %vm669_vm0, %v735_v62, %v736_v19  ;;  %v739_v60 = vsel %vm669_vm0, %v736_v19, %v738_v0  ;;  %v573_v1 = vmul.f32 %v8173_v50, %v557_v2  ;;  %7095 = vmatpush3.bf16.msra.mxu0 %v7550_v47 }
  0x80   : > { %v3005_v16 = vmul.f32 %v8173_v50, %v2989_v30  ;;  %v827_v12 = vpack.c.bf16 %v739_v60, %v737_v35  ;;  %v3090_v23 = vsel %vm1375_vm1, %v3088_v29, %v8275_v14  ;;  %v8327_v13 = vadd.f32 %v8185_v17, %v377_v34  ;;  %7096 = vmatprep.subr.bf16.mxu0 %v7552_v63  ;;  %v8340_v29 = vld [vmem:[%s9843_s1 + $0x1c0] sm:$0xff]  }
  0x81   : > { %v3094_v9 = vrot.slane %v9987_v44, 2  ;;  %v416_v8 = vadd.f32 %v8185_v17, %v378_v6  ;;  %v5931_v62 = vpack.c.bf16 %v3092_v53, %v3090_v23  ;;  %v8332_v19 = vadd.f32 %v8185_v17, %v573_v1  ;;  %v5882_v44 = vld [vmem:[%s7690_s24 + $0x60] sm:$0xe] }
  0x82   : > { %v3021_v0 = vadd.f32 %v8185_v17, %v3005_v16  ;;  %v9989_v2 = vmax.f32 %v8018_v27, 0.0  ;;  %6835 = vmatmul.mubr.bf16.gmra.mrb[24].mxu1 %v827_v12  ;;  %v9900_v34 = vmax.f32 %v8327_v13, 0.0  ;;  %v341_v47 = vunpack.c.l.bf16 %v309_v57 }
  0x83   : > { %9988 = vst [vmem:[#allocation16_spill] sm:$0xff] %v8332_v19  ;;  %v8343_v6 = vmax.f32 %v416_v8, 0.0  ;;  %v342_v53 = vunpack.c.h.bf16 %v309_v57  ;;  %7059 = vmatmul.mubr.msk.bf16.gmra.mrb[8].mxu0 %vm8114_vm4, %v5931_v62  ;;  %v9899_v27 = vmax.f32 %v8332_v19, 0.0  ;;  %v558_v1 = vunpack.c.l.bf16 %v542_v42 }
  0x84   : > { %v3096_v30 = vrot.slane %v9989_v2, 2  ;;  %v3037_v35 = vmax.f32 %v3021_v0, 0.0  ;;  %v740_v12 = vrot.slane %v9900_v34, 1  ;;  %v379_v23 = vmul.f32 %v8173_v50, %v341_v47  ;;  %7097 = vmatpush3.bf16.msra.mxu0 %v7552_v63 }
  0x85   : > { %v8353_v16 = vrot.slane %v8343_v6, 1  ;;  %v380_v57 = vmul.f32 %v8173_v50, %v342_v53  ;;  %v743_v8 = vrot.slane %v9899_v27, 1  ;;  %v574_v0 = vmul.f32 %v8173_v50, %v558_v1  ;;  %7130 = vmatprep.subr.bf16.mxu0 %v8340_v29  ;;  %v8371_v53 = vld [vmem:[%s7690_s24 + $0x70] ss:$24 sps:$4 sm:$0xff]   ;;  %v5883_v27 = vld [vmem:[%s7690_s24 + $0x6c] sm:$0xe] }
  0x86   : > { %v3097_v60 = vsel %vm1375_vm1, %v3094_v9, %v3096_v30  ;;  %v3093_v62 = vrot.slane %v3037_v35, 2  ;;  %v2990_v42 = vunpack.c.l.bf16 %v5882_v44  ;;  %v8364_v30 = vadd.f32 %v8185_v17, %v379_v23  ;;  %v5829_v23 = vld [vmem:[%s7690_s24 + $0x74] sm:$0x1] }
  0x87   : > { %9990 = vst [vmem:[#allocation17_spill] sm:$0xff] %v8353_v16  ;;  %v742_v2 = vsel %vm669_vm0, %v740_v12, %v8353_v16  ;;  %v418_v47 = vadd.f32 %v8185_v17, %v380_v57  ;;  %v8368_v63 = vrot.slane %v8073_v43, 2  ;;  %v744_v35 = vsel %vm669_vm0, %v8353_v16, %v743_v8  ;;  %v5832_v16 = vld [vmem:[%s7690_s24 + $0x80] sm:$0x1] }
  0x88   : > { %v3095_v44 = vsel %vm1375_vm1, %v3093_v62, %v3094_v9  ;;  %v8377_v1 = vadd.f32 %v8185_v17, %v574_v0  ;;  %v3006_v12 = vmul.f32 %v8173_v50, %v2990_v42  ;;  %v828_v57 = vpack.c.bf16 %v744_v35, %v742_v2  ;;  %v5884_v35 = vld [vmem:[%s7690_s24 + $0x78] sm:$0xe] }
  0x89   : > { %9991 = vst [vmem:[#allocation18_spill] sm:$0xff] %v8368_v63  ;;  %v5934_v34 = vpack.c.bf16 %v3097_v60, %v3095_v44  ;;  %v9907_v19 = vmax.f32 %v8364_v30, 0.0  ;;  %v8383_v54 = vmax.f32 %v418_v47, 0.0  ;;  %v9993_v9 = vmax.f32 %v8061_v22, 0.0 }
  0x8a   : > { %9992 = vst [vmem:[#allocation19_spill] sm:$0xff] %v8377_v1  ;;  %v9911_v14 = vmax.f32 %v8377_v1, 0.0  ;;  %v3022_v8 = vadd.f32 %v8185_v17, %v3006_v12  ;;  %v2334_v0 = vunpack.c.l.bf16 %v8371_v53  ;;  %6838 = vmatprep.mubr.bf16.mxu1 %v828_v57  ;;  %v2335_v2 = vunpack.c.l.bf16 %v5829_v23 }
  0x8b   : > { %v3101_v62 = vrot.slane %v9993_v9, 2  ;;  %7062 = vmatprep.mubr.msk.bf16.mxu0 %vm8114_vm4, %v5934_v34  ;;  %v745_v60 = vrot.slane %v9907_v19, 1  ;;  %v746_v42 = vrot.slane %v8383_v54, 1  ;;  %v2991_v47 = vunpack.c.l.bf16 %v5883_v27 }
  0x8c   : > { %v748_v44 = vrot.slane %v9911_v14, 1  ;;  %v3038_v22 = vmax.f32 %v3022_v8, 0.0  ;;  %v2382_v57 = vmul.f32 %v8173_v50, %v2334_v0  ;;  %v2383_v34 = vmul.f32 %v8173_v50, %v2335_v2 }
  0x8d   : > { %v3102_v12 = vsel %vm1375_vm1, %v8368_v63, %v3101_v62  ;;  %v747_v9 = vsel %vm669_vm0, %v745_v60, %v746_v42  ;;  %v3007_v19 = vmul.f32 %v8173_v50, %v2991_v47  ;;  %v2338_v25 = vunpack.c.l.bf16 %v5832_v16  ;;  %v5835_v47 = vld [vmem:[%s7690_s24 + $0x8c] sm:$0x1] }
  0x8e   : > { %v749_v27 = vsel %vm669_vm0, %v746_v42, %v748_v44  ;;  %v3098_v23 = vrot.slane %v3038_v22, 2  ;;  %v8407_v1 = vadd.f32 %v8185_v17, %v2382_v57  ;;  %v2992_v8 = vunpack.c.l.bf16 %v5884_v35 }
  0x8f   : > { %v829_v14 = vpack.c.bf16 %v749_v27, %v747_v9  ;;  %v8410_v62 = vadd.f32 %v8185_v17, %v2383_v34  ;;  %v3023_v0 = vadd.f32 %v8185_v17, %v3007_v19  ;;  %v2386_v60 = vmul.f32 %v8173_v50, %v2338_v25  ;;  %v5885_v25 = vld [vmem:[%s7690_s24 + $0x84] sm:$0xe] }
  0x90   : > { %9994 = vst [vmem:[#allocation20_spill] sm:$0xff] %v8407_v1  ;;  %v3100_v2 = vsel %vm1375_vm1, %v3098_v23, %v8368_v63  ;;  %v9912_v16 = vmax.f32 %v8407_v1, 0.0  ;;  %v3008_v42 = vmul.f32 %v8173_v50, %v2992_v8  ;;  %v9995_v19 = vmov 0.0|0.0   ;;  %v5838_v63 = vld [vmem:[%s7690_s24 + $0x98] sm:$0x1] }
  0x91   : > { %6839 = vmatmul.mubr.bf16.gmra.mrb[28].mxu1 %v829_v14  ;;  %v5937_v35 = vpack.c.bf16 %v3102_v12, %v3100_v2  ;;  %v9916_v44 = vmax.f32 %v8410_v62, 0.0  ;;  %v3039_v22 = vmax.f32 %v3023_v0, 0.0  ;;  %v8422_v57 = vadd.f32 %v8185_v17, %v2386_v60 }
  0x92   : > { %6858 = vmatprep.mubr.bf16.mxu1 %v9995_v19  ;;  %v3104_v9 = vrot.slane %v9912_v16, 2  ;;  %v3024_v34 = vadd.f32 %v8185_v17, %v3008_v42  ;;  %v8430_v27 = vrot.slane %v8151_v11, 2  ;;  %v2340_v14 = vunpack.c.h.bf16 %v8371_v53  ;;  %v5886_v53 = vld [vmem:[%s7690_s24 + $0x90] sm:$0xe] }
  0x93   : > { %7063 = vmatmul.mubr.msk.bf16.gmra.mrb[12].mxu0 %vm8114_vm4, %v5937_v35  ;;  %v3103_v12 = vrot.slane %v3039_v22, 2  ;;  %v3106_v23 = vrot.slane %v9916_v44, 2  ;;  %v9918_v8 = vmax.f32 %v8422_v57, 0.0  ;;  %v2341_v0 = vunpack.c.l.bf16 %v5835_v47 }
  0x94   : > { %v3040_v60 = vmax.f32 %v3024_v34, 0.0  ;;  %v9996_v2 = vmax.f32 %v7766_v18, 0.0  ;;  %v2388_v16 = vmul.f32 %v8173_v50, %v2340_v14  ;;  %v2993_v1 = vunpack.c.l.bf16 %v5885_v25 }
  0x95   : > { %v3105_v35 = vsel %vm1375_vm1, %v3103_v12, %v3104_v9  ;;  %v3107_v22 = vsel %vm1375_vm1, %v3104_v9, %v3106_v23  ;;  %v3111_v44 = vrot.slane %v9918_v8, 2  ;;  %v9997_v47 = vmax.f32 %v7847_v31, 0.0 }
  0x96   : > { %v5589_v42 = vpack.c.bf16 %v7780_v28, %v9996_v2  ;;  %v5940_v18 = vpack.c.bf16 %v3107_v22, %v3105_v35  ;;  %v3108_v25 = vrot.slane %v3040_v60, 2  ;;  %v2389_v14 = vmul.f32 %v8173_v50, %v2341_v0  ;;  %v8469_v35 = vld [vmem:[%s7690_s24 + $0xa0] ss:$24 sps:$4 sm:$0xff]   ;;  %v5841_v60 = vld [vmem:[%s7690_s24 + $0xa4] sm:$0x1] }
  0x97   : > { %v5592_v34 = vpack.c.bf16 %v7861_v45, %v9997_v47  ;;  %v8460_v9 = vadd.f32 %v8185_v17, %v2388_v16  ;;  %v3112_v31 = vsel %vm1375_vm1, %v8430_v27, %v3111_v44  ;;  %v3009_v12 = vmul.f32 %v8173_v50, %v2993_v1 }
  0x98   : > { %v2344_v23 = vunpack.c.l.bf16 %v5838_v63  ;;  %v2994_v2 = vunpack.c.l.bf16 %v5886_v53  ;;  %7066 = vmatprep.mubr.msk.bf16.mxu0 %vm8114_vm4, %v5940_v18  ;;  %v3110_v16 = vsel %vm1375_vm1, %v3108_v25, %v8430_v27  ;;  %v8476_v0 = vadd.f32 %v8185_v17, %v2389_v14  ;;  %v5887_v18 = vld [vmem:[%s7690_s24 + $0x9c] sm:$0xe] }
  0x99   : > { %10000 = vst [vmem:[#allocation21_spill] sm:$0xff] %v8460_v9  ;;  %v9917_v1 = vmax.f32 %v8460_v9, 0.0  ;;  %v8480_v44 = vrot.slane %v8254_v61, 2  ;;  %6859 = vmatmul.mubr.msk.bf16.vlgmr.msra.gmra.mrb[0].mxu1 %vm8454_vm6, %v7757_v7  ;;  %v5943_v63 = vpack.c.bf16 %v3112_v31, %v3110_v16  ;;  %v3025_v53 = vadd.f32 %v8185_v17, %v3009_v12  ;;  %v5844_v16 = vld [vmem:[%s7690_s24 + $0xb0] sm:$0x1] }
  0x9a   : > { %10001 = vst [vmem:[#allocation22_spill] sm:$0xff] %v8476_v0  ;;  %v2392_v22 = vmul.f32 %v8173_v50, %v2344_v23  ;;  %v3010_v47 = vmul.f32 %v8173_v50, %v2994_v2  ;;  %6891 = vmatpush3.bf16.msra.mxu1 %v7964_v21  ;;  %6862 = vmatprep.mubr.msk.bf16.mxu1 %vm8454_vm6, %v5589_v42  ;;  %v9921_v25 = vmax.f32 %v8476_v0, 0.0  ;;  %v10002_v7 = vmax.f32 %v7877_v3, 0.0  ;;  %v7549_v3 = vld [vmem:[%s9843_s1 + $0x90] sm:$0xff]  }
  0x9b   : > { %v3114_v14 = vrot.slane %v9917_v1, 2  ;;  %v2346_v12 = vunpack.c.l.bf16 %v8469_v35  ;;  %7067 = vmatmul.mubr.msk.bf16.gmra.mrb[16].mxu0 %vm8114_vm4, %v5943_v63  ;;  %v3041_v23 = vmax.f32 %v3025_v53, 0.0  ;;  %6892 = vmatprep.subr.bf16.mxu1 %v7547_v10  ;;  %v2347_v2 = vunpack.c.l.bf16 %v5841_v60 }
  0x9c   : > { %v5595_v31 = vpack.c.bf16 %v7888_v26, %v10002_v7  ;;  %v8503_v21 = vadd.f32 %v8185_v17, %v2392_v22  ;;  %v3026_v42 = vadd.f32 %v8185_v17, %v3010_v47  ;;  %v3116_v26 = vrot.slane %v9921_v25, 2  ;;  %v5888_v25 = vld [vmem:[%s7690_s24 + $0xa8] sm:$0xe] }
  0x9d   : > { %v2394_v7 = vmul.f32 %v8173_v50, %v2346_v12  ;;  %v2995_v63 = vunpack.c.l.bf16 %v5887_v18  ;;  %v10003_v53 = vmax.f32 %v7940_v38, 0.0  ;;  %v3113_v1 = vrot.slane %v3041_v23, 2 }
  0x9e   : > { %v9924_v60 = vmax.f32 %v8503_v21, 0.0  ;;  %v3042_v47 = vmax.f32 %v3026_v42, 0.0  ;;  %v2395_v8 = vmul.f32 %v8173_v50, %v2347_v2  ;;  %v3117_v9 = vsel %vm1375_vm1, %v3114_v14, %v3116_v26  ;;  %6893 = vmatpush3.bf16.msra.mxu1 %v7547_v10 }
  0x9f   : > { %v8516_v22 = vpack.c.bf16 %v7952_v4, %v10003_v53  ;;  %v8522_v0 = vadd.f32 %v8185_v17, %v2394_v7  ;;  %v3011_v12 = vmul.f32 %v8173_v50, %v2995_v63  ;;  %v2350_v18 = vunpack.c.l.bf16 %v5844_v16  ;;  %6894 = vmatprep.subr.bf16.mxu1 %v7549_v3  ;;  %v5847_v63 = vld [vmem:[%s7690_s24 + $0xbc] sm:$0x1] }
  0xa0   : > { %v3115_v38 = vsel %vm1375_vm1, %v3113_v1, %v3114_v14  ;;  %v3118_v53 = vrot.slane %v3042_v47, 2  ;;  %v3121_v23 = vrot.slane %v9924_v60, 2  ;;  %v8530_v42 = vadd.f32 %v8185_v17, %v2395_v8  ;;  %v7551_v1 = vld [vmem:[%s9843_s1 + $0x98] sm:$0xff]  }
  0xa1   : > { %10004 = vst [vmem:[#allocation23_spill] sm:$0xff] %v8522_v0  ;;  %v5946_v2 = vpack.c.bf16 %v3117_v9, %v3115_v38  ;;  %v9923_v10 = vmax.f32 %v8522_v0, 0.0  ;;  %v3027_v26 = vadd.f32 %v8185_v17, %v3011_v12  ;;  %v2398_v16 = vmul.f32 %v8173_v50, %v2350_v18  ;;  %6863 = vmatmul.mubr.msk.bf16.gmra.mrb[4].mxu1 %vm8454_vm6, %v5592_v34  ;;  %v5889_v38 = vld [vmem:[%s7690_s24 + $0xb4] sm:$0xe] }
  0xa2   : > { %10005 = vst [vmem:[#allocation24_spill] sm:$0xff] %v8530_v42  ;;  %v3120_v8 = vsel %vm1375_vm1, %v3118_v53, %v8480_v44  ;;  %v3122_v9 = vsel %vm1375_vm1, %v8480_v44, %v3121_v23  ;;  %v9922_v14 = vmax.f32 %v8530_v42, 0.0  ;;  %v2996_v7 = vunpack.c.l.bf16 %v5888_v25  ;;  %6866 = vmatprep.mubr.msk.bf16.mxu1 %vm8454_vm6, %v5595_v31  ;;  %6895 = vmatpush3.bf16.msra.mxu1 %v7549_v3  ;;  %v7553_v3 = vld [vmem:[%s9843_s1 + $0xa0] sm:$0xff]  }
  0xa3   : > { %7070 = vmatprep.mubr.msk.bf16.mxu0 %vm8114_vm4, %v5946_v2  ;;  %v5949_v47 = vpack.c.bf16 %v3122_v9, %v3120_v8  ;;  %v3043_v12 = vmax.f32 %v3027_v26, 0.0  ;;  %v3124_v34 = vrot.slane %v9923_v10, 2  ;;  %v8553_v18 = vadd.f32 %v8185_v17, %v2398_v16  ;;  %6896 = vmatprep.subr.bf16.mxu1 %v7551_v1  ;;  %v5890_v42 = vld [vmem:[%s7690_s24 + $0xc0] sm:$0xe] }
  0xa4   : > { %v3126_v25 = vrot.slane %v9922_v14, 2  ;;  %v3012_v53 = vmul.f32 %v8173_v50, %v2996_v7  ;;  %v8560_v23 = vrot.slane %v8343_v6, 2  ;;  %v10006_v31 = vmax.f32 %v7971_v36, 0.0  ;;  %v8570_v7 = vld [vmem:[%s7690_s24 + $0xc0] sm:$0xff]   ;;  %v5850_v14 = vld [vmem:[%s7690_s24 + $0xc8] sm:$0x1] }
  0xa5   : > { %7071 = vmatmul.mubr.msk.bf16.gmra.mrb[20].mxu0 %vm8114_vm4, %v5949_v47  ;;  %v3123_v26 = vrot.slane %v3043_v12, 2  ;;  %v9929_v16 = vmax.f32 %v8553_v18, 0.0  ;;  %v2352_v8 = vunpack.c.h.bf16 %v8469_v35  ;;  %v2353_v9 = vunpack.c.l.bf16 %v5847_v63 }
  0xa6   : > { %v5601_v2 = vpack.c.bf16 %v7985_v37, %v10006_v31  ;;  %v3127_v36 = vsel %vm1375_vm1, %v3124_v34, %v3126_v25  ;;  %v3028_v37 = vadd.f32 %v8185_v17, %v3012_v53  ;;  %v2997_v31 = vunpack.c.l.bf16 %v5889_v38  ;;  %6897 = vmatpush3.bf16.msra.mxu1 %v7551_v1 }
  0xa7   : > { %v10007_v47 = vmax.f32 %v8035_v5, 0.0  ;;  %v3125_v35 = vsel %vm1375_vm1, %v3123_v26, %v3124_v34  ;;  %v3131_v63 = vrot.slane %v9929_v16, 2  ;;  %v2400_v10 = vmul.f32 %v8173_v50, %v2352_v8  ;;  %6898 = vmatprep.subr.bf16.mxu1 %v7553_v3 }
  0xa8   : > { %v2401_v60 = vmul.f32 %v8173_v50, %v2353_v9  ;;  %v5952_v25 = vpack.c.bf16 %v3127_v36, %v3125_v35  ;;  %v3044_v0 = vmax.f32 %v3028_v37, 0.0  ;;  %v3013_v38 = vmul.f32 %v8173_v50, %v2997_v31  ;;  %v7555_v9 = vld [vmem:[%s9843_s1 + $0xa8] sm:$0xff]  }
  0xa9   : > { %v8580_v12 = vpack.c.bf16 %v8050_v51, %v10007_v47  ;;  %v6379_v5 = vunpack.c.h.bf16 %v8570_v7  ;;  %v3132_v53 = vsel %vm1375_vm1, %v8560_v23, %v3131_v63  ;;  %v8594_v34 = vadd.f32 %v8185_v17, %v2400_v10  ;;  %6867 = vmatmul.mubr.msk.bf16.gmra.mrb[8].mxu1 %vm8454_vm6, %v8516_v22  ;;  %v6547_v22 = vld [vmem:[%s7690_s24 + $0x18] sm:$0xff]  }
  0xaa   : > { %v8597_v26 = vadd.f32 %v8185_v17, %v2401_v60  ;;  %v2356_v8 = vunpack.c.l.bf16 %v5850_v14  ;;  %7074 = vmatprep.mubr.msk.bf16.mxu0 %vm8114_vm4, %v5952_v25  ;;  %v3128_v1 = vrot.slane %v3044_v0, 2  ;;  %v3029_v10 = vadd.f32 %v8185_v17, %v3013_v38  ;;  %6870 = vmatprep.mubr.msk.bf16.mxu1 %vm8454_vm6, %v5601_v2 }
  0xab   : > { %10008 = vst [vmem:[#allocation25_spill] sm:$0xff] %v8594_v34  ;;  %v2403_v36 = vmul.f32 %v8173_v50, %v6379_v5  ;;  %v2998_v60 = vunpack.c.l.bf16 %v5890_v42  ;;  %v9928_v14 = vmax.f32 %v8594_v34, 0.0  ;;  %v10010_v47 = vmax.f32 %v8055_v48, 0.0  ;;  %6899 = vmatpush3.bf16.msra.mxu1 %v7553_v3  ;;  %v7557_v5 = vld [vmem:[%s9843_s1 + $0xb0] sm:$0xff]  }
  0xac   : > { %10009 = vst [vmem:[#allocation26_spill] sm:$0xff] %v8597_v26  ;;  %v9927_v37 = vmax.f32 %v8597_v26, 0.0  ;;  %v2404_v31 = vmul.f32 %v8173_v50, %v2356_v8  ;;  %v3130_v0 = vsel %vm1375_vm1, %v3128_v1, %v8560_v23  ;;  %v3045_v63 = vmax.f32 %v3029_v10, 0.0  ;;  %6900 = vmatprep.subr.bf16.mxu1 %v7555_v9  ;;  %v5965_v10 = vld [vmem:[%s7690_s24 + $0x24] sm:$0xff]  }
  0xad   : > { %v5607_v35 = vpack.c.bf16 %v8073_v43, %v10010_v47  ;;  %v2451_v42 = vadd.f32 %v8185_v17, %v2403_v36  ;;  %v3014_v2 = vmul.f32 %v8173_v50, %v2998_v60  ;;  %v5955_v25 = vpack.c.bf16 %v3132_v53, %v3130_v0 }
  0xae   : > { %v3134_v38 = vrot.slane %v9928_v14, 2  ;;  %v3136_v48 = vrot.slane %v9927_v37, 2  ;;  %v8627_v43 = vadd.f32 %v8185_v17, %v2404_v31  ;;  %v3133_v8 = vrot.slane %v3045_v63, 2  ;;  %v6548_v14 = vld [vmem:[%s7690_s24 + $0x30] sm:$0xff]  }
  0xaf   : > { %v8632_v1 = vmax.f32 %v2451_v42, 0.0  ;;  %v3030_v3 = vadd.f32 %v8185_v17, %v3014_v2  ;;  %v6382_v53 = vunpack.c.l.bf16 %v6547_v22  ;;  %7075 = vmatmul.mubr.msk.bf16.gmra.mrb[24].mxu0 %vm8114_vm4, %v5955_v25  ;;  %v6383_v31 = vunpack.c.h.bf16 %v6547_v22  ;;  %6901 = vmatpush3.bf16.msra.mxu1 %v7555_v9 }
  0xb0   : > { %10011 = vst [vmem:[#allocation27_spill] sm:$0xff] %v8627_v43  ;;  %v3137_v36 = vsel %vm1375_vm1, %v3134_v38, %v3136_v48  ;;  %v9930_v60 = vmax.f32 %v8627_v43, 0.0  ;;  %v10013_v47 = vmax.f32 %v8099_v58, 0.0  ;;  %v3135_v63 = vsel %vm1375_vm1, %v3133_v8, %v3134_v38  ;;  %6902 = vmatprep.subr.bf16.mxu1 %v7557_v5  ;;  %v7559_v58 = vld [vmem:[%s9843_s1 + $0xb8] sm:$0xff]  }
  0xb1   : > { %10012 = vst [vmem:[#allocation28_spill] sm:$0xff] %v8632_v1  ;;  %v3046_v42 = vmax.f32 %v3030_v3, 0.0  ;;  %v3139_v37 = vrot.slane %v8632_v1, 2  ;;  %v3546_v2 = vmul.f32 %v8173_v50, %v6382_v53  ;;  %v5958_v16 = vpack.c.bf16 %v3137_v36, %v3135_v63  ;;  %6871 = vmatmul.mubr.msk.bf16.gmra.mrb[12].mxu1 %vm8454_vm6, %v8580_v12  ;;  %v5969_v63 = vld [vmem:[%s7690_s24 + $0x3c] sm:$0xff]  }
  0xb2   : > { %v5610_v0 = vpack.c.bf16 %v8126_v56, %v10013_v47  ;;  %v3141_v25 = vrot.slane %v9930_v60, 2  ;;  %v3547_v22 = vmul.f32 %v8173_v50, %v6383_v31  ;;  %v3516_v48 = vunpack.c.l.bf16 %v5965_v10  ;;  %6874 = vmatprep.mubr.msk.bf16.mxu1 %vm8454_vm6, %v5607_v35 }
  0xb3   : > { %v3138_v38 = vrot.slane %v3046_v42, 2  ;;  %v8657_v9 = vadd.f32 %v8185_v17, %v3546_v2  ;;  %v3517_v8 = vunpack.c.h.bf16 %v5965_v10  ;;  %v10014_v3 = vmax.f32 %v8133_v59, 0.0  ;;  %7078 = vmatprep.mubr.msk.bf16.mxu0 %vm8114_vm4, %v5958_v16  ;;  %6903 = vmatpush3.bf16.msra.mxu1 %v7557_v5 }
  0xb4   : > { %v3142_v36 = vsel %vm1375_vm1, %v3139_v37, %v3141_v25  ;;  %v3579_v31 = vadd.f32 %v8185_v17, %v3547_v22  ;;  %v3548_v12 = vmul.f32 %v8173_v50, %v3516_v48  ;;  %v6386_v47 = vunpack.c.l.bf16 %v6548_v14  ;;  %6904 = vmatprep.subr.bf16.mxu1 %v7559_v58  ;;  %v8680_v22 = vld [vmem:[%s9843_s1 + $0xc0] sm:$0xff]  }
  0xb5   : > { %v5613_v53 = vpack.c.bf16 %v8151_v11, %v10014_v3  ;;  %v3140_v10 = vsel %vm1375_vm1, %v3138_v38, %v3139_v37  ;;  %v9933_v59 = vmax.f32 %v8657_v9, 0.0  ;;  %v3549_v11 = vmul.f32 %v8173_v50, %v3517_v8  ;;  %v6549_v8 = vld [vmem:[%s7690_s24 + $0x48] sm:$0xff]  }
  0xb6   : > { %v6387_v42 = vunpack.c.h.bf16 %v6548_v14  ;;  %v5961_v16 = vpack.c.bf16 %v3142_v36, %v3140_v10  ;;  %v8673_v2 = vmax.f32 %v3579_v31, 0.0  ;;  %v3580_v35 = vadd.f32 %v8185_v17, %v3548_v12 }
  0xb7   : > { %v3550_v25 = vmul.f32 %v8173_v50, %v6386_v47  ;;  %v3581_v37 = vadd.f32 %v8185_v17, %v3549_v11  ;;  %v10015_v14 = vmax.f32 %v8188_v49, 0.0  ;;  %v3520_v38 = vunpack.c.l.bf16 %v5969_v63  ;;  %6905 = vmatpush3.bf16.msra.mxu1 %v7559_v58 }
  0xb8   : > { %v3551_v48 = vmul.f32 %v8173_v50, %v6387_v42  ;;  %7079 = vmatmul.mubr.msk.bf16.gmra.mrb[28].mxu0 %vm8114_vm4, %v5961_v16  ;;  %v6020_v3 = vpack.c.bf16 %v8673_v2, %v9933_v59  ;;  %v3612_v36 = vmax.f32 %v3580_v35, 0.0  ;;  %v3521_v12 = vunpack.c.h.bf16 %v5969_v63  ;;  %6938 = vmatprep.subr.bf16.mxu1 %v8680_v22 }
  0xb9   : > { %v8687_v5 = vpack.c.bf16 %v8213_v33, %v10015_v14  ;;  %v8696_v31 = vadd.f32 %v8185_v17, %v3550_v25  ;;  %v3613_v47 = vmax.f32 %v3581_v37, 0.0  ;;  %v3552_v10 = vmul.f32 %v8173_v50, %v3520_v38  ;;  %v5973_v14 = vld [vmem:[%s7690_s24 + $0x54] sm:$0xff]   ;;  %6875 = vmatmul.mubr.msk.bf16.gmra.mrb[16].mxu1 %vm8454_vm6, %v5610_v0 }
  0xba   : > { %v3583_v49 = vadd.f32 %v8185_v17, %v3551_v48  ;;  %v10016_v11 = vmax.f32 %v8236_v15, 0.0  ;;  %7098 = vmatprep.mubr.msk.bf16.mxu0 %vm8454_vm6, %v6020_v3  ;;  %v3553_v35 = vmul.f32 %v8173_v50, %v3521_v12  ;;  %v6390_v63 = vunpack.c.l.bf16 %v6549_v8  ;;  %6878 = vmatprep.mubr.msk.bf16.mxu1 %vm8454_vm6, %v5613_v53 }
  0xbb   : > { %v9932_v16 = vmax.f32 %v8696_v31, 0.0  ;;  %v6391_v25 = vunpack.c.h.bf16 %v6549_v8  ;;  %v6023_v15 = vpack.c.bf16 %v3613_v47, %v3612_v36  ;;  %v10017_v58 = vmax.f32 %v8280_v32, 0.0  ;;  %v6550_v36 = vld [vmem:[%s7690_s24 + $0x60] sm:$0xff]  }
  0xbc   : > { %v5619_v42 = vpack.c.bf16 %v8254_v61, %v10016_v11  ;;  %v8711_v37 = vmax.f32 %v3583_v49, 0.0  ;;  %v3584_v61 = vadd.f32 %v8185_v17, %v3552_v10  ;;  %v3585_v38 = vadd.f32 %v8185_v17, %v3553_v35  ;;  %v7556_v11 = vld [vmem:[%s9843_s1 + $0x1c8] sm:$0xff]  }
  0xbd   : > { %v8717_v48 = vpack.c.bf16 %v8300_v41, %v10017_v58  ;;  %v3554_v8 = vmul.f32 %v8173_v50, %v6390_v63  ;;  %v3555_v0 = vmul.f32 %v8173_v50, %v6391_v25  ;;  %v3524_v3 = vunpack.c.l.bf16 %v5973_v14  ;;  %v5977_v58 = vld [vmem:[%s7690_s24 + $0x6c] sm:$0xff]  }
  0xbe   : > { %v6026_v32 = vpack.c.bf16 %v8711_v37, %v9932_v16  ;;  %v3616_v12 = vmax.f32 %v3584_v61, 0.0  ;;  %v3525_v47 = vunpack.c.h.bf16 %v5973_v14  ;;  %v10018_v49 = vmax.f32 %v8327_v13, 0.0 }
  0xbf   : > { %v3617_v53 = vmax.f32 %v3585_v38, 0.0  ;;  %v8737_v35 = vadd.f32 %v8185_v17, %v3554_v8  ;;  %v3587_v63 = vadd.f32 %v8185_v17, %v3555_v0  ;;  %v3556_v25 = vmul.f32 %v8173_v50, %v3524_v3 }
  0xc0   : > { %v8731_v10 = vpack.c.bf16 %v8343_v6, %v10018_v49  ;;  %v3557_v14 = vmul.f32 %v8173_v50, %v3525_v47  ;;  %v6394_v13 = vunpack.c.l.bf16 %v6550_v36  ;;  %v6395_v61 = vunpack.c.h.bf16 %v6550_v36  ;;  %v6551_v49 = vld [vmem:[%s7690_s24 + $0x78] sm:$0xff]   ;;  %7099 = vmatmul.mubr.msk.bf16.vlgmr.msra.gmra.mrb[0].mxu0 %vm8454_vm6, %v6023_v15  ;;  %v1266_v15 = vld [vmem:[%s7690_s24 + $0xc] sm:$0xe] }
  0xc1   : > { %v10019_v6 = vmax.f32 %v8364_v30, 0.0  ;;  %v6029_v8 = vpack.c.bf16 %v3617_v53, %v3616_v12  ;;  %v9931_v0 = vmax.f32 %v8737_v35, 0.0  ;;  %v8752_v60 = vmax.f32 %v3587_v63, 0.0  ;;  %7131 = vmatpush3.bf16.msra.mxu0 %v8340_v29  ;;  %7102 = vmatprep.mubr.msk.bf16.mxu0 %vm8454_vm6, %v6026_v32  ;;  %v7558_v29 = vld [vmem:[%s9843_s1 + $0x1d0] sm:$0xff]  }
  0xc2   : > { %v3588_v3 = vadd.f32 %v8185_v17, %v3556_v25  ;;  %v3589_v30 = vadd.f32 %v8185_v17, %v3557_v14  ;;  %v3558_v36 = vmul.f32 %v8173_v50, %v6394_v13  ;;  %v3559_v47 = vmul.f32 %v8173_v50, %v6395_v61  ;;  %7132 = vmatprep.subr.bf16.mxu0 %v7556_v11  ;;  %v8778_v13 = vld [vmem:[%s9844_s2] ss:$0 sm:$0xff] }
  0xc3   : > { %v8746_v38 = vpack.c.bf16 %v8383_v54, %v10019_v6  ;;  %v3528_v6 = vunpack.c.l.bf16 %v5977_v58  ;;  %v6032_v12 = vpack.c.bf16 %v8752_v60, %v9931_v0  ;;  %v3529_v32 = vunpack.c.h.bf16 %v5977_v58  ;;  %6879 = vmatmul.mubr.msk.bf16.gmra.mrb[20].mxu1 %vm8454_vm6, %v8687_v5 }
  0xc4   : > { %v3620_v53 = vmax.f32 %v3588_v3, 0.0  ;;  %v6398_v63 = vunpack.c.l.bf16 %v6551_v49  ;;  %v3621_v50 = vmax.f32 %v3589_v30, 0.0  ;;  %v8772_v25 = vadd.f32 %v8185_v17, %v3558_v36  ;;  %6882 = vmatprep.mubr.msk.bf16.mxu1 %vm8454_vm6, %v5619_v42  ;;  %v5981_v36 = vld [vmem:[%s7690_s24 + $0x84] sm:$0xff]  }
  0xc5   : > { %v3591_v14 = vadd.f32 %v8185_v17, %v3559_v47  ;;  %v3560_v61 = vmul.f32 %v8778_v13, %v3528_v6  ;;  %v3561_v58 = vmul.f32 %v8778_v13, %v3529_v32  ;;  %v6399_v3 = vunpack.c.h.bf16 %v6551_v49  ;;  %7133 = vmatpush3.bf16.msra.mxu0 %v7556_v11  ;;  %v8792_v6 = vld [vmem:[%s9845_s3] ss:$0 sm:$0xff]  ;;  %v7560_v11 = vld [vmem:[%s9843_s1 + $0x1d8] sm:$0xff]  }
  0xc6   : > { %v3562_v5 = vmul.f32 %v8778_v13, %v6398_v63  ;;  %v1282_v30 = vunpack.c.l.bf16 %v1266_v15  ;;  %v6035_v17 = vpack.c.bf16 %v3621_v50, %v3620_v53  ;;  %v9935_v47 = vmax.f32 %v8772_v25, 0.0  ;;  %7134 = vmatprep.subr.bf16.mxu0 %v7558_v29  ;;  %v1267_v63 = vld [vmem:[%s7690_s24 + $0x18] sm:$0xe] }
  0xc7   : > { %v8787_v0 = vmax.f32 %v3591_v14, 0.0  ;;  %v3592_v42 = vadd.f32 %v8792_v6, %v3560_v61  ;;  %v3593_v49 = vadd.f32 %v8792_v6, %v3561_v58  ;;  %v3563_v15 = vmul.f32 %v8778_v13, %v6399_v3 }
  0xc8   : > { %v3594_v53 = vadd.f32 %v8792_v6, %v3562_v5  ;;  %v1298_v32 = vmul.f32 %v8778_v13, %v1282_v30  ;;  %v3532_v61 = vunpack.c.l.bf16 %v5981_v36  ;;  %v3533_v16 = vunpack.c.h.bf16 %v5981_v36  ;;  %7103 = vmatmul.mubr.msk.bf16.gmra.mrb[4].mxu0 %vm8454_vm6, %v6029_v8  ;;  %v6552_v5 = vld [vmem:[%s7690_s24 + $0x90] sm:$0xff]  }
  0xc9   : > { %v6038_v50 = vpack.c.bf16 %v8787_v0, %v9935_v47  ;;  %v3624_v14 = vmax.f32 %v3592_v42, 0.0  ;;  %v3625_v58 = vmax.f32 %v3593_v49, 0.0  ;;  %v3595_v59 = vadd.f32 %v8792_v6, %v3563_v15  ;;  %7106 = vmatprep.mubr.msk.bf16.mxu0 %vm8454_vm6, %v6032_v12  ;;  %7135 = vmatpush3.bf16.msra.mxu0 %v7558_v29  ;;  %v7562_v15 = vld [vmem:[%s9843_s1 + $0x1e0] sm:$0xff]  }
  0xca   : > { %v3626_v43 = vmax.f32 %v3594_v53, 0.0  ;;  %v1314_v3 = vadd.f32 %v8792_v6, %v1298_v32  ;;  %v3564_v30 = vmul.f32 %v8778_v13, %v3532_v61  ;;  %v3565_v42 = vmul.f32 %v8778_v13, %v3533_v16  ;;  %7136 = vmatprep.subr.bf16.mxu0 %v7560_v11 }
  0xcb   : > { %v1283_v36 = vunpack.c.l.bf16 %v1267_v63  ;;  %v8815_v47 = vpack.c.bf16 %v3625_v58, %v3624_v14  ;;  %v3627_v8 = vmax.f32 %v3595_v59, 0.0  ;;  %v10020_v53 = vmax.f32 %v7797_v46, 0.0  ;;  %6883 = vmatmul.mubr.msk.bf16.gmra.mrb[24].mxu1 %vm8454_vm6, %v8717_v48  ;;  %v1268_v63 = vld [vmem:[%s7690_s24 + $0x24] sm:$0xe] }
  0xcc   : > { %v1330_v49 = vmax.f32 %v1314_v3, 0.0  ;;  %v3596_v16 = vadd.f32 %v8792_v6, %v3564_v30  ;;  %v3597_v12 = vadd.f32 %v8792_v6, %v3565_v42  ;;  %v6402_v59 = vunpack.c.l.bf16 %v6552_v5  ;;  %6886 = vmatprep.mubr.msk.bf16.mxu1 %vm8454_vm6, %v8731_v10 }
  0xcd   : > { %v1389_v32 = vrot.slane %v10020_v53, 2  ;;  %v1299_v29 = vmul.f32 %v8778_v13, %v1283_v36  ;;  %v8832_v14 = vpack.c.bf16 %v3627_v8, %v3626_v43  ;;  %v6403_v61 = vunpack.c.h.bf16 %v6552_v5  ;;  %7137 = vmatpush3.bf16.msra.mxu0 %v7560_v11  ;;  %v5985_v36 = vld [vmem:[%s7690_s24 + $0x9c] sm:$0xff]   ;;  %v7564_v11 = vld [vmem:[%s9843_s1 + $0x1e8] sm:$0xff]   ;;  %v1269_v5 = vld [vmem:[%s7690_s24 + $0x30] sm:$0xe] }
  0xce   : > { %v1381_v46 = vrot.slane %v1330_v49, 2  ;;  %v3628_v58 = vmax.f32 %v3596_v16, 0.0  ;;  %v3629_v3 = vmax.f32 %v3597_v12, 0.0  ;;  %v3566_v42 = vmul.f32 %v8778_v13, %v6402_v59  ;;  %7138 = vmatprep.subr.bf16.mxu0 %v7562_v15 }
  0xcf   : > { %v8836_v48 = vsel %vm1375_vm1, %v7790_v39, %v1389_v32  ;;  %v1315_v30 = vadd.f32 %v8792_v6, %v1299_v29  ;;  %v10021_v53 = vrot.slane %v7742_v55, 2  ;;  %v3567_v10 = vmul.f32 %v8778_v13, %v6403_v61 }
  0xd0   : > { %v1284_v8 = vunpack.c.l.bf16 %v1268_v63  ;;  %v1392_v49 = vrot.slane %v7861_v45, 2  ;;  %v8854_v16 = vpack.c.bf16 %v3629_v3, %v3628_v58  ;;  %v3598_v12 = vadd.f32 %v8792_v6, %v3566_v42  ;;  %7107 = vmatmul.mubr.msk.bf16.gmra.mrb[8].mxu0 %vm8454_vm6, %v6035_v17 }
  0xd1   : > { %v8844_v43 = vsel %vm1375_vm1, %v1381_v46, %v10021_v53  ;;  %v1331_v55 = vmax.f32 %v1315_v30, 0.0  ;;  %v3599_v29 = vadd.f32 %v8792_v6, %v3567_v10  ;;  %v10022_v59 = vmax.f32 %v7855_v40, 0.0  ;;  %7110 = vmatprep.mubr.msk.bf16.mxu0 %vm8454_vm6, %v6038_v50  ;;  %7139 = vmatpush3.bf16.msra.mxu0 %v7562_v15  ;;  %v6553_v40 = vld [vmem:[%s7690_s24 + $0xa8] sm:$0xff]   ;;  %v7566_v50 = vld [vmem:[%s9843_s1 + $0x1f0] sm:$0xff]  }
  0xd2   : > { %v5655_v32 = vpack.c.bf16 %v7776_v24, %v8844_v43  ;;  %v1300_v45 = vmul.f32 %v8778_v13, %v1284_v8  ;;  %v3536_v46 = vunpack.c.l.bf16 %v5985_v36  ;;  %v3630_v58 = vmax.f32 %v3598_v12, 0.0  ;;  %7140 = vmatprep.subr.bf16.mxu0 %v7564_v11  ;;  %v1272_v43 = vld [vmem:[%s7690_s24 + $0x54] sm:$0xe] }
  0xd3   : > { %v1394_v63 = vrot.slane %v10022_v59, 2  ;;  %v1386_v61 = vrot.slane %v1331_v55, 2  ;;  %v3537_v3 = vunpack.c.h.bf16 %v5985_v36  ;;  %v1285_v30 = vunpack.c.l.bf16 %v1269_v5  ;;  %6887 = vmatmul.mubr.msk.bf16.gmra.mrb[28].mxu1 %vm8454_vm6, %v8746_v38  ;;  %v1270_v5 = vld [vmem:[%s7690_s24 + $0x3c] sm:$0xe] }
  0xd4   : > { %v3631_v42 = vmax.f32 %v3599_v29, 0.0  ;;  %v1316_v17 = vadd.f32 %v8792_v6, %v1300_v45  ;;  %v3568_v10 = vmul.f32 %v8778_v13, %v3536_v46  ;;  %6906 = vmatprep.mubr.bf16.mxu1 %v9995_v19  ;;  %v10023_v59 = vmax.f32 %v7891_v20, 0.0 }
  0xd5   : > { %v8867_v53 = vsel %vm1375_vm1, %v1392_v49, %v1394_v63  ;;  %v1388_v15 = vsel %vm1375_vm1, %v1386_v61, %v7790_v39  ;;  %v3569_v36 = vmul.f32 %v8778_v13, %v3537_v3  ;;  %v1301_v8 = vmul.f32 %v8778_v13, %v1285_v30  ;;  %7141 = vmatpush3.bf16.msra.mxu0 %v7564_v11 }
  0xd6   : > { %v5658_v55 = vpack.c.bf16 %v8836_v48, %v1388_v15  ;;  %v8884_v12 = vpack.c.bf16 %v3631_v42, %v3630_v58  ;;  %v1332_v29 = vmax.f32 %v1316_v17, 0.0  ;;  %v3600_v45 = vadd.f32 %v8792_v6, %v3568_v10  ;;  %7142 = vmatprep.subr.bf16.mxu0 %v7566_v50  ;;  %v7568_v58 = vld [vmem:[%s9843_s1 + $0x1f8] sm:$0xff]   ;;  %v10024_v10 = vld [vmem:[#allocation10_spill] sm:$0xff] }
  0xd7   : > { %v3601_v38 = vadd.f32 %v8792_v6, %v3569_v36  ;;  %v1317_v39 = vadd.f32 %v8792_v6, %v1301_v8  ;;  %v1399_v63 = vrot.slane %v10023_v59, 2  ;;  %v6406_v46 = vunpack.c.l.bf16 %v6553_v40  ;;  %v5989_v15 = vld [vmem:[%s7690_s24 + $0xb4] sm:$0xff]  }
  0xd8   : > { %v1391_v61 = vrot.slane %v1332_v29, 2  ;;  %v3632_v3 = vmax.f32 %v3600_v45, 0.0  ;;  %v6407_v30 = vunpack.c.h.bf16 %v6553_v40  ;;  %v1286_v48 = vunpack.c.l.bf16 %v1270_v5  ;;  %7111 = vmatmul.mubr.msk.bf16.gmra.mrb[12].mxu0 %vm8454_vm6, %v8815_v47  ;;  %v1271_v29 = vld [vmem:[%s7690_s24 + $0x48] sm:$0xe] }
  0xd9   : > { %v3633_v42 = vmax.f32 %v3601_v38, 0.0  ;;  %v1333_v17 = vmax.f32 %v1317_v39, 0.0  ;;  %v8896_v11 = vsel %vm1375_vm1, %v10024_v10, %v1399_v63  ;;  %v3570_v20 = vmul.f32 %v8778_v13, %v6406_v46  ;;  %7114 = vmatprep.mubr.msk.bf16.mxu0 %vm8454_vm6, %v8832_v14  ;;  %v7563_v47 = vld [vmem:[%s9843_s1 + $0xc8] sm:$0xff]   ;;  %7143 = vmatpush3.bf16.msra.mxu0 %v7566_v50  ;;  %v10025_v63 = vld [vmem:[#allocation2_spill] sm:$0xff] }
  0xda   : > { %v8904_v40 = vsel %vm1375_vm1, %v1391_v61, %v1392_v49  ;;  %v3571_v36 = vmul.f32 %v8778_v13, %v6407_v30  ;;  %v1302_v8 = vmul.f32 %v8778_v13, %v1286_v48  ;;  %v1402_v5 = vrot.slane %v7952_v4, 2  ;;  %7144 = vmatprep.subr.bf16.mxu0 %v7568_v58 }
  0xdb   : > { %v5661_v45 = vpack.c.bf16 %v8867_v53, %v8904_v40  ;;  %v8918_v49 = vpack.c.bf16 %v3633_v42, %v3632_v3  ;;  %v1396_v38 = vrot.slane %v1333_v17, 2  ;;  %v3602_v39 = vadd.f32 %v8792_v6, %v3570_v20  ;;  %v8928_v53 = vld [vmem:[%s9843_s1 + $0x200] sm:$0xff]   ;;  %6907 = vmatmul.mubr.msk.bf16.vlgmr.msra.gmra.mrb[0].mxu1 %vm8114_vm4, %v5655_v32  ;;  %v7565_v32 = vld [vmem:[%s9843_s1 + $0xd0] sm:$0xff]   ;;  %v10027_v40 = vld [vmem:[#allocation3_spill] sm:$0xff] }
  0xdc   : > { %v3603_v4 = vadd.f32 %v8792_v6, %v3571_v36  ;;  %v1318_v59 = vadd.f32 %v8792_v6, %v1302_v8  ;;  %v10026_v46 = vmax.f32 %v10025_v63, 0.0  ;;  %v3540_v61 = vunpack.c.l.bf16 %v5989_v15  ;;  %6939 = vmatpush3.bf16.msra.mxu1 %v8680_v22  ;;  %6910 = vmatprep.mubr.msk.bf16.mxu1 %vm8114_vm4, %v5658_v55  ;;  %v1273_v63 = vld [vmem:[%s7690_s24 + $0x60] sm:$0xe] }
  0xdd   : > { %v1398_v50 = vsel %vm1375_vm1, %v1396_v38, %v10024_v10  ;;  %v3634_v3 = vmax.f32 %v3602_v39, 0.0  ;;  %v3541_v30 = vunpack.c.h.bf16 %v5989_v15  ;;  %v1287_v48 = vunpack.c.l.bf16 %v1271_v29  ;;  %6940 = vmatprep.subr.bf16.mxu1 %v7563_v47  ;;  %7145 = vmatpush3.bf16.msra.mxu0 %v7568_v58 }
  0xde   : > { %v1404_v14 = vrot.slane %v10026_v46, 2  ;;  %v5664_v42 = vpack.c.bf16 %v8896_v11, %v1398_v50  ;;  %v3635_v17 = vmax.f32 %v3603_v4, 0.0  ;;  %v1334_v20 = vmax.f32 %v1318_v59, 0.0  ;;  %7178 = vmatprep.subr.bf16.mxu0 %v8928_v53  ;;  %v10029_v46 = vld [vmem:[#allocation14_spill] sm:$0xff] }
  0xdf   : > { %v3572_v10 = vmul.f32 %v8778_v13, %v3540_v61  ;;  %v3573_v22 = vmul.f32 %v8778_v13, %v3541_v30  ;;  %v1303_v55 = vmul.f32 %v8778_v13, %v1287_v48  ;;  %v10028_v36 = vmax.f32 %v10027_v40, 0.0 }
  0xe0   : > { %v8942_v24 = vsel %vm1375_vm1, %v1402_v5, %v1404_v14  ;;  %v6056_v11 = vpack.c.bf16 %v3635_v17, %v3634_v3  ;;  %v1401_v15 = vrot.slane %v1334_v20, 2  ;;  %v6410_v29 = vunpack.c.l.bf16 %v8570_v7  ;;  %7115 = vmatmul.mubr.msk.bf16.gmra.mrb[16].mxu0 %vm8454_vm6, %v8854_v16  ;;  %6941 = vmatpush3.bf16.msra.mxu1 %v7563_v47 }
  0xe1   : > { %v1409_v8 = vrot.slane %v10028_v36, 2  ;;  %v3604_v38 = vadd.f32 %v8792_v6, %v3572_v10  ;;  %v3605_v39 = vadd.f32 %v8792_v6, %v3573_v22  ;;  %v1319_v4 = vadd.f32 %v8792_v6, %v1303_v55  ;;  %7118 = vmatprep.mubr.msk.bf16.mxu0 %vm8454_vm6, %v8884_v12  ;;  %6942 = vmatprep.subr.bf16.mxu1 %v7565_v32  ;;  %v6066_v12 = vld [vmem:[%s7690_s24 + $0x20] sm:$0x1]  ;;  %v10032_v22 = vld [vmem:[#allocation5_spill] sm:$0xff] }
  0xe2   : > { %v1288_v59 = vunpack.c.l.bf16 %v1272_v43  ;;  %v1403_v58 = vsel %vm1375_vm1, %v1401_v15, %v1402_v5  ;;  %v3574_v14 = vmul.f32 %v8778_v13, %v6410_v29  ;;  %v1412_v61 = vrot.slane %v8050_v51, 2  ;;  %v7567_v5 = vld [vmem:[%s9843_s1 + $0xd8] sm:$0xff]   ;;  %v10030_v51 = vld [vmem:[#allocation4_spill] sm:$0xff] }
  0xe3   : > { %v8965_v7 = vsel %vm1375_vm1, %v10029_v46, %v1409_v8  ;;  %v5667_v50 = vpack.c.bf16 %v8942_v24, %v1403_v58  ;;  %v3636_v16 = vmax.f32 %v3604_v38, 0.0  ;;  %v3637_v47 = vmax.f32 %v3605_v39, 0.0  ;;  %6911 = vmatmul.mubr.msk.bf16.gmra.mrb[4].mxu1 %vm8114_vm4, %v5661_v45  ;;  %v1274_v45 = vld [vmem:[%s7690_s24 + $0x6c] sm:$0xe]  ;;  %v10034_v39 = vld [vmem:[#allocation18_spill] sm:$0xff] }
  0xe4   : > { %v1335_v3 = vmax.f32 %v1319_v4, 0.0  ;;  %v3606_v30 = vadd.f32 %v8792_v6, %v3574_v14  ;;  %v1304_v48 = vmul.f32 %v8778_v13, %v1288_v59  ;;  %v10031_v17 = vmax.f32 %v10030_v51, 0.0  ;;  %6914 = vmatprep.mubr.msk.bf16.mxu1 %vm8114_vm4, %v5664_v42  ;;  %6943 = vmatpush3.bf16.msra.mxu1 %v7565_v32  ;;  %v6067_v58 = vld [vmem:[%s7690_s24 + $0x24] sm:$0xff]   ;;  %v6069_v51 = vld [vmem:[%s7690_s24 + $0x2c] sm:$0x1] }
  0xe5   : > { %v1289_v43 = vunpack.c.l.bf16 %v1273_v63  ;;  %v8983_v24 = vpack.c.bf16 %v3637_v47, %v3636_v16  ;;  %v10033_v55 = vmax.f32 %v10032_v22, 0.0  ;;  %6944 = vmatprep.subr.bf16.mxu1 %v7567_v5  ;;  %v3998_v42 = vunpack.c.l.bf16 %v6066_v12  ;;  %v7569_v63 = vld [vmem:[%s9843_s1 + $0xe0] sm:$0xff]  }
  0xe6   : > { %v1414_v20 = vrot.slane %v10031_v17, 2  ;;  %v1406_v10 = vrot.slane %v1335_v3, 2  ;;  %v3638_v40 = vmax.f32 %v3606_v30, 0.0  ;;  %v1320_v36 = vadd.f32 %v8792_v6, %v1304_v48 }
  0xe7   : > { %v1419_v15 = vrot.slane %v10033_v55, 2  ;;  %v1305_v29 = vmul.f32 %v8778_v13, %v1289_v43  ;;  %v10035_v32 = vmax.f32 %v8657_v9, 0.0  ;;  %v4046_v3 = vmul.f32 %v8778_v13, %v3998_v42 }
  0xe8   : > { %v8991_v8 = vsel %vm1375_vm1, %v1412_v61, %v1414_v20  ;;  %v1408_v38 = vsel %vm1375_vm1, %v1406_v10, %v10029_v46  ;;  %v6062_v16 = vpack.c.bf16 %v8632_v1, %v3638_v40  ;;  %v1336_v47 = vmax.f32 %v1320_v36, 0.0  ;;  %7119 = vmatmul.mubr.msk.bf16.gmra.mrb[20].mxu0 %vm8454_vm6, %v8918_v49  ;;  %6945 = vmatpush3.bf16.msra.mxu1 %v7567_v5  ;;  %v10036_v20 = vld [vmem:[#allocation7_spill] sm:$0xff] }
  0xe9   : > { %v8999_v4 = vsel %vm1375_vm1, %v10034_v39, %v1419_v15  ;;  %v4236_v59 = vrot.slane %v10035_v32, 1  ;;  %v5670_v14 = vpack.c.bf16 %v8965_v7, %v1408_v38  ;;  %v1321_v46 = vadd.f32 %v8792_v6, %v1305_v29  ;;  %7122 = vmatprep.mubr.msk.bf16.mxu0 %vm8454_vm6, %v6056_v11  ;;  %6946 = vmatprep.subr.bf16.mxu1 %v7569_v63  ;;  %v1275_v15 = vld [vmem:[%s7690_s24 + $0x78] sm:$0xe]  ;;  %v7571_v5 = vld [vmem:[%s9843_s1 + $0xe8] sm:$0xff]  }
  0xea   : > { %v4237_v30 = vrot.slane %v8673_v2, 1  ;;  %v1290_v48 = vunpack.c.l.bf16 %v1274_v45  ;;  %v1422_v9 = vrot.slane %v8126_v56, 2  ;;  %v1411_v17 = vrot.slane %v1336_v47, 2 }
  0xeb   : > { %v1337_v7 = vmax.f32 %v1321_v46, 0.0  ;;  %v10037_v43 = vmax.f32 %v10036_v20, 0.0  ;;  %v3999_v10 = vunpack.c.l.bf16 %v6067_v58  ;;  %v9022_v22 = vadd.f32 %v8792_v6, %v4046_v3  ;;  %6915 = vmatmul.mubr.msk.bf16.gmra.mrb[8].mxu1 %vm8114_vm4, %v5667_v50  ;;  %v10038_v20 = vld [vmem:[#allocation8_spill] sm:$0xff] }
  0xec   : > { %v9025_v56 = vsel %vm669_vm0, %v4236_v59, %v4237_v30  ;;  %v1306_v55 = vmul.f32 %v8778_v13, %v1290_v48  ;;  %v4000_v49 = vunpack.c.h.bf16 %v6067_v58  ;;  %v1413_v40 = vsel %vm1375_vm1, %v1411_v17, %v1412_v61  ;;  %6918 = vmatprep.mubr.msk.bf16.mxu1 %vm8114_vm4, %v5670_v14  ;;  %6947 = vmatpush3.bf16.msra.mxu1 %v7569_v63  ;;  %v7573_v14 = vld [vmem:[%s9843_s1 + $0xf0] sm:$0xff]  }
  0xed   : > { %v1424_v12 = vrot.slane %v10037_v43, 2  ;;  %v1416_v36 = vrot.slane %v1337_v7, 2  ;;  %v4001_v29 = vunpack.c.l.bf16 %v6069_v51  ;;  %v5673_v45 = vpack.c.bf16 %v8991_v8, %v1413_v40  ;;  %6948 = vmatprep.subr.bf16.mxu1 %v7571_v5  ;;  %v6072_v51 = vld [vmem:[%s7690_s24 + $0x38] sm:$0x1] }
  0xee   : > { %v9955_v38 = vmax.f32 %v9022_v22, 0.0  ;;  %v1322_v42 = vadd.f32 %v8792_v6, %v1306_v55  ;;  %v4047_v32 = vmul.f32 %v8778_v13, %v3999_v10  ;;  %v4048_v59 = vmul.f32 %v8778_v13, %v4000_v49 }
  0xef   : > { %v9034_v11 = vsel %vm1375_vm1, %v1422_v9, %v1424_v12  ;;  %v1418_v61 = vsel %vm1375_vm1, %v1416_v36, %v10034_v39  ;;  %v4049_v58 = vmul.f32 %v8778_v13, %v4001_v29  ;;  %v1291_v50 = vunpack.c.l.bf16 %v1275_v15 }
  0xf0   : > { %v5676_v8 = vpack.c.bf16 %v8999_v4, %v1418_v61  ;;  %v4239_v47 = vrot.slane %v9955_v38, 1  ;;  %v1338_v46 = vmax.f32 %v1322_v42, 0.0  ;;  %v4095_v3 = vadd.f32 %v8792_v6, %v4047_v32  ;;  %7123 = vmatmul.mubr.msk.bf16.gmra.mrb[24].mxu0 %vm8454_vm6, %v8983_v24  ;;  %6949 = vmatpush3.bf16.msra.mxu1 %v7571_v5  ;;  %v1276_v42 = vld [vmem:[%s7690_s24 + $0x84] sm:$0xe]  ;;  %v7575_v24 = vld [vmem:[%s9843_s1 + $0xf8] sm:$0xff]  }
  0xf1   : > { %v4096_v39 = vadd.f32 %v8792_v6, %v4048_v59  ;;  %v4097_v48 = vadd.f32 %v8792_v6, %v4049_v58  ;;  %v1307_v63 = vmul.f32 %v8778_v13, %v1291_v50  ;;  %v10039_v43 = vmax.f32 %v10038_v20, 0.0  ;;  %7126 = vmatprep.mubr.msk.bf16.mxu0 %vm8454_vm6, %v6062_v16  ;;  %6950 = vmatprep.subr.bf16.mxu1 %v7573_v14 }
  0xf2   : > { %v4240_v4 = vsel %vm669_vm0, %v4237_v30, %v4239_v47  ;;  %v1421_v17 = vrot.slane %v1338_v46, 2  ;;  %v4143_v7 = vmax.f32 %v4095_v3, 0.0  ;;  %v4004_v29 = vunpack.c.l.bf16 %v6072_v51  ;;  %v6073_v47 = vld [vmem:[%s7690_s24 + $0x3c] sm:$0xff]  }
  0xf3   : > { %v1429_v12 = vrot.slane %v10039_v43, 2  ;;  %v4380_v10 = vpack.c.bf16 %v4240_v4, %v9025_v56  ;;  %v4144_v55 = vmax.f32 %v4096_v39, 0.0  ;;  %v4145_v49 = vmax.f32 %v4097_v48, 0.0  ;;  %6919 = vmatmul.mubr.msk.bf16.gmra.mrb[12].mxu1 %vm8114_vm4, %v5673_v45  ;;  %v6075_v39 = vld [vmem:[%s7690_s24 + $0x44] sm:$0x1] }
  0xf4   : > { %v1323_v15 = vadd.f32 %v8792_v6, %v1307_v63  ;;  %v1423_v30 = vsel %vm1375_vm1, %v1421_v17, %v1422_v9  ;;  %v4241_v40 = vrot.slane %v4143_v7, 1  ;;  %v4052_v59 = vmul.f32 %v8778_v13, %v4004_v29  ;;  %6922 = vmatprep.mubr.msk.bf16.mxu1 %vm8114_vm4, %v5676_v8  ;;  %6951 = vmatpush3.bf16.msra.mxu1 %v7573_v14  ;;  %v10041_v17 = vld [vmem:[#allocation11_spill] sm:$0xff] }
  0xf5   : > { %v1430_v36 = vsel %vm1375_vm1, %v8430_v27, %v1429_v12  ;;  %v5679_v56 = vpack.c.bf16 %v9034_v11, %v1423_v30  ;;  %v4242_v5 = vrot.slane %v4144_v55, 1  ;;  %v4244_v32 = vrot.slane %v4145_v49, 1  ;;  %6952 = vmatprep.subr.bf16.mxu1 %v7575_v24  ;;  %v1277_v12 = vld [vmem:[%s7690_s24 + $0x90] sm:$0xe] }
  0xf6   : > { %v9077_v16 = vrot.slane %v4144_v55, 2  ;;  %v9081_v9 = vrot.slane %v4145_v49, 2  ;;  %v1339_v61 = vmax.f32 %v1323_v15, 0.0  ;;  %v10040_v58 = vmax.f32 %v8696_v31, 0.0 }
  0xf7   : > { %v4243_v11 = vsel %vm669_vm0, %v4241_v40, %v4242_v5  ;;  %v4245_v46 = vsel %vm669_vm0, %v4242_v5, %v4244_v32  ;;  %v4247_v3 = vrot.slane %v8711_v37, 1  ;;  %v1292_v45 = vunpack.c.l.bf16 %v1276_v42 }
  0xf8   : > { %v4246_v50 = vrot.slane %v10040_v58, 1  ;;  %v4381_v48 = vpack.c.bf16 %v4245_v46, %v4243_v11  ;;  %v1426_v63 = vrot.slane %v1339_v61, 2  ;;  %v9094_v51 = vadd.f32 %v8792_v6, %v4052_v59  ;;  %7127 = vmatmul.mubr.bf16.gmra.mrb[28].mxu0 %v9995_v19  ;;  %6953 = vmatpush3.bf16.msra.mxu1 %v7575_v24 }
  0xf9   : > { %v1432_v31 = vrot.slane %v8213_v33, 2  ;;  %v1308_v4 = vmul.f32 %v8778_v13, %v1292_v45  ;;  %v10042_v7 = vmax.f32 %v10041_v17, 0.0  ;;  %v4005_v43 = vunpack.c.l.bf16 %v6073_v47  ;;  %7146 = vmatprep.mubr.bf16.mxu0 %v4380_v10  ;;  %v9120_v10 = vld [vmem:[%s9843_s1 + $0x100] sm:$0xff]  }
  0xfa   : > { %v4248_v8 = vsel %vm669_vm0, %v4246_v50, %v4247_v3  ;;  %v1428_v14 = vsel %vm1375_vm1, %v1426_v63, %v8430_v27  ;;  %v9954_v55 = vmax.f32 %v9094_v51, 0.0  ;;  %v4006_v49 = vunpack.c.h.bf16 %v6073_v47  ;;  %v6078_v47 = vld [vmem:[%s7690_s24 + $0x50] sm:$0x1]  ;;  %7226 = vmatprep.subr.bf16.mxu1 %v9120_v10 }
  0xfb   : > { %v1434_v20 = vrot.slane %v10042_v7, 2  ;;  %v4007_v15 = vunpack.c.l.bf16 %v6075_v39  ;;  %v5682_v33 = vpack.c.bf16 %v1430_v36, %v1428_v14  ;;  %v1324_v30 = vadd.f32 %v8792_v6, %v1308_v4  ;;  %v10043_v36 = vld [vmem:[#allocation12_spill] sm:$0xff]  ;;  %6923 = vmatmul.mubr.msk.bf16.gmra.mrb[16].mxu1 %vm8114_vm4, %v5679_v56 }
  0xfc   : > { %v4053_v29 = vmul.f32 %v8778_v13, %v4005_v43  ;;  %v4249_v42 = vrot.slane %v9954_v55, 1  ;;  %v4054_v27 = vmul.f32 %v8778_v13, %v4006_v49  ;;  %v1293_v32 = vunpack.c.l.bf16 %v1277_v12  ;;  %v1278_v43 = vld [vmem:[%s7690_s24 + $0x9c] sm:$0xe] }
  0xfd   : > { %v1435_v40 = vsel %vm1375_vm1, %v1432_v31, %v1434_v20  ;;  %v4055_v5 = vmul.f32 %v8778_v13, %v4007_v15  ;;  %v1340_v61 = vmax.f32 %v1324_v30, 0.0  ;;  %v10044_v58 = vmax.f32 %v10043_v36, 0.0  ;;  %6926 = vmatprep.mubr.msk.bf16.mxu1 %vm8114_vm4, %v5682_v33 }
  0xfe   : > { %v4101_v59 = vadd.f32 %v8792_v6, %v4053_v29  ;;  %v4250_v24 = vsel %vm669_vm0, %v4247_v3, %v4249_v42  ;;  %v9127_v11 = vadd.f32 %v8792_v6, %v4054_v27  ;;  %v1309_v45 = vmul.f32 %v8778_v13, %v1293_v32 }
  0xff   : > { %v1439_v50 = vrot.slane %v10044_v58, 2  ;;  %v9130_v46 = vadd.f32 %v8792_v6, %v4055_v5  ;;  %v4382_v39 = vpack.c.bf16 %v4250_v24, %v4248_v8  ;;  %v1431_v63 = vrot.slane %v1340_v61, 2  ;;  %v7572_v8 = vld [vmem:[%s9843_s1 + $0x208] sm:$0xff]   ;;  %v6079_v5 = vld [vmem:[%s7690_s24 + $0x54] sm:$0xff]  }
 0x100   : > { %v4149_v4 = vmax.f32 %v4101_v59, 0.0  ;;  %v9951_v3 = vmax.f32 %v9127_v11, 0.0  ;;  %v1325_v7 = vadd.f32 %v8792_v6, %v1309_v45  ;;  %v4010_v20 = vunpack.c.l.bf16 %v6078_v47  ;;  %7147 = vmatmul.mubr.bf16.vlgmr.msra.gmra.mrb[0].mxu0 %v4381_v48  ;;  %v6081_v59 = vld [vmem:[%s7690_s24 + $0x5c] sm:$0x1] }
 0x101   : > { %v1440_v56 = vsel %vm1375_vm1, %v8480_v44, %v1439_v50  ;;  %v9949_v17 = vmax.f32 %v9130_v46, 0.0  ;;  %v1433_v12 = vsel %vm1375_vm1, %v1431_v63, %v1432_v31  ;;  %v10045_v49 = vmax.f32 %v8737_v35, 0.0  ;;  %7179 = vmatpush3.bf16.msra.mxu0 %v8928_v53  ;;  %7150 = vmatprep.mubr.bf16.mxu0 %v4382_v39  ;;  %v10046_v50 = vld [vmem:[#allocation15_spill] sm:$0xff]  ;;  %v7574_v53 = vld [vmem:[%s9843_s1 + $0x210] sm:$0xff]  }
 0x102   : > { %v4251_v14 = vrot.slane %v4149_v4, 1  ;;  %v4257_v33 = vrot.slane %v8752_v60, 1  ;;  %v5685_v30 = vpack.c.bf16 %v1435_v40, %v1433_v12  ;;  %v4252_v29 = vrot.slane %v9951_v3, 1  ;;  %7180 = vmatprep.subr.bf16.mxu0 %v7572_v8  ;;  %v1279_v39 = vld [vmem:[%s7690_s24 + $0xa8] sm:$0xe] }
 0x103   : > { %v4256_v15 = vrot.slane %v10045_v49, 1  ;;  %v4254_v42 = vrot.slane %v9949_v17, 1  ;;  %v1341_v27 = vmax.f32 %v1325_v7, 0.0  ;;  %v4058_v31 = vmul.f32 %v8778_v13, %v4010_v20 }
 0x104   : > { %v1294_v61 = vunpack.c.l.bf16 %v1278_v43  ;;  %v1442_v35 = vrot.slane %v8300_v41, 2  ;;  %v4253_v40 = vsel %vm669_vm0, %v4251_v14, %v4252_v29  ;;  %v10047_v47 = vmax.f32 %v10046_v50, 0.0  ;;  %6927 = vmatmul.mubr.msk.bf16.gmra.mrb[20].mxu1 %vm8114_vm4, %v5685_v30 }
 0x105   : > { %v4258_v32 = vsel %vm669_vm0, %v4256_v15, %v4257_v33  ;;  %v4255_v36 = vsel %vm669_vm0, %v4252_v29, %v4254_v42  ;;  %v1436_v58 = vrot.slane %v1341_v27, 2  ;;  %v9163_v45 = vadd.f32 %v8792_v6, %v4058_v31  ;;  %v6084_v29 = vld [vmem:[%s7690_s24 + $0x68] sm:$0x1]  ;;  %7181 = vmatpush3.bf16.msra.mxu0 %v7572_v8  ;;  %v10048_v31 = vld [vmem:[#allocation16_spill] sm:$0xff]  ;;  %v7576_v8 = vld [vmem:[%s9843_s1 + $0x218] sm:$0xff]  }
 0x106   : > { %v1444_v48 = vrot.slane %v10047_v47, 2  ;;  %v4383_v24 = vpack.c.bf16 %v4255_v36, %v4253_v40  ;;  %v1310_v41 = vmul.f32 %v8778_v13, %v1294_v61  ;;  %v4011_v63 = vunpack.c.l.bf16 %v6079_v5  ;;  %7182 = vmatprep.subr.bf16.mxu0 %v7574_v53 }
 0x107   : > { %v1438_v4 = vsel %vm1375_vm1, %v1436_v58, %v8480_v44  ;;  %v4012_v20 = vunpack.c.h.bf16 %v6079_v5  ;;  %v4013_v43 = vunpack.c.l.bf16 %v6081_v59  ;;  %v9945_v14 = vmax.f32 %v9163_v45, 0.0 }
 0x108   : > { %v1445_v7 = vsel %vm1375_vm1, %v1442_v35, %v1444_v48  ;;  %v5688_v12 = vpack.c.bf16 %v1440_v56, %v1438_v4  ;;  %v1326_v49 = vadd.f32 %v8792_v6, %v1310_v41  ;;  %v4059_v15 = vmul.f32 %v8778_v13, %v4011_v63  ;;  %7151 = vmatmul.mubr.bf16.gmra.mrb[4].mxu0 %v4383_v24 }
 0x109   : > { %v4060_v42 = vmul.f32 %v8778_v13, %v4012_v20  ;;  %v4061_v30 = vmul.f32 %v8778_v13, %v4013_v43  ;;  %v1295_v27 = vunpack.c.l.bf16 %v1279_v39  ;;  %v4259_v44 = vrot.slane %v9945_v14, 1  ;;  %7183 = vmatpush3.bf16.msra.mxu0 %v7574_v53 }
 0x10a   : > { %6930 = vmatprep.mubr.msk.bf16.mxu1 %vm8114_vm4, %v5688_v12  ;;  %v1342_v56 = vmax.f32 %v1326_v49, 0.0  ;;  %v4107_v5 = vadd.f32 %v8792_v6, %v4059_v15  ;;  %v10049_v61 = vmax.f32 %v10048_v31, 0.0  ;;  %v4016_v50 = vunpack.c.l.bf16 %v6084_v29  ;;  %v1280_v12 = vld [vmem:[%s7690_s24 + $0xb4] sm:$0xe]  ;;  %7184 = vmatprep.subr.bf16.mxu0 %v7576_v8 }
 0x10b   : > { %v9192_v40 = vadd.f32 %v8792_v6, %v4060_v42  ;;  %v9195_v36 = vadd.f32 %v8792_v6, %v4061_v30  ;;  %v1311_v58 = vmul.f32 %v8778_v13, %v1295_v27  ;;  %v4260_v47 = vsel %vm669_vm0, %v4257_v33, %v4259_v44 }
 0x10c   : > { %v1449_v59 = vrot.slane %v10049_v61, 2  ;;  %v1441_v48 = vrot.slane %v1342_v56, 2  ;;  %v4155_v41 = vmax.f32 %v4107_v5, 0.0  ;;  %v4384_v39 = vpack.c.bf16 %v4260_v47, %v4258_v32  ;;  %v7577_v32 = vld [vmem:[%s9843_s1 + $0x220] sm:$0xff]   ;;  %v6085_v5 = vld [vmem:[%s7690_s24 + $0x6c] sm:$0xff]  }
 0x10d   : > { %v9943_v4 = vmax.f32 %v9192_v40, 0.0  ;;  %v9942_v20 = vmax.f32 %v9195_v36, 0.0  ;;  %v1327_v43 = vadd.f32 %v8792_v6, %v1311_v58  ;;  %v4064_v33 = vmul.f32 %v8778_v13, %v4016_v50  ;;  %v6087_v47 = vld [vmem:[%s7690_s24 + $0x74] sm:$0x1]  ;;  %7185 = vmatpush3.bf16.msra.mxu0 %v7576_v8 }
 0x10e   : > { %v1450_v63 = vsel %vm1375_vm1, %v8560_v23, %v1449_v59  ;;  %v1443_v49 = vsel %vm1375_vm1, %v1441_v48, %v1442_v35  ;;  %v4261_v24 = vrot.slane %v4155_v41, 1  ;;  %v10050_v15 = vmax.f32 %v8772_v25, 0.0  ;;  %7154 = vmatprep.mubr.bf16.mxu0 %v4384_v39  ;;  %v10051_v59 = vld [vmem:[#allocation19_spill] sm:$0xff]  ;;  %7186 = vmatprep.subr.bf16.mxu0 %v7577_v32 }
 0x10f   : > { %v5691_v53 = vpack.c.bf16 %v1445_v7, %v1443_v49  ;;  %v4262_v42 = vrot.slane %v9943_v4, 1  ;;  %v4264_v35 = vrot.slane %v9942_v20, 1  ;;  %v1343_v30 = vmax.f32 %v1327_v43, 0.0  ;;  %v5699_v43 = vld [vmem:[%s7690_s24 + $0xc] sm:$0xff]  }
 0x110   : > { %v4266_v29 = vrot.slane %v10050_v15, 1  ;;  %v9217_v27 = vadd.f32 %v8792_v6, %v4064_v33  ;;  %v4267_v25 = vrot.slane %v8787_v0, 1  ;;  %v1296_v44 = vunpack.c.l.bf16 %v1280_v12  ;;  %v7578_v12 = vld [vmem:[%s9843_s1 + $0x228] sm:$0xff]   ;;  %v6559_v15 = vld [vmem:[%s7690_s24 + $0x78] sm:$0xff]  }
 0x111   : > { %v1452_v56 = vrot.slane %v8383_v54, 2  ;;  %6931 = vmatmul.mubr.msk.bf16.gmra.mrb[24].mxu1 %vm8114_vm4, %v5691_v53  ;;  %v4263_v7 = vsel %vm669_vm0, %v4261_v24, %v4262_v42  ;;  %v4265_v31 = vsel %vm669_vm0, %v4262_v42, %v4264_v35  ;;  %v1446_v61 = vrot.slane %v1343_v30, 2  ;;  %7187 = vmatpush3.bf16.msra.mxu0 %v7577_v32 }
 0x112   : > { %v10052_v58 = vmax.f32 %v10051_v59, 0.0  ;;  %v4385_v48 = vpack.c.bf16 %v4265_v31, %v4263_v7  ;;  %v9941_v41 = vmax.f32 %v9217_v27, 0.0  ;;  %v4268_v54 = vsel %vm669_vm0, %v4266_v29, %v4267_v25  ;;  %v6090_v59 = vld [vmem:[%s7690_s24 + $0x80] sm:$0x1]  ;;  %7188 = vmatprep.subr.bf16.mxu0 %v7578_v12 }
 0x113   : > { %v1312_v39 = vmul.f32 %v8778_v13, %v1296_v44  ;;  %v1448_v49 = vsel %vm1375_vm1, %v1446_v61, %v8560_v23  ;;  %v4017_v33 = vunpack.c.l.bf16 %v6085_v5  ;;  %v4018_v8 = vunpack.c.h.bf16 %v6085_v5 }
 0x114   : > { %v1454_v50 = vrot.slane %v10052_v58, 2  ;;  %7155 = vmatmul.mubr.bf16.gmra.mrb[8].mxu0 %v4385_v48  ;;  %v5694_v53 = vpack.c.bf16 %v1450_v63, %v1448_v49  ;;  %v4269_v29 = vrot.slane %v9941_v41, 1  ;;  %v4019_v35 = vunpack.c.l.bf16 %v6087_v47  ;;  %v7579_v58 = vld [vmem:[%s9843_s1 + $0x230] sm:$0xff]  }
 0x115   : > { %v1328_v42 = vadd.f32 %v8792_v6, %v1312_v39  ;;  %v4065_v30 = vmul.f32 %v8778_v13, %v4017_v33  ;;  %v4066_v44 = vmul.f32 %v8778_v13, %v4018_v8  ;;  %v1827_v7 = vunpack.c.l.bf16 %v5699_v43  ;;  %7189 = vmatpush3.bf16.msra.mxu0 %v7578_v12 }
 0x116   : > { %v1455_v24 = vsel %vm1375_vm1, %v1452_v56, %v1454_v50  ;;  %v1828_v23 = vunpack.c.h.bf16 %v5699_v43  ;;  %6934 = vmatprep.mubr.msk.bf16.mxu1 %vm8114_vm4, %v5694_v53  ;;  %v4270_v5 = vsel %vm669_vm0, %v4267_v25, %v4269_v29  ;;  %v4067_v63 = vmul.f32 %v8778_v13, %v4019_v35  ;;  %7190 = vmatprep.subr.bf16.mxu0 %v7579_v58 }
 0x117   : > { %v1344_v31 = vmax.f32 %v1328_v42, 0.0  ;;  %v6430_v61 = vunpack.c.l.bf16 %v6559_v15  ;;  %v4386_v50 = vpack.c.bf16 %v4270_v5, %v4268_v54  ;;  %v4113_v47 = vadd.f32 %v8792_v6, %v4065_v30 }
 0x118   : > { %v9255_v32 = vadd.f32 %v8792_v6, %v4066_v44  ;;  %v1859_v48 = vmul.f32 %v8778_v13, %v1827_v7  ;;  %v9259_v39 = vadd.f32 %v8792_v6, %v4067_v63  ;;  %v1860_v43 = vmul.f32 %v8778_v13, %v1828_v23  ;;  %v6531_v44 = vld [vmem:[%s7690_s24 + $0x18] sm:$0xff]  }
 0x119   : > { %v1451_v25 = vrot.slane %v1344_v31, 2  ;;  %v6431_v49 = vunpack.c.h.bf16 %v6559_v15  ;;  %7158 = vmatprep.mubr.bf16.mxu0 %v4386_v50  ;;  %v4161_v33 = vmax.f32 %v4113_v47, 0.0  ;;  %v4022_v53 = vunpack.c.l.bf16 %v6090_v59  ;;  %v7580_v15 = vld [vmem:[%s9843_s1 + $0x238] sm:$0xff]   ;;  %7191 = vmatpush3.bf16.msra.mxu0 %v7579_v58 }
 0x11a   : > { %v9938_v8 = vmax.f32 %v9255_v32, 0.0  ;;  %v1891_v54 = vadd.f32 %v8792_v6, %v1859_v48  ;;  %v9937_v42 = vmax.f32 %v9259_v39, 0.0  ;;  %v1892_v35 = vadd.f32 %v8792_v6, %v1860_v43  ;;  %v6091_v48 = vld [vmem:[%s7690_s24 + $0x84] sm:$0xff]   ;;  %7192 = vmatprep.subr.bf16.mxu0 %v7580_v15 }
 0x11b   : > { %v1453_v29 = vsel %vm1375_vm1, %v1451_v25, %v1452_v56  ;;  %v4068_v30 = vmul.f32 %v8778_v13, %v6430_v61  ;;  %v4271_v23 = vrot.slane %v4161_v33, 1  ;;  %v4069_v63 = vmul.f32 %v8778_v13, %v6431_v49 }
 0x11c   : > { %v5697_v7 = vpack.c.bf16 %v1455_v24, %v1453_v29  ;;  %v4272_v12 = vrot.slane %v9938_v8, 1  ;;  %v1923_v5 = vmax.f32 %v1891_v54, 0.0  ;;  %v4274_v56 = vrot.slane %v9937_v42, 1  ;;  %v6093_v54 = vld [vmem:[%s7690_s24 + $0x8c] sm:$0x1] }
 0x11d   : > { %v1924_v31 = vmax.f32 %v1892_v35, 0.0  ;;  %v4070_v61 = vmul.f32 %v8778_v13, %v4022_v53  ;;  %v9282_v24 = vadd.f32 %v8792_v6, %v4068_v30  ;;  %v6318_v50 = vunpack.c.l.bf16 %v6531_v44  ;;  %7193 = vmatpush3.bf16.msra.mxu0 %v7580_v15  ;;  %v6096_v15 = vld [vmem:[%s7690_s24 + $0x98] sm:$0x1] }
 0x11e   : > { %6935 = vmatmul.mubr.msk.bf16.gmra.mrb[28].mxu1 %vm8114_vm4, %v5697_v7  ;;  %v4273_v59 = vsel %vm669_vm0, %v4271_v23, %v4272_v12  ;;  %v6319_v47 = vunpack.c.h.bf16 %v6531_v44  ;;  %v4275_v25 = vsel %vm669_vm0, %v4272_v12, %v4274_v56  ;;  %v4117_v49 = vadd.f32 %v8792_v6, %v4069_v63  ;;  %v5703_v12 = vld [vmem:[%s7690_s24 + $0x24] sm:$0xff]  }
 0x11f   : > { %v5756_v43 = vpack.c.bf16 %v1924_v31, %v1923_v5  ;;  %v9288_v33 = vadd.f32 %v8792_v6, %v4070_v61  ;;  %v4387_v53 = vpack.c.bf16 %v4275_v25, %v4273_v59  ;;  %v9952_v29 = vmax.f32 %v9282_v24, 0.0 }
 0x120   : > { %v1861_v35 = vmul.f32 %v8778_v13, %v6318_v50  ;;  %v1862_v30 = vmul.f32 %v8778_v13, %v6319_v47  ;;  %v9296_v58 = vmax.f32 %v4117_v49, 0.0  ;;  %v4023_v7 = vunpack.c.l.bf16 %v6091_v48 }
 0x121   : > { %6954 = vmatprep.mubr.msk.bf16.mxu1 %vm8454_vm6, %v5756_v43  ;;  %v9936_v44 = vmax.f32 %v9288_v33, 0.0  ;;  %v4024_v23 = vunpack.c.h.bf16 %v6091_v48  ;;  %7159 = vmatmul.mubr.bf16.gmra.mrb[12].mxu0 %v4387_v53  ;;  %v4276_v5 = vrot.slane %v9952_v29, 1  ;;  %v4025_v63 = vunpack.c.l.bf16 %v6093_v54  ;;  %v9312_v43 = vld [vmem:[%s9844_s2] ss:$0 sm:$0xff]  ;;  %v6560_v53 = vld [vmem:[%s7690_s24 + $0x90] sm:$0xff]  }
 0x122   : > { %v1893_v56 = vadd.f32 %v8792_v6, %v1861_v35  ;;  %v1894_v31 = vadd.f32 %v8792_v6, %v1862_v30  ;;  %v4277_v61 = vrot.slane %v9296_v58, 1  ;;  %v4071_v50 = vmul.f32 %v8778_v13, %v4023_v7  ;;  %v6562_v29 = vld [vmem:[%s7690_s24 + $0xc0] sm:$0xff]  }
 0x123   : > { %v4279_v59 = vrot.slane %v9936_v44, 1  ;;  %v4072_v47 = vmul.f32 %v8778_v13, %v4024_v23  ;;  %v4073_v49 = vmul.f32 %v9312_v43, %v4025_v63  ;;  %v1831_v54 = vunpack.c.l.bf16 %v5703_v12 }
 0x124   : > { %v1925_v48 = vmax.f32 %v1893_v56, 0.0  ;;  %v1926_v25 = vmax.f32 %v1894_v31, 0.0  ;;  %v4278_v35 = vsel %vm669_vm0, %v4276_v5, %v4277_v61  ;;  %v4119_v7 = vadd.f32 %v8792_v6, %v4071_v50 }
 0x125   : > { %v4280_v30 = vsel %vm669_vm0, %v4277_v61, %v4279_v59  ;;  %v9320_v13 = vadd.f32 %v8792_v6, %v4072_v47  ;;  %v9324_v31 = vadd.f32 %v8792_v6, %v4073_v49  ;;  %v1832_v44 = vunpack.c.h.bf16 %v5703_v12 }
 0x126   : > { %v4388_v23 = vpack.c.bf16 %v4280_v30, %v4278_v35  ;;  %v5759_v56 = vpack.c.bf16 %v1926_v25, %v1925_v48  ;;  %v4167_v63 = vmax.f32 %v4119_v7, 0.0  ;;  %v1863_v5 = vmul.f32 %v9312_v43, %v1831_v54  ;;  %v6532_v48 = vld [vmem:[%s7690_s24 + $0x30] sm:$0xff]   ;;  %v9339_v25 = vld [vmem:[%s9845_s3] ss:$0 sm:$0xff] }
 0x127   : > { %v9940_v42 = vmax.f32 %v9320_v13, 0.0  ;;  %v6434_v8 = vunpack.c.l.bf16 %v6560_v53  ;;  %v9939_v61 = vmax.f32 %v9324_v31, 0.0  ;;  %v1864_v59 = vmul.f32 %v9312_v43, %v1832_v44 }
 0x128   : > { %7162 = vmatprep.mubr.bf16.mxu0 %v4388_v23  ;;  %6955 = vmatmul.mubr.msk.bf16.vlgmr.msra.gmra.mrb[0].mxu1 %vm8454_vm6, %v5759_v56  ;;  %v6435_v50 = vunpack.c.h.bf16 %v6560_v53  ;;  %v4028_v47 = vunpack.c.l.bf16 %v6096_v15  ;;  %v4281_v6 = vrot.slane %v4167_v63, 1  ;;  %v1895_v49 = vadd.f32 %v9339_v25, %v1863_v5  ;;  %v6097_v56 = vld [vmem:[%s7690_s24 + $0x9c] sm:$0xff]  }
 0x129   : > { %v4282_v12 = vrot.slane %v9940_v42, 1  ;;  %7234 = vmatpush3.bf16.msra.mxu1 %v9120_v10  ;;  %v4074_v54 = vmul.f32 %v9312_v43, %v6434_v8  ;;  %v4284_v44 = vrot.slane %v9939_v61, 1  ;;  %v1896_v53 = vadd.f32 %v9339_v25, %v1864_v59  ;;  %v7588_v10 = vld [vmem:[%s9843_s1 + $0x108] sm:$0xff]  }
 0x12a   : > { %v4075_v35 = vmul.f32 %v9312_v43, %v6435_v50  ;;  %v4076_v30 = vmul.f32 %v9312_v43, %v4028_v47  ;;  %7227 = vmatprep.subr.bf16.mxu1 %v7588_v10  ;;  %v1927_v15 = vmax.f32 %v1895_v49, 0.0  ;;  %v6322_v23 = vunpack.c.l.bf16 %v6532_v48  ;;  %v6099_v49 = vld [vmem:[%s7690_s24 + $0xa4] sm:$0x1] }
 0x12b   : > { %v4283_v7 = vsel %vm669_vm0, %v4281_v6, %v4282_v12  ;;  %v9353_v8 = vadd.f32 %v9339_v25, %v4074_v54  ;;  %v4285_v63 = vsel %vm669_vm0, %v4282_v12, %v4284_v44  ;;  %v1928_v5 = vmax.f32 %v1896_v53, 0.0  ;;  %v5707_v44 = vld [vmem:[%s7690_s24 + $0x3c] sm:$0xff]   ;;  %v7589_v53 = vld [vmem:[%s9843_s1 + $0x110] sm:$0xff]  }
 0x12c   : > { %v4123_v59 = vadd.f32 %v9339_v25, %v4075_v35  ;;  %v9359_v50 = vadd.f32 %v9339_v25, %v4076_v30  ;;  %v4389_v47 = vpack.c.bf16 %v4285_v63, %v4283_v7  ;;  %v6323_v42 = vunpack.c.h.bf16 %v6532_v48 }
 0x12d   : > { %v9946_v61 = vmax.f32 %v9353_v8, 0.0  ;;  %v1865_v6 = vmul.f32 %v9312_v43, %v6322_v23  ;;  %7235 = vmatpush3.bf16.msra.mxu1 %v7588_v10  ;;  %v5762_v54 = vpack.c.bf16 %v1928_v5, %v1927_v15  ;;  %v4029_v12 = vunpack.c.l.bf16 %v6097_v56 }
 0x12e   : > { %v9364_v41 = vmax.f32 %v4123_v59, 0.0  ;;  %v9944_v20 = vmax.f32 %v9359_v50, 0.0  ;;  %7228 = vmatprep.subr.bf16.mxu1 %v7589_v53  ;;  %7163 = vmatmul.mubr.bf16.gmra.mrb[16].mxu0 %v4389_v47  ;;  %v1866_v35 = vmul.f32 %v9312_v43, %v6323_v42  ;;  %v4030_v10 = vunpack.c.h.bf16 %v6097_v56 }
 0x12f   : > { %v4286_v48 = vrot.slane %v9946_v61, 1  ;;  %v1897_v30 = vadd.f32 %v9339_v25, %v1865_v6  ;;  %6958 = vmatprep.mubr.msk.bf16.mxu1 %vm8454_vm6, %v5762_v54  ;;  %v4031_v23 = vunpack.c.l.bf16 %v6099_v49  ;;  %v4077_v63 = vmul.f32 %v9312_v43, %v4029_v12  ;;  %v6561_v6 = vld [vmem:[%s7690_s24 + $0xa8] sm:$0xff]   ;;  %v7590_v49 = vld [vmem:[%s9843_s1 + $0x118] sm:$0xff]  }
 0x130   : > { %v4287_v7 = vrot.slane %v9364_v41, 1  ;;  %v4289_v15 = vrot.slane %v9944_v20, 1  ;;  %v1898_v5 = vadd.f32 %v9339_v25, %v1866_v35  ;;  %v4078_v42 = vmul.f32 %v9312_v43, %v4030_v10  ;;  %v6102_v10 = vld [vmem:[%s7690_s24 + $0xb0] sm:$0x1] }
 0x131   : > { %v1929_v59 = vmax.f32 %v1897_v30, 0.0  ;;  %v1835_v47 = vunpack.c.l.bf16 %v5707_v44  ;;  %7236 = vmatpush3.bf16.msra.mxu1 %v7589_v53  ;;  %v4079_v4 = vmul.f32 %v9312_v43, %v4031_v23  ;;  %v4125_v20 = vadd.f32 %v9339_v25, %v4077_v63 }
 0x132   : > { %v4288_v56 = vsel %vm669_vm0, %v4286_v48, %v4287_v7  ;;  %v4290_v54 = vsel %vm669_vm0, %v4287_v7, %v4289_v15  ;;  %7229 = vmatprep.subr.bf16.mxu1 %v7590_v49  ;;  %v1930_v35 = vmax.f32 %v1898_v5, 0.0  ;;  %v9392_v30 = vadd.f32 %v9339_v25, %v4078_v42  ;;  %v6533_v5 = vld [vmem:[%s7690_s24 + $0x48] sm:$0xff]  }
 0x133   : > { %v4390_v12 = vpack.c.bf16 %v4290_v54, %v4288_v56  ;;  %v1836_v53 = vunpack.c.h.bf16 %v5707_v44  ;;  %v9396_v48 = vadd.f32 %v9339_v25, %v4079_v4  ;;  %v4173_v7 = vmax.f32 %v4125_v20, 0.0  ;;  %v7591_v20 = vld [vmem:[%s9843_s1 + $0x120] sm:$0xff]  }
 0x134   : > { %v1867_v15 = vmul.f32 %v9312_v43, %v1835_v47  ;;  %v6438_v23 = vunpack.c.l.bf16 %v6561_v6  ;;  %v5765_v63 = vpack.c.bf16 %v1930_v35, %v1929_v59  ;;  %v9947_v14 = vmax.f32 %v9392_v30, 0.0 }
 0x135   : > { %7166 = vmatprep.mubr.bf16.mxu0 %v4390_v12  ;;  %v1868_v61 = vmul.f32 %v9312_v43, %v1836_v53  ;;  %v6439_v56 = vunpack.c.h.bf16 %v6561_v6  ;;  %7237 = vmatpush3.bf16.msra.mxu1 %v7590_v49  ;;  %v9948_v42 = vmax.f32 %v9396_v48, 0.0  ;;  %v4291_v44 = vrot.slane %v4173_v7, 1 }
 0x136   : > { %v1899_v54 = vadd.f32 %v9339_v25, %v1867_v15  ;;  %v4034_v4 = vunpack.c.l.bf16 %v6102_v10  ;;  %7230 = vmatprep.subr.bf16.mxu1 %v7591_v20  ;;  %6959 = vmatmul.mubr.msk.bf16.gmra.mrb[4].mxu1 %vm8454_vm6, %v5765_v63  ;;  %v4292_v59 = vrot.slane %v9947_v14, 1  ;;  %v4080_v6 = vmul.f32 %v9312_v43, %v6438_v23  ;;  %v6103_v14 = vld [vmem:[%s7690_s24 + $0xb4] sm:$0xff]  }
 0x137   : > { %v1900_v47 = vadd.f32 %v9339_v25, %v1868_v61  ;;  %v4081_v49 = vmul.f32 %v9312_v43, %v6439_v56  ;;  %v4294_v12 = vrot.slane %v9948_v42, 1  ;;  %v6326_v10 = vunpack.c.l.bf16 %v6533_v5  ;;  %v6105_v42 = vld [vmem:[%s7690_s24 + $0xbc] sm:$0x1] }
 0x138   : > { %v1931_v35 = vmax.f32 %v1899_v54, 0.0  ;;  %v4082_v53 = vmul.f32 %v9312_v43, %v4034_v4  ;;  %v4293_v7 = vsel %vm669_vm0, %v4291_v44, %v4292_v59  ;;  %v9419_v63 = vadd.f32 %v9339_v25, %v4080_v6  ;;  %v7592_v44 = vld [vmem:[%s9843_s1 + $0x128] sm:$0xff]  }
 0x139   : > { %v1932_v15 = vmax.f32 %v1900_v47, 0.0  ;;  %v4129_v61 = vadd.f32 %v9339_v25, %v4081_v49  ;;  %7238 = vmatpush3.bf16.msra.mxu1 %v7591_v20  ;;  %v4295_v23 = vsel %vm669_vm0, %v4292_v59, %v4294_v12  ;;  %v6327_v54 = vunpack.c.h.bf16 %v6533_v5 }
 0x13a   : > { %v9425_v56 = vadd.f32 %v9339_v25, %v4082_v53  ;;  %v1869_v4 = vmul.f32 %v9312_v43, %v6326_v10  ;;  %7231 = vmatprep.subr.bf16.mxu1 %v7592_v44  ;;  %v4391_v47 = vpack.c.bf16 %v4295_v23, %v4293_v7  ;;  %v9950_v49 = vmax.f32 %v9419_v63, 0.0  ;;  %v5711_v10 = vld [vmem:[%s7690_s24 + $0x54] sm:$0xff]  }
 0x13b   : > { %v5768_v6 = vpack.c.bf16 %v1932_v15, %v1931_v35  ;;  %v9433_v20 = vmax.f32 %v4129_v61, 0.0  ;;  %v1870_v12 = vmul.f32 %v9312_v43, %v6327_v54  ;;  %v4035_v53 = vunpack.c.l.bf16 %v6103_v14 }
 0x13c   : > { %v9953_v59 = vmax.f32 %v9425_v56, 0.0  ;;  %v1901_v5 = vadd.f32 %v9339_v25, %v1869_v4  ;;  %7167 = vmatmul.mubr.bf16.gmra.mrb[20].mxu0 %v4391_v47  ;;  %v4296_v35 = vrot.slane %v9950_v49, 1  ;;  %v4036_v15 = vunpack.c.h.bf16 %v6103_v14  ;;  %v7593_v14 = vld [vmem:[%s9843_s1 + $0x130] sm:$0xff]  }
 0x13d   : > { %6962 = vmatprep.mubr.msk.bf16.mxu1 %vm8454_vm6, %v5768_v6  ;;  %v4297_v7 = vrot.slane %v9433_v20, 1  ;;  %v4037_v61 = vunpack.c.l.bf16 %v6105_v42  ;;  %v1902_v54 = vadd.f32 %v9339_v25, %v1870_v12  ;;  %v4083_v17 = vmul.f32 %v9312_v43, %v4035_v53  ;;  %7239 = vmatpush3.bf16.msra.mxu1 %v7592_v44 }
 0x13e   : > { %v4299_v23 = vrot.slane %v9953_v59, 1  ;;  %v1933_v4 = vmax.f32 %v1901_v5, 0.0  ;;  %v4084_v6 = vmul.f32 %v9312_v43, %v4036_v15  ;;  %v1839_v3 = vunpack.c.l.bf16 %v5711_v10  ;;  %7232 = vmatprep.subr.bf16.mxu1 %v7593_v14  ;;  %v6108_v59 = vld [vmem:[%s7690_s24 + $0xc8] sm:$0x1] }
 0x13f   : > { %v4298_v47 = vsel %vm669_vm0, %v4296_v35, %v4297_v7  ;;  %v4085_v49 = vmul.f32 %v9312_v43, %v4037_v61  ;;  %v1934_v12 = vmax.f32 %v1902_v54, 0.0  ;;  %v4131_v5 = vadd.f32 %v9339_v25, %v4083_v17 }
 0x140   : > { %v4300_v42 = vsel %vm669_vm0, %v4297_v7, %v4299_v23  ;;  %v1840_v44 = vunpack.c.h.bf16 %v5711_v10  ;;  %v9458_v35 = vadd.f32 %v9339_v25, %v4084_v6  ;;  %v1871_v61 = vmul.f32 %v9312_v43, %v1839_v3  ;;  %v7594_v3 = vld [vmem:[%s9843_s1 + $0x138] sm:$0xff]  }
 0x141   : > { %v4392_v53 = vpack.c.bf16 %v4300_v42, %v4298_v47  ;;  %v9461_v15 = vadd.f32 %v9339_v25, %v4085_v49  ;;  %v5771_v55 = vpack.c.bf16 %v1934_v12, %v1933_v4  ;;  %v4179_v38 = vmax.f32 %v4131_v5, 0.0  ;;  %7240 = vmatpush3.bf16.msra.mxu1 %v7593_v14  ;;  %v6534_v47 = vld [vmem:[%s7690_s24 + $0x60] sm:$0xff]  }
 0x142   : > { %v1872_v1 = vmul.f32 %v9312_v43, %v1840_v44  ;;  %v6442_v7 = vunpack.c.l.bf16 %v6562_v29  ;;  %v9957_v17 = vmax.f32 %v9458_v35, 0.0  ;;  %v1903_v23 = vadd.f32 %v9339_v25, %v1871_v61  ;;  %7233 = vmatprep.subr.bf16.mxu1 %v7594_v3 }
 0x143   : > { %10053 = vst [vmem:[#allocation10_spill] sm:$0xff] %v9461_v15  ;;  %7170 = vmatprep.mubr.bf16.mxu0 %v4392_v53  ;;  %v9958_v10 = vmax.f32 %v9461_v15, 0.0  ;;  %v6443_v54 = vunpack.c.h.bf16 %v6562_v29  ;;  %6963 = vmatmul.mubr.msk.bf16.gmra.mrb[8].mxu1 %vm8454_vm6, %v5771_v55  ;;  %v4301_v49 = vrot.slane %v4179_v38, 1  ;;  %v4040_v6 = vunpack.c.l.bf16 %v6108_v59  ;;  %v5715_v55 = vld [vmem:[%s7690_s24 + $0x6c] sm:$0xff]  }
 0x144   : > { %v1904_v4 = vadd.f32 %v9339_v25, %v1872_v1  ;;  %v4086_v14 = vmul.f32 %v9312_v43, %v6442_v7  ;;  %v4302_v29 = vrot.slane %v9957_v17, 1  ;;  %v1935_v12 = vmax.f32 %v1903_v23, 0.0 }
 0x145   : > { %v4304_v42 = vrot.slane %v9958_v10, 1  ;;  %v4087_v5 = vmul.f32 %v9312_v43, %v6443_v54  ;;  %v4088_v53 = vmul.f32 %v9312_v43, %v4040_v6  ;;  %v6330_v1 = vunpack.c.l.bf16 %v6534_v47  ;;  %7241 = vmatpush3.bf16.msra.mxu1 %v7594_v3  ;;  %v6136_v10 = vld [vmem:[%s7690_s24 + $0x18] sm:$0xe] }
 0x146   : > { %v1936_v44 = vmax.f32 %v1904_v4, 0.0  ;;  %v9484_v38 = vadd.f32 %v9339_v25, %v4086_v14  ;;  %v4303_v59 = vsel %vm669_vm0, %v4301_v49, %v4302_v29  ;;  %v6331_v17 = vunpack.c.h.bf16 %v6534_v47 }
 0x147   : > { %v4305_v61 = vsel %vm669_vm0, %v4302_v29, %v4304_v42  ;;  %v4135_v7 = vadd.f32 %v9339_v25, %v4087_v5  ;;  %v9492_v54 = vadd.f32 %v9339_v25, %v4088_v53  ;;  %v1873_v14 = vmul.f32 %v9312_v43, %v6330_v1 }
 0x148   : > { %v4393_v23 = vpack.c.bf16 %v4305_v61, %v4303_v59  ;;  %v5774_v26 = vpack.c.bf16 %v1936_v44, %v1935_v12  ;;  %v9960_v4 = vmax.f32 %v9484_v38, 0.0  ;;  %v1874_v3 = vmul.f32 %v9312_v43, %v6331_v17 }
 0x149   : > { %10054 = vst [vmem:[#allocation2_spill] sm:$0xff] %v9492_v54  ;;  %v9495_v6 = vmax.f32 %v4135_v7, 0.0  ;;  %v1843_v49 = vunpack.c.l.bf16 %v5715_v55  ;;  %v9961_v47 = vmax.f32 %v9492_v54, 0.0  ;;  %v1844_v42 = vunpack.c.h.bf16 %v5715_v55  ;;  %v5719_v54 = vld [vmem:[%s7690_s24 + $0x84] sm:$0xff]  }
 0x14a   : > { %7171 = vmatmul.mubr.bf16.gmra.mrb[24].mxu0 %v4393_v23  ;;  %6966 = vmatprep.mubr.msk.bf16.mxu1 %vm8454_vm6, %v5774_v26  ;;  %v4306_v29 = vrot.slane %v9960_v4, 1  ;;  %v4670_v12 = vunpack.c.l.bf16 %v6136_v10  ;;  %v1905_v44 = vadd.f32 %v9339_v25, %v1873_v14  ;;  %v1906_v17 = vadd.f32 %v9339_v25, %v1874_v3  ;;  %v6137_v14 = vld [vmem:[%s7690_s24 + $0x24] sm:$0xe] }
 0x14b   : > { %v4307_v5 = vrot.slane %v9495_v6, 1  ;;  %v1875_v53 = vmul.f32 %v9312_v43, %v1843_v49  ;;  %v4309_v26 = vrot.slane %v9961_v47, 1  ;;  %v1876_v1 = vmul.f32 %v9312_v43, %v1844_v42 }
 0x14c   : > { %v4686_v59 = vmul.f32 %v9312_v43, %v4670_v12  ;;  %v4751_v55 = vrot.slane %v8673_v2, 2  ;;  %v1937_v61 = vmax.f32 %v1905_v44, 0.0  ;;  %v1938_v7 = vmax.f32 %v1906_v17, 0.0  ;;  %v6138_v12 = vld [vmem:[%s7690_s24 + $0x30] sm:$0xe] }
 0x14d   : > { %v4308_v10 = vsel %vm669_vm0, %v4306_v29, %v4307_v5  ;;  %v1907_v23 = vadd.f32 %v9339_v25, %v1875_v53  ;;  %v4310_v3 = vsel %vm669_vm0, %v4307_v5, %v4309_v26  ;;  %v1908_v49 = vadd.f32 %v9339_v25, %v1876_v1 }
 0x14e   : > { %v4702_v4 = vadd.f32 %v9339_v25, %v4686_v59  ;;  %v10055_v47 = vmax.f32 %v9022_v22, 0.0  ;;  %v10056_v2 = vmax.f32 %v8422_v57, 0.0  ;;  %v4394_v44 = vpack.c.bf16 %v4310_v3, %v4308_v10  ;;  %v6139_v59 = vld [vmem:[%s7690_s24 + $0x3c] sm:$0xe] }
 0x14f   : > { %v5777_v17 = vpack.c.bf16 %v1938_v7, %v1937_v61  ;;  %v1939_v53 = vmax.f32 %v1907_v23, 0.0  ;;  %v1940_v34 = vmax.f32 %v1908_v49, 0.0  ;;  %v4671_v26 = vunpack.c.l.bf16 %v6137_v14 }
 0x150   : > { %v4753_v42 = vrot.slane %v10055_v47, 2  ;;  %v9525_v29 = vrot.slane %v10056_v2, 1  ;;  %v4718_v15 = vmax.f32 %v4702_v4, 0.0  ;;  %7174 = vmatprep.mubr.bf16.mxu0 %v4394_v44  ;;  %v4759_v22 = vsel %vm1375_vm1, %v9077_v16, %v9081_v9 }
 0x151   : > { %6967 = vmatmul.mubr.msk.bf16.gmra.mrb[12].mxu1 %vm8454_vm6, %v5777_v17  ;;  %v1847_v47 = vunpack.c.l.bf16 %v5719_v54  ;;  %v1848_v57 = vunpack.c.h.bf16 %v5719_v54  ;;  %v4672_v1 = vunpack.c.l.bf16 %v6138_v12  ;;  %v5780_v10 = vpack.c.bf16 %v1940_v34, %v1939_v53  ;;  %v5723_v17 = vld [vmem:[%s7690_s24 + $0x9c] sm:$0xff]  }
 0x152   : > { %v4754_v5 = vsel %vm1375_vm1, %v4751_v55, %v4753_v42  ;;  %7175 = vmatmul.mubr.bf16.gmra.mrb[28].mxu0 %v9995_v19  ;;  %v4750_v61 = vrot.slane %v4718_v15, 2  ;;  %v4687_v4 = vmul.f32 %v9312_v43, %v4671_v26  ;;  %v4761_v7 = vrot.slane %v8711_v37, 2 }
 0x153   : > { %v1879_v23 = vmul.f32 %v9312_v43, %v1847_v47  ;;  %v1880_v14 = vmul.f32 %v9312_v43, %v1848_v57  ;;  %v4688_v3 = vmul.f32 %v9312_v43, %v4672_v1  ;;  %v10057_v9 = vmax.f32 %v9094_v51, 0.0  ;;  %6970 = vmatprep.mubr.msk.bf16.mxu1 %vm8454_vm6, %v5780_v10  ;;  %v6140_v57 = vld [vmem:[%s7690_s24 + $0x48] sm:$0xe] }
 0x154   : > { %v4752_v34 = vsel %vm1375_vm1, %v4750_v61, %v4751_v55  ;;  %v10058_v15 = vmax.f32 %v9282_v24, 0.0  ;;  %v4703_v37 = vadd.f32 %v9339_v25, %v4687_v4  ;;  %v4673_v42 = vunpack.c.l.bf16 %v6139_v59 }
 0x155   : > { %v4763_v54 = vrot.slane %v10057_v9, 2  ;;  %v6177_v12 = vpack.c.bf16 %v4754_v5, %v4752_v34  ;;  %v1911_v2 = vadd.f32 %v9339_v25, %v1879_v23  ;;  %v1912_v44 = vadd.f32 %v9339_v25, %v1880_v14 }
 0x156   : > { %v5783_v49 = vpack.c.bf16 %v9296_v58, %v10058_v15  ;;  %v4704_v51 = vadd.f32 %v9339_v25, %v4688_v3  ;;  %v4719_v53 = vmax.f32 %v4703_v37, 0.0  ;;  %v4689_v55 = vmul.f32 %v9312_v43, %v4673_v42 }
 0x157   : > { %v4764_v26 = vsel %vm1375_vm1, %v4761_v7, %v4763_v54  ;;  %v10059_v24 = vmax.f32 %v9127_v11, 0.0  ;;  %7194 = vmatprep.mubr.msk.bf16.mxu0 %vm8114_vm4, %v6177_v12  ;;  %v1943_v5 = vmax.f32 %v1911_v2, 0.0  ;;  %v1944_v1 = vmax.f32 %v1912_v44, 0.0  ;;  %v6141_v12 = vld [vmem:[%s7690_s24 + $0x54] sm:$0xe] }
 0x158   : > { %v4720_v59 = vmax.f32 %v4704_v51, 0.0  ;;  %v10060_v10 = vmax.f32 %v9130_v46, 0.0  ;;  %v4755_v4 = vrot.slane %v4719_v53, 2  ;;  %v4705_v23 = vadd.f32 %v9339_v25, %v4689_v55 }
 0x159   : > { %v4766_v47 = vrot.slane %v10059_v24, 2  ;;  %v1851_v14 = vunpack.c.l.bf16 %v5723_v17  ;;  %v1852_v3 = vunpack.c.h.bf16 %v5723_v17  ;;  %6971 = vmatmul.mubr.msk.bf16.gmra.mrb[16].mxu1 %vm8454_vm6, %v5783_v49  ;;  %v5786_v11 = vpack.c.bf16 %v1944_v1, %v1943_v5  ;;  %v5727_v1 = vld [vmem:[%s7690_s24 + $0xb4] sm:$0xff]  }
 0x15a   : > { %v4768_v61 = vrot.slane %v10060_v10, 2  ;;  %v4760_v9 = vrot.slane %v4720_v59, 2  ;;  %v4674_v34 = vunpack.c.l.bf16 %v6140_v57  ;;  %v4757_v15 = vsel %vm1375_vm1, %v4755_v4, %v9077_v16 }
 0x15b   : > { %v4721_v37 = vmax.f32 %v4705_v23, 0.0  ;;  %v1883_v46 = vmul.f32 %v9312_v43, %v1851_v14  ;;  %v1884_v42 = vmul.f32 %v9312_v43, %v1852_v3  ;;  %v6180_v2 = vpack.c.bf16 %v4759_v22, %v4757_v15  ;;  %6974 = vmatprep.mubr.msk.bf16.mxu1 %vm8454_vm6, %v5786_v11 }
 0x15c   : > { %v4769_v54 = vsel %vm1375_vm1, %v4766_v47, %v4768_v61  ;;  %v4762_v49 = vsel %vm1375_vm1, %v4760_v9, %v4761_v7  ;;  %v4690_v44 = vmul.f32 %v9312_v43, %v4674_v34  ;;  %v4771_v51 = vrot.slane %v8752_v60, 2 }
 0x15d   : > { %v6183_v17 = vpack.c.bf16 %v4764_v26, %v4762_v49  ;;  %v4765_v16 = vrot.slane %v4721_v37, 2  ;;  %v1915_v53 = vadd.f32 %v9339_v25, %v1883_v46  ;;  %v1916_v55 = vadd.f32 %v9339_v25, %v1884_v42  ;;  %7195 = vmatmul.mubr.msk.bf16.vlgmr.msra.gmra.mrb[0].mxu0 %vm8114_vm4, %v6180_v2 }
 0x15e   : > { %v10061_v22 = vmax.f32 %v9353_v8, 0.0  ;;  %v4706_v7 = vadd.f32 %v9339_v25, %v4690_v44  ;;  %v10062_v57 = vmax.f32 %v9163_v45, 0.0  ;;  %v4675_v60 = vunpack.c.l.bf16 %v6141_v12  ;;  %v6142_v8 = vld [vmem:[%s7690_s24 + $0x60] sm:$0xe] }
 0x15f   : > { %7198 = vmatprep.mubr.msk.bf16.mxu0 %vm8114_vm4, %v6183_v17  ;;  %v4767_v26 = vsel %vm1375_vm1, %v4765_v16, %v4766_v47  ;;  %v1947_v59 = vmax.f32 %v1915_v53, 0.0  ;;  %v1948_v10 = vmax.f32 %v1916_v55, 0.0  ;;  %v10063_v61 = vmax.f32 %v9192_v40, 0.0  ;;  %v6143_v17 = vld [vmem:[%s7690_s24 + $0x6c] sm:$0xe] }
 0x160   : > { %v5789_v24 = vpack.c.bf16 %v9364_v41, %v10061_v22  ;;  %v4773_v5 = vrot.slane %v10062_v57, 2  ;;  %v6186_v23 = vpack.c.bf16 %v4769_v54, %v4767_v26  ;;  %v4722_v14 = vmax.f32 %v4706_v7, 0.0  ;;  %v9615_v22 = vld [vmem:[%s7690_s24 + $0x6c] ss:$24 sps:$4 sm:$0xff]  }
 0x161   : > { %v4776_v4 = vrot.slane %v10063_v61, 2  ;;  %v4691_v45 = vmul.f32 %v9312_v43, %v4675_v60  ;;  %v5792_v11 = vpack.c.bf16 %v1948_v10, %v1947_v59  ;;  %v10064_v9 = vmax.f32 %v9195_v36, 0.0 }
 0x162   : > { %v4774_v3 = vsel %vm1375_vm1, %v4771_v51, %v4773_v5  ;;  %v1855_v15 = vunpack.c.l.bf16 %v5727_v1  ;;  %v1856_v37 = vunpack.c.h.bf16 %v5727_v1  ;;  %6975 = vmatmul.mubr.msk.bf16.gmra.mrb[20].mxu1 %vm8454_vm6, %v5789_v24  ;;  %v4770_v40 = vrot.slane %v4722_v14, 2 }
 0x163   : > { %v4778_v34 = vrot.slane %v10064_v9, 2  ;;  %v4707_v47 = vadd.f32 %v9339_v25, %v4691_v45  ;;  %v4676_v54 = vunpack.c.l.bf16 %v6142_v8  ;;  %v4781_v46 = vrot.slane %v8787_v0, 2  ;;  %6978 = vmatprep.mubr.msk.bf16.mxu1 %vm8454_vm6, %v5792_v11  ;;  %v6144_v8 = vld [vmem:[%s7690_s24 + $0x78] sm:$0xe] }
 0x164   : > { %v10065_v42 = vmax.f32 %v9419_v63, 0.0  ;;  %v1887_v12 = vmul.f32 %v9312_v43, %v1855_v15  ;;  %v1888_v2 = vmul.f32 %v9312_v43, %v1856_v37  ;;  %v10066_v49 = vmax.f32 %v9217_v27, 0.0  ;;  %v10070_v37 = vld [vmem:[#allocation20_spill] sm:$0xff] }
 0x165   : > { %v4772_v16 = vsel %vm1375_vm1, %v4770_v40, %v4771_v51  ;;  %v4723_v53 = vmax.f32 %v4707_v47, 0.0  ;;  %v4779_v0 = vsel %vm1375_vm1, %v4776_v4, %v4778_v34  ;;  %v4692_v55 = vmul.f32 %v9312_v43, %v4676_v54  ;;  %7199 = vmatmul.mubr.msk.bf16.gmra.mrb[4].mxu0 %vm8114_vm4, %v6186_v23 }
 0x166   : > { %v5795_v36 = vpack.c.bf16 %v9433_v20, %v10065_v42  ;;  %v4783_v44 = vrot.slane %v10066_v49, 2  ;;  %v6189_v63 = vpack.c.bf16 %v4774_v3, %v4772_v16  ;;  %v1919_v24 = vadd.f32 %v9339_v25, %v1887_v12 }
 0x167   : > { %v1920_v7 = vadd.f32 %v9339_v25, %v1888_v2  ;;  %v10067_v57 = vmax.f32 %v9484_v38, 0.0  ;;  %v4775_v51 = vrot.slane %v4723_v53, 2  ;;  %v4708_v5 = vadd.f32 %v9339_v25, %v4692_v55  ;;  %v6145_v53 = vld [vmem:[%s7690_s24 + $0x84] sm:$0xe] }
 0x168   : > { %v4784_v60 = vsel %vm1375_vm1, %v4781_v46, %v4783_v44  ;;  %v4677_v1 = vunpack.c.l.bf16 %v6143_v17  ;;  %7202 = vmatprep.mubr.msk.bf16.mxu0 %vm8114_vm4, %v6189_v63  ;;  %v1951_v26 = vmax.f32 %v1919_v24, 0.0  ;;  %v10068_v10 = vmax.f32 %v9255_v32, 0.0  ;;  %v10074_v17 = vld [vmem:[#allocation6_spill] sm:$0xff] }
 0x169   : > { %v5801_v27 = vpack.c.bf16 %v9495_v6, %v10067_v57  ;;  %v1952_v59 = vmax.f32 %v1920_v7, 0.0  ;;  %v2333_v38 = vunpack.c.l.bf16 %v9615_v22  ;;  %v4777_v14 = vsel %vm1375_vm1, %v4775_v51, %v4776_v4 }
 0x16a   : > { %v4786_v61 = vrot.slane %v10068_v10, 2  ;;  %v4724_v23 = vmax.f32 %v4708_v5, 0.0  ;;  %v4693_v3 = vmul.f32 %v9312_v43, %v4677_v1  ;;  %v10069_v45 = vmax.f32 %v9259_v39, 0.0  ;;  %6979 = vmatmul.mubr.msk.bf16.gmra.mrb[24].mxu1 %vm8454_vm6, %v5795_v36 }
 0x16b   : > { %v6192_v9 = vpack.c.bf16 %v4779_v0, %v4777_v14  ;;  %v5798_v34 = vpack.c.bf16 %v1952_v59, %v1951_v26  ;;  %v2381_v15 = vmul.f32 %v9312_v43, %v2333_v38  ;;  %v10071_v40 = vmax.f32 %v10070_v37, 0.0 }
 0x16c   : > { %v4788_v11 = vrot.slane %v10069_v45, 2  ;;  %v4780_v47 = vrot.slane %v4724_v23, 2  ;;  %v4709_v4 = vadd.f32 %v9339_v25, %v4693_v3  ;;  %v10072_v54 = vmax.f32 %v8410_v62, 0.0  ;;  %v6146_v45 = vld [vmem:[%s7690_s24 + $0x90] sm:$0xe] }
 0x16d   : > { %v2590_v32 = vrot.slane %v10071_v40, 1  ;;  %v4678_v12 = vunpack.c.l.bf16 %v6144_v8  ;;  %6982 = vmatprep.mubr.msk.bf16.mxu1 %vm8454_vm6, %v5798_v34  ;;  %v2429_v39 = vadd.f32 %v9339_v25, %v2381_v15  ;;  %v4791_v2 = vrot.slane %v9296_v58, 2  ;;  %7203 = vmatmul.mubr.msk.bf16.gmra.mrb[8].mxu0 %vm8114_vm4, %v6192_v9  ;;  %v10078_v15 = vld [vmem:[#allocation9_spill] sm:$0xff] }
 0x16e   : > { %v2592_v42 = vrot.slane %v10072_v54, 1  ;;  %v10073_v49 = vmax.f32 %v9288_v33, 0.0  ;;  %v10075_v16 = vunpack.c.l.bf16 %v10074_v17  ;;  %v4782_v0 = vsel %vm1375_vm1, %v4780_v47, %v4781_v46  ;;  %v10079_v47 = vld [vmem:[#allocation21_spill] sm:$0xff]  ;;  %v10081_v54 = vld [vmem:[#allocation22_spill] sm:$0xff] }
 0x16f   : > { %v4725_v62 = vmax.f32 %v4709_v4, 0.0  ;;  %v4789_v55 = vsel %vm1375_vm1, %v4786_v61, %v4788_v11  ;;  %v4694_v63 = vmul.f32 %v9312_v43, %v4678_v12  ;;  %v6195_v24 = vpack.c.bf16 %v4784_v60, %v4782_v0 }
 0x170   : > { %v4793_v44 = vrot.slane %v10073_v49, 2  ;;  %v2384_v36 = vmul.f32 %v9312_v43, %v10075_v16  ;;  %v2477_v7 = vmax.f32 %v2429_v39, 0.0  ;;  %v2593_v57 = vsel %vm669_vm0, %v2590_v32, %v2592_v42 }
 0x171   : > { %v4785_v58 = vrot.slane %v4725_v62, 2  ;;  %v4710_v51 = vadd.f32 %v9339_v25, %v4694_v63  ;;  %v4679_v5 = vunpack.c.l.bf16 %v6145_v53  ;;  %7206 = vmatprep.mubr.msk.bf16.mxu0 %vm8114_vm4, %v6195_v24  ;;  %v10076_v26 = vmax.f32 %v9320_v13, 0.0  ;;  %v7595_v63 = vld [vmem:[%s7690_s24 + $0x90] sm:$0xff]  }
 0x172   : > { %v2432_v33 = vadd.f32 %v9339_v25, %v2384_v36  ;;  %v4794_v46 = vsel %vm1375_vm1, %v4791_v2, %v4793_v44  ;;  %v2589_v1 = vrot.slane %v2477_v7, 1  ;;  %v10077_v10 = vmax.f32 %v9324_v31, 0.0  ;;  %6983 = vmatmul.mubr.msk.bf16.gmra.mrb[28].mxu1 %vm8454_vm6, %v5801_v27  ;;  %v6147_v44 = vld [vmem:[%s7690_s24 + $0x9c] sm:$0xe] }
 0x173   : > { %v4796_v59 = vrot.slane %v10076_v26, 2  ;;  %v4787_v8 = vsel %vm1375_vm1, %v4785_v58, %v4786_v61  ;;  %v4726_v14 = vmax.f32 %v4710_v51, 0.0  ;;  %v4695_v23 = vmul.f32 %v9312_v43, %v4679_v5  ;;  %v9707_v5 = vld [vmem:[%s7690_s24 + $0x9c] ss:$24 sps:$4 sm:$0xff]  }
 0x174   : > { %v2480_v60 = vmax.f32 %v2432_v33, 0.0  ;;  %v4798_v38 = vrot.slane %v10077_v10, 2  ;;  %v2339_v3 = vunpack.c.h.bf16 %v9615_v22  ;;  %v6198_v11 = vpack.c.bf16 %v4789_v55, %v4787_v8 }
 0x175   : > { %v2591_v9 = vsel %vm669_vm0, %v2589_v1, %v2590_v32  ;;  %v2598_v13 = vsel %vm669_vm0, %v10078_v15, %v9525_v29  ;;  %v4790_v61 = vrot.slane %v4726_v14, 2  ;;  %v4711_v37 = vadd.f32 %v9339_v25, %v4695_v23 }
 0x176   : > { %v2594_v34 = vrot.slane %v2480_v60, 1  ;;  %v2701_v31 = vpack.c.bf16 %v2593_v57, %v2591_v9  ;;  %v2387_v40 = vmul.f32 %v9312_v43, %v2339_v3  ;;  %v10080_v32 = vmax.f32 %v10079_v47, 0.0  ;;  %7207 = vmatmul.mubr.msk.bf16.gmra.mrb[12].mxu0 %vm8114_vm4, %v6198_v11  ;;  %v6148_v3 = vld [vmem:[%s7690_s24 + $0xa8] sm:$0xe] }
 0x177   : > { %v10082_v42 = vmax.f32 %v10081_v54, 0.0  ;;  %v4680_v29 = vunpack.c.l.bf16 %v6146_v45  ;;  %v4792_v28 = vsel %vm1375_vm1, %v4790_v61, %v4791_v2  ;;  %v4727_v27 = vmax.f32 %v4711_v37, 0.0  ;;  %v10088_v37 = vld [vmem:[#allocation23_spill] sm:$0xff] }
 0x178   : > { %v2596_v22 = vsel %vm669_vm0, %v2594_v34, %v10078_v15  ;;  %v2600_v4 = vrot.slane %v10080_v32, 1  ;;  %7018 = vmatprep.mubr.bf16.mxu1 %v2701_v31  ;;  %v4799_v39 = vsel %vm1375_vm1, %v4796_v59, %v4798_v38  ;;  %v2435_v49 = vadd.f32 %v9339_v25, %v2387_v40 }
 0x179   : > { %v2602_v12 = vrot.slane %v10082_v42, 1  ;;  %v6201_v17 = vpack.c.bf16 %v4794_v46, %v4792_v28  ;;  %v2702_v16 = vpack.c.bf16 %v2598_v13, %v2596_v22  ;;  %v4696_v36 = vmul.f32 %v9312_v43, %v4680_v29  ;;  %v10087_v13 = vld [vmem:[#allocation13_spill] sm:$0xff]  ;;  %v10090_v42 = vld [vmem:[#allocation24_spill] sm:$0xff] }
 0x17a   : > { %v4801_v53 = vrot.slane %v9364_v41, 2  ;;  %v4795_v0 = vrot.slane %v4727_v27, 2  ;;  %v2483_v62 = vmax.f32 %v2435_v49, 0.0  ;;  %v10083_v2 = vmax.f32 %v9359_v50, 0.0 }
 0x17b   : > { %v6370_v24 = vunpack.c.l.bf16 %v7595_v63  ;;  %7210 = vmatprep.mubr.msk.bf16.mxu0 %vm8114_vm4, %v6201_v17  ;;  %v2603_v7 = vsel %vm669_vm0, %v2600_v4, %v2602_v12  ;;  %v4712_v57 = vadd.f32 %v9339_v25, %v4696_v36  ;;  %v4681_v33 = vunpack.c.l.bf16 %v6147_v44  ;;  %7019 = vmatmul.mubr.bf16.vlgmr.msra.gmra.mrb[16].mxu1 %v2702_v16  ;;  %v7596_v36 = vld [vmem:[%s7690_s24 + $0xa8] sm:$0xff]  }
 0x17c   : > { %v4803_v55 = vrot.slane %v10083_v2, 2  ;;  %v4797_v41 = vsel %vm1375_vm1, %v4795_v0, %v4796_v59  ;;  %v2599_v58 = vrot.slane %v2483_v62, 1  ;;  %v10084_v46 = vmax.f32 %v8503_v21, 0.0 }
 0x17d   : > { %v2390_v51 = vmul.f32 %v9312_v43, %v6370_v24  ;;  %v6204_v1 = vpack.c.bf16 %v4799_v39, %v4797_v41  ;;  %v4728_v60 = vmax.f32 %v4712_v57, 0.0  ;;  %v4697_v10 = vmul.f32 %v9312_v43, %v4681_v33 }
 0x17e   : > { %v2607_v50 = vrot.slane %v10084_v46, 1  ;;  %v4804_v26 = vsel %vm1375_vm1, %v4801_v53, %v4803_v55  ;;  %v2601_v38 = vsel %vm669_vm0, %v2599_v58, %v2600_v4  ;;  %v10085_v59 = vmax.f32 %v9392_v30, 0.0 }
 0x17f   : > { %v2438_v8 = vadd.f32 %v9339_v25, %v2390_v51  ;;  %v10086_v23 = vmax.f32 %v9396_v48, 0.0  ;;  %v2703_v45 = vpack.c.bf16 %v2603_v7, %v2601_v38  ;;  %v4800_v11 = vrot.slane %v4728_v60, 2  ;;  %7211 = vmatmul.mubr.msk.bf16.gmra.mrb[16].mxu0 %vm8114_vm4, %v6204_v1  ;;  %v10095_v1 = vld [vmem:[#allocation17_spill] sm:$0xff] }
 0x180   : > { %v4806_v14 = vrot.slane %v10085_v59, 2  ;;  %v4713_v9 = vadd.f32 %v9339_v25, %v4697_v10  ;;  %v2345_v34 = vunpack.c.l.bf16 %v9707_v5  ;;  %v2608_v31 = vsel %vm669_vm0, %v10087_v13, %v2607_v50  ;;  %v6150_v59 = vld [vmem:[%s7690_s24 + $0xc0] sm:$0xe] }
 0x181   : > { %v4808_v21 = vrot.slane %v10086_v23, 2  ;;  %v2486_v15 = vmax.f32 %v2438_v8, 0.0  ;;  %v10089_v40 = vmax.f32 %v10088_v37, 0.0  ;;  %7022 = vmatprep.mubr.bf16.mxu1 %v2703_v45  ;;  %v4802_v48 = vsel %vm1375_vm1, %v4800_v11, %v4801_v53 }
 0x182   : > { %v4729_v22 = vmax.f32 %v4713_v9, 0.0  ;;  %v2393_v47 = vmul.f32 %v9312_v43, %v2345_v34  ;;  %v4682_v32 = vunpack.c.l.bf16 %v6148_v3  ;;  %v6207_v4 = vpack.c.bf16 %v4804_v26, %v4802_v48  ;;  %v10096_v26 = vld [vmem:[#allocation10_spill] sm:$0xff]  ;;  %v10098_v3 = vld [vmem:[#allocation25_spill] sm:$0xff] }
 0x183   : > { %v4809_v61 = vsel %vm1375_vm1, %v4806_v14, %v4808_v21  ;;  %v2610_v30 = vrot.slane %v10089_v40, 1  ;;  %v2604_v54 = vrot.slane %v2486_v15, 1  ;;  %v10091_v12 = vmax.f32 %v10090_v42, 0.0 }
 0x184   : > { %v4811_v28 = vrot.slane %v9433_v20, 2  ;;  %v4805_v27 = vrot.slane %v4729_v22, 2  ;;  %v2441_v39 = vadd.f32 %v9339_v25, %v2393_v47  ;;  %v4698_v49 = vmul.f32 %v9312_v43, %v4682_v32  ;;  %7214 = vmatprep.mubr.msk.bf16.mxu0 %vm8114_vm4, %v6207_v4  ;;  %v6149_v20 = vld [vmem:[%s7690_s24 + $0xb4] sm:$0xe] }
 0x185   : > { %v2612_v29 = vrot.slane %v10091_v12, 1  ;;  %v10092_v44 = vmax.f32 %v9425_v56, 0.0  ;;  %v2606_v16 = vsel %vm669_vm0, %v2604_v54, %v10087_v13  ;;  %v6374_v53 = vunpack.c.l.bf16 %v7596_v36  ;;  %v10102_v54 = vld [vmem:[#allocation2_spill] sm:$0xff] }
 0x186   : > { %v10093_v0 = vmax.f32 %v8553_v18, 0.0  ;;  %v2704_v2 = vpack.c.bf16 %v2608_v31, %v2606_v16  ;;  %v4807_v55 = vsel %vm1375_vm1, %v4805_v27, %v4806_v14  ;;  %v2489_v63 = vmax.f32 %v2441_v39, 0.0  ;;  %v10100_v31 = vld [vmem:[#allocation26_spill] sm:$0xff] }
 0x187   : > { %v4813_v17 = vrot.slane %v10092_v44, 2  ;;  %v4714_v56 = vadd.f32 %v9339_v25, %v4698_v49  ;;  %v6210_v24 = vpack.c.bf16 %v4809_v61, %v4807_v55  ;;  %v2613_v7 = vsel %vm669_vm0, %v2610_v30, %v2612_v29  ;;  %v7597_v29 = vld [vmem:[%s7690_s24 + $0xc0] sm:$0xff]   ;;  %s6255_s24 = sshll.u32 %s10108_s22, 7 }
 0x188   : > { %v2617_v62 = vrot.slane %v10093_v0, 1  ;;  %v2396_v33 = vmul.f32 %v9312_v43, %v6374_v53  ;;  %7023 = vmatmul.mubr.bf16.gmra.mrb[20].mxu1 %v2704_v2  ;;  %v2609_v41 = vrot.slane %v2489_v63, 1  ;;  %v4683_v18 = vunpack.c.l.bf16 %v6149_v20  ;;  %v10104_v20 = vld [vmem:[#allocation28_spill] sm:$0xff]  ;;  %s9810_s12 = scalar_lea.vmem %s9846_s4, %s6255_s24 }
 0x189   : > { %v4814_v57 = vsel %vm1375_vm1, %v4811_v28, %v4813_v17  ;;  %v4730_v58 = vmax.f32 %v4714_v56, 0.0  ;;  %v10094_v51 = vmax.f32 %v9458_v35, 0.0  ;;  %v10097_v10 = vmax.f32 %v10096_v26, 0.0  ;;  %7215 = vmatmul.mubr.msk.bf16.gmra.mrb[20].mxu0 %vm8114_vm4, %v6210_v24  ;;  %v10105_v24 = vld [vmem:[#allocation27_spill] sm:$0xff] }
 0x18a   : > { %v2444_v50 = vadd.f32 %v9339_v25, %v2396_v33  ;;  %v2618_v60 = vsel %vm669_vm0, %v10095_v1, %v2617_v62  ;;  %v2351_v8 = vunpack.c.h.bf16 %v9707_v5  ;;  %v2611_v14 = vsel %vm669_vm0, %v2609_v41, %v2610_v30 }
 0x18b   : > { %v4816_v46 = vrot.slane %v10094_v51, 2  ;;  %v4818_v38 = vrot.slane %v10097_v10, 2  ;;  %v4810_v23 = vrot.slane %v4730_v58, 2  ;;  %v4699_v21 = vmul.f32 %v9312_v43, %v4683_v18 }
 0x18c   : > { %v10099_v45 = vmax.f32 %v10098_v3, 0.0  ;;  %v2705_v11 = vpack.c.bf16 %v2613_v7, %v2611_v14  ;;  %v2492_v9 = vmax.f32 %v2444_v50, 0.0  ;;  %v2399_v15 = vmul.f32 %v9312_v43, %v2351_v8 }
 0x18d   : > { %v4819_v34 = vsel %vm1375_vm1, %v4816_v46, %v4818_v38  ;;  %v4812_v5 = vsel %vm1375_vm1, %v4810_v23, %v4811_v28  ;;  %v4715_v13 = vadd.f32 %v9339_v25, %v4699_v21  ;;  %v10101_v61 = vmax.f32 %v10100_v31, 0.0 }
 0x18e   : > { %v2620_v35 = vrot.slane %v10099_v45, 1  ;;  %v4684_v40 = vunpack.c.l.bf16 %v6150_v59  ;;  %7026 = vmatprep.mubr.bf16.mxu1 %v2705_v11  ;;  %v6213_v30 = vpack.c.bf16 %v4814_v57, %v4812_v5  ;;  %v2614_v48 = vrot.slane %v2492_v9, 1 }
 0x18f   : > { %v2622_v37 = vrot.slane %v10101_v61, 1  ;;  %v2447_v22 = vadd.f32 %v9339_v25, %v2399_v15  ;;  %v4821_v47 = vrot.slane %v9495_v6, 2  ;;  %v4731_v32 = vmax.f32 %v4715_v13, 0.0 }
 0x190   : > { %v4700_v4 = vmul.f32 %v9312_v43, %v4684_v40  ;;  %v10103_v42 = vmax.f32 %v10102_v54, 0.0  ;;  %v6378_v28 = vunpack.c.l.bf16 %v7597_v29  ;;  %7218 = vmatprep.mubr.msk.bf16.mxu0 %vm8114_vm4, %v6213_v30  ;;  %v2616_v27 = vsel %vm669_vm0, %v2614_v48, %v10095_v1 }
 0x191   : > { %v2495_v39 = vmax.f32 %v2447_v22, 0.0  ;;  %v2706_v49 = vpack.c.bf16 %v2618_v60, %v2616_v27  ;;  %v4815_v44 = vrot.slane %v4731_v32, 2  ;;  %v2623_v36 = vsel %vm669_vm0, %v2620_v35, %v2622_v37 }
 0x192   : > { %v4823_v12 = vrot.slane %v10103_v42, 2  ;;  %v4716_v17 = vadd.f32 %v9339_v25, %v4700_v4  ;;  %v2402_v53 = vmul.f32 %v9312_v43, %v6378_v28  ;;  %v2625_v2 = vrot.slane %v10104_v20, 1 }
 0x193   : > { %v2619_v16 = vrot.slane %v2495_v39, 1  ;;  %7027 = vmatmul.mubr.bf16.gmra.mrb[24].mxu1 %v2706_v49  ;;  %v4817_v0 = vsel %vm1375_vm1, %v4815_v44, %v4816_v46  ;;  %v10106_v7 = vmax.f32 %v10105_v24, 0.0 }
 0x194   : > { %v4824_v6 = vsel %vm1375_vm1, %v4821_v47, %v4823_v12  ;;  %v4732_v62 = vmax.f32 %v4716_v17, 0.0  ;;  %v6216_v55 = vpack.c.bf16 %v4819_v34, %v4817_v0  ;;  %v2450_v56 = vadd.f32 %v9339_v25, %v2402_v53 }
 0x195   : > { %v2621_v63 = vsel %vm669_vm0, %v2619_v16, %v2620_v35  ;;  %v2627_v57 = vrot.slane %v10106_v7, 1 }
 0x196   : > { %v2707_v33 = vpack.c.bf16 %v2623_v36, %v2621_v63  ;;  %v4820_v41 = vrot.slane %v4732_v62, 2  ;;  %7219 = vmatmul.mubr.msk.bf16.gmra.mrb[24].mxu0 %vm8114_vm4, %v6216_v55  ;;  %v2498_v43 = vmax.f32 %v2450_v56, 0.0 }
 0x197   : > { %v2628_v46 = vsel %vm669_vm0, %v2625_v2, %v2627_v57 }
 0x198   : > { %7030 = vmatprep.mubr.bf16.mxu1 %v2707_v33  ;;  %v4822_v58 = vsel %vm1375_vm1, %v4820_v41, %v4821_v47  ;;  %v2624_v51 = vrot.slane %v2498_v43, 1 }
 0x199   : > { %v6219_v18 = vpack.c.bf16 %v4824_v6, %v4822_v58 }
 0x19a   : > { %v2626_v25 = vsel %vm669_vm0, %v2624_v51, %v2625_v2 }
 0x19b   : > { %7222 = vmatprep.mubr.msk.bf16.mxu0 %vm8114_vm4, %v6219_v18  ;;  %v2708_v50 = vpack.c.bf16 %v2628_v46, %v2626_v25 }
 0x19d   : > { %7031 = vmatmul.mubr.bf16.gmra.mrb[28].mxu1 %v2708_v50 }
 0x19e   : > { %7223 = vmatmul.mubr.bf16.gmra.mrb[28].mxu0 %v9995_v19 }
 0x1fb   : > { %v6956_v1 = vpop.f32.mrb[0].mxu1 }
 0x1fc   : > { %v2102_v60 = vpop.f32.mrb[1].mxu1 }
 0x1fd   : > { %v6957_v26 = vpop.f32.mrb[2].mxu1 }
 0x1fe   : > { %v2105_v10 = vpop.f32.mrb[3].mxu1 }
 0x209   : > { %v6960_v38 = vpop.f32.mrb[4].mxu1 }
 0x20a   : > { %v2118_v8 = vpop.f32.mrb[5].mxu1 }
 0x20b   : > { %v6961_v59 = vpop.f32.mrb[6].mxu1 }
 0x20c   : > { %v2121_v14 = vpop.f32.mrb[7].mxu1 }
 0x216   : > { %v6964_v23 = vpop.f32.mrb[8].mxu1 }
 0x217   : > { %v2134_v21 = vpop.f32.mrb[9].mxu1 }
 0x218   : > { %v6965_v3 = vpop.f32.mrb[10].mxu1 }
 0x219   : > { %v2137_v52 = vpop.f32.mrb[11].mxu1 }
 0x224   : > { %v9798_v45 = vpop.f32.mrb[12].mxu1 }
 0x225   : > { %v9800_v35 = vpop.f32.mrb[13].mxu1 }
 0x226   : > { %v9802_v11 = vpop.f32.mrb[14].mxu1 }
 0x227   : > { %v9804_v19 = vpop.f32.mrb[15].mxu1 }
 0x230   : > { %v7196_v9 = vpop.f32.mrb[0].mxu0 }
 0x231   : > { %v7242_v34 = vadd.f32 %v7196_v9, %v6956_v1  ;;  %v5009_v15 = vpop.f32.mrb[1].mxu0 }
 0x232   : > { %v7243_v5 = vadd.f32 %v5009_v15, %v2102_v60  ;;  %v7197_v13 = vpop.f32.mrb[2].mxu0 }
 0x233   : > { %v7244_v31 = vadd.f32 %v7197_v13, %v6957_v26  ;;  %v5012_v61 = vpop.f32.mrb[3].mxu0  ;;  %v5202_v32 = vmul.f32 %v7242_v34, %v7242_v34 }
 0x234   : > { %v7245_v37 = vadd.f32 %v5012_v61, %v2105_v10  ;;  %v5200_v30 = vmul.f32 %v7243_v5, %v7243_v5 }
 0x235   : > { %v6452_v40 = vpack.c.bf16 %v7244_v31, %v7242_v34  ;;  %v5203_v28 = vmul.f32 %v7244_v31, %v7244_v31 }
 0x236   : > { %v5168_v48 = vadd.f32 %v7245_v37, %v7243_v5  ;;  %v5201_v22 = vmul.f32 %v7245_v37, %v7245_v37  ;;  %v6447_v47 = vpack.c.bf16 %v7245_v37, %v7243_v5 }
 0x237   : > { %6563 = vst [vmem:[%s9810_s12 + $0x8] sm:$0xff] %v6452_v40  }
 0x238   : > { %v5169_v4 = vadd.f32 %v7242_v34, %v5168_v48  ;;  %v5232_v54 = vadd.f32 %v5201_v22, %v5200_v30  ;;  %6448 = vst [vmem:[%s9810_s12] sm:$0xff] %v6447_v47   ;;  %v7200_v42 = vpop.f32.mrb[4].mxu0 }
 0x239   : > { %v7246_v12 = vadd.f32 %v7200_v42, %v6960_v38  ;;  %v5025_v29 = vpop.f32.mrb[5].mxu0 }
 0x23a   : > { %v5233_v27 = vadd.f32 %v5232_v54, %v5202_v32  ;;  %v7247_v39 = vadd.f32 %v5025_v29, %v2118_v8  ;;  %v5170_v49 = vadd.f32 %v7244_v31, %v5169_v4  ;;  %v7201_v44 = vpop.f32.mrb[6].mxu0 }
 0x23b   : > { %v7248_v17 = vadd.f32 %v7201_v44, %v6961_v59  ;;  %v5028_v6 = vpop.f32.mrb[7].mxu0  ;;  %v5206_v56 = vmul.f32 %v7246_v12, %v7246_v12 }
 0x23c   : > { %v5171_v16 = vadd.f32 %v7247_v39, %v5170_v49  ;;  %v5204_v36 = vmul.f32 %v7247_v39, %v7247_v39  ;;  %v5234_v53 = vadd.f32 %v5233_v27, %v5203_v28  ;;  %v7249_v0 = vadd.f32 %v5028_v6, %v2121_v14 }
 0x23d   : > { %v6462_v62 = vpack.c.bf16 %v7248_v17, %v7246_v12  ;;  %v5207_v43 = vmul.f32 %v7248_v17, %v7248_v17 }
 0x23e   : > { %v5235_v20 = vadd.f32 %v5234_v53, %v5204_v36  ;;  %v5172_v2 = vadd.f32 %v7249_v0, %v5171_v16  ;;  %v5205_v55 = vmul.f32 %v7249_v0, %v7249_v0  ;;  %v6457_v63 = vpack.c.bf16 %v7249_v0, %v7247_v39 }
 0x23f   : > { %6565 = vst [vmem:[%s9810_s12 + $0x18] sm:$0xff] %v6462_v62  }
 0x240   : > { %v5173_v24 = vadd.f32 %v7246_v12, %v5172_v2  ;;  %v5236_v7 = vadd.f32 %v5235_v20, %v5205_v55  ;;  %6564 = vst [vmem:[%s9810_s12 + $0x10] sm:$0xff] %v6457_v63   ;;  %v7204_v57 = vpop.f32.mrb[8].mxu0 }
 0x241   : > { %v7250_v33 = vadd.f32 %v7204_v57, %v6964_v23  ;;  %v5041_v41 = vpop.f32.mrb[9].mxu0 }
 0x242   : > { %v5237_v58 = vadd.f32 %v5236_v7, %v5206_v56  ;;  %v7251_v18 = vadd.f32 %v5041_v41, %v2134_v21  ;;  %v5174_v51 = vadd.f32 %v7248_v17, %v5173_v24  ;;  %v7205_v46 = vpop.f32.mrb[10].mxu0 }
 0x243   : > { %v7252_v25 = vadd.f32 %v7205_v46, %v6965_v3  ;;  %v5044_v50 = vpop.f32.mrb[11].mxu0  ;;  %v5210_v23 = vmul.f32 %v7250_v33, %v7250_v33 }
 0x244   : > { %v5175_v1 = vadd.f32 %v7251_v18, %v5174_v51  ;;  %v5208_v60 = vmul.f32 %v7251_v18, %v7251_v18  ;;  %v5238_v26 = vadd.f32 %v5237_v58, %v5207_v43  ;;  %v7253_v10 = vadd.f32 %v5044_v50, %v2137_v52 }
 0x245   : > { %v6472_v38 = vpack.c.bf16 %v7252_v25, %v7250_v33  ;;  %v5211_v3 = vmul.f32 %v7252_v25, %v7252_v25 }
 0x246   : > { %v5239_v8 = vadd.f32 %v5238_v26, %v5208_v60  ;;  %v5176_v59 = vadd.f32 %v7253_v10, %v5175_v1  ;;  %v5209_v14 = vmul.f32 %v7253_v10, %v7253_v10  ;;  %v6467_v9 = vpack.c.bf16 %v7253_v10, %v7251_v18 }
 0x247   : > { %6567 = vst [vmem:[%s9810_s12 + $0x28] sm:$0xff] %v6472_v38  }
 0x248   : > { %v5177_v34 = vadd.f32 %v7250_v33, %v5176_v59  ;;  %v5240_v15 = vadd.f32 %v5239_v8, %v5209_v14  ;;  %6566 = vst [vmem:[%s9810_s12 + $0x20] sm:$0xff] %v6467_v9  }
 0x249   : > { %v7208_v21 = vpop.f32.mrb[12].mxu0 }
 0x24a   : > { %v7254_v5 = vadd.f32 %v7208_v21, %v9798_v45  ;;  %v5057_v13 = vpop.f32.mrb[13].mxu0  ;;  %v5241_v31 = vadd.f32 %v5240_v15, %v5210_v23  ;;  %v5178_v37 = vadd.f32 %v7252_v25, %v5177_v34 }
 0x24b   : > { %v7255_v61 = vadd.f32 %v5057_v13, %v9800_v35  ;;  %v7209_v52 = vpop.f32.mrb[14].mxu0 }
 0x24c   : > { %v7256_v40 = vadd.f32 %v7209_v52, %v9802_v11  ;;  %v5060_v30 = vpop.f32.mrb[15].mxu0  ;;  %v5242_v47 = vadd.f32 %v5241_v31, %v5211_v3  ;;  %v5214_v39 = vmul.f32 %v7254_v5, %v7254_v5 }
 0x24d   : > { %v5179_v48 = vadd.f32 %v7255_v61, %v5178_v37  ;;  %v5212_v22 = vmul.f32 %v7255_v61, %v7255_v61  ;;  %v7257_v32 = vadd.f32 %v5060_v30, %v9804_v19 }
 0x24e   : > { %v7020_v4 = vpop.f32.mrb[16].mxu1  ;;  %v6482_v54 = vpack.c.bf16 %v7256_v40, %v7254_v5  ;;  %v5215_v16 = vmul.f32 %v7256_v40, %v7256_v40 }
 0x24f   : > { %v2872_v45 = vpop.f32.mrb[17].mxu1  ;;  %v5243_v42 = vadd.f32 %v5242_v47, %v5212_v22  ;;  %v5180_v12 = vadd.f32 %v7257_v32, %v5179_v48  ;;  %v5213_v29 = vmul.f32 %v7257_v32, %v7257_v32  ;;  %v6477_v28 = vpack.c.bf16 %v7257_v32, %v7255_v61 }
 0x250   : > { %v7021_v35 = vpop.f32.mrb[18].mxu1  ;;  %6569 = vst [vmem:[%s9810_s12 + $0x38] sm:$0xff] %v6482_v54  }
 0x251   : > { %v2875_v27 = vpop.f32.mrb[19].mxu1  ;;  %v5181_v49 = vadd.f32 %v7254_v5, %v5180_v12  ;;  %v5244_v11 = vadd.f32 %v5243_v42, %v5213_v29  ;;  %6568 = vst [vmem:[%s9810_s12 + $0x30] sm:$0xff] %v6477_v28  }
 0x252   : > { %v7212_v44 = vpop.f32.mrb[16].mxu0 }
 0x253   : > { %v7258_v17 = vadd.f32 %v7212_v44, %v7020_v4  ;;  %v5073_v6 = vpop.f32.mrb[17].mxu0  ;;  %v5245_v36 = vadd.f32 %v5244_v11, %v5214_v39  ;;  %v5182_v53 = vadd.f32 %v7256_v40, %v5181_v49 }
 0x254   : > { %v7259_v19 = vadd.f32 %v5073_v6, %v2872_v45  ;;  %v7213_v0 = vpop.f32.mrb[18].mxu0 }
 0x255   : > { %v7260_v62 = vadd.f32 %v7213_v0, %v7021_v35  ;;  %v5076_v20 = vpop.f32.mrb[19].mxu0  ;;  %v5246_v63 = vadd.f32 %v5245_v36, %v5215_v16  ;;  %v5218_v51 = vmul.f32 %v7258_v17, %v7258_v17 }
 0x256   : > { %v5183_v2 = vadd.f32 %v7259_v19, %v5182_v53  ;;  %v5216_v55 = vmul.f32 %v7259_v19, %v7259_v19  ;;  %v7261_v56 = vadd.f32 %v5076_v20, %v2875_v27 }
 0x257   : > { %v6492_v24 = vpack.c.bf16 %v7260_v62, %v7258_v17  ;;  %v5219_v10 = vmul.f32 %v7260_v62, %v7260_v62 }
 0x258   : > { %v5247_v57 = vadd.f32 %v5246_v63, %v5216_v55  ;;  %v5184_v33 = vadd.f32 %v7261_v56, %v5183_v2  ;;  %v5217_v41 = vmul.f32 %v7261_v56, %v7261_v56  ;;  %v6487_v43 = vpack.c.bf16 %v7261_v56, %v7259_v19 }
 0x259   : > { %6571 = vst [vmem:[%s9810_s12 + $0x48] sm:$0xff] %v6492_v24  }
 0x25a   : > { %v5185_v46 = vadd.f32 %v7258_v17, %v5184_v33  ;;  %v5248_v25 = vadd.f32 %v5247_v57, %v5217_v41  ;;  %6570 = vst [vmem:[%s9810_s12 + $0x40] sm:$0xff] %v6487_v43  }
 0x25b   : > { %v7024_v7 = vpop.f32.mrb[20].mxu1 }
 0x25c   : > { %v2888_v58 = vpop.f32.mrb[21].mxu1  ;;  %v7216_v50 = vpop.f32.mrb[20].mxu0  ;;  %v5249_v38 = vadd.f32 %v5248_v25, %v5218_v51  ;;  %v5186_v59 = vadd.f32 %v7260_v62, %v5185_v46 }
 0x25d   : > { %v7025_v18 = vpop.f32.mrb[22].mxu1  ;;  %v7262_v60 = vadd.f32 %v7216_v50, %v7024_v7  ;;  %v5089_v26 = vpop.f32.mrb[21].mxu0 }
 0x25e   : > { %v2891_v1 = vpop.f32.mrb[23].mxu1  ;;  %v7263_v8 = vadd.f32 %v5089_v26, %v2888_v58  ;;  %v7217_v14 = vpop.f32.mrb[22].mxu0  ;;  %v5250_v21 = vadd.f32 %v5249_v38, %v5219_v10 }
 0x25f   : > { %v7264_v9 = vadd.f32 %v7217_v14, %v7025_v18  ;;  %v5092_v23 = vpop.f32.mrb[23].mxu0  ;;  %v5222_v40 = vmul.f32 %v7262_v60, %v7262_v60 }
 0x260   : > { %v5187_v34 = vadd.f32 %v7263_v8, %v5186_v59  ;;  %v5220_v15 = vmul.f32 %v7263_v8, %v7263_v8  ;;  %v7265_v5 = vadd.f32 %v5092_v23, %v2891_v1 }
 0x261   : > { %v6502_v13 = vpack.c.bf16 %v7264_v9, %v7262_v60  ;;  %v5223_v32 = vmul.f32 %v7264_v9, %v7264_v9 }
 0x262   : > { %v5251_v3 = vadd.f32 %v5250_v21, %v5220_v15  ;;  %v5188_v31 = vadd.f32 %v7265_v5, %v5187_v34  ;;  %v5221_v61 = vmul.f32 %v7265_v5, %v7265_v5  ;;  %v6497_v37 = vpack.c.bf16 %v7265_v5, %v7263_v8 }
 0x263   : > { %6573 = vst [vmem:[%s9810_s12 + $0x58] sm:$0xff] %v6502_v13  }
 0x264   : > { %v5189_v30 = vadd.f32 %v7262_v60, %v5188_v31  ;;  %v5252_v48 = vadd.f32 %v5251_v3, %v5221_v61  ;;  %6572 = vst [vmem:[%s9810_s12 + $0x50] sm:$0xff] %v6497_v37  }
 0x266   : > { %v7028_v52 = vpop.f32.mrb[24].mxu1  ;;  %v5253_v4 = vadd.f32 %v5252_v48, %v5222_v40  ;;  %v5190_v45 = vadd.f32 %v7264_v9, %v5189_v30 }
 0x267   : > { %v2904_v22 = vpop.f32.mrb[25].mxu1 }
 0x268   : > { %v7029_v47 = vpop.f32.mrb[26].mxu1  ;;  %v5254_v35 = vadd.f32 %v5253_v4, %v5223_v32 }
 0x269   : > { %v7220_v54 = vpop.f32.mrb[24].mxu0  ;;  %v2907_v42 = vpop.f32.mrb[27].mxu1 }
 0x26a   : > { %v7266_v12 = vadd.f32 %v7220_v54, %v7028_v52  ;;  %v5105_v29 = vpop.f32.mrb[25].mxu0 }
 0x26b   : > { %v7267_v28 = vadd.f32 %v5105_v29, %v2904_v22  ;;  %v7221_v27 = vpop.f32.mrb[26].mxu0 }
 0x26c   : > { %v7268_v39 = vadd.f32 %v7221_v27, %v7029_v47  ;;  %v5108_v49 = vpop.f32.mrb[27].mxu0  ;;  %v5226_v62 = vmul.f32 %v7266_v12, %v7266_v12 }
 0x26d   : > { %v5191_v11 = vadd.f32 %v7267_v28, %v5190_v45  ;;  %v5224_v44 = vmul.f32 %v7267_v28, %v7267_v28  ;;  %v7269_v17 = vadd.f32 %v5108_v49, %v2907_v42 }
 0x26e   : > { %v6512_v6 = vpack.c.bf16 %v7268_v39, %v7266_v12  ;;  %v5227_v57 = vmul.f32 %v7268_v39, %v7268_v39 }
 0x26f   : > { %v5255_v16 = vadd.f32 %v5254_v35, %v5224_v44  ;;  %v5192_v36 = vadd.f32 %v7269_v17, %v5191_v11  ;;  %v5225_v19 = vmul.f32 %v7269_v17, %v7269_v17  ;;  %v6507_v53 = vpack.c.bf16 %v7269_v17, %v7267_v28 }
 0x270   : > { %6575 = vst [vmem:[%s9810_s12 + $0x68] sm:$0xff] %v6512_v6   ;;  %v7032_v0 = vpop.f32.mrb[28].mxu1 }
 0x271   : > { %v5193_v20 = vadd.f32 %v7266_v12, %v5192_v36  ;;  %v5256_v2 = vadd.f32 %v5255_v16, %v5225_v19  ;;  %6574 = vst [vmem:[%s9810_s12 + $0x60] sm:$0xff] %v6507_v53   ;;  %v7224_v55 = vpop.f32.mrb[28].mxu0  ;;  %v2920_v63 = vpop.f32.mrb[29].mxu1 }
 0x272   : > { %v7270_v56 = vadd.f32 %v7224_v55, %v7032_v0  ;;  %v5121_v24 = vpop.f32.mrb[29].mxu0  ;;  %v7033_v7 = vpop.f32.mrb[30].mxu1 }
 0x273   : > { %v5257_v33 = vadd.f32 %v5256_v2, %v5226_v62  ;;  %v7271_v41 = vadd.f32 %v5121_v24, %v2920_v63  ;;  %v5194_v43 = vadd.f32 %v7268_v39, %v5193_v20  ;;  %v7225_v58 = vpop.f32.mrb[30].mxu0  ;;  %v2923_v18 = vpop.f32.mrb[31].mxu1 }
 0x274   : > { %v7272_v51 = vadd.f32 %v7225_v58, %v7033_v7  ;;  %v5124_v46 = vpop.f32.mrb[31].mxu0  ;;  %v5230_v14 = vmul.f32 %v7270_v56, %v7270_v56 }
 0x275   : > { %v5195_v25 = vadd.f32 %v7271_v41, %v5194_v43  ;;  %v5228_v50 = vmul.f32 %v7271_v41, %v7271_v41  ;;  %v5258_v1 = vadd.f32 %v5257_v33, %v5227_v57  ;;  %v7273_v60 = vadd.f32 %v5124_v46, %v2923_v18 }
 0x276   : > { %v6522_v26 = vpack.c.bf16 %v7272_v51, %v7270_v56  ;;  %v5231_v34 = vmul.f32 %v7272_v51, %v7272_v51 }
 0x277   : > { %v5259_v10 = vadd.f32 %v5258_v1, %v5228_v50  ;;  %v5196_v38 = vadd.f32 %v7273_v60, %v5195_v25  ;;  %v5229_v8 = vmul.f32 %v7273_v60, %v7273_v60  ;;  %v6517_v59 = vpack.c.bf16 %v7273_v60, %v7271_v41 }
 0x278   : > { %6577 = vst [vmem:[%s9810_s12 + $0x78] sm:$0xff] %v6522_v26  }
 0x279   : > { %v5197_v9 = vadd.f32 %v7270_v56, %v5196_v38  ;;  %v5260_v23 = vadd.f32 %v5259_v10, %v5229_v8  ;;  %6576 = vst [vmem:[%s9810_s12 + $0x70] sm:$0xff] %v6517_v59  }
 0x27b   : > { %v5198_v15 = vadd.f32 %v7272_v51, %v5197_v9  ;;  %v5261_v21 = vadd.f32 %v5260_v23, %v5230_v14 }
 0x27d   : > { %5199 = vst [vmem:[%s268_s16] sm:$0xff] %v5198_v15  ;;  %v5262_v5 = vadd.f32 %v5261_v21, %v5231_v34 }
 0x27f   : > { %5263 = vst [vmem:[%s272_s19] sm:$0xff] %v5262_v5 }
 0x280 PF: > { %s17_s21 = sadd.s32 1, %s7604_s21  }
 0x281   : > { %p14_p4 = scmp.ge.s32.totalorder %s17_s21, 4  }
 0x283   :  { %16 = sbr.rel (!%p14_p4) target bundleno = 1 (0x1), region = 100 }

</bundles_post_ra>
